<compile_context>
chip_gen: v7x
topology: tpu7x:2x2x1
jax: 0.10.0
libtpu: 0.0.40
codegen_flags: <defaults>
</compile_context>

<pallas_src>
import functools

import jax
import jax.numpy as jnp
from jax import lax
from jax.experimental import pallas as pl
from jax.experimental.pallas import tpu as pltpu


VMEM_LIMIT = 32 * 1024 * 1024          # fits v5e/v6e (128 MiB) and v7x (64 MiB per TC)
MATMUL_DTYPE = jnp.bfloat16            # MXU-native on v5e/v6e/v7x; accumulation stays f32
STREAM_DTYPE = jnp.bfloat16            # dtype of the large HBM-streamed tensors (gh3T, C)


def _graphs_per_step(n, max_b=8):
    """Largest divisor of n that is <= max_b (graphs batched per grid step)."""
    for b_try in range(min(n, max_b), 0, -1):
        if n % b_try == 0:
            return b_try
    return 1


# ----------------------------------------------------------------------------
# Fused, row-tiled dense stack (MLP) kernel: weights resident, intermediates in VMEM
# ----------------------------------------------------------------------------

def _dense_stack_kernel(*refs, acts, has_scale):
    o_ref = refs[-1]
    in_refs = refs[:-1]
    h = in_refs[0][...].astype(jnp.float32)
    idx = 1
    for act in acts:
        w = in_refs[idx][...]
        b = in_refs[idx + 1][...]
        idx += 2
        h = jnp.dot(h.astype(MATMUL_DTYPE), w.astype(MATMUL_DTYPE),
                    preferred_element_type=jnp.float32) + b
        if act == "relu":
            h = jnp.maximum(h, 0.0)
    if has_scale:
        h = h * in_refs[idx][...]
    o_ref[...] = h.astype(o_ref.dtype)


def dense_stack(x, weights, biases, acts, scale=None, tile_m=1024,
                out_dtype=jnp.float32):
    """Apply a sequence of (W, b, act) layers to rows of x, tiled over rows.

    Weights/biases use constant index maps (resident in VMEM across the grid);
    only the row tiles of x / scale / output are streamed from HBM.
    """
    M, K = x.shape
    n_out = weights[-1].shape[1]
    TM = M if M <= tile_m else tile_m

    args = [x]
    in_specs = [pl.BlockSpec((TM, K), lambda i: (i, 0))]
    for w, b in zip(weights, biases):
        args.append(w)
        args.append(b.reshape(1, -1).astype(jnp.float32))
        in_specs.append(pl.BlockSpec(w.shape, lambda i: (0, 0)))
        in_specs.append(pl.BlockSpec((1, w.shape[1]), lambda i: (0, 0)))
    if scale is not None:
        args.append(scale)
        in_specs.append(pl.BlockSpec((TM, 1), lambda i: (i, 0)))

    return pl.pallas_call(
        functools.partial(_dense_stack_kernel, acts=tuple(acts),
                          has_scale=scale is not None),
        out_shape=jax.ShapeDtypeStruct((M, n_out), out_dtype),
        grid=(pl.cdiv(M, TM),),
        in_specs=in_specs,
        out_specs=pl.BlockSpec((TM, n_out), lambda i: (i, 0)),
        compiler_params=pltpu.CompilerParams(
            dimension_semantics=("parallel",),
            vmem_limit_bytes=VMEM_LIMIT),
    )(*args)


# ----------------------------------------------------------------------------
# Fused message-aggregation + GRU-update kernel (B graphs per grid step)
# ----------------------------------------------------------------------------

def _msg_gru_kernel(gh3t_ref, c_ref, gT_ref, h_ref, mask_ref,
                    b3t_ref, wi_ref, wh_ref, bi_ref, bh_ref, o_ref, *, hss):
    B, V, H = h_ref.shape
    mss = c_ref.shape[2]

    h = h_ref[...]                                   # (B, V, H) f32
    h_flat = h.reshape(B * V, H)                     # leading-dim collapse (layout-safe)
    h_mm = h_flat.astype(MATMUL_DTYPE)

    # m1[b,w,o] = sum_{v,k} g[b,v,w]*h3[b,v,w,k] * C[b, v*E3+k, o]   (batched MXU matmul)
    m1 = jnp.einsum("bwk,bko->bwo",
                    gh3t_ref[...].astype(MATMUL_DTYPE),
                    c_ref[...].astype(MATMUL_DTYPE),
                    preferred_element_type=jnp.float32)              # (B, V, mss)

    # d[b,v,o] = b3_matrix @ h_t[b,v] ;  m2[b,w,o] = sum_v g[b,v,w] d[b,v,o]
    d = jnp.dot(h_mm, b3t_ref[...].astype(MATMUL_DTYPE),
                preferred_element_type=jnp.float32)                  # (B*V, mss)
    m2 = jnp.einsum("bwv,bvo->bwo",
                    gT_ref[...].astype(MATMUL_DTYPE),
                    d.reshape(B, V, mss).astype(MATMUL_DTYPE),
                    preferred_element_type=jnp.float32)              # (B, V, mss)

    m = (m1 + m2).reshape(B * V, mss)

    # Packed single-step GRU (PyTorch nn.GRU semantics): 2 matmuls instead of 6.
    gi = jnp.dot(m.astype(MATMUL_DTYPE), wi_ref[...].astype(MATMUL_DTYPE),
                 preferred_element_type=jnp.float32) + bi_ref[...]   # (B*V, 3H)
    gh = jnp.dot(h_mm, wh_ref[...].astype(MATMUL_DTYPE),
                 preferred_element_type=jnp.float32) + bh_ref[...]   # (B*V, 3H)
    Hs = hss
    r = jax.nn.sigmoid(gi[:, 0:Hs] + gh[:, 0:Hs])
    z = jax.nn.sigmoid(gi[:, Hs:2 * Hs] + gh[:, Hs:2 * Hs])
    n = jnp.tanh(gi[:, 2 * Hs:3 * Hs] + r * gh[:, 2 * Hs:3 * Hs])
    h_new = (1.0 - z) * n + z * h_flat
    h_new = h_new * mask_ref[...].reshape(B * V, 1)
    o_ref[...] = h_new.reshape(B, V, H).astype(o_ref.dtype)


def message_gru_layer(gh3T, C, gT, h_t, mask, b3rT, Wi, Wh, bi, bh, graphs_per_step):
    N, V, H = h_t.shape
    KE = gh3T.shape[2]                 # V * 128
    mss = C.shape[2]
    B = graphs_per_step
    in_specs = [
        pl.BlockSpec((B, V, KE), lambda n: (n, 0, 0)),
        pl.BlockSpec((B, KE, mss), lambda n: (n, 0, 0)),
        pl.BlockSpec((B, V, V), lambda n: (n, 0, 0)),
        pl.BlockSpec((B, V, H), lambda n: (n, 0, 0)),
        pl.BlockSpec((B, V, 1), lambda n: (n, 0, 0)),
        pl.BlockSpec(b3rT.shape, lambda n: (0, 0)),
        pl.BlockSpec(Wi.shape, lambda n: (0, 0)),
        pl.BlockSpec(Wh.shape, lambda n: (0, 0)),
        pl.BlockSpec(bi.shape, lambda n: (0, 0)),
        pl.BlockSpec(bh.shape, lambda n: (0, 0)),
    ]
    return pl.pallas_call(
        functools.partial(_msg_gru_kernel, hss=H),
        out_shape=jax.ShapeDtypeStruct((N, V, H), jnp.float32),
        grid=(N // B,),
        in_specs=in_specs,
        out_specs=pl.BlockSpec((B, V, H), lambda n: (n, 0, 0)),
        compiler_params=pltpu.CompilerParams(
            dimension_semantics=("parallel",),
            vmem_limit_bytes=VMEM_LIMIT),
    )(gh3T, C, gT, h_t, mask, b3rT, Wi, Wh, bi, bh)


# ----------------------------------------------------------------------------
# Single fused readout kernel: all 4 heads (i-net, j-net, sigmoid gate, mask, node-sum)
# ----------------------------------------------------------------------------

_W_PER_HEAD = 17   # [w0a, w0b, b0, w1, b1, w2, b2, w3, b3] (i) + [w0..b3] (j)


def _readout4_kernel(*refs, n_heads):
    h0_ref, hT_ref, mask_ref = refs[0], refs[1], refs[2]
    w_refs = refs[3:3 + _W_PER_HEAD * n_heads]
    out_refs = refs[3 + _W_PER_HEAD * n_heads:]
    B, V, H = h0_ref.shape

    h0 = h0_ref[...].reshape(B * V, H).astype(MATMUL_DTYPE)
    hT = hT_ref[...].reshape(B * V, H).astype(MATMUL_DTYPE)
    mask = mask_ref[...].reshape(B * V, 1)

    # Per-graph node-sum expressed as one small selector matmul (MXU, no reshapes).
    b_idx = lax.broadcasted_iota(jnp.int32, (B, B * V), 0)
    r_idx = lax.broadcasted_iota(jnp.int32, (B, B * V), 1)
    sel = jnp.logical_and(r_idx >= b_idx * V, r_idx < (b_idx + 1) * V)
    sel = sel.astype(jnp.float32)                                    # (B, B*V)

    def dense(x, w_ref, b_ref, relu):
        y = jnp.dot(x.astype(MATMUL_DTYPE), w_ref[...],
                    preferred_element_type=jnp.float32) + b_ref[...]
        return jnp.maximum(y, 0.0) if relu else y

    for hd in range(n_heads):
        w = w_refs[_W_PER_HEAD * hd:_W_PER_HEAD * (hd + 1)]
        # i-net on [h0 ; hT], first layer split into two matmuls (no concat needed).
        x = (jnp.dot(h0, w[0][...], preferred_element_type=jnp.float32)
             + jnp.dot(hT, w[1][...], preferred_element_type=jnp.float32)
             + w[2][...])
        x = jnp.maximum(x, 0.0)
        x = dense(x, w[3], w[4], True)
        x = dense(x, w[5], w[6], True)
        i_out = dense(x, w[7], w[8], False)
        # j-net on hT.
        y = dense(hT, w[9], w[10], True)
        y = dense(y, w[11], w[12], True)
        y = dense(y, w[13], w[14], True)
        j_out = dense(y, w[15], w[16], False)

        gated = jax.nn.sigmoid(i_out) * j_out * mask                 # (B*V, T)
        res = jnp.dot(sel, gated, preferred_element_type=jnp.float32)  # (B, T)
        out_refs[hd][:, 0, :] = res.astype(out_refs[hd].dtype)


def readout4(h0, hT, mask, head_params, graphs_per_step):
    N, V, H = hT.shape
    B = graphs_per_step
    n_heads = len(head_params)

    def Wc(a):
        return a.astype(MATMUL_DTYPE)

    def Bz(a):
        return a.reshape(1, -1).astype(jnp.float32)

    data_args = [h0, hT, mask]
    data_specs = [
        pl.BlockSpec((B, V, H), lambda n: (n, 0, 0)),
        pl.BlockSpec((B, V, H), lambda n: (n, 0, 0)),
        pl.BlockSpec((B, V, 1), lambda n: (n, 0, 0)),
    ]
    w_args, w_specs, out_shapes, out_specs, targets = [], [], [], [], []
    for pr in head_params:
        pi, pj = pr["i"], pr["j"]
        target = pi["w3"].shape[1]
        targets.append(target)
        w0 = pi["w0"]
        head_ws = [Wc(w0[:H, :]), Wc(w0[H:, :]), Bz(pi["b0"]),
                   Wc(pi["w1"]), Bz(pi["b1"]), Wc(pi["w2"]), Bz(pi["b2"]),
                   Wc(pi["w3"]), Bz(pi["b3"]),
                   Wc(pj["w0"]), Bz(pj["b0"]), Wc(pj["w1"]), Bz(pj["b1"]),
                   Wc(pj["w2"]), Bz(pj["b2"]), Wc(pj["w3"]), Bz(pj["b3"])]
        w_args += head_ws
        w_specs += [pl.BlockSpec(a.shape, lambda n: (0, 0)) for a in head_ws]
        out_shapes.append(jax.ShapeDtypeStruct((N, 1, target), jnp.float32))
        out_specs.append(pl.BlockSpec((B, 1, target), lambda n: (n, 0, 0)))

    outs = pl.pallas_call(
        functools.partial(_readout4_kernel, n_heads=n_heads),
        out_shape=tuple(out_shapes),
        grid=(N // B,),
        in_specs=data_specs + w_specs,
        out_specs=tuple(out_specs),
        compiler_params=pltpu.CompilerParams(
            dimension_semantics=("parallel",),
            vmem_limit_bytes=VMEM_LIMIT),
    )(*(data_args + w_args))
    return [o.reshape(N, t) for o, t in zip(outs, targets)]


# ----------------------------------------------------------------------------
# Deterministic parameter construction (shapes per the module's __init__)
# ----------------------------------------------------------------------------

def _init_nnet(key, n_in, n_out, hidden=(128, 256, 128)):
    dims = (n_in,) + hidden + (n_out,)
    ks = jax.random.split(key, 4)
    p = {}
    for idx in range(4):
        fan_in = dims[idx]
        p[f"w{idx}"] = (jax.random.normal(ks[idx], (dims[idx], dims[idx + 1]),
                                          jnp.float32) / jnp.sqrt(float(fan_in)))
        p[f"b{idx}"] = jnp.zeros((dims[idx + 1],), jnp.float32)
    return p


def _init_gru(key, in_m, H):
    ks = jax.random.split(key, 6)
    scale = 1.0 / jnp.sqrt(float(H))
    p = {}
    for (name, k, fan) in [("ir", ks[0], in_m), ("iz", ks[1], in_m), ("in", ks[2], in_m),
                           ("hr", ks[3], H), ("hz", ks[4], H), ("hn", ks[5], H)]:
        p[f"w_{name}"] = jax.random.normal(k, (fan, H), jnp.float32) * scale
        p[f"b_{name}"] = jnp.zeros((H,), jnp.float32)
    return p


def init_params(key, node_feat, edge_feat, hss, mss, l_target):
    ks = jax.random.split(key, 10)
    params = {}
    # MessageFunction('mpnn'): NNet(edge_feat -> mss*hss) producing per-edge matrices.
    params["edge_nn"] = _init_nnet(ks[0], edge_feat, mss * hss)
    # UpdateFunction('mpnn'): GRU(in_m=mss, out=hss).
    params["gru"] = _init_gru(ks[1], mss, hss)
    # ReadoutFunction('mpnn') heads: i-net (2*hss -> target), j-net (hss -> target).
    params["r"] = {"i": _init_nnet(ks[2], 2 * hss, l_target), "j": _init_nnet(ks[3], hss, l_target)}
    params["n_atoms"] = {"i": _init_nnet(ks[4], 2 * hss, 7), "j": _init_nnet(ks[5], hss, 7)}
    params["n_electrons"] = {"i": _init_nnet(ks[6], 2 * hss, 7), "j": _init_nnet(ks[7], hss, 7)}
    params["pdf"] = {"i": _init_nnet(ks[8], 2 * hss, 1), "j": _init_nnet(ks[9], hss, 1)}
    return params


# ----------------------------------------------------------------------------
# MPNN forward (default messaging phase, regression, no hidden-state return)
# ----------------------------------------------------------------------------

def mpnn_forward(params, g, h_in, e, b, *, n_layers=3):
    del b  # bond one-hot `b`, valence_alpha and bond_coef are dead under valence_informed='default'
    N, V, feat_n = h_in.shape
    H = params["gru"]["w_hr"].shape[0]           # hidden_state_size
    Hm = params["gru"]["w_ir"].shape[0]          # message_size
    E3 = params["edge_nn"]["w3"].shape[0]        # penultimate edge-NN width (128)

    h_in = h_in.astype(jnp.float32)
    g = g.astype(jnp.float32)
    e = e.astype(jnp.float32)

    Bstep = _graphs_per_step(N)                  # graphs per grid step (fills the MXU)

    # Pad node features with zeros up to hidden_state_size; node mask removes virtual nodes.
    h0 = jnp.concatenate(
        [h_in, jnp.zeros((N, V, H - feat_n), jnp.float32)], axis=2)
    node_mask = (jnp.sum(h_in, axis=2, keepdims=True) > 0).astype(jnp.float32)  # (N, V, 1)

    # --- Edge network (once per forward), factored.  Feeding e in (n, w, v) row order makes
    # the row-tiled MLP kernel emit the aggregation-ready layout
    #   gh3T[n, w, v*E3 + k] = g[n,v,w] * relu-MLP_3(e[n,v,w])[k]
    # directly, so no 128-wide transpose is needed (only the 5-wide e / tiny g are transposed).
    # The mss*hss-wide per-edge matrices A are never built.
    enn = params["edge_nn"]
    eT_flat = jnp.transpose(e, (0, 2, 1, 3)).reshape(N * V * V, e.shape[-1])
    gT = jnp.transpose(g, (0, 2, 1))                                 # gT[n, w, v] = g[n, v, w]
    gT_scale = gT.reshape(N * V * V, 1)
    gh3_flat = dense_stack(
        eT_flat,
        [enn["w0"].astype(MATMUL_DTYPE), enn["w1"].astype(MATMUL_DTYPE),
         enn["w2"].astype(MATMUL_DTYPE)],
        [enn["b0"], enn["b1"], enn["b2"]],
        acts=("relu", "relu", "relu"),
        scale=gT_scale, tile_m=1024, out_dtype=STREAM_DTYPE)         # (N*V*V, E3) bf16
    gh3T = gh3_flat.reshape(N, V, V * E3)                            # contiguous reshape (free)

    # Factorization of the last edge layer  A = reshape(h3 @ W3 + b3, (mss, hss)):
    #   m[n,v,w] = A(e) @ h[n,v] = h3[n,v,w] @ C[n,v] + d[n,v]
    W3, b3 = enn["w3"], enn["b3"]
    W3_perm = (W3.reshape(E3, Hm, H).transpose(2, 0, 1)
               .reshape(H, E3 * Hm).astype(MATMUL_DTYPE))            # (hss, E3*mss)
    b3rT = b3.reshape(Hm, H).T.astype(MATMUL_DTYPE)                  # (hss, mss)
    zeros_bias_C = jnp.zeros((E3 * Hm,), jnp.float32)

    # Packed GRU weights (PyTorch nn.GRU single-step semantics), bf16 for the MXU.
    gp = params["gru"]
    Wi = jnp.concatenate([gp["w_ir"], gp["w_iz"], gp["w_in"]], axis=1).astype(MATMUL_DTYPE)
    Wh = jnp.concatenate([gp["w_hr"], gp["w_hz"], gp["w_hn"]], axis=1).astype(MATMUL_DTYPE)
    bi = jnp.concatenate([gp["b_ir"], gp["b_iz"], gp["b_in"]]).reshape(1, -1)
    bh = jnp.concatenate([gp["b_hr"], gp["b_hz"], gp["b_hn"]]).reshape(1, -1)

    gT_b = gT.astype(STREAM_DTYPE)

    h_t = h0
    for _ in range(n_layers):
        # C[n, v*E3+k, o] = sum_i W3[k, o*hss+i] * h_t[n,v,i]  — bf16 stream, weights resident.
        # TODO(synk): fully fusing this matmul into _msg_gru_kernel needs an in-kernel
        # (V, E3*mss)->(V*E3, mss) lane-splitting reshape that Mosaic may not lower reliably;
        # kept as a separate bf16 row-tiled kernel (half the previous HBM traffic) instead.
        C_flat = dense_stack(h_t.reshape(N * V, H), [W3_perm], [zeros_bias_C],
                             acts=(None,), tile_m=256, out_dtype=STREAM_DTYPE)
        C = C_flat.reshape(N, V * E3, Hm)
        # Fused message aggregation + packed GRU update + node mask, B graphs per grid step.
        h_t = message_gru_layer(gh3T, C, gT_b, h_t, node_mask, b3rT, Wi, Wh, bi, bh, Bstep)
    hT = h_t

    # Single fused kernel for all four readout heads; h0/hT/mask are streamed once.
    heads = [params["r"], params["n_atoms"], params["n_electrons"], params["pdf"]]
    res, n_atoms, n_electrons, pdf = readout4(h0, hT, node_mask, heads, Bstep)
    # TODO(synk): the fork's ReadoutFunction second return (`nn_res`, only consumed when
    # return_hidden_states=True) is not defined in the provided code and is omitted here.
    return res, n_atoms, n_electrons, pdf


# ----------------------------------------------------------------------------
# Demo
# ----------------------------------------------------------------------------

if __name__ == "__main__":
    key = jax.random.PRNGKey(0)
    kp, kg, kh, ke, kb = jax.random.split(key, 5)

    N, V = 2, 8                  # graphs, nodes per graph
    node_feat, edge_feat = 5, 5  # in_n = [5, 5]
    H = 16                       # hidden_state_size == message_size (small for the demo)
    n_layers = 3
    l_target = 1

    params = init_params(kp, node_feat, edge_feat, H, H, l_target)

    # Adjacency g (N, V, V), no self-loops.
    adj = (jax.random.uniform(kg, (N, V, V)) > 0.5).astype(jnp.float32)
    adj = adj * (1.0 - jnp.eye(V, dtype=jnp.float32))[None]
    # Node features, with the last two nodes of each graph zeroed (virtual / padded nodes).
    h_in = jax.random.uniform(kh, (N, V, node_feat), minval=0.1, maxval=1.0)
    h_in = h_in * (jnp.arange(V) < (V - 2)).astype(jnp.float32)[None, :, None]
    # Edge features and bond one-hot (b is unused in the default messaging phase).
    e = jax.random.normal(ke, (N, V, V, edge_feat)) * 0.5
    b = jax.nn.one_hot(jax.random.randint(kb, (N, V, V), 0, 5), 5, dtype=jnp.float32)

    fwd = jax.jit(functools.partial(mpnn_forward, n_layers=n_layers))
    res, n_atoms, n_electrons, pdf = fwd(params, adj, h_in, e, b)
    jax.block_until_ready((res, n_atoms, n_electrons, pdf))

    assert res.shape == (N, l_target)
    assert n_atoms.shape == (N, 7)
    assert n_electrons.shape == (N, 7)
    assert pdf.shape == (N, 1)
    print("KERNEL_OK")
</pallas_src>

<mosaic_0001>
module attributes {stable_mosaic.version = 11 : i64} {
  func.func @_dense_stack_kernel(%arg0: i32, %arg1: memref<16x16xf32, #tpu.memory_space<vmem>>, %arg2: memref<16x2048xbf16, #tpu.memory_space<vmem>>, %arg3: memref<1x2048xf32, #tpu.memory_space<vmem>>, %arg4: memref<16x2048xbf16, #tpu.memory_space<vmem>>) attributes {dimension_semantics = [#tpu.dimension_semantics<parallel>], iteration_bounds = array<i64: 1>, scalar_prefetch = 0 : i64, scratch_operands = 0 : i64, tpu.core_type = #tpu.core_type<tc>, window_params = [{transform_indices = @transform_0, window_bounds = array<i64: 16, 16>}, {pipeline_mode = #tpu.pipeline_mode<synchronous>, transform_indices = @transform_1, window_bounds = array<i64: 16, 2048>}, {pipeline_mode = #tpu.pipeline_mode<synchronous>, transform_indices = @transform_2, window_bounds = array<i64: 1, 2048>}, {transform_indices = @transform_3, window_bounds = array<i64: 16, 2048>}]} {
    %c0 = arith.constant 0 : index
    %c0_0 = arith.constant 0 : index
    %0 = vector.load %arg1[%c0, %c0_0] : memref<16x16xf32, #tpu.memory_space<vmem>>, vector<16x16xf32>
    %c0_1 = arith.constant 0 : index
    %c0_2 = arith.constant 0 : index
    %1 = vector.load %arg2[%c0_1, %c0_2] : memref<16x2048xbf16, #tpu.memory_space<vmem>>, vector<16x2048xbf16>
    %c0_3 = arith.constant 0 : index
    %c0_4 = arith.constant 0 : index
    %2 = vector.load %arg3[%c0_3, %c0_4] : memref<1x2048xf32, #tpu.memory_space<vmem>>, vector<1x2048xf32>
    %3 = arith.truncf %0 : vector<16x16xf32> to vector<16x16xbf16>
    %cst = arith.constant dense<0.000000e+00> : vector<16x2048xf32>
    %4 = tpu.matmul %3, %1, %cst {dimension_numbers = #tpu.dot_dimension_numbers<[1], [0], [0], [1], [0, 0, 1, 1], [], []>} : vector<16x16xbf16>, vector<16x2048xbf16>, vector<16x2048xf32> -> vector<16x2048xf32>
    %5 = vector.broadcast %2 : vector<1x2048xf32> to vector<16x2048xf32>
    %6 = arith.addf %4, %5 : vector<16x2048xf32>
    %7 = arith.truncf %6 : vector<16x2048xf32> to vector<16x2048xbf16>
    %c0_5 = arith.constant 0 : index
    %c0_6 = arith.constant 0 : index
    %8 = vector.load %arg4[%c0_5, %c0_6] : memref<16x2048xbf16, #tpu.memory_space<vmem>>, vector<16x2048xbf16>
    tpu.vector_store %arg4[%c0_5, %c0_6], %7 {strides = array<i32>} : memref<16x2048xbf16, #tpu.memory_space<vmem>>, vector<16x2048xbf16>,
    return
  }
  func.func @transform_0(%arg0: i32) -> (i32, i32) {
    %c0_i32 = arith.constant 0 : i32
    %c0_i32_0 = arith.constant 0 : i32
    return %arg0, %c0_i32 : i32, i32
  }
  func.func @transform_1(%arg0: i32) -> (i32, i32) {
    %c0_i32 = arith.constant 0 : i32
    %c0_i32_0 = arith.constant 0 : i32
    %c0_i32_1 = arith.constant 0 : i32
    return %c0_i32, %c0_i32_0 : i32, i32
  }
  func.func @transform_2(%arg0: i32) -> (i32, i32) {
    %c0_i32 = arith.constant 0 : i32
    %c0_i32_0 = arith.constant 0 : i32
    %c0_i32_1 = arith.constant 0 : i32
    return %c0_i32, %c0_i32_0 : i32, i32
  }
  func.func @transform_3(%arg0: i32) -> (i32, i32) {
    %c0_i32 = arith.constant 0 : i32
    %c0_i32_0 = arith.constant 0 : i32
    return %arg0, %c0_i32 : i32, i32
  }
}

module attributes {stable_mosaic.version = 11 : i64} {
  func.func @_dense_stack_kernel(%arg0: i32, %arg1: memref<128x5xf32, #tpu.memory_space<vmem>>, %arg2: memref<5x128xbf16, #tpu.memory_space<vmem>>, %arg3: memref<1x128xf32, #tpu.memory_space<vmem>>, %arg4: memref<128x256xbf16, #tpu.memory_space<vmem>>, %arg5: memref<1x256xf32, #tpu.memory_space<vmem>>, %arg6: memref<256x128xbf16, #tpu.memory_space<vmem>>, %arg7: memref<1x128xf32, #tpu.memory_space<vmem>>, %arg8: memref<128x1xf32, #tpu.memory_space<vmem>>, %arg9: memref<128x128xbf16, #tpu.memory_space<vmem>>) attributes {dimension_semantics = [#tpu.dimension_semantics<parallel>], iteration_bounds = array<i64: 1>, scalar_prefetch = 0 : i64, scratch_operands = 0 : i64, tpu.core_type = #tpu.core_type<tc>, window_params = [{transform_indices = @transform_0, window_bounds = array<i64: 128, 5>}, {pipeline_mode = #tpu.pipeline_mode<synchronous>, transform_indices = @transform_1, window_bounds = array<i64: 5, 128>}, {pipeline_mode = #tpu.pipeline_mode<synchronous>, transform_indices = @transform_2, window_bounds = array<i64: 1, 128>}, {pipeline_mode = #tpu.pipeline_mode<synchronous>, transform_indices = @transform_3, window_bounds = array<i64: 128, 256>}, {pipeline_mode = #tpu.pipeline_mode<synchronous>, transform_indices = @transform_4, window_bounds = array<i64: 1, 256>}, {pipeline_mode = #tpu.pipeline_mode<synchronous>, transform_indices = @transform_5, window_bounds = array<i64: 256, 128>}, {pipeline_mode = #tpu.pipeline_mode<synchronous>, transform_indices = @transform_6, window_bounds = array<i64: 1, 128>}, {transform_indices = @transform_7, window_bounds = array<i64: 128, 1>}, {transform_indices = @transform_8, window_bounds = array<i64: 128, 128>}]} {
    %c0 = arith.constant 0 : index
    %c0_0 = arith.constant 0 : index
    %0 = vector.load %arg1[%c0, %c0_0] : memref<128x5xf32, #tpu.memory_space<vmem>>, vector<128x5xf32>
    %c0_1 = arith.constant 0 : index
    %c0_2 = arith.constant 0 : index
    %1 = vector.load %arg2[%c0_1, %c0_2] : memref<5x128xbf16, #tpu.memory_space<vmem>>, vector<5x128xbf16>
    %c0_3 = arith.constant 0 : index
    %c0_4 = arith.constant 0 : index
    %2 = vector.load %arg3[%c0_3, %c0_4] : memref<1x128xf32, #tpu.memory_space<vmem>>, vector<1x128xf32>
    %3 = arith.truncf %0 : vector<128x5xf32> to vector<128x5xbf16>
    %cst = arith.constant dense<0.000000e+00> : vector<128x128xf32>
    %4 = tpu.matmul %3, %1, %cst {dimension_numbers = #tpu.dot_dimension_numbers<[1], [0], [0], [1], [0, 0, 1, 1], [], []>} : vector<128x5xbf16>, vector<5x128xbf16>, vector<128x128xf32> -> vector<128x128xf32>
    %5 = vector.broadcast %2 : vector<1x128xf32> to vector<128x128xf32>
    %6 = arith.addf %4, %5 : vector<128x128xf32>
    %cst_5 = arith.constant 0.000000e+00 : f32
    %7 = vector.broadcast %cst_5 : f32 to vector<128x128xf32>
    %8 = arith.maximumf %6, %7 : vector<128x128xf32>
    %c0_6 = arith.constant 0 : index
    %c0_7 = arith.constant 0 : index
    %9 = vector.load %arg4[%c0_6, %c0_7] : memref<128x256xbf16, #tpu.memory_space<vmem>>, vector<128x256xbf16>
    %c0_8 = arith.constant 0 : index
    %c0_9 = arith.constant 0 : index
    %10 = vector.load %arg5[%c0_8, %c0_9] : memref<1x256xf32, #tpu.memory_space<vmem>>, vector<1x256xf32>
    %11 = arith.truncf %8 : vector<128x128xf32> to vector<128x128xbf16>
    %cst_10 = arith.constant dense<0.000000e+00> : vector<128x256xf32>
    %12 = tpu.matmul %11, %9, %cst_10 {dimension_numbers = #tpu.dot_dimension_numbers<[1], [0], [0], [1], [0, 0, 1, 1], [], []>} : vector<128x128xbf16>, vector<128x256xbf16>, vector<128x256xf32> -> vector<128x256xf32>
    %13 = vector.broadcast %10 : vector<1x256xf32> to vector<128x256xf32>
    %14 = arith.addf %12, %13 : vector<128x256xf32>
    %cst_11 = arith.constant 0.000000e+00 : f32
    %15 = vector.broadcast %cst_11 : f32 to vector<128x256xf32>
    %16 = arith.maximumf %14, %15 : vector<128x256xf32>
    %c0_12 = arith.constant 0 : index
    %c0_13 = arith.constant 0 : index
    %17 = vector.load %arg6[%c0_12, %c0_13] : memref<256x128xbf16, #tpu.memory_space<vmem>>, vector<256x128xbf16>
    %c0_14 = arith.constant 0 : index
    %c0_15 = arith.constant 0 : index
    %18 = vector.load %arg7[%c0_14, %c0_15] : memref<1x128xf32, #tpu.memory_space<vmem>>, vector<1x128xf32>
    %19 = arith.truncf %16 : vector<128x256xf32> to vector<128x256xbf16>
    %cst_16 = arith.constant dense<0.000000e+00> : vector<128x128xf32>
    %20 = tpu.matmul %19, %17, %cst_16 {dimension_numbers = #tpu.dot_dimension_numbers<[1], [0], [0], [1], [0, 0, 1, 1], [], []>} : vector<128x256xbf16>, vector<256x128xbf16>, vector<128x128xf32> -> vector<128x128xf32>
    %21 = vector.broadcast %18 : vector<1x128xf32> to vector<128x128xf32>
    %22 = arith.addf %20, %21 : vector<128x128xf32>
    %cst_17 = arith.constant 0.000000e+00 : f32
    %23 = vector.broadcast %cst_17 : f32 to vector<128x128xf32>
    %24 = arith.maximumf %22, %23 : vector<128x128xf32>
    %c0_18 = arith.constant 0 : index
    %c0_19 = arith.constant 0 : index
    %25 = vector.load %arg8[%c0_18, %c0_19] : memref<128x1xf32, #tpu.memory_space<vmem>>, vector<128x1xf32>
    %26 = vector.broadcast %25 : vector<128x1xf32> to vector<128x128xf32>
    %27 = arith.mulf %24, %26 : vector<128x128xf32>
    %28 = arith.truncf %27 : vector<128x128xf32> to vector<128x128xbf16>
    %c0_20 = arith.constant 0 : index
    %c0_21 = arith.constant 0 : index
    %29 = vector.load %arg9[%c0_20, %c0_21] : memref<128x128xbf16, #tpu.memory_space<vmem>>, vector<128x128xbf16>
    tpu.vector_store %arg9[%c0_20, %c0_21], %28 {strides = array<i32>} : memref<128x128xbf16, #tpu.memory_space<vmem>>, vector<128x128xbf16>,
    return
  }
  func.func @transform_0(%arg0: i32) -> (i32, i32) {
    %c0_i32 = arith.constant 0 : i32
    %c0_i32_0 = arith.constant 0 : i32
    return %arg0, %c0_i32 : i32, i32
  }
  func.func @transform_1(%arg0: i32) -> (i32, i32) {
    %c0_i32 = arith.constant 0 : i32
    %c0_i32_0 = arith.constant 0 : i32
    %c0_i32_1 = arith.constant 0 : i32
    return %c0_i32, %c0_i32_0 : i32, i32
  }
  func.func @transform_2(%arg0: i32) -> (i32, i32) {
    %c0_i32 = arith.constant 0 : i32
    %c0_i32_0 = arith.constant 0 : i32
    %c0_i32_1 = arith.constant 0 : i32
    return %c0_i32, %c0_i32_0 : i32, i32
  }
  func.func @transform_3(%arg0: i32) -> (i32, i32) {
    %c0_i32 = arith.constant 0 : i32
    %c0_i32_0 = arith.constant 0 : i32
    %c0_i32_1 = arith.constant 0 : i32
    return %c0_i32, %c0_i32_0 : i32, i32
  }
  func.func @transform_4(%arg0: i32) -> (i32, i32) {
    %c0_i32 = arith.constant 0 : i32
    %c0_i32_0 = arith.constant 0 : i32
    %c0_i32_1 = arith.constant 0 : i32
    return %c0_i32, %c0_i32_0 : i32, i32
  }
  func.func @transform_5(%arg0: i32) -> (i32, i32) {
    %c0_i32 = arith.constant 0 : i32
    %c0_i32_0 = arith.constant 0 : i32
    %c0_i32_1 = arith.constant 0 : i32
    return %c0_i32, %c0_i32_0 : i32, i32
  }
  func.func @transform_6(%arg0: i32) -> (i32, i32) {
    %c0_i32 = arith.constant 0 : i32
    %c0_i32_0 = arith.constant 0 : i32
    %c0_i32_1 = arith.constant 0 : i32
    return %c0_i32, %c0_i32_0 : i32, i32
  }
  func.func @transform_7(%arg0: i32) -> (i32, i32) {
    %c0_i32 = arith.constant 0 : i32
    %c0_i32_0 = arith.constant 0 : i32
    return %arg0, %c0_i32 : i32, i32
  }
  func.func @transform_8(%arg0: i32) -> (i32, i32) {
    %c0_i32 = arith.constant 0 : i32
    %c0_i32_0 = arith.constant 0 : i32
    return %arg0, %c0_i32 : i32, i32
  }
}

module attributes {stable_mosaic.version = 11 : i64} {
  func.func @_msg_gru_kernel(%arg0: i32, %arg1: memref<2x8x1024xbf16, #tpu.memory_space<vmem>>, %arg2: memref<2x1024x16xbf16, #tpu.memory_space<vmem>>, %arg3: memref<2x8x8xbf16, #tpu.memory_space<vmem>>, %arg4: memref<2x8x16xf32, #tpu.memory_space<vmem>>, %arg5: memref<2x8x1xf32, #tpu.memory_space<vmem>>, %arg6: memref<16x16xbf16, #tpu.memory_space<vmem>>, %arg7: memref<16x48xbf16, #tpu.memory_space<vmem>>, %arg8: memref<16x48xbf16, #tpu.memory_space<vmem>>, %arg9: memref<1x48xf32, #tpu.memory_space<vmem>>, %arg10: memref<1x48xf32, #tpu.memory_space<vmem>>, %arg11: memref<2x8x16xf32, #tpu.memory_space<vmem>>) attributes {dimension_semantics = [#tpu.dimension_semantics<parallel>], iteration_bounds = array<i64: 1>, scalar_prefetch = 0 : i64, scratch_operands = 0 : i64, tpu.core_type = #tpu.core_type<tc>, window_params = [{transform_indices = @transform_0, window_bounds = array<i64: 2, 8, 1024>}, {transform_indices = @transform_1, window_bounds = array<i64: 2, 1024, 16>}, {transform_indices = @transform_2, window_bounds = array<i64: 2, 8, 8>}, {transform_indices = @transform_3, window_bounds = array<i64: 2, 8, 16>}, {transform_indices = @transform_4, window_bounds = array<i64: 2, 8, 1>}, {pipeline_mode = #tpu.pipeline_mode<synchronous>, transform_indices = @transform_5, window_bounds = array<i64: 16, 16>}, {pipeline_mode = #tpu.pipeline_mode<synchronous>, transform_indices = @transform_6, window_bounds = array<i64: 16, 48>}, {pipeline_mode = #tpu.pipeline_mode<synchronous>, transform_indices = @transform_7, window_bounds = array<i64: 16, 48>}, {pipeline_mode = #tpu.pipeline_mode<synchronous>, transform_indices = @transform_8, window_bounds = array<i64: 1, 48>}, {pipeline_mode = #tpu.pipeline_mode<synchronous>, transform_indices = @transform_9, window_bounds = array<i64: 1, 48>}, {transform_indices = @transform_10, window_bounds = array<i64: 2, 8, 16>}]} {
    %c0 = arith.constant 0 : index
    %c0_0 = arith.constant 0 : index
    %c0_1 = arith.constant 0 : index
    %0 = vector.load %arg4[%c0, %c0_0, %c0_1] : memref<2x8x16xf32, #tpu.memory_space<vmem>>, vector<2x8x16xf32>
    %1 = vector.shape_cast %0 : vector<2x8x16xf32> to vector<16x16xf32>
    %2 = arith.truncf %1 : vector<16x16xf32> to vector<16x16xbf16>
    %c0_2 = arith.constant 0 : index
    %c0_3 = arith.constant 0 : index
    %c0_4 = arith.constant 0 : index
    %3 = vector.load %arg1[%c0_2, %c0_3, %c0_4] : memref<2x8x1024xbf16, #tpu.memory_space<vmem>>, vector<2x8x1024xbf16>
    %c0_5 = arith.constant 0 : index
    %c0_6 = arith.constant 0 : index
    %c0_7 = arith.constant 0 : index
    %4 = vector.load %arg2[%c0_5, %c0_6, %c0_7] : memref<2x1024x16xbf16, #tpu.memory_space<vmem>>, vector<2x1024x16xbf16>
    "tpu.trace_start"() <{level = 10 : i32, message = "bwk,bko->bwo"}> : () -> ()
    %cst = arith.constant dense<0.000000e+00> : vector<2x8x16xf32>
    %5 = tpu.matmul %3, %4, %cst {dimension_numbers = #tpu.dot_dimension_numbers<[2], [1], [1], [2], [0, 0, 0, 1, 1, 2], [0], [0]>} : vector<2x8x1024xbf16>, vector<2x1024x16xbf16>, vector<2x8x16xf32> -> vector<2x8x16xf32>
    "tpu.trace_stop"() : () -> ()
    %c0_8 = arith.constant 0 : index
    %c0_9 = arith.constant 0 : index
    %6 = vector.load %arg6[%c0_8, %c0_9] : memref<16x16xbf16, #tpu.memory_space<vmem>>, vector<16x16xbf16>
    %cst_10 = arith.constant dense<0.000000e+00> : vector<16x16xf32>
    %7 = tpu.matmul %2, %6, %cst_10 {dimension_numbers = #tpu.dot_dimension_numbers<[1], [0], [0], [1], [0, 0, 1, 1], [], []>} : vector<16x16xbf16>, vector<16x16xbf16>, vector<16x16xf32> -> vector<16x16xf32>
    %c0_11 = arith.constant 0 : index
    %c0_12 = arith.constant 0 : index
    %c0_13 = arith.constant 0 : index
    %8 = vector.load %arg3[%c0_11, %c0_12, %c0_13] : memref<2x8x8xbf16, #tpu.memory_space<vmem>>, vector<2x8x8xbf16>
    %9 = vector.shape_cast %7 : vector<16x16xf32> to vector<2x8x16xf32>
    %10 = arith.truncf %9 : vector<2x8x16xf32> to vector<2x8x16xbf16>
    "tpu.trace_start"() <{level = 10 : i32, message = "bwv,bvo->bwo"}> : () -> ()
    %cst_14 = arith.constant dense<0.000000e+00> : vector<2x8x16xf32>
    %11 = tpu.matmul %8, %10, %cst_14 {dimension_numbers = #tpu.dot_dimension_numbers<[2], [1], [1], [2], [0, 0, 0, 1, 1, 2], [0], [0]>} : vector<2x8x8xbf16>, vector<2x8x16xbf16>, vector<2x8x16xf32> -> vector<2x8x16xf32>
    "tpu.trace_stop"() : () -> ()
    %12 = arith.addf %5, %11 : vector<2x8x16xf32>
    %13 = vector.shape_cast %12 : vector<2x8x16xf32> to vector<16x16xf32>
    %14 = arith.truncf %13 : vector<16x16xf32> to vector<16x16xbf16>
    %c0_15 = arith.constant 0 : index
    %c0_16 = arith.constant 0 : index
    %15 = vector.load %arg7[%c0_15, %c0_16] : memref<16x48xbf16, #tpu.memory_space<vmem>>, vector<16x48xbf16>
    %cst_17 = arith.constant dense<0.000000e+00> : vector<16x48xf32>
    %16 = tpu.matmul %14, %15, %cst_17 {dimension_numbers = #tpu.dot_dimension_numbers<[1], [0], [0], [1], [0, 0, 1, 1], [], []>} : vector<16x16xbf16>, vector<16x48xbf16>, vector<16x48xf32> -> vector<16x48xf32>
    %c0_18 = arith.constant 0 : index
    %c0_19 = arith.constant 0 : index
    %17 = vector.load %arg9[%c0_18, %c0_19] : memref<1x48xf32, #tpu.memory_space<vmem>>, vector<1x48xf32>
    %18 = vector.broadcast %17 : vector<1x48xf32> to vector<16x48xf32>
    %19 = arith.addf %16, %18 : vector<16x48xf32>
    %c0_20 = arith.constant 0 : index
    %c0_21 = arith.constant 0 : index
    %20 = vector.load %arg8[%c0_20, %c0_21] : memref<16x48xbf16, #tpu.memory_space<vmem>>, vector<16x48xbf16>
    %cst_22 = arith.constant dense<0.000000e+00> : vector<16x48xf32>
    %21 = tpu.matmul %2, %20, %cst_22 {dimension_numbers = #tpu.dot_dimension_numbers<[1], [0], [0], [1], [0, 0, 1, 1], [], []>} : vector<16x16xbf16>, vector<16x48xbf16>, vector<16x48xf32> -> vector<16x48xf32>
    %c0_23 = arith.constant 0 : index
    %c0_24 = arith.constant 0 : index
    %22 = vector.load %arg10[%c0_23, %c0_24] : memref<1x48xf32, #tpu.memory_space<vmem>>, vector<1x48xf32>
    %23 = vector.broadcast %22 : vector<1x48xf32> to vector<16x48xf32>
    %24 = arith.addf %21, %23 : vector<16x48xf32>
    %25 = vector.extract_strided_slice %19 {offsets = [0, 0], sizes = [16, 16], strides = [1, 1]} : vector<16x48xf32> to vector<16x16xf32>
    %26 = vector.extract_strided_slice %24 {offsets = [0, 0], sizes = [16, 16], strides = [1, 1]} : vector<16x48xf32> to vector<16x16xf32>
    %27 = arith.addf %25, %26 : vector<16x16xf32>
    %28 = arith.negf %27 : vector<16x16xf32>
    %29 = math.exp %28 : vector<16x16xf32>
    %cst_25 = arith.constant 1.000000e+00 : f32
    %30 = vector.broadcast %cst_25 : f32 to vector<16x16xf32>
    %31 = arith.addf %30, %29 : vector<16x16xf32>
    %32 = arith.divf %30, %31 : vector<16x16xf32>
    %33 = vector.extract_strided_slice %19 {offsets = [0, 16], sizes = [16, 16], strides = [1, 1]} : vector<16x48xf32> to vector<16x16xf32>
    %34 = vector.extract_strided_slice %24 {offsets = [0, 16], sizes = [16, 16], strides = [1, 1]} : vector<16x48xf32> to vector<16x16xf32>
    %35 = arith.addf %33, %34 : vector<16x16xf32>
    %36 = arith.negf %35 : vector<16x16xf32>
    %37 = math.exp %36 : vector<16x16xf32>
    %cst_26 = arith.constant 1.000000e+00 : f32
    %38 = vector.broadcast %cst_26 : f32 to vector<16x16xf32>
    %39 = arith.addf %38, %37 : vector<16x16xf32>
    %40 = arith.divf %38, %39 : vector<16x16xf32>
    %41 = vector.extract_strided_slice %19 {offsets = [0, 32], sizes = [16, 16], strides = [1, 1]} : vector<16x48xf32> to vector<16x16xf32>
    %42 = vector.extract_strided_slice %24 {offsets = [0, 32], sizes = [16, 16], strides = [1, 1]} : vector<16x48xf32> to vector<16x16xf32>
    %43 = arith.mulf %32, %42 : vector<16x16xf32>
    %44 = arith.addf %41, %43 : vector<16x16xf32>
    %45 = math.tanh %44 : vector<16x16xf32>
    %cst_27 = arith.constant 1.000000e+00 : f32
    %46 = vector.broadcast %cst_27 : f32 to vector<16x16xf32>
    %47 = arith.subf %46, %40 : vector<16x16xf32>
    %48 = arith.mulf %47, %45 : vector<16x16xf32>
    %49 = arith.mulf %40, %1 : vector<16x16xf32>
    %50 = arith.addf %48, %49 : vector<16x16xf32>
    %c0_28 = arith.constant 0 : index
    %c0_29 = arith.constant 0 : index
    %c0_30 = arith.constant 0 : index
    %51 = vector.load %arg5[%c0_28, %c0_29, %c0_30] : memref<2x8x1xf32, #tpu.memory_space<vmem>>, vector<2x8x1xf32>
    %52 = vector.shape_cast %51 : vector<2x8x1xf32> to vector<16x1xf32>
    %53 = vector.broadcast %52 : vector<16x1xf32> to vector<16x16xf32>
    %54 = arith.mulf %50, %53 : vector<16x16xf32>
    %55 = vector.shape_cast %54 : vector<16x16xf32> to vector<2x8x16xf32>
    %c0_31 = arith.constant 0 : index
    %c0_32 = arith.constant 0 : index
    %c0_33 = arith.constant 0 : index
    %56 = vector.load %arg11[%c0_31, %c0_32, %c0_33] : memref<2x8x16xf32, #tpu.memory_space<vmem>>, vector<2x8x16xf32>
    tpu.vector_store %arg11[%c0_31, %c0_32, %c0_33], %55 {strides = array<i32>} : memref<2x8x16xf32, #tpu.memory_space<vmem>>, vector<2x8x16xf32>,
    return
  }
  func.func @transform_0(%arg0: i32) -> (i32, i32, i32) {
    %c0_i32 = arith.constant 0 : i32
    %c0_i32_0 = arith.constant 0 : i32
    %c0_i32_1 = arith.constant 0 : i32
    return %arg0, %c0_i32, %c0_i32_0 : i32, i32, i32
  }
  func.func @transform_1(%arg0: i32) -> (i32, i32, i32) {
    %c0_i32 = arith.constant 0 : i32
    %c0_i32_0 = arith.constant 0 : i32
    %c0_i32_1 = arith.constant 0 : i32
    return %arg0, %c0_i32, %c0_i32_0 : i32, i32, i32
  }
  func.func @transform_2(%arg0: i32) -> (i32, i32, i32) {
    %c0_i32 = arith.constant 0 : i32
    %c0_i32_0 = arith.constant 0 : i32
    %c0_i32_1 = arith.constant 0 : i32
    return %arg0, %c0_i32, %c0_i32_0 : i32, i32, i32
  }
  func.func @transform_3(%arg0: i32) -> (i32, i32, i32) {
    %c0_i32 = arith.constant 0 : i32
    %c0_i32_0 = arith.constant 0 : i32
    %c0_i32_1 = arith.constant 0 : i32
    return %arg0, %c0_i32, %c0_i32_0 : i32, i32, i32
  }
  func.func @transform_4(%arg0: i32) -> (i32, i32, i32) {
    %c0_i32 = arith.constant 0 : i32
    %c0_i32_0 = arith.constant 0 : i32
    %c0_i32_1 = arith.constant 0 : i32
    return %arg0, %c0_i32, %c0_i32_0 : i32, i32, i32
  }
  func.func @transform_5(%arg0: i32) -> (i32, i32) {
    %c0_i32 = arith.constant 0 : i32
    %c0_i32_0 = arith.constant 0 : i32
    %c0_i32_1 = arith.constant 0 : i32
    return %c0_i32, %c0_i32_0 : i32, i32
  }
  func.func @transform_6(%arg0: i32) -> (i32, i32) {
    %c0_i32 = arith.constant 0 : i32
    %c0_i32_0 = arith.constant 0 : i32
    %c0_i32_1 = arith.constant 0 : i32
    return %c0_i32, %c0_i32_0 : i32, i32
  }
  func.func @transform_7(%arg0: i32) -> (i32, i32) {
    %c0_i32 = arith.constant 0 : i32
    %c0_i32_0 = arith.constant 0 : i32
    %c0_i32_1 = arith.constant 0 : i32
    return %c0_i32, %c0_i32_0 : i32, i32
  }
  func.func @transform_8(%arg0: i32) -> (i32, i32) {
    %c0_i32 = arith.constant 0 : i32
    %c0_i32_0 = arith.constant 0 : i32
    %c0_i32_1 = arith.constant 0 : i32
    return %c0_i32, %c0_i32_0 : i32, i32
  }
  func.func @transform_9(%arg0: i32) -> (i32, i32) {
    %c0_i32 = arith.constant 0 : i32
    %c0_i32_0 = arith.constant 0 : i32
    %c0_i32_1 = arith.constant 0 : i32
    return %c0_i32, %c0_i32_0 : i32, i32
  }
  func.func @transform_10(%arg0: i32) -> (i32, i32, i32) {
    %c0_i32 = arith.constant 0 : i32
    %c0_i32_0 = arith.constant 0 : i32
    %c0_i32_1 = arith.constant 0 : i32
    return %arg0, %c0_i32, %c0_i32_0 : i32, i32, i32
  }
}

module attributes {stable_mosaic.version = 11 : i64} {
  func.func @_readout4_kernel(%arg0: i32, %arg1: memref<2x8x16xf32, #tpu.memory_space<vmem>>, %arg2: memref<2x8x16xf32, #tpu.memory_space<vmem>>, %arg3: memref<2x8x1xf32, #tpu.memory_space<vmem>>, %arg4: memref<16x128xbf16, #tpu.memory_space<vmem>>, %arg5: memref<16x128xbf16, #tpu.memory_space<vmem>>, %arg6: memref<1x128xf32, #tpu.memory_space<vmem>>, %arg7: memref<128x256xbf16, #tpu.memory_space<vmem>>, %arg8: memref<1x256xf32, #tpu.memory_space<vmem>>, %arg9: memref<256x128xbf16, #tpu.memory_space<vmem>>, %arg10: memref<1x128xf32, #tpu.memory_space<vmem>>, %arg11: memref<128x1xbf16, #tpu.memory_space<vmem>>, %arg12: memref<1x1xf32, #tpu.memory_space<vmem>>, %arg13: memref<16x128xbf16, #tpu.memory_space<vmem>>, %arg14: memref<1x128xf32, #tpu.memory_space<vmem>>, %arg15: memref<128x256xbf16, #tpu.memory_space<vmem>>, %arg16: memref<1x256xf32, #tpu.memory_space<vmem>>, %arg17: memref<256x128xbf16, #tpu.memory_space<vmem>>, %arg18: memref<1x128xf32, #tpu.memory_space<vmem>>, %arg19: memref<128x1xbf16, #tpu.memory_space<vmem>>, %arg20: memref<1x1xf32, #tpu.memory_space<vmem>>, %arg21: memref<16x128xbf16, #tpu.memory_space<vmem>>, %arg22: memref<16x128xbf16, #tpu.memory_space<vmem>>, %arg23: memref<1x128xf32, #tpu.memory_space<vmem>>, %arg24: memref<128x256xbf16, #tpu.memory_space<vmem>>, %arg25: memref<1x256xf32, #tpu.memory_space<vmem>>, %arg26: memref<256x128xbf16, #tpu.memory_space<vmem>>, %arg27: memref<1x128xf32, #tpu.memory_space<vmem>>, %arg28: memref<128x7xbf16, #tpu.memory_space<vmem>>, %arg29: memref<1x7xf32, #tpu.memory_space<vmem>>, %arg30: memref<16x128xbf16, #tpu.memory_space<vmem>>, %arg31: memref<1x128xf32, #tpu.memory_space<vmem>>, %arg32: memref<128x256xbf16, #tpu.memory_space<vmem>>, %arg33: memref<1x256xf32, #tpu.memory_space<vmem>>, %arg34: memref<256x128xbf16, #tpu.memory_space<vmem>>, %arg35: memref<1x128xf32, #tpu.memory_space<vmem>>, %arg36: memref<128x7xbf16, #tpu.memory_space<vmem>>, %arg37: memref<1x7xf32, #tpu.memory_space<vmem>>, %arg38: memref<16x128xbf16, #tpu.memory_space<vmem>>, %arg39: memref<16x128xbf16, #tpu.memory_space<vmem>>, %arg40: memref<1x128xf32, #tpu.memory_space<vmem>>, %arg41: memref<128x256xbf16, #tpu.memory_space<vmem>>, %arg42: memref<1x256xf32, #tpu.memory_space<vmem>>, %arg43: memref<256x128xbf16, #tpu.memory_space<vmem>>, %arg44: memref<1x128xf32, #tpu.memory_space<vmem>>, %arg45: memref<128x7xbf16, #tpu.memory_space<vmem>>, %arg46: memref<1x7xf32, #tpu.memory_space<vmem>>, %arg47: memref<16x128xbf16, #tpu.memory_space<vmem>>, %arg48: memref<1x128xf32, #tpu.memory_space<vmem>>, %arg49: memref<128x256xbf16, #tpu.memory_space<vmem>>, %arg50: memref<1x256xf32, #tpu.memory_space<vmem>>, %arg51: memref<256x128xbf16, #tpu.memory_space<vmem>>, %arg52: memref<1x128xf32, #tpu.memory_space<vmem>>, %arg53: memref<128x7xbf16, #tpu.memory_space<vmem>>, %arg54: memref<1x7xf32, #tpu.memory_space<vmem>>, %arg55: memref<16x128xbf16, #tpu.memory_space<vmem>>, %arg56: memref<16x128xbf16, #tpu.memory_space<vmem>>, %arg57: memref<1x128xf32, #tpu.memory_space<vmem>>, %arg58: memref<128x256xbf16, #tpu.memory_space<vmem>>, %arg59: memref<1x256xf32, #tpu.memory_space<vmem>>, %arg60: memref<256x128xbf16, #tpu.memory_space<vmem>>, %arg61: memref<1x128xf32, #tpu.memory_space<vmem>>, %arg62: memref<128x1xbf16, #tpu.memory_space<vmem>>, %arg63: memref<1x1xf32, #tpu.memory_space<vmem>>, %arg64: memref<16x128xbf16, #tpu.memory_space<vmem>>, %arg65: memref<1x128xf32, #tpu.memory_space<vmem>>, %arg66: memref<128x256xbf16, #tpu.memory_space<vmem>>, %arg67: memref<1x256xf32, #tpu.memory_space<vmem>>, %arg68: memref<256x128xbf16, #tpu.memory_space<vmem>>, %arg69: memref<1x128xf32, #tpu.memory_space<vmem>>, %arg70: memref<128x1xbf16, #tpu.memory_space<vmem>>, %arg71: memref<1x1xf32, #tpu.memory_space<vmem>>, %arg72: memref<2x1x1xf32, #tpu.memory_space<vmem>>, %arg73: memref<2x1x7xf32, #tpu.memory_space<vmem>>, %arg74: memref<2x1x7xf32, #tpu.memory_space<vmem>>, %arg75: memref<2x1x1xf32, #tpu.memory_space<vmem>>) attributes {dimension_semantics = [#tpu.dimension_semantics<parallel>], iteration_bounds = array<i64: 1>, scalar_prefetch = 0 : i64, scratch_operands = 0 : i64, tpu.core_type = #tpu.core_type<tc>, window_params = [{transform_indices = @transform_0, window_bounds = array<i64: 2, 8, 16>}, {transform_indices = @transform_1, window_bounds = array<i64: 2, 8, 16>}, {transform_indices = @transform_2, window_bounds = array<i64: 2, 8, 1>}, {pipeline_mode = #tpu.pipeline_mode<synchronous>, transform_indices = @transform_3, window_bounds = array<i64: 16, 128>}, {pipeline_mode = #tpu.pipeline_mode<synchronous>, transform_indices = @transform_4, window_bounds = array<i64: 16, 128>}, {pipeline_mode = #tpu.pipeline_mode<synchronous>, transform_indices = @transform_5, window_bounds = array<i64: 1, 128>}, {pipeline_mode = #tpu.pipeline_mode<synchronous>, transform_indices = @transform_6, window_bounds = array<i64: 128, 256>}, {pipeline_mode = #tpu.pipeline_mode<synchronous>, transform_indices = @transform_7, window_bounds = array<i64: 1, 256>}, {pipeline_mode = #tpu.pipeline_mode<synchronous>, transform_indices = @transform_8, window_bounds = array<i64: 256, 128>}, {pipeline_mode = #tpu.pipeline_mode<synchronous>, transform_indices = @transform_9, window_bounds = array<i64: 1, 128>}, {pipeline_mode = #tpu.pipeline_mode<synchronous>, transform_indices = @transform_10, window_bounds = array<i64: 128, 1>}, {pipeline_mode = #tpu.pipeline_mode<synchronous>, transform_indices = @transform_11, window_bounds = array<i64: 1, 1>}, {pipeline_mode = #tpu.pipeline_mode<synchronous>, transform_indices = @transform_12, window_bounds = array<i64: 16, 128>}, {pipeline_mode = #tpu.pipeline_mode<synchronous>, transform_indices = @transform_13, window_bounds = array<i64: 1, 128>}, {pipeline_mode = #tpu.pipeline_mode<synchronous>, transform_indices = @transform_14, window_bounds = array<i64: 128, 256>}, {pipeline_mode = #tpu.pipeline_mode<synchronous>, transform_indices = @transform_15, window_bounds = array<i64: 1, 256>}, {pipeline_mode = #tpu.pipeline_mode<synchronous>, transform_indices = @transform_16, window_bounds = array<i64: 256, 128>}, {pipeline_mode = #tpu.pipeline_mode<synchronous>, transform_indices = @transform_17, window_bounds = array<i64: 1, 128>}, {pipeline_mode = #tpu.pipeline_mode<synchronous>, transform_indices = @transform_18, window_bounds = array<i64: 128, 1>}, {pipeline_mode = #tpu.pipeline_mode<synchronous>, transform_indices = @transform_19, window_bounds = array<i64: 1, 1>}, {pipeline_mode = #tpu.pipeline_mode<synchronous>, transform_indices = @transform_20, window_bounds = array<i64: 16, 128>}, {pipeline_mode = #tpu.pipeline_mode<synchronous>, transform_indices = @transform_21, window_bounds = array<i64: 16, 128>}, {pipeline_mode = #tpu.pipeline_mode<synchronous>, transform_indices = @transform_22, window_bounds = array<i64: 1, 128>}, {pipeline_mode = #tpu.pipeline_mode<synchronous>, transform_indices = @transform_23, window_bounds = array<i64: 128, 256>}, {pipeline_mode = #tpu.pipeline_mode<synchronous>, transform_indices = @transform_24, window_bounds = array<i64: 1, 256>}, {pipeline_mode = #tpu.pipeline_mode<synchronous>, transform_indices = @transform_25, window_bounds = array<i64: 256, 128>}, {pipeline_mode = #tpu.pipeline_mode<synchronous>, transform_indices = @transform_26, window_bounds = array<i64: 1, 128>}, {pipeline_mode = #tpu.pipeline_mode<synchronous>, transform_indices = @transform_27, window_bounds = array<i64: 128, 7>}, {pipeline_mode = #tpu.pipeline_mode<synchronous>, transform_indices = @transform_28, window_bounds = array<i64: 1, 7>}, {pipeline_mode = #tpu.pipeline_mode<synchronous>, transform_indices = @transform_29, window_bounds = array<i64: 16, 128>}, {pipeline_mode = #tpu.pipeline_mode<synchronous>, transform_indices = @transform_30, window_bounds = array<i64: 1, 128>}, {pipeline_mode = #tpu.pipeline_mode<synchronous>, transform_indices = @transform_31, window_bounds = array<i64: 128, 256>}, {pipeline_mode = #tpu.pipeline_mode<synchronous>, transform_indices = @transform_32, window_bounds = array<i64: 1, 256>}, {pipeline_mode = #tpu.pipeline_mode<synchronous>, transform_indices = @transform_33, window_bounds = array<i64: 256, 128>}, {pipeline_mode = #tpu.pipeline_mode<synchronous>, transform_indices = @transform_34, window_bounds = array<i64: 1, 128>}, {pipeline_mode = #tpu.pipeline_mode<synchronous>, transform_indices = @transform_35, window_bounds = array<i64: 128, 7>}, {pipeline_mode = #tpu.pipeline_mode<synchronous>, transform_indices = @transform_36, window_bounds = array<i64: 1, 7>}, {pipeline_mode = #tpu.pipeline_mode<synchronous>, transform_indices = @transform_37, window_bounds = array<i64: 16, 128>}, {pipeline_mode = #tpu.pipeline_mode<synchronous>, transform_indices = @transform_38, window_bounds = array<i64: 16, 128>}, {pipeline_mode = #tpu.pipeline_mode<synchronous>, transform_indices = @transform_39, window_bounds = array<i64: 1, 128>}, {pipeline_mode = #tpu.pipeline_mode<synchronous>, transform_indices = @transform_40, window_bounds = array<i64: 128, 256>}, {pipeline_mode = #tpu.pipeline_mode<synchronous>, transform_indices = @transform_41, window_bounds = array<i64: 1, 256>}, {pipeline_mode = #tpu.pipeline_mode<synchronous>, transform_indices = @transform_42, window_bounds = array<i64: 256, 128>}, {pipeline_mode = #tpu.pipeline_mode<synchronous>, transform_indices = @transform_43, window_bounds = array<i64: 1, 128>}, {pipeline_mode = #tpu.pipeline_mode<synchronous>, transform_indices = @transform_44, window_bounds = array<i64: 128, 7>}, {pipeline_mode = #tpu.pipeline_mode<synchronous>, transform_indices = @transform_45, window_bounds = array<i64: 1, 7>}, {pipeline_mode = #tpu.pipeline_mode<synchronous>, transform_indices = @transform_46, window_bounds = array<i64: 16, 128>}, {pipeline_mode = #tpu.pipeline_mode<synchronous>, transform_indices = @transform_47, window_bounds = array<i64: 1, 128>}, {pipeline_mode = #tpu.pipeline_mode<synchronous>, transform_indices = @transform_48, window_bounds = array<i64: 128, 256>}, {pipeline_mode = #tpu.pipeline_mode<synchronous>, transform_indices = @transform_49, window_bounds = array<i64: 1, 256>}, {pipeline_mode = #tpu.pipeline_mode<synchronous>, transform_indices = @transform_50, window_bounds = array<i64: 256, 128>}, {pipeline_mode = #tpu.pipeline_mode<synchronous>, transform_indices = @transform_51, window_bounds = array<i64: 1, 128>}, {pipeline_mode = #tpu.pipeline_mode<synchronous>, transform_indices = @transform_52, window_bounds = array<i64: 128, 7>}, {pipeline_mode = #tpu.pipeline_mode<synchronous>, transform_indices = @transform_53, window_bounds = array<i64: 1, 7>}, {pipeline_mode = #tpu.pipeline_mode<synchronous>, transform_indices = @transform_54, window_bounds = array<i64: 16, 128>}, {pipeline_mode = #tpu.pipeline_mode<synchronous>, transform_indices = @transform_55, window_bounds = array<i64: 16, 128>}, {pipeline_mode = #tpu.pipeline_mode<synchronous>, transform_indices = @transform_56, window_bounds = array<i64: 1, 128>}, {pipeline_mode = #tpu.pipeline_mode<synchronous>, transform_indices = @transform_57, window_bounds = array<i64: 128, 256>}, {pipeline_mode = #tpu.pipeline_mode<synchronous>, transform_indices = @transform_58, window_bounds = array<i64: 1, 256>}, {pipeline_mode = #tpu.pipeline_mode<synchronous>, transform_indices = @transform_59, window_bounds = array<i64: 256, 128>}, {pipeline_mode = #tpu.pipeline_mode<synchronous>, transform_indices = @transform_60, window_bounds = array<i64: 1, 128>}, {pipeline_mode = #tpu.pipeline_mode<synchronous>, transform_indices = @transform_61, window_bounds = array<i64: 128, 1>}, {pipeline_mode = #tpu.pipeline_mode<synchronous>, transform_indices = @transform_62, window_bounds = array<i64: 1, 1>}, {pipeline_mode = #tpu.pipeline_mode<synchronous>, transform_indices = @transform_63, window_bounds = array<i64: 16, 128>}, {pipeline_mode = #tpu.pipeline_mode<synchronous>, transform_indices = @transform_64, window_bounds = array<i64: 1, 128>}, {pipeline_mode = #tpu.pipeline_mode<synchronous>, transform_indices = @transform_65, window_bounds = array<i64: 128, 256>}, {pipeline_mode = #tpu.pipeline_mode<synchronous>, transform_indices = @transform_66, window_bounds = array<i64: 1, 256>}, {pipeline_mode = #tpu.pipeline_mode<synchronous>, transform_indices = @transform_67, window_bounds = array<i64: 256, 128>}, {pipeline_mode = #tpu.pipeline_mode<synchronous>, transform_indices = @transform_68, window_bounds = array<i64: 1, 128>}, {pipeline_mode = #tpu.pipeline_mode<synchronous>, transform_indices = @transform_69, window_bounds = array<i64: 128, 1>}, {pipeline_mode = #tpu.pipeline_mode<synchronous>, transform_indices = @transform_70, window_bounds = array<i64: 1, 1>}, {transform_indices = @transform_71, window_bounds = array<i64: 2, 1, 1>}, {transform_indices = @transform_72, window_bounds = array<i64: 2, 1, 7>}, {transform_indices = @transform_73, window_bounds = array<i64: 2, 1, 7>}, {transform_indices = @transform_74, window_bounds = array<i64: 2, 1, 1>}]} {
    %c0 = arith.constant 0 : index
    %c0_0 = arith.constant 0 : index
    %c0_1 = arith.constant 0 : index
    %0 = vector.load %arg1[%c0, %c0_0, %c0_1] : memref<2x8x16xf32, #tpu.memory_space<vmem>>, vector<2x8x16xf32>
    %1 = vector.shape_cast %0 : vector<2x8x16xf32> to vector<16x16xf32>
    %2 = arith.truncf %1 : vector<16x16xf32> to vector<16x16xbf16>
    %c0_2 = arith.constant 0 : index
    %c0_3 = arith.constant 0 : index
    %c0_4 = arith.constant 0 : index
    %3 = vector.load %arg2[%c0_2, %c0_3, %c0_4] : memref<2x8x16xf32, #tpu.memory_space<vmem>>, vector<2x8x16xf32>
    %4 = vector.shape_cast %3 : vector<2x8x16xf32> to vector<16x16xf32>
    %5 = arith.truncf %4 : vector<16x16xf32> to vector<16x16xbf16>
    %c0_5 = arith.constant 0 : index
    %c0_6 = arith.constant 0 : index
    %c0_7 = arith.constant 0 : index
    %6 = vector.load %arg3[%c0_5, %c0_6, %c0_7] : memref<2x8x1xf32, #tpu.memory_space<vmem>>, vector<2x8x1xf32>
    %7 = vector.shape_cast %6 : vector<2x8x1xf32> to vector<16x1xf32>
    %8 = tpu.iota {dimensions = array<i32: 0>} : vector<2x16xi32>
    %9 = tpu.iota {dimensions = array<i32: 1>} : vector<2x16xi32>
    %c8_i32 = arith.constant 8 : i32
    %10 = vector.broadcast %c8_i32 : i32 to vector<2x16xi32>
    %11 = arith.muli %8, %10 : vector<2x16xi32>
    %12 = arith.cmpi sge, %9, %11 : vector<2x16xi32>
    %c1_i32 = arith.constant 1 : i32
    %13 = vector.broadcast %c1_i32 : i32 to vector<2x16xi32>
    %14 = arith.addi %8, %13 : vector<2x16xi32>
    %c8_i32_8 = arith.constant 8 : i32
    %15 = vector.broadcast %c8_i32_8 : i32 to vector<2x16xi32>
    %16 = arith.muli %14, %15 : vector<2x16xi32>
    %17 = arith.cmpi slt, %9, %16 : vector<2x16xi32>
    %18 = arith.andi %12, %17 : vector<2x16xi1>
    %19 = arith.extui %18 : vector<2x16xi1> to vector<2x16xi32>
    %20 = arith.sitofp %19 : vector<2x16xi32> to vector<2x16xf32>
    %c0_9 = arith.constant 0 : index
    %c0_10 = arith.constant 0 : index
    %21 = vector.load %arg4[%c0_9, %c0_10] : memref<16x128xbf16, #tpu.memory_space<vmem>>, vector<16x128xbf16>
    %cst = arith.constant dense<0.000000e+00> : vector<16x128xf32>
    %22 = tpu.matmul %2, %21, %cst {dimension_numbers = #tpu.dot_dimension_numbers<[1], [0], [0], [1], [0, 0, 1, 1], [], []>} : vector<16x16xbf16>, vector<16x128xbf16>, vector<16x128xf32> -> vector<16x128xf32>
    %c0_11 = arith.constant 0 : index
    %c0_12 = arith.constant 0 : index
    %23 = vector.load %arg5[%c0_11, %c0_12] : memref<16x128xbf16, #tpu.memory_space<vmem>>, vector<16x128xbf16>
    %cst_13 = arith.constant dense<0.000000e+00> : vector<16x128xf32>
    %24 = tpu.matmul %5, %23, %cst_13 {dimension_numbers = #tpu.dot_dimension_numbers<[1], [0], [0], [1], [0, 0, 1, 1], [], []>} : vector<16x16xbf16>, vector<16x128xbf16>, vector<16x128xf32> -> vector<16x128xf32>
    %25 = arith.addf %22, %24 : vector<16x128xf32>
    %c0_14 = arith.constant 0 : index
    %c0_15 = arith.constant 0 : index
    %26 = vector.load %arg6[%c0_14, %c0_15] : memref<1x128xf32, #tpu.memory_space<vmem>>, vector<1x128xf32>
    %27 = vector.broadcast %26 : vector<1x128xf32> to vector<16x128xf32>
    %28 = arith.addf %25, %27 : vector<16x128xf32>
    %cst_16 = arith.constant 0.000000e+00 : f32
    %29 = vector.broadcast %cst_16 : f32 to vector<16x128xf32>
    %30 = arith.maximumf %28, %29 : vector<16x128xf32>
    %31 = arith.truncf %30 : vector<16x128xf32> to vector<16x128xbf16>
    %c0_17 = arith.constant 0 : index
    %c0_18 = arith.constant 0 : index
    %32 = vector.load %arg7[%c0_17, %c0_18] : memref<128x256xbf16, #tpu.memory_space<vmem>>, vector<128x256xbf16>
    %cst_19 = arith.constant dense<0.000000e+00> : vector<16x256xf32>
    %33 = tpu.matmul %31, %32, %cst_19 {dimension_numbers = #tpu.dot_dimension_numbers<[1], [0], [0], [1], [0, 0, 1, 1], [], []>} : vector<16x128xbf16>, vector<128x256xbf16>, vector<16x256xf32> -> vector<16x256xf32>
    %c0_20 = arith.constant 0 : index
    %c0_21 = arith.constant 0 : index
    %34 = vector.load %arg8[%c0_20, %c0_21] : memref<1x256xf32, #tpu.memory_space<vmem>>, vector<1x256xf32>
    %35 = vector.broadcast %34 : vector<1x256xf32> to vector<16x256xf32>
    %36 = arith.addf %33, %35 : vector<16x256xf32>
    %cst_22 = arith.constant 0.000000e+00 : f32
    %37 = vector.broadcast %cst_22 : f32 to vector<16x256xf32>
    %38 = arith.maximumf %36, %37 : vector<16x256xf32>
    %39 = arith.truncf %38 : vector<16x256xf32> to vector<16x256xbf16>
    %c0_23 = arith.constant 0 : index
    %c0_24 = arith.constant 0 : index
    %40 = vector.load %arg9[%c0_23, %c0_24] : memref<256x128xbf16, #tpu.memory_space<vmem>>, vector<256x128xbf16>
    %cst_25 = arith.constant dense<0.000000e+00> : vector<16x128xf32>
    %41 = tpu.matmul %39, %40, %cst_25 {dimension_numbers = #tpu.dot_dimension_numbers<[1], [0], [0], [1], [0, 0, 1, 1], [], []>} : vector<16x256xbf16>, vector<256x128xbf16>, vector<16x128xf32> -> vector<16x128xf32>
    %c0_26 = arith.constant 0 : index
    %c0_27 = arith.constant 0 : index
    %42 = vector.load %arg10[%c0_26, %c0_27] : memref<1x128xf32, #tpu.memory_space<vmem>>, vector<1x128xf32>
    %43 = vector.broadcast %42 : vector<1x128xf32> to vector<16x128xf32>
    %44 = arith.addf %41, %43 : vector<16x128xf32>
    %cst_28 = arith.constant 0.000000e+00 : f32
    %45 = vector.broadcast %cst_28 : f32 to vector<16x128xf32>
    %46 = arith.maximumf %44, %45 : vector<16x128xf32>
    %47 = arith.truncf %46 : vector<16x128xf32> to vector<16x128xbf16>
    %c0_29 = arith.constant 0 : index
    %c0_30 = arith.constant 0 : index
    %48 = vector.load %arg11[%c0_29, %c0_30] : memref<128x1xbf16, #tpu.memory_space<vmem>>, vector<128x1xbf16>
    %cst_31 = arith.constant dense<0.000000e+00> : vector<16x1xf32>
    %49 = tpu.matmul %47, %48, %cst_31 {dimension_numbers = #tpu.dot_dimension_numbers<[1], [0], [0], [1], [0, 0, 1, 1], [], []>} : vector<16x128xbf16>, vector<128x1xbf16>, vector<16x1xf32> -> vector<16x1xf32>
    %c0_32 = arith.constant 0 : index
    %c0_33 = arith.constant 0 : index
    %50 = vector.load %arg12[%c0_32, %c0_33] : memref<1x1xf32, #tpu.memory_space<vmem>>, vector<1x1xf32>
    %51 = vector.broadcast %50 : vector<1x1xf32> to vector<16x1xf32>
    %52 = arith.addf %49, %51 : vector<16x1xf32>
    %c0_34 = arith.constant 0 : index
    %c0_35 = arith.constant 0 : index
    %53 = vector.load %arg13[%c0_34, %c0_35] : memref<16x128xbf16, #tpu.memory_space<vmem>>, vector<16x128xbf16>
    %cst_36 = arith.constant dense<0.000000e+00> : vector<16x128xf32>
    %54 = tpu.matmul %5, %53, %cst_36 {dimension_numbers = #tpu.dot_dimension_numbers<[1], [0], [0], [1], [0, 0, 1, 1], [], []>} : vector<16x16xbf16>, vector<16x128xbf16>, vector<16x128xf32> -> vector<16x128xf32>
    %c0_37 = arith.constant 0 : index
    %c0_38 = arith.constant 0 : index
    %55 = vector.load %arg14[%c0_37, %c0_38] : memref<1x128xf32, #tpu.memory_space<vmem>>, vector<1x128xf32>
    %56 = vector.broadcast %55 : vector<1x128xf32> to vector<16x128xf32>
    %57 = arith.addf %54, %56 : vector<16x128xf32>
    %cst_39 = arith.constant 0.000000e+00 : f32
    %58 = vector.broadcast %cst_39 : f32 to vector<16x128xf32>
    %59 = arith.maximumf %57, %58 : vector<16x128xf32>
    %60 = arith.truncf %59 : vector<16x128xf32> to vector<16x128xbf16>
    %c0_40 = arith.constant 0 : index
    %c0_41 = arith.constant 0 : index
    %61 = vector.load %arg15[%c0_40, %c0_41] : memref<128x256xbf16, #tpu.memory_space<vmem>>, vector<128x256xbf16>
    %cst_42 = arith.constant dense<0.000000e+00> : vector<16x256xf32>
    %62 = tpu.matmul %60, %61, %cst_42 {dimension_numbers = #tpu.dot_dimension_numbers<[1], [0], [0], [1], [0, 0, 1, 1], [], []>} : vector<16x128xbf16>, vector<128x256xbf16>, vector<16x256xf32> -> vector<16x256xf32>
    %c0_43 = arith.constant 0 : index
    %c0_44 = arith.constant 0 : index
    %63 = vector.load %arg16[%c0_43, %c0_44] : memref<1x256xf32, #tpu.memory_space<vmem>>, vector<1x256xf32>
    %64 = vector.broadcast %63 : vector<1x256xf32> to vector<16x256xf32>
    %65 = arith.addf %62, %64 : vector<16x256xf32>
    %cst_45 = arith.constant 0.000000e+00 : f32
    %66 = vector.broadcast %cst_45 : f32 to vector<16x256xf32>
    %67 = arith.maximumf %65, %66 : vector<16x256xf32>
    %68 = arith.truncf %67 : vector<16x256xf32> to vector<16x256xbf16>
    %c0_46 = arith.constant 0 : index
    %c0_47 = arith.constant 0 : index
    %69 = vector.load %arg17[%c0_46, %c0_47] : memref<256x128xbf16, #tpu.memory_space<vmem>>, vector<256x128xbf16>
    %cst_48 = arith.constant dense<0.000000e+00> : vector<16x128xf32>
    %70 = tpu.matmul %68, %69, %cst_48 {dimension_numbers = #tpu.dot_dimension_numbers<[1], [0], [0], [1], [0, 0, 1, 1], [], []>} : vector<16x256xbf16>, vector<256x128xbf16>, vector<16x128xf32> -> vector<16x128xf32>
    %c0_49 = arith.constant 0 : index
    %c0_50 = arith.constant 0 : index
    %71 = vector.load %arg18[%c0_49, %c0_50] : memref<1x128xf32, #tpu.memory_space<vmem>>, vector<1x128xf32>
    %72 = vector.broadcast %71 : vector<1x128xf32> to vector<16x128xf32>
    %73 = arith.addf %70, %72 : vector<16x128xf32>
    %cst_51 = arith.constant 0.000000e+00 : f32
    %74 = vector.broadcast %cst_51 : f32 to vector<16x128xf32>
    %75 = arith.maximumf %73, %74 : vector<16x128xf32>
    %76 = arith.truncf %75 : vector<16x128xf32> to vector<16x128xbf16>
    %c0_52 = arith.constant 0 : index
    %c0_53 = arith.constant 0 : index
    %77 = vector.load %arg19[%c0_52, %c0_53] : memref<128x1xbf16, #tpu.memory_space<vmem>>, vector<128x1xbf16>
    %cst_54 = arith.constant dense<0.000000e+00> : vector<16x1xf32>
    %78 = tpu.matmul %76, %77, %cst_54 {dimension_numbers = #tpu.dot_dimension_numbers<[1], [0], [0], [1], [0, 0, 1, 1], [], []>} : vector<16x128xbf16>, vector<128x1xbf16>, vector<16x1xf32> -> vector<16x1xf32>
    %c0_55 = arith.constant 0 : index
    %c0_56 = arith.constant 0 : index
    %79 = vector.load %arg20[%c0_55, %c0_56] : memref<1x1xf32, #tpu.memory_space<vmem>>, vector<1x1xf32>
    %80 = vector.broadcast %79 : vector<1x1xf32> to vector<16x1xf32>
    %81 = arith.addf %78, %80 : vector<16x1xf32>
    %82 = arith.negf %52 : vector<16x1xf32>
    %83 = math.exp %82 : vector<16x1xf32>
    %cst_57 = arith.constant 1.000000e+00 : f32
    %84 = vector.broadcast %cst_57 : f32 to vector<16x1xf32>
    %85 = arith.addf %84, %83 : vector<16x1xf32>
    %86 = arith.divf %84, %85 : vector<16x1xf32>
    %87 = arith.mulf %86, %81 : vector<16x1xf32>
    %88 = arith.mulf %87, %7 : vector<16x1xf32>
    %cst_58 = arith.constant dense<0.000000e+00> : vector<2x1xf32>
    %89 = tpu.matmul %20, %88, %cst_58 {dimension_numbers = #tpu.dot_dimension_numbers<[1], [0], [0], [1], [0, 0, 1, 1], [], []>} : vector<2x16xf32>, vector<16x1xf32>, vector<2x1xf32> -> vector<2x1xf32>
    %c0_59 = arith.constant 0 : index
    %c0_60 = arith.constant 0 : index
    %c0_61 = arith.constant 0 : index
    %90 = vector.load %arg72[%c0_59, %c0_60, %c0_61] : memref<2x1x1xf32, #tpu.memory_space<vmem>>, vector<2x1x1xf32>
    %91 = vector.shape_cast %90 : vector<2x1x1xf32> to vector<2x1xf32>
    %92 = vector.shape_cast %89 : vector<2x1xf32> to vector<2x1x1xf32>
    tpu.vector_store %arg72[%c0_59, %c0_60, %c0_61], %92 {strides = array<i32>} : memref<2x1x1xf32, #tpu.memory_space<vmem>>, vector<2x1x1xf32>,
    %c0_62 = arith.constant 0 : index
    %c0_63 = arith.constant 0 : index
    %93 = vector.load %arg21[%c0_62, %c0_63] : memref<16x128xbf16, #tpu.memory_space<vmem>>, vector<16x128xbf16>
    %cst_64 = arith.constant dense<0.000000e+00> : vector<16x128xf32>
    %94 = tpu.matmul %2, %93, %cst_64 {dimension_numbers = #tpu.dot_dimension_numbers<[1], [0], [0], [1], [0, 0, 1, 1], [], []>} : vector<16x16xbf16>, vector<16x128xbf16>, vector<16x128xf32> -> vector<16x128xf32>
    %c0_65 = arith.constant 0 : index
    %c0_66 = arith.constant 0 : index
    %95 = vector.load %arg22[%c0_65, %c0_66] : memref<16x128xbf16, #tpu.memory_space<vmem>>, vector<16x128xbf16>
    %cst_67 = arith.constant dense<0.000000e+00> : vector<16x128xf32>
    %96 = tpu.matmul %5, %95, %cst_67 {dimension_numbers = #tpu.dot_dimension_numbers<[1], [0], [0], [1], [0, 0, 1, 1], [], []>} : vector<16x16xbf16>, vector<16x128xbf16>, vector<16x128xf32> -> vector<16x128xf32>
    %97 = arith.addf %94, %96 : vector<16x128xf32>
    %c0_68 = arith.constant 0 : index
    %c0_69 = arith.constant 0 : index
    %98 = vector.load %arg23[%c0_68, %c0_69] : memref<1x128xf32, #tpu.memory_space<vmem>>, vector<1x128xf32>
    %99 = vector.broadcast %98 : vector<1x128xf32> to vector<16x128xf32>
    %100 = arith.addf %97, %99 : vector<16x128xf32>
    %cst_70 = arith.constant 0.000000e+00 : f32
    %101 = vector.broadcast %cst_70 : f32 to vector<16x128xf32>
    %102 = arith.maximumf %100, %101 : vector<16x128xf32>
    %103 = arith.truncf %102 : vector<16x128xf32> to vector<16x128xbf16>
    %c0_71 = arith.constant 0 : index
    %c0_72 = arith.constant 0 : index
    %104 = vector.load %arg24[%c0_71, %c0_72] : memref<128x256xbf16, #tpu.memory_space<vmem>>, vector<128x256xbf16>
    %cst_73 = arith.constant dense<0.000000e+00> : vector<16x256xf32>
    %105 = tpu.matmul %103, %104, %cst_73 {dimension_numbers = #tpu.dot_dimension_numbers<[1], [0], [0], [1], [0, 0, 1, 1], [], []>} : vector<16x128xbf16>, vector<128x256xbf16>, vector<16x256xf32> -> vector<16x256xf32>
    %c0_74 = arith.constant 0 : index
    %c0_75 = arith.constant 0 : index
    %106 = vector.load %arg25[%c0_74, %c0_75] : memref<1x256xf32, #tpu.memory_space<vmem>>, vector<1x256xf32>
    %107 = vector.broadcast %106 : vector<1x256xf32> to vector<16x256xf32>
    %108 = arith.addf %105, %107 : vector<16x256xf32>
    %cst_76 = arith.constant 0.000000e+00 : f32
    %109 = vector.broadcast %cst_76 : f32 to vector<16x256xf32>
    %110 = arith.maximumf %108, %109 : vector<16x256xf32>
    %111 = arith.truncf %110 : vector<16x256xf32> to vector<16x256xbf16>
    %c0_77 = arith.constant 0 : index
    %c0_78 = arith.constant 0 : index
    %112 = vector.load %arg26[%c0_77, %c0_78] : memref<256x128xbf16, #tpu.memory_space<vmem>>, vector<256x128xbf16>
    %cst_79 = arith.constant dense<0.000000e+00> : vector<16x128xf32>
    %113 = tpu.matmul %111, %112, %cst_79 {dimension_numbers = #tpu.dot_dimension_numbers<[1], [0], [0], [1], [0, 0, 1, 1], [], []>} : vector<16x256xbf16>, vector<256x128xbf16>, vector<16x128xf32> -> vector<16x128xf32>
    %c0_80 = arith.constant 0 : index
    %c0_81 = arith.constant 0 : index
    %114 = vector.load %arg27[%c0_80, %c0_81] : memref<1x128xf32, #tpu.memory_space<vmem>>, vector<1x128xf32>
    %115 = vector.broadcast %114 : vector<1x128xf32> to vector<16x128xf32>
    %116 = arith.addf %113, %115 : vector<16x128xf32>
    %cst_82 = arith.constant 0.000000e+00 : f32
    %117 = vector.broadcast %cst_82 : f32 to vector<16x128xf32>
    %118 = arith.maximumf %116, %117 : vector<16x128xf32>
    %119 = arith.truncf %118 : vector<16x128xf32> to vector<16x128xbf16>
    %c0_83 = arith.constant 0 : index
    %c0_84 = arith.constant 0 : index
    %120 = vector.load %arg28[%c0_83, %c0_84] : memref<128x7xbf16, #tpu.memory_space<vmem>>, vector<128x7xbf16>
    %cst_85 = arith.constant dense<0.000000e+00> : vector<16x7xf32>
    %121 = tpu.matmul %119, %120, %cst_85 {dimension_numbers = #tpu.dot_dimension_numbers<[1], [0], [0], [1], [0, 0, 1, 1], [], []>} : vector<16x128xbf16>, vector<128x7xbf16>, vector<16x7xf32> -> vector<16x7xf32>
    %c0_86 = arith.constant 0 : index
    %c0_87 = arith.constant 0 : index
    %122 = vector.load %arg29[%c0_86, %c0_87] : memref<1x7xf32, #tpu.memory_space<vmem>>, vector<1x7xf32>
    %123 = vector.broadcast %122 : vector<1x7xf32> to vector<16x7xf32>
    %124 = arith.addf %121, %123 : vector<16x7xf32>
    %c0_88 = arith.constant 0 : index
    %c0_89 = arith.constant 0 : index
    %125 = vector.load %arg30[%c0_88, %c0_89] : memref<16x128xbf16, #tpu.memory_space<vmem>>, vector<16x128xbf16>
    %cst_90 = arith.constant dense<0.000000e+00> : vector<16x128xf32>
    %126 = tpu.matmul %5, %125, %cst_90 {dimension_numbers = #tpu.dot_dimension_numbers<[1], [0], [0], [1], [0, 0, 1, 1], [], []>} : vector<16x16xbf16>, vector<16x128xbf16>, vector<16x128xf32> -> vector<16x128xf32>
    %c0_91 = arith.constant 0 : index
    %c0_92 = arith.constant 0 : index
    %127 = vector.load %arg31[%c0_91, %c0_92] : memref<1x128xf32, #tpu.memory_space<vmem>>, vector<1x128xf32>
    %128 = vector.broadcast %127 : vector<1x128xf32> to vector<16x128xf32>
    %129 = arith.addf %126, %128 : vector<16x128xf32>
    %cst_93 = arith.constant 0.000000e+00 : f32
    %130 = vector.broadcast %cst_93 : f32 to vector<16x128xf32>
    %131 = arith.maximumf %129, %130 : vector<16x128xf32>
    %132 = arith.truncf %131 : vector<16x128xf32> to vector<16x128xbf16>
    %c0_94 = arith.constant 0 : index
    %c0_95 = arith.constant 0 : index
    %133 = vector.load %arg32[%c0_94, %c0_95] : memref<128x256xbf16, #tpu.memory_space<vmem>>, vector<128x256xbf16>
    %cst_96 = arith.constant dense<0.000000e+00> : vector<16x256xf32>
    %134 = tpu.matmul %132, %133, %cst_96 {dimension_numbers = #tpu.dot_dimension_numbers<[1], [0], [0], [1], [0, 0, 1, 1], [], []>} : vector<16x128xbf16>, vector<128x256xbf16>, vector<16x256xf32> -> vector<16x256xf32>
    %c0_97 = arith.constant 0 : index
    %c0_98 = arith.constant 0 : index
    %135 = vector.load %arg33[%c0_97, %c0_98] : memref<1x256xf32, #tpu.memory_space<vmem>>, vector<1x256xf32>
    %136 = vector.broadcast %135 : vector<1x256xf32> to vector<16x256xf32>
    %137 = arith.addf %134, %136 : vector<16x256xf32>
    %cst_99 = arith.constant 0.000000e+00 : f32
    %138 = vector.broadcast %cst_99 : f32 to vector<16x256xf32>
    %139 = arith.maximumf %137, %138 : vector<16x256xf32>
    %140 = arith.truncf %139 : vector<16x256xf32> to vector<16x256xbf16>
    %c0_100 = arith.constant 0 : index
    %c0_101 = arith.constant 0 : index
    %141 = vector.load %arg34[%c0_100, %c0_101] : memref<256x128xbf16, #tpu.memory_space<vmem>>, vector<256x128xbf16>
    %cst_102 = arith.constant dense<0.000000e+00> : vector<16x128xf32>
    %142 = tpu.matmul %140, %141, %cst_102 {dimension_numbers = #tpu.dot_dimension_numbers<[1], [0], [0], [1], [0, 0, 1, 1], [], []>} : vector<16x256xbf16>, vector<256x128xbf16>, vector<16x128xf32> -> vector<16x128xf32>
    %c0_103 = arith.constant 0 : index
    %c0_104 = arith.constant 0 : index
    %143 = vector.load %arg35[%c0_103, %c0_104] : memref<1x128xf32, #tpu.memory_space<vmem>>, vector<1x128xf32>
    %144 = vector.broadcast %143 : vector<1x128xf32> to vector<16x128xf32>
    %145 = arith.addf %142, %144 : vector<16x128xf32>
    %cst_105 = arith.constant 0.000000e+00 : f32
    %146 = vector.broadcast %cst_105 : f32 to vector<16x128xf32>
    %147 = arith.maximumf %145, %146 : vector<16x128xf32>
    %148 = arith.truncf %147 : vector<16x128xf32> to vector<16x128xbf16>
    %c0_106 = arith.constant 0 : index
    %c0_107 = arith.constant 0 : index
    %149 = vector.load %arg36[%c0_106, %c0_107] : memref<128x7xbf16, #tpu.memory_space<vmem>>, vector<128x7xbf16>
    %cst_108 = arith.constant dense<0.000000e+00> : vector<16x7xf32>
    %150 = tpu.matmul %148, %149, %cst_108 {dimension_numbers = #tpu.dot_dimension_numbers<[1], [0], [0], [1], [0, 0, 1, 1], [], []>} : vector<16x128xbf16>, vector<128x7xbf16>, vector<16x7xf32> -> vector<16x7xf32>
    %c0_109 = arith.constant 0 : index
    %c0_110 = arith.constant 0 : index
    %151 = vector.load %arg37[%c0_109, %c0_110] : memref<1x7xf32, #tpu.memory_space<vmem>>, vector<1x7xf32>
    %152 = vector.broadcast %151 : vector<1x7xf32> to vector<16x7xf32>
    %153 = arith.addf %150, %152 : vector<16x7xf32>
    %154 = arith.negf %124 : vector<16x7xf32>
    %155 = math.exp %154 : vector<16x7xf32>
    %cst_111 = arith.constant 1.000000e+00 : f32
    %156 = vector.broadcast %cst_111 : f32 to vector<16x7xf32>
    %157 = arith.addf %156, %155 : vector<16x7xf32>
    %158 = arith.divf %156, %157 : vector<16x7xf32>
    %159 = arith.mulf %158, %153 : vector<16x7xf32>
    %160 = vector.broadcast %7 : vector<16x1xf32> to vector<16x7xf32>
    %161 = arith.mulf %159, %160 : vector<16x7xf32>
    %cst_112 = arith.constant dense<0.000000e+00> : vector<2x7xf32>
    %162 = tpu.matmul %20, %161, %cst_112 {dimension_numbers = #tpu.dot_dimension_numbers<[1], [0], [0], [1], [0, 0, 1, 1], [], []>} : vector<2x16xf32>, vector<16x7xf32>, vector<2x7xf32> -> vector<2x7xf32>
    %c0_113 = arith.constant 0 : index
    %c0_114 = arith.constant 0 : index
    %c0_115 = arith.constant 0 : index
    %163 = vector.load %arg73[%c0_113, %c0_114, %c0_115] : memref<2x1x7xf32, #tpu.memory_space<vmem>>, vector<2x1x7xf32>
    %164 = vector.shape_cast %163 : vector<2x1x7xf32> to vector<2x7xf32>
    %165 = vector.shape_cast %162 : vector<2x7xf32> to vector<2x1x7xf32>
    tpu.vector_store %arg73[%c0_113, %c0_114, %c0_115], %165 {strides = array<i32>} : memref<2x1x7xf32, #tpu.memory_space<vmem>>, vector<2x1x7xf32>,
    %c0_116 = arith.constant 0 : index
    %c0_117 = arith.constant 0 : index
    %166 = vector.load %arg38[%c0_116, %c0_117] : memref<16x128xbf16, #tpu.memory_space<vmem>>, vector<16x128xbf16>
    %cst_118 = arith.constant dense<0.000000e+00> : vector<16x128xf32>
    %167 = tpu.matmul %2, %166, %cst_118 {dimension_numbers = #tpu.dot_dimension_numbers<[1], [0], [0], [1], [0, 0, 1, 1], [], []>} : vector<16x16xbf16>, vector<16x128xbf16>, vector<16x128xf32> -> vector<16x128xf32>
    %c0_119 = arith.constant 0 : index
    %c0_120 = arith.constant 0 : index
    %168 = vector.load %arg39[%c0_119, %c0_120] : memref<16x128xbf16, #tpu.memory_space<vmem>>, vector<16x128xbf16>
    %cst_121 = arith.constant dense<0.000000e+00> : vector<16x128xf32>
    %169 = tpu.matmul %5, %168, %cst_121 {dimension_numbers = #tpu.dot_dimension_numbers<[1], [0], [0], [1], [0, 0, 1, 1], [], []>} : vector<16x16xbf16>, vector<16x128xbf16>, vector<16x128xf32> -> vector<16x128xf32>
    %170 = arith.addf %167, %169 : vector<16x128xf32>
    %c0_122 = arith.constant 0 : index
    %c0_123 = arith.constant 0 : index
    %171 = vector.load %arg40[%c0_122, %c0_123] : memref<1x128xf32, #tpu.memory_space<vmem>>, vector<1x128xf32>
    %172 = vector.broadcast %171 : vector<1x128xf32> to vector<16x128xf32>
    %173 = arith.addf %170, %172 : vector<16x128xf32>
    %cst_124 = arith.constant 0.000000e+00 : f32
    %174 = vector.broadcast %cst_124 : f32 to vector<16x128xf32>
    %175 = arith.maximumf %173, %174 : vector<16x128xf32>
    %176 = arith.truncf %175 : vector<16x128xf32> to vector<16x128xbf16>
    %c0_125 = arith.constant 0 : index
    %c0_126 = arith.constant 0 : index
    %177 = vector.load %arg41[%c0_125, %c0_126] : memref<128x256xbf16, #tpu.memory_space<vmem>>, vector<128x256xbf16>
    %cst_127 = arith.constant dense<0.000000e+00> : vector<16x256xf32>
    %178 = tpu.matmul %176, %177, %cst_127 {dimension_numbers = #tpu.dot_dimension_numbers<[1], [0], [0], [1], [0, 0, 1, 1], [], []>} : vector<16x128xbf16>, vector<128x256xbf16>, vector<16x256xf32> -> vector<16x256xf32>
    %c0_128 = arith.constant 0 : index
    %c0_129 = arith.constant 0 : index
    %179 = vector.load %arg42[%c0_128, %c0_129] : memref<1x256xf32, #tpu.memory_space<vmem>>, vector<1x256xf32>
    %180 = vector.broadcast %179 : vector<1x256xf32> to vector<16x256xf32>
    %181 = arith.addf %178, %180 : vector<16x256xf32>
    %cst_130 = arith.constant 0.000000e+00 : f32
    %182 = vector.broadcast %cst_130 : f32 to vector<16x256xf32>
    %183 = arith.maximumf %181, %182 : vector<16x256xf32>
    %184 = arith.truncf %183 : vector<16x256xf32> to vector<16x256xbf16>
    %c0_131 = arith.constant 0 : index
    %c0_132 = arith.constant 0 : index
    %185 = vector.load %arg43[%c0_131, %c0_132] : memref<256x128xbf16, #tpu.memory_space<vmem>>, vector<256x128xbf16>
    %cst_133 = arith.constant dense<0.000000e+00> : vector<16x128xf32>
    %186 = tpu.matmul %184, %185, %cst_133 {dimension_numbers = #tpu.dot_dimension_numbers<[1], [0], [0], [1], [0, 0, 1, 1], [], []>} : vector<16x256xbf16>, vector<256x128xbf16>, vector<16x128xf32> -> vector<16x128xf32>
    %c0_134 = arith.constant 0 : index
    %c0_135 = arith.constant 0 : index
    %187 = vector.load %arg44[%c0_134, %c0_135] : memref<1x128xf32, #tpu.memory_space<vmem>>, vector<1x128xf32>
    %188 = vector.broadcast %187 : vector<1x128xf32> to vector<16x128xf32>
    %189 = arith.addf %186, %188 : vector<16x128xf32>
    %cst_136 = arith.constant 0.000000e+00 : f32
    %190 = vector.broadcast %cst_136 : f32 to vector<16x128xf32>
    %191 = arith.maximumf %189, %190 : vector<16x128xf32>
    %192 = arith.truncf %191 : vector<16x128xf32> to vector<16x128xbf16>
    %c0_137 = arith.constant 0 : index
    %c0_138 = arith.constant 0 : index
    %193 = vector.load %arg45[%c0_137, %c0_138] : memref<128x7xbf16, #tpu.memory_space<vmem>>, vector<128x7xbf16>
    %cst_139 = arith.constant dense<0.000000e+00> : vector<16x7xf32>
    %194 = tpu.matmul %192, %193, %cst_139 {dimension_numbers = #tpu.dot_dimension_numbers<[1], [0], [0], [1], [0, 0, 1, 1], [], []>} : vector<16x128xbf16>, vector<128x7xbf16>, vector<16x7xf32> -> vector<16x7xf32>
    %c0_140 = arith.constant 0 : index
    %c0_141 = arith.constant 0 : index
    %195 = vector.load %arg46[%c0_140, %c0_141] : memref<1x7xf32, #tpu.memory_space<vmem>>, vector<1x7xf32>
    %196 = vector.broadcast %195 : vector<1x7xf32> to vector<16x7xf32>
    %197 = arith.addf %194, %196 : vector<16x7xf32>
    %c0_142 = arith.constant 0 : index
    %c0_143 = arith.constant 0 : index
    %198 = vector.load %arg47[%c0_142, %c0_143] : memref<16x128xbf16, #tpu.memory_space<vmem>>, vector<16x128xbf16>
    %cst_144 = arith.constant dense<0.000000e+00> : vector<16x128xf32>
    %199 = tpu.matmul %5, %198, %cst_144 {dimension_numbers = #tpu.dot_dimension_numbers<[1], [0], [0], [1], [0, 0, 1, 1], [], []>} : vector<16x16xbf16>, vector<16x128xbf16>, vector<16x128xf32> -> vector<16x128xf32>
    %c0_145 = arith.constant 0 : index
    %c0_146 = arith.constant 0 : index
    %200 = vector.load %arg48[%c0_145, %c0_146] : memref<1x128xf32, #tpu.memory_space<vmem>>, vector<1x128xf32>
    %201 = vector.broadcast %200 : vector<1x128xf32> to vector<16x128xf32>
    %202 = arith.addf %199, %201 : vector<16x128xf32>
    %cst_147 = arith.constant 0.000000e+00 : f32
    %203 = vector.broadcast %cst_147 : f32 to vector<16x128xf32>
    %204 = arith.maximumf %202, %203 : vector<16x128xf32>
    %205 = arith.truncf %204 : vector<16x128xf32> to vector<16x128xbf16>
    %c0_148 = arith.constant 0 : index
    %c0_149 = arith.constant 0 : index
    %206 = vector.load %arg49[%c0_148, %c0_149] : memref<128x256xbf16, #tpu.memory_space<vmem>>, vector<128x256xbf16>
    %cst_150 = arith.constant dense<0.000000e+00> : vector<16x256xf32>
    %207 = tpu.matmul %205, %206, %cst_150 {dimension_numbers = #tpu.dot_dimension_numbers<[1], [0], [0], [1], [0, 0, 1, 1], [], []>} : vector<16x128xbf16>, vector<128x256xbf16>, vector<16x256xf32> -> vector<16x256xf32>
    %c0_151 = arith.constant 0 : index
    %c0_152 = arith.constant 0 : index
    %208 = vector.load %arg50[%c0_151, %c0_152] : memref<1x256xf32, #tpu.memory_space<vmem>>, vector<1x256xf32>
    %209 = vector.broadcast %208 : vector<1x256xf32> to vector<16x256xf32>
    %210 = arith.addf %207, %209 : vector<16x256xf32>
    %cst_153 = arith.constant 0.000000e+00 : f32
    %211 = vector.broadcast %cst_153 : f32 to vector<16x256xf32>
    %212 = arith.maximumf %210, %211 : vector<16x256xf32>
    %213 = arith.truncf %212 : vector<16x256xf32> to vector<16x256xbf16>
    %c0_154 = arith.constant 0 : index
    %c0_155 = arith.constant 0 : index
    %214 = vector.load %arg51[%c0_154, %c0_155] : memref<256x128xbf16, #tpu.memory_space<vmem>>, vector<256x128xbf16>
    %cst_156 = arith.constant dense<0.000000e+00> : vector<16x128xf32>
    %215 = tpu.matmul %213, %214, %cst_156 {dimension_numbers = #tpu.dot_dimension_numbers<[1], [0], [0], [1], [0, 0, 1, 1], [], []>} : vector<16x256xbf16>, vector<256x128xbf16>, vector<16x128xf32> -> vector<16x128xf32>
    %c0_157 = arith.constant 0 : index
    %c0_158 = arith.constant 0 : index
    %216 = vector.load %arg52[%c0_157, %c0_158] : memref<1x128xf32, #tpu.memory_space<vmem>>, vector<1x128xf32>
    %217 = vector.broadcast %216 : vector<1x128xf32> to vector<16x128xf32>
    %218 = arith.addf %215, %217 : vector<16x128xf32>
    %cst_159 = arith.constant 0.000000e+00 : f32
    %219 = vector.broadcast %cst_159 : f32 to vector<16x128xf32>
    %220 = arith.maximumf %218, %219 : vector<16x128xf32>
    %221 = arith.truncf %220 : vector<16x128xf32> to vector<16x128xbf16>
    %c0_160 = arith.constant 0 : index
    %c0_161 = arith.constant 0 : index
    %222 = vector.load %arg53[%c0_160, %c0_161] : memref<128x7xbf16, #tpu.memory_space<vmem>>, vector<128x7xbf16>
    %cst_162 = arith.constant dense<0.000000e+00> : vector<16x7xf32>
    %223 = tpu.matmul %221, %222, %cst_162 {dimension_numbers = #tpu.dot_dimension_numbers<[1], [0], [0], [1], [0, 0, 1, 1], [], []>} : vector<16x128xbf16>, vector<128x7xbf16>, vector<16x7xf32> -> vector<16x7xf32>
    %c0_163 = arith.constant 0 : index
    %c0_164 = arith.constant 0 : index
    %224 = vector.load %arg54[%c0_163, %c0_164] : memref<1x7xf32, #tpu.memory_space<vmem>>, vector<1x7xf32>
    %225 = vector.broadcast %224 : vector<1x7xf32> to vector<16x7xf32>
    %226 = arith.addf %223, %225 : vector<16x7xf32>
    %227 = arith.negf %197 : vector<16x7xf32>
    %228 = math.exp %227 : vector<16x7xf32>
    %cst_165 = arith.constant 1.000000e+00 : f32
    %229 = vector.broadcast %cst_165 : f32 to vector<16x7xf32>
    %230 = arith.addf %229, %228 : vector<16x7xf32>
    %231 = arith.divf %229, %230 : vector<16x7xf32>
    %232 = arith.mulf %231, %226 : vector<16x7xf32>
    %233 = vector.broadcast %7 : vector<16x1xf32> to vector<16x7xf32>
    %234 = arith.mulf %232, %233 : vector<16x7xf32>
    %cst_166 = arith.constant dense<0.000000e+00> : vector<2x7xf32>
    %235 = tpu.matmul %20, %234, %cst_166 {dimension_numbers = #tpu.dot_dimension_numbers<[1], [0], [0], [1], [0, 0, 1, 1], [], []>} : vector<2x16xf32>, vector<16x7xf32>, vector<2x7xf32> -> vector<2x7xf32>
    %c0_167 = arith.constant 0 : index
    %c0_168 = arith.constant 0 : index
    %c0_169 = arith.constant 0 : index
    %236 = vector.load %arg74[%c0_167, %c0_168, %c0_169] : memref<2x1x7xf32, #tpu.memory_space<vmem>>, vector<2x1x7xf32>
    %237 = vector.shape_cast %236 : vector<2x1x7xf32> to vector<2x7xf32>
    %238 = vector.shape_cast %235 : vector<2x7xf32> to vector<2x1x7xf32>
    tpu.vector_store %arg74[%c0_167, %c0_168, %c0_169], %238 {strides = array<i32>} : memref<2x1x7xf32, #tpu.memory_space<vmem>>, vector<2x1x7xf32>,
    %c0_170 = arith.constant 0 : index
    %c0_171 = arith.constant 0 : index
    %239 = vector.load %arg55[%c0_170, %c0_171] : memref<16x128xbf16, #tpu.memory_space<vmem>>, vector<16x128xbf16>
    %cst_172 = arith.constant dense<0.000000e+00> : vector<16x128xf32>
    %240 = tpu.matmul %2, %239, %cst_172 {dimension_numbers = #tpu.dot_dimension_numbers<[1], [0], [0], [1], [0, 0, 1, 1], [], []>} : vector<16x16xbf16>, vector<16x128xbf16>, vector<16x128xf32> -> vector<16x128xf32>
    %c0_173 = arith.constant 0 : index
    %c0_174 = arith.constant 0 : index
    %241 = vector.load %arg56[%c0_173, %c0_174] : memref<16x128xbf16, #tpu.memory_space<vmem>>, vector<16x128xbf16>
    %cst_175 = arith.constant dense<0.000000e+00> : vector<16x128xf32>
    %242 = tpu.matmul %5, %241, %cst_175 {dimension_numbers = #tpu.dot_dimension_numbers<[1], [0], [0], [1], [0, 0, 1, 1], [], []>} : vector<16x16xbf16>, vector<16x128xbf16>, vector<16x128xf32> -> vector<16x128xf32>
    %243 = arith.addf %240, %242 : vector<16x128xf32>
    %c0_176 = arith.constant 0 : index
    %c0_177 = arith.constant 0 : index
    %244 = vector.load %arg57[%c0_176, %c0_177] : memref<1x128xf32, #tpu.memory_space<vmem>>, vector<1x128xf32>
    %245 = vector.broadcast %244 : vector<1x128xf32> to vector<16x128xf32>
    %246 = arith.addf %243, %245 : vector<16x128xf32>
    %cst_178 = arith.constant 0.000000e+00 : f32
    %247 = vector.broadcast %cst_178 : f32 to vector<16x128xf32>
    %248 = arith.maximumf %246, %247 : vector<16x128xf32>
    %249 = arith.truncf %248 : vector<16x128xf32> to vector<16x128xbf16>
    %c0_179 = arith.constant 0 : index
    %c0_180 = arith.constant 0 : index
    %250 = vector.load %arg58[%c0_179, %c0_180] : memref<128x256xbf16, #tpu.memory_space<vmem>>, vector<128x256xbf16>
    %cst_181 = arith.constant dense<0.000000e+00> : vector<16x256xf32>
    %251 = tpu.matmul %249, %250, %cst_181 {dimension_numbers = #tpu.dot_dimension_numbers<[1], [0], [0], [1], [0, 0, 1, 1], [], []>} : vector<16x128xbf16>, vector<128x256xbf16>, vector<16x256xf32> -> vector<16x256xf32>
    %c0_182 = arith.constant 0 : index
    %c0_183 = arith.constant 0 : index
    %252 = vector.load %arg59[%c0_182, %c0_183] : memref<1x256xf32, #tpu.memory_space<vmem>>, vector<1x256xf32>
    %253 = vector.broadcast %252 : vector<1x256xf32> to vector<16x256xf32>
    %254 = arith.addf %251, %253 : vector<16x256xf32>
    %cst_184 = arith.constant 0.000000e+00 : f32
    %255 = vector.broadcast %cst_184 : f32 to vector<16x256xf32>
    %256 = arith.maximumf %254, %255 : vector<16x256xf32>
    %257 = arith.truncf %256 : vector<16x256xf32> to vector<16x256xbf16>
    %c0_185 = arith.constant 0 : index
    %c0_186 = arith.constant 0 : index
    %258 = vector.load %arg60[%c0_185, %c0_186] : memref<256x128xbf16, #tpu.memory_space<vmem>>, vector<256x128xbf16>
    %cst_187 = arith.constant dense<0.000000e+00> : vector<16x128xf32>
    %259 = tpu.matmul %257, %258, %cst_187 {dimension_numbers = #tpu.dot_dimension_numbers<[1], [0], [0], [1], [0, 0, 1, 1], [], []>} : vector<16x256xbf16>, vector<256x128xbf16>, vector<16x128xf32> -> vector<16x128xf32>
    %c0_188 = arith.constant 0 : index
    %c0_189 = arith.constant 0 : index
    %260 = vector.load %arg61[%c0_188, %c0_189] : memref<1x128xf32, #tpu.memory_space<vmem>>, vector<1x128xf32>
    %261 = vector.broadcast %260 : vector<1x128xf32> to vector<16x128xf32>
    %262 = arith.addf %259, %261 : vector<16x128xf32>
    %cst_190 = arith.constant 0.000000e+00 : f32
    %263 = vector.broadcast %cst_190 : f32 to vector<16x128xf32>
    %264 = arith.maximumf %262, %263 : vector<16x128xf32>
    %265 = arith.truncf %264 : vector<16x128xf32> to vector<16x128xbf16>
    %c0_191 = arith.constant 0 : index
    %c0_192 = arith.constant 0 : index
    %266 = vector.load %arg62[%c0_191, %c0_192] : memref<128x1xbf16, #tpu.memory_space<vmem>>, vector<128x1xbf16>
    %cst_193 = arith.constant dense<0.000000e+00> : vector<16x1xf32>
    %267 = tpu.matmul %265, %266, %cst_193 {dimension_numbers = #tpu.dot_dimension_numbers<[1], [0], [0], [1], [0, 0, 1, 1], [], []>} : vector<16x128xbf16>, vector<128x1xbf16>, vector<16x1xf32> -> vector<16x1xf32>
    %c0_194 = arith.constant 0 : index
    %c0_195 = arith.constant 0 : index
    %268 = vector.load %arg63[%c0_194, %c0_195] : memref<1x1xf32, #tpu.memory_space<vmem>>, vector<1x1xf32>
    %269 = vector.broadcast %268 : vector<1x1xf32> to vector<16x1xf32>
    %270 = arith.addf %267, %269 : vector<16x1xf32>
    %c0_196 = arith.constant 0 : index
    %c0_197 = arith.constant 0 : index
    %271 = vector.load %arg64[%c0_196, %c0_197] : memref<16x128xbf16, #tpu.memory_space<vmem>>, vector<16x128xbf16>
    %cst_198 = arith.constant dense<0.000000e+00> : vector<16x128xf32>
    %272 = tpu.matmul %5, %271, %cst_198 {dimension_numbers = #tpu.dot_dimension_numbers<[1], [0], [0], [1], [0, 0, 1, 1], [], []>} : vector<16x16xbf16>, vector<16x128xbf16>, vector<16x128xf32> -> vector<16x128xf32>
    %c0_199 = arith.constant 0 : index
    %c0_200 = arith.constant 0 : index
    %273 = vector.load %arg65[%c0_199, %c0_200] : memref<1x128xf32, #tpu.memory_space<vmem>>, vector<1x128xf32>
    %274 = vector.broadcast %273 : vector<1x128xf32> to vector<16x128xf32>
    %275 = arith.addf %272, %274 : vector<16x128xf32>
    %cst_201 = arith.constant 0.000000e+00 : f32
    %276 = vector.broadcast %cst_201 : f32 to vector<16x128xf32>
    %277 = arith.maximumf %275, %276 : vector<16x128xf32>
    %278 = arith.truncf %277 : vector<16x128xf32> to vector<16x128xbf16>
    %c0_202 = arith.constant 0 : index
    %c0_203 = arith.constant 0 : index
    %279 = vector.load %arg66[%c0_202, %c0_203] : memref<128x256xbf16, #tpu.memory_space<vmem>>, vector<128x256xbf16>
    %cst_204 = arith.constant dense<0.000000e+00> : vector<16x256xf32>
    %280 = tpu.matmul %278, %279, %cst_204 {dimension_numbers = #tpu.dot_dimension_numbers<[1], [0], [0], [1], [0, 0, 1, 1], [], []>} : vector<16x128xbf16>, vector<128x256xbf16>, vector<16x256xf32> -> vector<16x256xf32>
    %c0_205 = arith.constant 0 : index
    %c0_206 = arith.constant 0 : index
    %281 = vector.load %arg67[%c0_205, %c0_206] : memref<1x256xf32, #tpu.memory_space<vmem>>, vector<1x256xf32>
    %282 = vector.broadcast %281 : vector<1x256xf32> to vector<16x256xf32>
    %283 = arith.addf %280, %282 : vector<16x256xf32>
    %cst_207 = arith.constant 0.000000e+00 : f32
    %284 = vector.broadcast %cst_207 : f32 to vector<16x256xf32>
    %285 = arith.maximumf %283, %284 : vector<16x256xf32>
    %286 = arith.truncf %285 : vector<16x256xf32> to vector<16x256xbf16>
    %c0_208 = arith.constant 0 : index
    %c0_209 = arith.constant 0 : index
    %287 = vector.load %arg68[%c0_208, %c0_209] : memref<256x128xbf16, #tpu.memory_space<vmem>>, vector<256x128xbf16>
    %cst_210 = arith.constant dense<0.000000e+00> : vector<16x128xf32>
    %288 = tpu.matmul %286, %287, %cst_210 {dimension_numbers = #tpu.dot_dimension_numbers<[1], [0], [0], [1], [0, 0, 1, 1], [], []>} : vector<16x256xbf16>, vector<256x128xbf16>, vector<16x128xf32> -> vector<16x128xf32>
    %c0_211 = arith.constant 0 : index
    %c0_212 = arith.constant 0 : index
    %289 = vector.load %arg69[%c0_211, %c0_212] : memref<1x128xf32, #tpu.memory_space<vmem>>, vector<1x128xf32>
    %290 = vector.broadcast %289 : vector<1x128xf32> to vector<16x128xf32>
    %291 = arith.addf %288, %290 : vector<16x128xf32>
    %cst_213 = arith.constant 0.000000e+00 : f32
    %292 = vector.broadcast %cst_213 : f32 to vector<16x128xf32>
    %293 = arith.maximumf %291, %292 : vector<16x128xf32>
    %294 = arith.truncf %293 : vector<16x128xf32> to vector<16x128xbf16>
    %c0_214 = arith.constant 0 : index
    %c0_215 = arith.constant 0 : index
    %295 = vector.load %arg70[%c0_214, %c0_215] : memref<128x1xbf16, #tpu.memory_space<vmem>>, vector<128x1xbf16>
    %cst_216 = arith.constant dense<0.000000e+00> : vector<16x1xf32>
    %296 = tpu.matmul %294, %295, %cst_216 {dimension_numbers = #tpu.dot_dimension_numbers<[1], [0], [0], [1], [0, 0, 1, 1], [], []>} : vector<16x128xbf16>, vector<128x1xbf16>, vector<16x1xf32> -> vector<16x1xf32>
    %c0_217 = arith.constant 0 : index
    %c0_218 = arith.constant 0 : index
    %297 = vector.load %arg71[%c0_217, %c0_218] : memref<1x1xf32, #tpu.memory_space<vmem>>, vector<1x1xf32>
    %298 = vector.broadcast %297 : vector<1x1xf32> to vector<16x1xf32>
    %299 = arith.addf %296, %298 : vector<16x1xf32>
    %300 = arith.negf %270 : vector<16x1xf32>
    %301 = math.exp %300 : vector<16x1xf32>
    %cst_219 = arith.constant 1.000000e+00 : f32
    %302 = vector.broadcast %cst_219 : f32 to vector<16x1xf32>
    %303 = arith.addf %302, %301 : vector<16x1xf32>
    %304 = arith.divf %302, %303 : vector<16x1xf32>
    %305 = arith.mulf %304, %299 : vector<16x1xf32>
    %306 = arith.mulf %305, %7 : vector<16x1xf32>
    %cst_220 = arith.constant dense<0.000000e+00> : vector<2x1xf32>
    %307 = tpu.matmul %20, %306, %cst_220 {dimension_numbers = #tpu.dot_dimension_numbers<[1], [0], [0], [1], [0, 0, 1, 1], [], []>} : vector<2x16xf32>, vector<16x1xf32>, vector<2x1xf32> -> vector<2x1xf32>
    %c0_221 = arith.constant 0 : index
    %c0_222 = arith.constant 0 : index
    %c0_223 = arith.constant 0 : index
    %308 = vector.load %arg75[%c0_221, %c0_222, %c0_223] : memref<2x1x1xf32, #tpu.memory_space<vmem>>, vector<2x1x1xf32>
    %309 = vector.shape_cast %308 : vector<2x1x1xf32> to vector<2x1xf32>
    %310 = vector.shape_cast %307 : vector<2x1xf32> to vector<2x1x1xf32>
    tpu.vector_store %arg75[%c0_221, %c0_222, %c0_223], %310 {strides = array<i32>} : memref<2x1x1xf32, #tpu.memory_space<vmem>>, vector<2x1x1xf32>,
    return
  }
  func.func @transform_0(%arg0: i32) -> (i32, i32, i32) {
    %c0_i32 = arith.constant 0 : i32
    %c0_i32_0 = arith.constant 0 : i32
    %c0_i32_1 = arith.constant 0 : i32
    return %arg0, %c0_i32, %c0_i32_0 : i32, i32, i32
  }
  func.func @transform_1(%arg0: i32) -> (i32, i32, i32) {
    %c0_i32 = arith.constant 0 : i32
    %c0_i32_0 = arith.constant 0 : i32
    %c0_i32_1 = arith.constant 0 : i32
    return %arg0, %c0_i32, %c0_i32_0 : i32, i32, i32
  }
  func.func @transform_2(%arg0: i32) -> (i32, i32, i32) {
    %c0_i32 = arith.constant 0 : i32
    %c0_i32_0 = arith.constant 0 : i32
    %c0_i32_1 = arith.constant 0 : i32
    return %arg0, %c0_i32, %c0_i32_0 : i32, i32, i32
  }
  func.func @transform_3(%arg0: i32) -> (i32, i32) {
    %c0_i32 = arith.constant 0 : i32
    %c0_i32_0 = arith.constant 0 : i32
    %c0_i32_1 = arith.constant 0 : i32
    return %c0_i32, %c0_i32_0 : i32, i32
  }
  func.func @transform_4(%arg0: i32) -> (i32, i32) {
    %c0_i32 = arith.constant 0 : i32
    %c0_i32_0 = arith.constant 0 : i32
    %c0_i32_1 = arith.constant 0 : i32
    return %c0_i32, %c0_i32_0 : i32, i32
  }
  func.func @transform_5(%arg0: i32) -> (i32, i32) {
    %c0_i32 = arith.constant 0 : i32
    %c0_i32_0 = arith.constant 0 : i32
    %c0_i32_1 = arith.constant 0 : i32
    return %c0_i32, %c0_i32_0 : i32, i32
  }
  func.func @transform_6(%arg0: i32) -> (i32, i32) {
    %c0_i32 = arith.constant 0 : i32
    %c0_i32_0 = arith.constant 0 : i32
    %c0_i32_1 = arith.constant 0 : i32
    return %c0_i32, %c0_i32_0 : i32, i32
  }
  func.func @transform_7(%arg0: i32) -> (i32, i32) {
    %c0_i32 = arith.constant 0 : i32
    %c0_i32_0 = arith.constant 0 : i32
    %c0_i32_1 = arith.constant 0 : i32
    return %c0_i32, %c0_i32_0 : i32, i32
  }
  func.func @transform_8(%arg0: i32) -> (i32, i32) {
    %c0_i32 = arith.constant 0 : i32
    %c0_i32_0 = arith.constant 0 : i32
    %c0_i32_1 = arith.constant 0 : i32
    return %c0_i32, %c0_i32_0 : i32, i32
  }
  func.func @transform_9(%arg0: i32) -> (i32, i32) {
    %c0_i32 = arith.constant 0 : i32
    %c0_i32_0 = arith.constant 0 : i32
    %c0_i32_1 = arith.constant 0 : i32
    return %c0_i32, %c0_i32_0 : i32, i32
  }
  func.func @transform_10(%arg0: i32) -> (i32, i32) {
    %c0_i32 = arith.constant 0 : i32
    %c0_i32_0 = arith.constant 0 : i32
    %c0_i32_1 = arith.constant 0 : i32
    return %c0_i32, %c0_i32_0 : i32, i32
  }
  func.func @transform_11(%arg0: i32) -> (i32, i32) {
    %c0_i32 = arith.constant 0 : i32
    %c0_i32_0 = arith.constant 0 : i32
    %c0_i32_1 = arith.constant 0 : i32
    return %c0_i32, %c0_i32_0 : i32, i32
  }
  func.func @transform_12(%arg0: i32) -> (i32, i32) {
    %c0_i32 = arith.constant 0 : i32
    %c0_i32_0 = arith.constant 0 : i32
    %c0_i32_1 = arith.constant 0 : i32
    return %c0_i32, %c0_i32_0 : i32, i32
  }
  func.func @transform_13(%arg0: i32) -> (i32, i32) {
    %c0_i32 = arith.constant 0 : i32
    %c0_i32_0 = arith.constant 0 : i32
    %c0_i32_1 = arith.constant 0 : i32
    return %c0_i32, %c0_i32_0 : i32, i32
  }
  func.func @transform_14(%arg0: i32) -> (i32, i32) {
    %c0_i32 = arith.constant 0 : i32
    %c0_i32_0 = arith.constant 0 : i32
    %c0_i32_1 = arith.constant 0 : i32
    return %c0_i32, %c0_i32_0 : i32, i32
  }
  func.func @transform_15(%arg0: i32) -> (i32, i32) {
    %c0_i32 = arith.constant 0 : i32
    %c0_i32_0 = arith.constant 0 : i32
    %c0_i32_1 = arith.constant 0 : i32
    return %c0_i32, %c0_i32_0 : i32, i32
  }
  func.func @transform_16(%arg0: i32) -> (i32, i32) {
    %c0_i32 = arith.constant 0 : i32
    %c0_i32_0 = arith.constant 0 : i32
    %c0_i32_1 = arith.constant 0 : i32
    return %c0_i32, %c0_i32_0 : i32, i32
  }
  func.func @transform_17(%arg0: i32) -> (i32, i32) {
    %c0_i32 = arith.constant 0 : i32
    %c0_i32_0 = arith.constant 0 : i32
    %c0_i32_1 = arith.constant 0 : i32
    return %c0_i32, %c0_i32_0 : i32, i32
  }
  func.func @transform_18(%arg0: i32) -> (i32, i32) {
    %c0_i32 = arith.constant 0 : i32
    %c0_i32_0 = arith.constant 0 : i32
    %c0_i32_1 = arith.constant 0 : i32
    return %c0_i32, %c0_i32_0 : i32, i32
  }
  func.func @transform_19(%arg0: i32) -> (i32, i32) {
    %c0_i32 = arith.constant 0 : i32
    %c0_i32_0 = arith.constant 0 : i32
    %c0_i32_1 = arith.constant 0 : i32
    return %c0_i32, %c0_i32_0 : i32, i32
  }
  func.func @transform_20(%arg0: i32) -> (i32, i32) {
    %c0_i32 = arith.constant 0 : i32
    %c0_i32_0 = arith.constant 0 : i32
    %c0_i32_1 = arith.constant 0 : i32
    return %c0_i32, %c0_i32_0 : i32, i32
  }
  func.func @transform_21(%arg0: i32) -> (i32, i32) {
    %c0_i32 = arith.constant 0 : i32
    %c0_i32_0 = arith.constant 0 : i32
    %c0_i32_1 = arith.constant 0 : i32
    return %c0_i32, %c0_i32_0 : i32, i32
  }
  func.func @transform_22(%arg0: i32) -> (i32, i32) {
    %c0_i32 = arith.constant 0 : i32
    %c0_i32_0 = arith.constant 0 : i32
    %c0_i32_1 = arith.constant 0 : i32
    return %c0_i32, %c0_i32_0 : i32, i32
  }
  func.func @transform_23(%arg0: i32) -> (i32, i32) {
    %c0_i32 = arith.constant 0 : i32
    %c0_i32_0 = arith.constant 0 : i32
    %c0_i32_1 = arith.constant 0 : i32
    return %c0_i32, %c0_i32_0 : i32, i32
  }
  func.func @transform_24(%arg0: i32) -> (i32, i32) {
    %c0_i32 = arith.constant 0 : i32
    %c0_i32_0 = arith.constant 0 : i32
    %c0_i32_1 = arith.constant 0 : i32
    return %c0_i32, %c0_i32_0 : i32, i32
  }
  func.func @transform_25(%arg0: i32) -> (i32, i32) {
    %c0_i32 = arith.constant 0 : i32
    %c0_i32_0 = arith.constant 0 : i32
    %c0_i32_1 = arith.constant 0 : i32
    return %c0_i32, %c0_i32_0 : i32, i32
  }
  func.func @transform_26(%arg0: i32) -> (i32, i32) {
    %c0_i32 = arith.constant 0 : i32
    %c0_i32_0 = arith.constant 0 : i32
    %c0_i32_1 = arith.constant 0 : i32
    return %c0_i32, %c0_i32_0 : i32, i32
  }
  func.func @transform_27(%arg0: i32) -> (i32, i32) {
    %c0_i32 = arith.constant 0 : i32
    %c0_i32_0 = arith.constant 0 : i32
    %c0_i32_1 = arith.constant 0 : i32
    return %c0_i32, %c0_i32_0 : i32, i32
  }
  func.func @transform_28(%arg0: i32) -> (i32, i32) {
    %c0_i32 = arith.constant 0 : i32
    %c0_i32_0 = arith.constant 0 : i32
    %c0_i32_1 = arith.constant 0 : i32
    return %c0_i32, %c0_i32_0 : i32, i32
  }
  func.func @transform_29(%arg0: i32) -> (i32, i32) {
    %c0_i32 = arith.constant 0 : i32
    %c0_i32_0 = arith.constant 0 : i32
    %c0_i32_1 = arith.constant 0 : i32
    return %c0_i32, %c0_i32_0 : i32, i32
  }
  func.func @transform_30(%arg0: i32) -> (i32, i32) {
    %c0_i32 = arith.constant 0 : i32
    %c0_i32_0 = arith.constant 0 : i32
    %c0_i32_1 = arith.constant 0 : i32
    return %c0_i32, %c0_i32_0 : i32, i32
  }
  func.func @transform_31(%arg0: i32) -> (i32, i32) {
    %c0_i32 = arith.constant 0 : i32
    %c0_i32_0 = arith.constant 0 : i32
    %c0_i32_1 = arith.constant 0 : i32
    return %c0_i32, %c0_i32_0 : i32, i32
  }
  func.func @transform_32(%arg0: i32) -> (i32, i32) {
    %c0_i32 = arith.constant 0 : i32
    %c0_i32_0 = arith.constant 0 : i32
    %c0_i32_1 = arith.constant 0 : i32
    return %c0_i32, %c0_i32_0 : i32, i32
  }
  func.func @transform_33(%arg0: i32) -> (i32, i32) {
    %c0_i32 = arith.constant 0 : i32
    %c0_i32_0 = arith.constant 0 : i32
    %c0_i32_1 = arith.constant 0 : i32
    return %c0_i32, %c0_i32_0 : i32, i32
  }
  func.func @transform_34(%arg0: i32) -> (i32, i32) {
    %c0_i32 = arith.constant 0 : i32
    %c0_i32_0 = arith.constant 0 : i32
    %c0_i32_1 = arith.constant 0 : i32
    return %c0_i32, %c0_i32_0 : i32, i32
  }
  func.func @transform_35(%arg0: i32) -> (i32, i32) {
    %c0_i32 = arith.constant 0 : i32
    %c0_i32_0 = arith.constant 0 : i32
    %c0_i32_1 = arith.constant 0 : i32
    return %c0_i32, %c0_i32_0 : i32, i32
  }
  func.func @transform_36(%arg0: i32) -> (i32, i32) {
    %c0_i32 = arith.constant 0 : i32
    %c0_i32_0 = arith.constant 0 : i32
    %c0_i32_1 = arith.constant 0 : i32
    return %c0_i32, %c0_i32_0 : i32, i32
  }
  func.func @transform_37(%arg0: i32) -> (i32, i32) {
    %c0_i32 = arith.constant 0 : i32
    %c0_i32_0 = arith.constant 0 : i32
    %c0_i32_1 = arith.constant 0 : i32
    return %c0_i32, %c0_i32_0 : i32, i32
  }
  func.func @transform_38(%arg0: i32) -> (i32, i32) {
    %c0_i32 = arith.constant 0 : i32
    %c0_i32_0 = arith.constant 0 : i32
    %c0_i32_1 = arith.constant 0 : i32
    return %c0_i32, %c0_i32_0 : i32, i32
  }
  func.func @transform_39(%arg0: i32) -> (i32, i32) {
    %c0_i32 = arith.constant 0 : i32
    %c0_i32_0 = arith.constant 0 : i32
    %c0_i32_1 = arith.constant 0 : i32
    return %c0_i32, %c0_i32_0 : i32, i32
  }
  func.func @transform_40(%arg0: i32) -> (i32, i32) {
    %c0_i32 = arith.constant 0 : i32
    %c0_i32_0 = arith.constant 0 : i32
    %c0_i32_1 = arith.constant 0 : i32
    return %c0_i32, %c0_i32_0 : i32, i32
  }
  func.func @transform_41(%arg0: i32) -> (i32, i32) {
    %c0_i32 = arith.constant 0 : i32
    %c0_i32_0 = arith.constant 0 : i32
    %c0_i32_1 = arith.constant 0 : i32
    return %c0_i32, %c0_i32_0 : i32, i32
  }
  func.func @transform_42(%arg0: i32) -> (i32, i32) {
    %c0_i32 = arith.constant 0 : i32
    %c0_i32_0 = arith.constant 0 : i32
    %c0_i32_1 = arith.constant 0 : i32
    return %c0_i32, %c0_i32_0 : i32, i32
  }
  func.func @transform_43(%arg0: i32) -> (i32, i32) {
    %c0_i32 = arith.constant 0 : i32
    %c0_i32_0 = arith.constant 0 : i32
    %c0_i32_1 = arith.constant 0 : i32
    return %c0_i32, %c0_i32_0 : i32, i32
  }
  func.func @transform_44(%arg0: i32) -> (i32, i32) {
    %c0_i32 = arith.constant 0 : i32
    %c0_i32_0 = arith.constant 0 : i32
    %c0_i32_1 = arith.constant 0 : i32
    return %c0_i32, %c0_i32_0 : i32, i32
  }
  func.func @transform_45(%arg0: i32) -> (i32, i32) {
    %c0_i32 = arith.constant 0 : i32
    %c0_i32_0 = arith.constant 0 : i32
    %c0_i32_1 = arith.constant 0 : i32
    return %c0_i32, %c0_i32_0 : i32, i32
  }
  func.func @transform_46(%arg0: i32) -> (i32, i32) {
    %c0_i32 = arith.constant 0 : i32
    %c0_i32_0 = arith.constant 0 : i32
    %c0_i32_1 = arith.constant 0 : i32
    return %c0_i32, %c0_i32_0 : i32, i32
  }
  func.func @transform_47(%arg0: i32) -> (i32, i32) {
    %c0_i32 = arith.constant 0 : i32
    %c0_i32_0 = arith.constant 0 : i32
    %c0_i32_1 = arith.constant 0 : i32
    return %c0_i32, %c0_i32_0 : i32, i32
  }
  func.func @transform_48(%arg0: i32) -> (i32, i32) {
    %c0_i32 = arith.constant 0 : i32
    %c0_i32_0 = arith.constant 0 : i32
    %c0_i32_1 = arith.constant 0 : i32
    return %c0_i32, %c0_i32_0 : i32, i32
  }
  func.func @transform_49(%arg0: i32) -> (i32, i32) {
    %c0_i32 = arith.constant 0 : i32
    %c0_i32_0 = arith.constant 0 : i32
    %c0_i32_1 = arith.constant 0 : i32
    return %c0_i32, %c0_i32_0 : i32, i32
  }
  func.func @transform_50(%arg0: i32) -> (i32, i32) {
    %c0_i32 = arith.constant 0 : i32
    %c0_i32_0 = arith.constant 0 : i32
    %c0_i32_1 = arith.constant 0 : i32
    return %c0_i32, %c0_i32_0 : i32, i32
  }
  func.func @transform_51(%arg0: i32) -> (i32, i32) {
    %c0_i32 = arith.constant 0 : i32
    %c0_i32_0 = arith.constant 0 : i32
    %c0_i32_1 = arith.constant 0 : i32
    return %c0_i32, %c0_i32_0 : i32, i32
  }
  func.func @transform_52(%arg0: i32) -> (i32, i32) {
    %c0_i32 = arith.constant 0 : i32
    %c0_i32_0 = arith.constant 0 : i32
    %c0_i32_1 = arith.constant 0 : i32
    return %c0_i32, %c0_i32_0 : i32, i32
  }
  func.func @transform_53(%arg0: i32) -> (i32, i32) {
    %c0_i32 = arith.constant 0 : i32
    %c0_i32_0 = arith.constant 0 : i32
    %c0_i32_1 = arith.constant 0 : i32
    return %c0_i32, %c0_i32_0 : i32, i32
  }
  func.func @transform_54(%arg0: i32) -> (i32, i32) {
    %c0_i32 = arith.constant 0 : i32
    %c0_i32_0 = arith.constant 0 : i32
    %c0_i32_1 = arith.constant 0 : i32
    return %c0_i32, %c0_i32_0 : i32, i32
  }
  func.func @transform_55(%arg0: i32) -> (i32, i32) {
    %c0_i32 = arith.constant 0 : i32
    %c0_i32_0 = arith.constant 0 : i32
    %c0_i32_1 = arith.constant 0 : i32
    return %c0_i32, %c0_i32_0 : i32, i32
  }
  func.func @transform_56(%arg0: i32) -> (i32, i32) {
    %c0_i32 = arith.constant 0 : i32
    %c0_i32_0 = arith.constant 0 : i32
    %c0_i32_1 = arith.constant 0 : i32
    return %c0_i32, %c0_i32_0 : i32, i32
  }
  func.func @transform_57(%arg0: i32) -> (i32, i32) {
    %c0_i32 = arith.constant 0 : i32
    %c0_i32_0 = arith.constant 0 : i32
    %c0_i32_1 = arith.constant 0 : i32
    return %c0_i32, %c0_i32_0 : i32, i32
  }
  func.func @transform_58(%arg0: i32) -> (i32, i32) {
    %c0_i32 = arith.constant 0 : i32
    %c0_i32_0 = arith.constant 0 : i32
    %c0_i32_1 = arith.constant 0 : i32
    return %c0_i32, %c0_i32_0 : i32, i32
  }
  func.func @transform_59(%arg0: i32) -> (i32, i32) {
    %c0_i32 = arith.constant 0 : i32
    %c0_i32_0 = arith.constant 0 : i32
    %c0_i32_1 = arith.constant 0 : i32
    return %c0_i32, %c0_i32_0 : i32, i32
  }
  func.func @transform_60(%arg0: i32) -> (i32, i32) {
    %c0_i32 = arith.constant 0 : i32
    %c0_i32_0 = arith.constant 0 : i32
    %c0_i32_1 = arith.constant 0 : i32
    return %c0_i32, %c0_i32_0 : i32, i32
  }
  func.func @transform_61(%arg0: i32) -> (i32, i32) {
    %c0_i32 = arith.constant 0 : i32
    %c0_i32_0 = arith.constant 0 : i32
    %c0_i32_1 = arith.constant 0 : i32
    return %c0_i32, %c0_i32_0 : i32, i32
  }
  func.func @transform_62(%arg0: i32) -> (i32, i32) {
    %c0_i32 = arith.constant 0 : i32
    %c0_i32_0 = arith.constant 0 : i32
    %c0_i32_1 = arith.constant 0 : i32
    return %c0_i32, %c0_i32_0 : i32, i32
  }
  func.func @transform_63(%arg0: i32) -> (i32, i32) {
    %c0_i32 = arith.constant 0 : i32
    %c0_i32_0 = arith.constant 0 : i32
    %c0_i32_1 = arith.constant 0 : i32
    return %c0_i32, %c0_i32_0 : i32, i32
  }
  func.func @transform_64(%arg0: i32) -> (i32, i32) {
    %c0_i32 = arith.constant 0 : i32
    %c0_i32_0 = arith.constant 0 : i32
    %c0_i32_1 = arith.constant 0 : i32
    return %c0_i32, %c0_i32_0 : i32, i32
  }
  func.func @transform_65(%arg0: i32) -> (i32, i32) {
    %c0_i32 = arith.constant 0 : i32
    %c0_i32_0 = arith.constant 0 : i32
    %c0_i32_1 = arith.constant 0 : i32
    return %c0_i32, %c0_i32_0 : i32, i32
  }
  func.func @transform_66(%arg0: i32) -> (i32, i32) {
    %c0_i32 = arith.constant 0 : i32
    %c0_i32_0 = arith.constant 0 : i32
    %c0_i32_1 = arith.constant 0 : i32
    return %c0_i32, %c0_i32_0 : i32, i32
  }
  func.func @transform_67(%arg0: i32) -> (i32, i32) {
    %c0_i32 = arith.constant 0 : i32
    %c0_i32_0 = arith.constant 0 : i32
    %c0_i32_1 = arith.constant 0 : i32
    return %c0_i32, %c0_i32_0 : i32, i32
  }
  func.func @transform_68(%arg0: i32) -> (i32, i32) {
    %c0_i32 = arith.constant 0 : i32
    %c0_i32_0 = arith.constant 0 : i32
    %c0_i32_1 = arith.constant 0 : i32
    return %c0_i32, %c0_i32_0 : i32, i32
  }
  func.func @transform_69(%arg0: i32) -> (i32, i32) {
    %c0_i32 = arith.constant 0 : i32
    %c0_i32_0 = arith.constant 0 : i32
    %c0_i32_1 = arith.constant 0 : i32
    return %c0_i32, %c0_i32_0 : i32, i32
  }
  func.func @transform_70(%arg0: i32) -> (i32, i32) {
    %c0_i32 = arith.constant 0 : i32
    %c0_i32_0 = arith.constant 0 : i32
    %c0_i32_1 = arith.constant 0 : i32
    return %c0_i32, %c0_i32_0 : i32, i32
  }
  func.func @transform_71(%arg0: i32) -> (i32, i32, i32) {
    %c0_i32 = arith.constant 0 : i32
    %c0_i32_0 = arith.constant 0 : i32
    %c0_i32_1 = arith.constant 0 : i32
    return %arg0, %c0_i32, %c0_i32_0 : i32, i32, i32
  }
  func.func @transform_72(%arg0: i32) -> (i32, i32, i32) {
    %c0_i32 = arith.constant 0 : i32
    %c0_i32_0 = arith.constant 0 : i32
    %c0_i32_1 = arith.constant 0 : i32
    return %arg0, %c0_i32, %c0_i32_0 : i32, i32, i32
  }
  func.func @transform_73(%arg0: i32) -> (i32, i32, i32) {
    %c0_i32 = arith.constant 0 : i32
    %c0_i32_0 = arith.constant 0 : i32
    %c0_i32_1 = arith.constant 0 : i32
    return %arg0, %c0_i32, %c0_i32_0 : i32, i32, i32
  }
  func.func @transform_74(%arg0: i32) -> (i32, i32, i32) {
    %c0_i32 = arith.constant 0 : i32
    %c0_i32_0 = arith.constant 0 : i32
    %c0_i32_1 = arith.constant 0 : i32
    return %arg0, %c0_i32, %c0_i32_0 : i32, i32, i32
  }
}

</mosaic_0001>

<bundles_post_ra>
// kernel: mpnn_forward.9
= control target key start
LH: loop header
LB: loop body
LE: loop exit
PB: predicated region body
PF: predicated region fallthrough
CT: control target
= control target key end

     0   :  { %v719_v3 = vmov 0   ;;  %vm198_vm0 = vcmask 130048   ;;  %v38_v36 = vlaneseq  ;;  %s886_s1 = inlined_call_operand.vmem [shape: bf16[16,2048], index: 1, kind: input, shape index: {}]   ;;  %s887_s0 = inlined_call_operand.vmem [shape: f32[16,16], index: 0, kind: input, shape index: {}]   ;;  %s888_s2 = inlined_call_operand.vmem [shape: f32[1,2048], index: 2, kind: input, shape index: {}]   ;;  %s889_s3 = inlined_call_operand.vmem [shape: bf16[16,2048], index: 3, kind: output, shape index: {}]  }
   0x1   :  { %v17_v0 = vld [vmem:[%s886_s1] sm:$0xff]  ;;  %v18_v2 = vld [vmem:[%s886_s1 + $0x8] sm:$0xff]  ;;  %234 = vmatprep.mubr.bf16.mxu0 %v719_v3  ;;  %277 = vmatprep.mubr.bf16.mxu1 %v719_v3  ;;  %v19_v11 = vld [vmem:[%s886_s1 + $0x10] sm:$0xff] }
   0x2   :  { %v25_v1 = vld [vmem:[%s886_s1 + $0x40] sm:$0xff]  ;;  %v26_v5 = vld [vmem:[%s886_s1 + $0x48] sm:$0xff]  ;;  %v27_v12 = vld [vmem:[%s886_s1 + $0x50] sm:$0xff]  ;;  %v802_v37 = vshrl.u32 %v38_v36, 7 }
   0x3   :  { %v663_v4 = vcombine.high %v17_v0, %v25_v1  ;;  %v662_v6 = vcombine.low %v17_v0, %v25_v1  ;;  %v15_v7 = vld [vmem:[%s887_s0] sm:$0xff]  ;;  %v16_v8 = vld [vmem:[%s887_s0 + $0x8] sm:$0xff]  ;;  %v665_v9 = vcombine.high %v18_v2, %v26_v5  ;;  %v664_v10 = vcombine.low %v18_v2, %v26_v5  ;;  %v20_v13 = vld [vmem:[%s886_s1 + $0x18] sm:$0xff] }
   0x4   :  { %v35_v14 = vpack.c.bf16 %v16_v8, %v15_v7  ;;  %v667_v15 = vcombine.high %v19_v11, %v27_v12  ;;  %v28_v16 = vld [vmem:[%s886_s1 + $0x58] sm:$0xff]  ;;  %v21_v17 = vld [vmem:[%s886_s1 + $0x20] sm:$0xff]  ;;  %v666_v19 = vcombine.low %v19_v11, %v27_v12  ;;  %v22_v21 = vld [vmem:[%s886_s1 + $0x28] sm:$0xff]  ;;  %v40_v38 = vsub.s32 0, %v802_v37 }
   0x5   :  { %202 = vmatprep.subr.bf16.mxu0 %v663_v4  ;;  %v29_v18 = vld [vmem:[%s886_s1 + $0x60] sm:$0xff]  ;;  %245 = vmatprep.subr.bf16.mxu1 %v665_v9  ;;  %v669_v20 = vcombine.high %v20_v13, %v28_v16  ;;  %v30_v22 = vld [vmem:[%s886_s1 + $0x68] sm:$0xff]  ;;  %v668_v23 = vcombine.low %v20_v13, %v28_v16  ;;  %v23_v26 = vld [vmem:[%s886_s1 + $0x30] sm:$0xff]  ;;  %v48_v40 = vsub.s32 2, %v802_v37  ;;  %v44_v41 = vsub.s32 1, %v802_v37 }
   0x6   :  { %203 = vmatpush1.bf16.msra.mxu0 %v662_v6  ;;  %246 = vmatpush1.bf16.msra.mxu1 %v664_v10  ;;  %v671_v24 = vcombine.high %v21_v17, %v29_v18  ;;  %v673_v25 = vcombine.high %v22_v21, %v30_v22  ;;  %v31_v27 = vld [vmem:[%s886_s1 + $0x70] sm:$0xff]  ;;  %v670_v28 = vcombine.low %v21_v17, %v29_v18  ;;  %v24_v29 = vld [vmem:[%s886_s1 + $0x38] sm:$0xff]  ;;  %v33_v39 = vld [vmem:[%s888_s2] sm:$0xff]  ;;  %v52_v42 = vsub.s32 3, %v802_v37 }
   0x7   :  { %288 = vmatprep.subr.bf16.mxu0 %v667_v15  ;;  %331 = vmatprep.subr.bf16.mxu1 %v669_v20  ;;  %v32_v30 = vld [vmem:[%s886_s1 + $0x78] sm:$0xff]  ;;  %v672_v31 = vcombine.low %v22_v21, %v30_v22  ;;  %v675_v32 = vcombine.high %v23_v26, %v31_v27  ;;  %v674_v34 = vcombine.low %v23_v26, %v31_v27  ;;  %v56_v51 = vsub.s32 4, %v802_v37 }
   0x8   :  { %v677_v33 = vcombine.high %v24_v29, %v32_v30  ;;  %v676_v35 = vcombine.low %v24_v29, %v32_v30  ;;  %v41_v43 = vrot.slane %v33_v39, %v40_v38  ;;  %v49_v44 = vrot.slane %v33_v39, %v48_v40 }
   0x9   :  { %678 = vmatmul.mubr.msk.bf16.vlgmr.msra.gmra.mrb[0].mxu0 %vm198_vm0, %v35_v14  ;;  %679 = vmatmul.mubr.msk.bf16.vlgmr.msra.gmra.mrb[0].mxu1 %vm198_vm0, %v35_v14  ;;  %v45_v45 = vrot.slane %v33_v39, %v44_v41  ;;  %v53_v46 = vrot.slane %v33_v39, %v52_v42  ;;  %v64_v56 = vsub.s32 6, %v802_v37  ;;  %v60_v57 = vsub.s32 5, %v802_v37 }
   0xa   :  { %289 = vmatpush1.bf16.msra.mxu0 %v666_v19  ;;  %332 = vmatpush1.bf16.msra.mxu1 %v668_v23  ;;  %v68_v62 = vsub.s32 7, %v802_v37  ;;  %v57_v5 = vrot.slane %v33_v39, %v56_v51  ;;  %v34_v19 = vld [vmem:[%s888_s2 + $0x8] sm:$0xff] }
   0xb   :  { %320 = vmatprep.mubr.bf16.mxu0 %v719_v3  ;;  %363 = vmatprep.mubr.bf16.mxu1 %v719_v3  ;;  %v65_v7 = vrot.slane %v33_v39, %v64_v56  ;;  %v61_v8 = vrot.slane %v33_v39, %v60_v57  ;;  %v73_v30 = vrot.slane %v34_v19, %v40_v38 }
   0xc   :  { %374 = vmatprep.subr.bf16.mxu0 %v671_v24  ;;  %417 = vmatprep.subr.bf16.mxu1 %v673_v25  ;;  %v69_v10 = vrot.slane %v33_v39, %v68_v62 }
  0x11   :  { %680 = vmatmul.mubr.msk.bf16.vlgmr.msra.gmra.mrb[4].mxu0 %vm198_vm0, %v35_v14  ;;  %681 = vmatmul.mubr.msk.bf16.vlgmr.msra.gmra.mrb[4].mxu1 %vm198_vm0, %v35_v14 }
  0x12   :  { %375 = vmatpush1.bf16.msra.mxu0 %v670_v28  ;;  %418 = vmatpush1.bf16.msra.mxu1 %v672_v31 }
  0x13   :  { %406 = vmatprep.mubr.bf16.mxu0 %v719_v3  ;;  %449 = vmatprep.mubr.bf16.mxu1 %v719_v3 }
  0x14   :  { %460 = vmatprep.subr.bf16.mxu0 %v675_v32  ;;  %503 = vmatprep.subr.bf16.mxu1 %v677_v33  ;;  %v81_v32 = vrot.slane %v34_v19, %v48_v40  ;;  %v77_v33 = vrot.slane %v34_v19, %v44_v41 }
  0x19   :  { %682 = vmatmul.mubr.msk.bf16.vlgmr.msra.gmra.mrb[8].mxu0 %vm198_vm0, %v35_v14  ;;  %683 = vmatmul.mubr.msk.bf16.vlgmr.msra.gmra.mrb[8].mxu1 %vm198_vm0, %v35_v14 }
  0x1a   :  { %461 = vmatpush1.bf16.msra.mxu0 %v674_v34  ;;  %504 = vmatpush1.bf16.msra.mxu1 %v676_v35  ;;  %v85_v35 = vrot.slane %v34_v19, %v52_v42 }
  0x1b   :  { %492 = vmatprep.mubr.bf16.mxu0 %v719_v3  ;;  %535 = vmatprep.mubr.bf16.mxu1 %v719_v3 }
  0x21   :  { %684 = vmatmul.mubr.msk.bf16.vlgmr.msra.gmra.mrb[12].mxu0 %vm198_vm0, %v35_v14  ;;  %685 = vmatmul.mubr.msk.bf16.vlgmr.msra.gmra.mrb[12].mxu1 %vm198_vm0, %v35_v14 }
  0xdc   :  { %v236_v47 = vpop.f32.mrb[0].mxu0  ;;  %v279_v49 = vpop.f32.mrb[0].mxu1 }
  0xdd   :  { %v237_v48 = vadd.f32 %v236_v47, %v41_v43  ;;  %v238_v50 = vpop.f32.mrb[1].mxu0  ;;  %v280_v52 = vadd.f32 %v279_v49, %v49_v44  ;;  %v281_v54 = vpop.f32.mrb[1].mxu1 }
  0xde   :  { %v239_v53 = vadd.f32 %v238_v50, %v45_v45  ;;  %v240_v55 = vpop.f32.mrb[2].mxu0  ;;  %v282_v58 = vadd.f32 %v281_v54, %v53_v46  ;;  %v283_v60 = vpop.f32.mrb[2].mxu1 }
  0xdf   :  { %v241_v59 = vadd.f32 %v240_v55, %v41_v43  ;;  %v242_v61 = vpop.f32.mrb[3].mxu0  ;;  %v284_v0 = vadd.f32 %v283_v60, %v49_v44  ;;  %v285_v2 = vpop.f32.mrb[3].mxu1  ;;  %v97_v60 = vrot.slane %v34_v19, %v64_v56 }
  0xe0   :  { %v702_v63 = vpack.c.bf16 %v239_v53, %v237_v48  ;;  %v243_v1 = vadd.f32 %v242_v61, %v45_v45  ;;  %v703_v3 = vpack.c.bf16 %v282_v58, %v280_v52  ;;  %v286_v4 = vadd.f32 %v285_v2, %v53_v46 }
  0xe1   :  { %v89_v58 = vrot.slane %v34_v19, %v56_v51  ;;  %v93_v61 = vrot.slane %v34_v19, %v60_v57 }
  0xe2   :  { %642 = vst [vmem:[%s889_s3] sm:$0xff] %v702_v63  ;;  %v710_v6 = vpack.c.bf16 %v243_v1, %v241_v59  ;;  %643 = vst [vmem:[%s889_s3 + $0x8] sm:$0xff] %v703_v3  ;;  %v711_v9 = vpack.c.bf16 %v286_v4, %v284_v0  ;;  %v101_v0 = vrot.slane %v34_v19, %v68_v62 }
  0xe4   :  { %650 = vst [vmem:[%s889_s3 + $0x40] sm:$0xff] %v710_v6  ;;  %v322_v11 = vpop.f32.mrb[4].mxu0  ;;  %651 = vst [vmem:[%s889_s3 + $0x48] sm:$0xff] %v711_v9  ;;  %v365_v13 = vpop.f32.mrb[4].mxu1 }
  0xe5   :  { %v323_v12 = vadd.f32 %v322_v11, %v57_v5  ;;  %v324_v14 = vpop.f32.mrb[5].mxu0  ;;  %v366_v15 = vadd.f32 %v365_v13, %v65_v7  ;;  %v367_v17 = vpop.f32.mrb[5].mxu1 }
  0xe6   :  { %v325_v16 = vadd.f32 %v324_v14, %v61_v8  ;;  %v326_v18 = vpop.f32.mrb[6].mxu0  ;;  %v368_v20 = vadd.f32 %v367_v17, %v69_v10  ;;  %v369_v22 = vpop.f32.mrb[6].mxu1 }
  0xe7   :  { %v327_v21 = vadd.f32 %v326_v18, %v57_v5  ;;  %v328_v23 = vpop.f32.mrb[7].mxu0  ;;  %v370_v25 = vadd.f32 %v369_v22, %v65_v7  ;;  %v371_v27 = vpop.f32.mrb[7].mxu1 }
  0xe8   :  { %v704_v24 = vpack.c.bf16 %v325_v16, %v323_v12  ;;  %v329_v26 = vadd.f32 %v328_v23, %v61_v8  ;;  %v705_v28 = vpack.c.bf16 %v368_v20, %v366_v15  ;;  %v372_v29 = vadd.f32 %v371_v27, %v69_v10 }
  0xea   :  { %644 = vst [vmem:[%s889_s3 + $0x10] sm:$0xff] %v704_v24  ;;  %v712_v31 = vpack.c.bf16 %v329_v26, %v327_v21  ;;  %645 = vst [vmem:[%s889_s3 + $0x18] sm:$0xff] %v705_v28  ;;  %v713_v34 = vpack.c.bf16 %v372_v29, %v370_v25 }
  0xec   :  { %652 = vst [vmem:[%s889_s3 + $0x50] sm:$0xff] %v712_v31  ;;  %v408_v36 = vpop.f32.mrb[8].mxu0  ;;  %653 = vst [vmem:[%s889_s3 + $0x58] sm:$0xff] %v713_v34  ;;  %v451_v39 = vpop.f32.mrb[8].mxu1 }
  0xed   :  { %v409_v38 = vadd.f32 %v408_v36, %v73_v30  ;;  %v410_v40 = vpop.f32.mrb[9].mxu0  ;;  %v452_v41 = vadd.f32 %v451_v39, %v81_v32  ;;  %v453_v44 = vpop.f32.mrb[9].mxu1 }
  0xee   :  { %v411_v43 = vadd.f32 %v410_v40, %v77_v33  ;;  %v412_v45 = vpop.f32.mrb[10].mxu0  ;;  %v454_v46 = vadd.f32 %v453_v44, %v85_v35  ;;  %v455_v48 = vpop.f32.mrb[10].mxu1 }
  0xef   :  { %v413_v47 = vadd.f32 %v412_v45, %v73_v30  ;;  %v414_v42 = vpop.f32.mrb[11].mxu0  ;;  %v456_v50 = vadd.f32 %v455_v48, %v81_v32  ;;  %v457_v53 = vpop.f32.mrb[11].mxu1 }
  0xf0   :  { %v706_v49 = vpack.c.bf16 %v411_v43, %v409_v38  ;;  %v415_v52 = vadd.f32 %v414_v42, %v77_v33  ;;  %v707_v54 = vpack.c.bf16 %v454_v46, %v452_v41  ;;  %v458_v55 = vadd.f32 %v457_v53, %v85_v35 }
  0xf2   :  { %646 = vst [vmem:[%s889_s3 + $0x20] sm:$0xff] %v706_v49  ;;  %v714_v59 = vpack.c.bf16 %v415_v52, %v413_v47  ;;  %647 = vst [vmem:[%s889_s3 + $0x28] sm:$0xff] %v707_v54  ;;  %v715_v63 = vpack.c.bf16 %v458_v55, %v456_v50 }
  0xf4   :  { %654 = vst [vmem:[%s889_s3 + $0x60] sm:$0xff] %v714_v59  ;;  %v494_v51 = vpop.f32.mrb[12].mxu0  ;;  %655 = vst [vmem:[%s889_s3 + $0x68] sm:$0xff] %v715_v63  ;;  %v537_v1 = vpop.f32.mrb[12].mxu1 }
  0xf5   :  { %v495_v56 = vadd.f32 %v494_v51, %v89_v58  ;;  %v496_v57 = vpop.f32.mrb[13].mxu0  ;;  %v538_v2 = vadd.f32 %v537_v1, %v97_v60  ;;  %v539_v4 = vpop.f32.mrb[13].mxu1 }
  0xf6   :  { %v497_v3 = vadd.f32 %v496_v57, %v93_v61  ;;  %v498_v5 = vpop.f32.mrb[14].mxu0  ;;  %v540_v6 = vadd.f32 %v539_v4, %v101_v0  ;;  %v541_v37 = vpop.f32.mrb[14].mxu1 }
  0xf7   :  { %v499_v7 = vadd.f32 %v498_v5, %v89_v58  ;;  %v500_v62 = vpop.f32.mrb[15].mxu0  ;;  %v542_v9 = vadd.f32 %v541_v37, %v97_v60  ;;  %v543_v11 = vpop.f32.mrb[15].mxu1 }
  0xf8   :  { %v708_v8 = vpack.c.bf16 %v497_v3, %v495_v56  ;;  %v501_v10 = vadd.f32 %v500_v62, %v93_v61  ;;  %v709_v12 = vpack.c.bf16 %v540_v6, %v538_v2  ;;  %v544_v13 = vadd.f32 %v543_v11, %v101_v0 }
  0xfa   :  { %648 = vst [vmem:[%s889_s3 + $0x30] sm:$0xff] %v708_v8  ;;  %v716_v14 = vpack.c.bf16 %v501_v10, %v499_v7  ;;  %649 = vst [vmem:[%s889_s3 + $0x38] sm:$0xff] %v709_v12  ;;  %v717_v15 = vpack.c.bf16 %v544_v13, %v542_v9 }
  0xfc   :  { %656 = vst [vmem:[%s889_s3 + $0x70] sm:$0xff] %v716_v14  ;;  %657 = vst [vmem:[%s889_s3 + $0x78] sm:$0xff] %v717_v15 }

// kernel: mpnn_forward.8
= control target key start
LH: loop header
LB: loop body
LE: loop exit
PB: predicated region body
PF: predicated region fallthrough
CT: control target
= control target key end

     0   :  { %vm87_vm0 = vcmask 1041408   ;;  %vm88_vm1 = vcmask 1042432   ;;  %v1184_v1 = vmov 65535   ;;  %vm62_vm2 = vcmask 39936   ;;  %s1531_s1 = inlined_call_operand.vmem [shape: bf16[5,128], index: 1, kind: input, shape index: {}]   ;;  %s1532_s0 = inlined_call_operand.vmem [shape: f32[128,5], index: 0, kind: input, shape index: {}]   ;;  %s1533_s3 = inlined_call_operand.vmem [shape: bf16[128,256], index: 3, kind: input, shape index: {}]   ;;  %s1534_s5 = inlined_call_operand.vmem [shape: bf16[256,128], index: 5, kind: input, shape index: {}]   ;;  %s1535_s2 = inlined_call_operand.vmem [shape: f32[1,128], index: 2, kind: input, shape index: {}]   ;;  %s1536_s7 = inlined_call_operand.vmem [shape: f32[128,1], index: 7, kind: input, shape index: {}]   ;;  %s1537_s4 = inlined_call_operand.vmem [shape: f32[1,256], index: 4, kind: input, shape index: {}]   ;;  %s1538_s6 = inlined_call_operand.vmem [shape: f32[1,128], index: 6, kind: input, shape index: {}]   ;;  %s1539_s8 = inlined_call_operand.vmem [shape: bf16[128,128], index: 8, kind: output, shape index: {}]  }
   0x1   :  { %v46_v0 = vld [vmem:[%s1531_s1] sm:$0x7]  ;;  %v89_v2 = vsel %vm87_vm0, 4294967295, %v1184_v1  ;;  %v31_v4 = vld [vmem:[%s1532_s0 + $0x8] sm:$0xff]  ;;  %v32_v7 = vld [vmem:[%s1532_s0 + $0x10] sm:$0xff]  ;;  %v1185_v45 = vmov 0  }
   0x2   :  { %v30_v3 = vld [vmem:[%s1532_s0] sm:$0xff]  ;;  %v90_v5 = vsel %vm88_vm1, %v89_v2, 0  ;;  %v33_v8 = vld [vmem:[%s1532_s0 + $0x18] sm:$0xff]  ;;  %v35_v11 = vld [vmem:[%s1532_s0 + $0x28] sm:$0xff]  ;;  %355 = vmatprep.mubr.bf16.mxu1 %v1185_v45  ;;  %1142 = vset.pattern.permute.xlu0 %v1185_v45 }
   0x3   :  { %v48_v6 = vpack.c.bf16 %v31_v4, %v30_v3  ;;  %v92_v9 = vand.u32 %v90_v5, %v46_v0  ;;  %v34_v10 = vld [vmem:[%s1532_s0 + $0x20] sm:$0xff]  ;;  %v49_v12 = vpack.c.bf16 %v33_v8, %v32_v7  ;;  %v36_v16 = vld [vmem:[%s1532_s0 + $0x30] sm:$0xff]  ;;  %v37_v18 = vld [vmem:[%s1532_s0 + $0x38] sm:$0xff]  ;;  %1143 = vset.pattern.permute.xlu1 %v1185_v45 }
   0x4   :  { %v50_v13 = vpack.c.bf16 %v35_v11, %v34_v10  ;;  %v1144_v14 = vld [vmem:[%s1533_s3 + $0x4] ss:$8 sps:$4 sm:$0xff]   ;;  %v1146_v15 = vld [vmem:[%s1533_s3] ss:$8 sps:$4 sm:$0xff]   ;;  %v1147_v17 = vld [vmem:[%s1533_s3 + $0x14] ss:$8 sps:$4 sm:$0xff]   ;;  %v51_v23 = vpack.c.bf16 %v37_v18, %v36_v16 }
   0x5   :  { %1124 = vmatprep.mubr.msk.bf16.mxu0 %vm62_vm2, %v48_v6  ;;  %1122 = vmatprep.subr.bf16.mxu0 %v92_v9  ;;  %v38_v19 = vld [vmem:[%s1532_s0 + $0x40] sm:$0xff]  ;;  %v1149_v20 = vld [vmem:[%s1533_s3 + $0x10] ss:$8 sps:$4 sm:$0xff]   ;;  %v39_v21 = vld [vmem:[%s1532_s0 + $0x48] sm:$0xff] }
   0x6   :  { %1123 = vmatpush3.bf16.msra.mxu0 %v92_v9  ;;  %323 = vmatprep.subr.bf16.mxu1 %v1144_v14  ;;  %v1150_v22 = vld [vmem:[%s1533_s3 + $0x24] ss:$8 sps:$4 sm:$0xff]   ;;  %v52_v24 = vpack.c.bf16 %v39_v21, %v38_v19  ;;  %v1152_v25 = vld [vmem:[%s1533_s3 + $0x20] ss:$8 sps:$4 sm:$0xff]   ;;  %v1153_v26 = vld [vmem:[%s1533_s3 + $0x34] ss:$8 sps:$4 sm:$0xff]  }
   0x7   :  { %324 = vmatpush1.bf16.msra.mxu1 %v1146_v15  ;;  %v40_v27 = vld [vmem:[%s1532_s0 + $0x50] sm:$0xff]  ;;  %v41_v28 = vld [vmem:[%s1532_s0 + $0x58] sm:$0xff]  ;;  %v42_v30 = vld [vmem:[%s1532_s0 + $0x60] sm:$0xff] }
   0x8   :  { %325 = vmatprep.subr.bf16.mxu1 %v1147_v17  ;;  %v1155_v29 = vld [vmem:[%s1533_s3 + $0x30] ss:$8 sps:$4 sm:$0xff]   ;;  %v43_v31 = vld [vmem:[%s1532_s0 + $0x68] sm:$0xff]  ;;  %v53_v33 = vpack.c.bf16 %v41_v28, %v40_v27  ;;  %v1159_v36 = vld [vmem:[%s1533_s3 + $0x54] ss:$8 sps:$4 sm:$0xff]  }
   0x9   :  { %1125 = vmatmul.mubr.msk.bf16.vlgmr.msra.gmra.mrb[0].mxu0 %vm62_vm2, %v49_v12  ;;  %v1156_v32 = vld [vmem:[%s1533_s3 + $0x44] ss:$8 sps:$4 sm:$0xff]   ;;  %v54_v34 = vpack.c.bf16 %v43_v31, %v42_v30  ;;  %v1158_v35 = vld [vmem:[%s1533_s3 + $0x40] ss:$8 sps:$4 sm:$0xff]   ;;  %v44_v37 = vld [vmem:[%s1532_s0 + $0x70] sm:$0xff] }
   0xa   :  { %1128 = vmatprep.mubr.msk.bf16.mxu0 %vm62_vm2, %v50_v13  ;;  %v45_v38 = vld [vmem:[%s1532_s0 + $0x78] sm:$0xff]  ;;  %v1162_v41 = vld [vmem:[%s1533_s3 + $0x64] ss:$8 sps:$4 sm:$0xff]   ;;  %v1164_v42 = vld [vmem:[%s1533_s3 + $0x60] ss:$8 sps:$4 sm:$0xff]  }
   0xb   :  { %326 = vmatpush1.bf16.msra.mxu1 %v1149_v20  ;;  %v1161_v39 = vld [vmem:[%s1533_s3 + $0x50] ss:$8 sps:$4 sm:$0xff]   ;;  %v55_v40 = vpack.c.bf16 %v45_v38, %v44_v37  ;;  %v1165_v43 = vld [vmem:[%s1533_s3 + $0x74] ss:$8 sps:$4 sm:$0xff]   ;;  %v1168_v46 = vld [vmem:[%s1534_s5 + $0x40] sm:$0xff]  }
   0xc   :  { %327 = vmatprep.subr.bf16.mxu1 %v1150_v22  ;;  %v1167_v44 = vld [vmem:[%s1533_s3 + $0x70] ss:$8 sps:$4 sm:$0xff]   ;;  %v1169_v47 = vld [vmem:[%s1534_s5] sm:$0xff]   ;;  %1058 = vmatprep.subr.bf16.mxu0 %v1168_v46  ;;  %v1170_v48 = vld [vmem:[%s1534_s5 + $0x48] sm:$0xff]  }
   0xd   :  { %1059 = vmatpush3.bf16.msra.mxu0 %v1169_v47  ;;  %v1171_v49 = vld [vmem:[%s1534_s5 + $0x8] sm:$0xff]   ;;  %v1172_v50 = vld [vmem:[%s1534_s5 + $0x50] sm:$0xff]   ;;  %v1174_v52 = vld [vmem:[%s1534_s5 + $0x58] sm:$0xff]  }
   0xe   :  { %1060 = vmatprep.subr.bf16.mxu0 %v1170_v48  ;;  %v1173_v51 = vld [vmem:[%s1534_s5 + $0x10] sm:$0xff]   ;;  %v1175_v53 = vld [vmem:[%s1534_s5 + $0x18] sm:$0xff]   ;;  %v1176_v54 = vld [vmem:[%s1534_s5 + $0x60] sm:$0xff]  }
   0xf   :  { %328 = vmatpush1.bf16.msra.mxu1 %v1152_v25  ;;  %v1177_v55 = vld [vmem:[%s1534_s5 + $0x20] sm:$0xff]   ;;  %v1178_v56 = vld [vmem:[%s1534_s5 + $0x68] sm:$0xff]  }
  0x10   :  { %329 = vmatprep.subr.bf16.mxu1 %v1153_v26  ;;  %v1179_v57 = vld [vmem:[%s1534_s5 + $0x28] sm:$0xff]   ;;  %v928_v58 = vld [vmem:[%s1535_s2] ss:$0 sm:$0xff] }
  0x11   :  { %1129 = vmatmul.mubr.msk.bf16.gmra.mrb[4].mxu0 %vm62_vm2, %v51_v23 }
  0x12   :  { %1132 = vmatprep.mubr.msk.bf16.mxu0 %vm62_vm2, %v52_v24  ;;  %1061 = vmatpush3.bf16.msra.mxu0 %v1171_v49 }
  0x13   :  { %330 = vmatpush1.bf16.msra.mxu1 %v1155_v29  ;;  %1062 = vmatprep.subr.bf16.mxu0 %v1172_v50 }
  0x14   :  { %331 = vmatprep.subr.bf16.mxu1 %v1156_v32 }
  0x16   :  { %1063 = vmatpush3.bf16.msra.mxu0 %v1173_v51 }
  0x17   :  { %332 = vmatpush1.bf16.msra.mxu1 %v1158_v35  ;;  %1064 = vmatprep.subr.bf16.mxu0 %v1174_v52  ;;  %v1180_v52 = vld [vmem:[%s1534_s5 + $0x70] sm:$0xff]  }
  0x18   :  { %333 = vmatprep.subr.bf16.mxu1 %v1159_v36 }
  0x19   :  { %1133 = vmatmul.mubr.msk.bf16.gmra.mrb[8].mxu0 %vm62_vm2, %v53_v33 }
  0x1a   :  { %1136 = vmatprep.mubr.msk.bf16.mxu0 %vm62_vm2, %v54_v34  ;;  %1065 = vmatpush3.bf16.msra.mxu0 %v1175_v53  ;;  %v1181_v53 = vld [vmem:[%s1534_s5 + $0x30] sm:$0xff]  }
  0x1b   :  { %334 = vmatpush1.bf16.msra.mxu1 %v1161_v39  ;;  %1066 = vmatprep.subr.bf16.mxu0 %v1176_v54  ;;  %v1182_v54 = vld [vmem:[%s1534_s5 + $0x78] sm:$0xff]  }
  0x1c   :  { %335 = vmatprep.subr.bf16.mxu1 %v1162_v41 }
  0x1e   :  { %1067 = vmatpush3.bf16.msra.mxu0 %v1177_v55  ;;  %v1183_v55 = vld [vmem:[%s1534_s5 + $0x38] sm:$0xff]  }
  0x1f   :  { %336 = vmatpush1.bf16.msra.mxu1 %v1164_v42  ;;  %1068 = vmatprep.subr.bf16.mxu0 %v1178_v56  ;;  %v734_v56 = vld [vmem:[%s1536_s7 + $0x10] sm:$0xff] }
  0x20   :  { %337 = vmatprep.subr.bf16.mxu1 %v1165_v43  ;;  %760 = vperm.xlu1 %1143, %v734_v56  }
  0x21   :  { %1137 = vmatmul.mubr.msk.bf16.gmra.mrb[12].mxu0 %vm62_vm2, %v55_v40 }
  0x22   :  { %1069 = vmatpush3.bf16.msra.mxu0 %v1179_v57  ;;  %v733_v57 = vld [vmem:[%s1536_s7 + $0x8] sm:$0xff] }
  0x23   :  { %338 = vmatpush1.bf16.msra.mxu1 %v1167_v44  ;;  %1070 = vmatprep.subr.bf16.mxu0 %v1180_v52 }
  0x26   :  { %1071 = vmatpush3.bf16.msra.mxu0 %v1181_v53 }
  0x27   :  { %1072 = vmatprep.subr.bf16.mxu0 %v1182_v54 }
  0x2a   :  { %1073 = vmatpush3.bf16.msra.mxu0 %v1183_v55 }
  0xdc   :  { %v1126_v59 = vpop.f32.mrb[0].mxu0 }
  0xdd   :  { %v137_v60 = vadd.f32 %v1126_v59, %v928_v58  ;;  %v128_v61 = vpop.f32.mrb[1].mxu0  ;;  %v737_v59 = vld [vmem:[%s1536_s7 + $0x28] sm:$0xff] }
  0xde   :  { %v129_v62 = vadd.f32 %v928_v58, %v128_v61  ;;  %v1127_v63 = vpop.f32.mrb[2].mxu0  ;;  %v739_v61 = vld [vmem:[%s1536_s7 + $0x38] sm:$0xff] }
  0xdf   :  { %v140_v0 = vadd.f32 %v1127_v63, %v928_v58  ;;  %v131_v1 = vpop.f32.mrb[3].mxu0  ;;  %v193_v3 = vmax.f32 %v137_v60, 0.0  ;;  %v736_v60 = vld [vmem:[%s1536_s7 + $0x20] sm:$0xff]  ;;  %v741_v63 = vld [vmem:[%s1536_s7 + $0x48] sm:$0xff] }
  0xe0   :  { %v132_v2 = vadd.f32 %v928_v58, %v131_v1  ;;  %v191_v5 = vmax.f32 %v129_v62, 0.0  ;;  %v738_v62 = vld [vmem:[%s1536_s7 + $0x30] sm:$0xff]  ;;  %v743_v1 = vld [vmem:[%s1536_s7 + $0x58] sm:$0xff] }
  0xe1   :  { %v194_v4 = vmax.f32 %v140_v0, 0.0  ;;  %v740_v0 = vld [vmem:[%s1536_s7 + $0x40] sm:$0xff] }
  0xe2   :  { %v192_v6 = vmax.f32 %v132_v2, 0.0  ;;  %v742_v2 = vld [vmem:[%s1536_s7 + $0x50] sm:$0xff] }
  0xe3   :  { %v225_v7 = vpack.c.bf16 %v194_v4, %v193_v3  ;;  %v745_v3 = vld [vmem:[%s1536_s7 + $0x68] sm:$0xff]  ;;  %v744_v4 = vld [vmem:[%s1536_s7 + $0x60] sm:$0xff] }
  0xe4   :  { %v224_v8 = vpack.c.bf16 %v192_v6, %v191_v5  ;;  %v1130_v9 = vpop.f32.mrb[4].mxu0  ;;  %v747_v5 = vld [vmem:[%s1536_s7 + $0x78] sm:$0xff]  ;;  %v746_v6 = vld [vmem:[%s1536_s7 + $0x70] sm:$0xff] }
  0xe5   :  { %v153_v10 = vadd.f32 %v1130_v9, %v928_v58  ;;  %v144_v11 = vpop.f32.mrb[5].mxu0 }
  0xe6   :  { %356 = vmatmul.mubr.bf16.vlgmr.msra.gmra.mrb[0].mxu1 %v224_v8  ;;  %v145_v12 = vadd.f32 %v928_v58, %v144_v11  ;;  %v1131_v13 = vpop.f32.mrb[6].mxu0 }
  0xe7   :  { %v197_v14 = vmax.f32 %v153_v10, 0.0  ;;  %v156_v15 = vadd.f32 %v1131_v13, %v928_v58  ;;  %v147_v16 = vpop.f32.mrb[7].mxu0  ;;  %365 = vmatprep.mubr.bf16.mxu1 %v1185_v45  ;;  %v223_v10 = vld [vmem:[%s1537_s4] sm:$0x3] }
  0xe8   :  { %v195_v17 = vmax.f32 %v145_v12, 0.0  ;;  %v148_v18 = vadd.f32 %v928_v58, %v147_v16 }
  0xe9   :  { %v198_v19 = vmax.f32 %v156_v15, 0.0 }
  0xea   :  { %v196_v20 = vmax.f32 %v148_v18, 0.0 }
  0xeb   :  { %v227_v21 = vpack.c.bf16 %v198_v19, %v197_v14 }
  0xec   :  { %v226_v22 = vpack.c.bf16 %v196_v20, %v195_v17  ;;  %v1134_v23 = vpop.f32.mrb[8].mxu0 }
  0xed   :  { %v169_v24 = vadd.f32 %v1134_v23, %v928_v58  ;;  %v160_v25 = vpop.f32.mrb[9].mxu0 }
  0xee   :  { %366 = vmatmul.mubr.bf16.gmra.mrb[4].mxu1 %v225_v7  ;;  %v161_v26 = vadd.f32 %v928_v58, %v160_v25  ;;  %v1135_v27 = vpop.f32.mrb[10].mxu0  ;;  %v233_v7 = vlaneseq }
  0xef   :  { %375 = vmatprep.mubr.bf16.mxu1 %v1185_v45  ;;  %v201_v28 = vmax.f32 %v169_v24, 0.0  ;;  %v172_v29 = vadd.f32 %v1135_v27, %v928_v58  ;;  %v163_v30 = vpop.f32.mrb[11].mxu0 }
  0xf0   :  { %v199_v31 = vmax.f32 %v161_v26, 0.0  ;;  %v164_v32 = vadd.f32 %v928_v58, %v163_v30  ;;  %v234_v8 = vshrl.u32 %v233_v7, 7 }
  0xf1   :  { %v202_v33 = vmax.f32 %v172_v29, 0.0 }
  0xf2   :  { %v200_v34 = vmax.f32 %v164_v32, 0.0  ;;  %v235_v9 = vsub.s32 0, %v234_v8  ;;  %v239_v11 = vsub.s32 1, %v234_v8 }
  0xf3   :  { %v229_v35 = vpack.c.bf16 %v202_v33, %v201_v28 }
  0xf4   :  { %v228_v36 = vpack.c.bf16 %v200_v34, %v199_v31  ;;  %v1138_v37 = vpop.f32.mrb[12].mxu0  ;;  %v1450_v12 = vrot.slane %v223_v10, %v235_v9  ;;  %v1452_v13 = vrot.slane %v223_v10, %v239_v11 }
  0xf5   :  { %v185_v38 = vadd.f32 %v1138_v37, %v928_v58  ;;  %v176_v39 = vpop.f32.mrb[13].mxu0 }
  0xf6   :  { %376 = vmatmul.mubr.bf16.gmra.mrb[8].mxu1 %v226_v22  ;;  %v177_v40 = vadd.f32 %v928_v58, %v176_v39  ;;  %v1139_v41 = vpop.f32.mrb[14].mxu0 }
  0xf7   :  { %385 = vmatprep.mubr.bf16.mxu1 %v1185_v45  ;;  %v205_v42 = vmax.f32 %v185_v38, 0.0  ;;  %v188_v43 = vadd.f32 %v1139_v41, %v928_v58  ;;  %v179_v44 = vpop.f32.mrb[15].mxu0 }
  0xf8   :  { %v203_v46 = vmax.f32 %v177_v40, 0.0  ;;  %v180_v47 = vadd.f32 %v928_v58, %v179_v44  ;;  %v735_v58 = vld [vmem:[%s1536_s7 + $0x18] sm:$0xff] }
  0xf9   :  { %v206_v48 = vmax.f32 %v188_v43, 0.0  ;;  %765 = vperm.xlu1 %1143, %v735_v58  }
  0xfa   :  { %v204_v49 = vmax.f32 %v180_v47, 0.0 }
  0xfb   :  { %v231_v50 = vpack.c.bf16 %v206_v48, %v205_v42 }
  0xfc   :  { %v230_v51 = vpack.c.bf16 %v204_v49, %v203_v46 }
  0xfd   :  { %775 = vperm.xlu1 %1143, %v737_v59  }
  0xfe   :  { %386 = vmatmul.mubr.bf16.gmra.mrb[12].mxu1 %v227_v21 }
  0xff   :  { %395 = vmatprep.mubr.bf16.mxu1 %v1185_v45 }
 0x101   :  { %785 = vperm.xlu1 %1143, %v739_v61  }
 0x105   :  { %795 = vperm.xlu1 %1143, %v741_v63  }
 0x106   :  { %396 = vmatmul.mubr.bf16.gmra.mrb[16].mxu1 %v228_v36 }
 0x107   :  { %405 = vmatprep.mubr.bf16.mxu1 %v1185_v45 }
 0x109   :  { %805 = vperm.xlu1 %1143, %v743_v1  }
 0x10d   :  { %815 = vperm.xlu1 %1143, %v745_v3  }
 0x10e   :  { %406 = vmatmul.mubr.bf16.gmra.mrb[20].mxu1 %v229_v35 }
 0x10f   :  { %415 = vmatprep.mubr.bf16.mxu1 %v1185_v45 }
 0x111   :  { %825 = vperm.xlu1 %1143, %v747_v5  }
 0x116   :  { %416 = vmatmul.mubr.bf16.gmra.mrb[24].mxu1 %v230_v51 }
 0x117   :  { %425 = vmatprep.mubr.bf16.mxu1 %v1185_v45  ;;  %v732_v45 = vld [vmem:[%s1536_s7] sm:$0xff] }
 0x118   :  { %750 = vperm.xlu0 %1142, %v732_v45  }
 0x11c   :  { %755 = vperm.xlu0 %1142, %v733_v57  }
 0x11e   :  { %426 = vmatmul.mubr.bf16.gmra.mrb[28].mxu1 %v231_v50 }
 0x120   :  { %770 = vperm.xlu0 %1142, %v736_v60  }
 0x124   :  { %780 = vperm.xlu0 %1142, %v738_v62  }
 0x128   :  { %790 = vperm.xlu0 %1142, %v740_v0  }
 0x12c   :  { %800 = vperm.xlu0 %1142, %v742_v2  }
 0x130   :  { %810 = vperm.xlu0 %1142, %v744_v4  }
 0x134   :  { %820 = vperm.xlu0 %1142, %v746_v6  }
 0x1b9   :  { %v357_v14 = vpop.f32.mrb[0].mxu1 }
 0x1ba   :  { %v358_v15 = vadd.f32 %v357_v14, %v1450_v12  ;;  %v359_v16 = vpop.f32.mrb[1].mxu1 }
 0x1bb   :  { %v360_v17 = vadd.f32 %v359_v16, %v1452_v13  ;;  %v361_v18 = vpop.f32.mrb[2].mxu1 }
 0x1bc   :  { %v362_v19 = vadd.f32 %v361_v18, %v1450_v12  ;;  %v363_v20 = vpop.f32.mrb[3].mxu1  ;;  %v436_v22 = vmax.f32 %v358_v15, 0.0 }
 0x1bd   :  { %v364_v21 = vadd.f32 %v363_v20, %v1452_v13  ;;  %v437_v24 = vmax.f32 %v360_v17, 0.0 }
 0x1be   :  { %v438_v23 = vmax.f32 %v362_v19, 0.0 }
 0x1bf   :  { %v439_v25 = vmax.f32 %v364_v21, 0.0 }
 0x1c0   :  { %v501_v26 = vpack.c.bf16 %v438_v23, %v436_v22 }
 0x1c1   :  { %v502_v27 = vpack.c.bf16 %v439_v25, %v437_v24  ;;  %v367_v28 = vpop.f32.mrb[4].mxu1 }
 0x1c2   :  { %v368_v29 = vadd.f32 %v367_v28, %v1450_v12  ;;  %v369_v30 = vpop.f32.mrb[5].mxu1 }
 0x1c3   :  { %v370_v31 = vadd.f32 %v369_v30, %v1452_v13  ;;  %v371_v32 = vpop.f32.mrb[6].mxu1  ;;  %651 = vmatprep.mubr.bf16.mxu0 %v502_v27 }
 0x1c4   :  { %v372_v33 = vadd.f32 %v371_v32, %v1450_v12  ;;  %v373_v34 = vpop.f32.mrb[7].mxu1  ;;  %652 = vmatmul.mubr.bf16.vlgmr.msra.gmra.mrb[16].mxu0 %v501_v26  ;;  %v440_v36 = vmax.f32 %v368_v29, 0.0 }
 0x1c5   :  { %v374_v35 = vadd.f32 %v373_v34, %v1452_v13  ;;  %v441_v38 = vmax.f32 %v370_v31, 0.0 }
 0x1c6   :  { %v442_v37 = vmax.f32 %v372_v33, 0.0 }
 0x1c7   :  { %v443_v39 = vmax.f32 %v374_v35, 0.0 }
 0x1c8   :  { %v503_v40 = vpack.c.bf16 %v442_v37, %v440_v36 }
 0x1c9   :  { %v504_v41 = vpack.c.bf16 %v443_v39, %v441_v38  ;;  %v377_v42 = vpop.f32.mrb[8].mxu1 }
 0x1ca   :  { %v378_v43 = vadd.f32 %v377_v42, %v1450_v12  ;;  %v379_v44 = vpop.f32.mrb[9].mxu1 }
 0x1cb   :  { %v380_v46 = vadd.f32 %v379_v44, %v1452_v13  ;;  %v381_v47 = vpop.f32.mrb[10].mxu1  ;;  %659 = vmatprep.mubr.bf16.mxu0 %v504_v41 }
 0x1cc   :  { %v382_v48 = vadd.f32 %v381_v47, %v1450_v12  ;;  %v383_v49 = vpop.f32.mrb[11].mxu1  ;;  %660 = vmatmul.mubr.bf16.gmra.mrb[20].mxu0 %v503_v40  ;;  %v444_v51 = vmax.f32 %v378_v43, 0.0 }
 0x1cd   :  { %v384_v50 = vadd.f32 %v383_v49, %v1452_v13  ;;  %v445_v53 = vmax.f32 %v380_v46, 0.0 }
 0x1ce   :  { %v446_v52 = vmax.f32 %v382_v48, 0.0 }
 0x1cf   :  { %v447_v54 = vmax.f32 %v384_v50, 0.0 }
 0x1d0   :  { %v505_v55 = vpack.c.bf16 %v446_v52, %v444_v51 }
 0x1d1   :  { %v506_v45 = vpack.c.bf16 %v447_v54, %v445_v53  ;;  %v387_v56 = vpop.f32.mrb[12].mxu1 }
 0x1d2   :  { %v388_v57 = vadd.f32 %v387_v56, %v1450_v12  ;;  %v389_v58 = vpop.f32.mrb[13].mxu1 }
 0x1d3   :  { %v390_v59 = vadd.f32 %v389_v58, %v1452_v13  ;;  %v391_v60 = vpop.f32.mrb[14].mxu1  ;;  %667 = vmatprep.mubr.bf16.mxu0 %v506_v45 }
 0x1d4   :  { %v392_v61 = vadd.f32 %v391_v60, %v1450_v12  ;;  %v393_v62 = vpop.f32.mrb[15].mxu1  ;;  %668 = vmatmul.mubr.bf16.gmra.mrb[24].mxu0 %v505_v55  ;;  %v448_v0 = vmax.f32 %v388_v57, 0.0 }
 0x1d5   :  { %v394_v63 = vadd.f32 %v393_v62, %v1452_v13  ;;  %v449_v2 = vmax.f32 %v390_v59, 0.0 }
 0x1d6   :  { %v450_v1 = vmax.f32 %v392_v61, 0.0 }
 0x1d7   :  { %v451_v3 = vmax.f32 %v394_v63, 0.0 }
 0x1d8   :  { %v507_v4 = vpack.c.bf16 %v450_v1, %v448_v0  ;;  %v1489_v1 = vld [vmem:[%s1538_s6] ss:$0 sm:$0xff] }
 0x1d9   :  { %v508_v5 = vpack.c.bf16 %v451_v3, %v449_v2  ;;  %v397_v6 = vpop.f32.mrb[16].mxu1 }
 0x1da   :  { %v398_v7 = vadd.f32 %v397_v6, %v1450_v12  ;;  %v399_v8 = vpop.f32.mrb[17].mxu1 }
 0x1db   :  { %v400_v9 = vadd.f32 %v399_v8, %v1452_v13  ;;  %v401_v10 = vpop.f32.mrb[18].mxu1  ;;  %675 = vmatprep.mubr.bf16.mxu0 %v508_v5 }
 0x1dc   :  { %v402_v11 = vadd.f32 %v401_v10, %v1450_v12  ;;  %v403_v14 = vpop.f32.mrb[19].mxu1  ;;  %676 = vmatmul.mubr.bf16.gmra.mrb[28].mxu0 %v507_v4  ;;  %v452_v16 = vmax.f32 %v398_v7, 0.0 }
 0x1dd   :  { %v404_v15 = vadd.f32 %v403_v14, %v1452_v13  ;;  %v453_v18 = vmax.f32 %v400_v9, 0.0 }
 0x1de   :  { %v454_v17 = vmax.f32 %v402_v11, 0.0 }
 0x1df   :  { %v455_v19 = vmax.f32 %v404_v15, 0.0 }
 0x1e0   :  { %v509_v20 = vpack.c.bf16 %v454_v17, %v452_v16 }
 0x1e1   :  { %v510_v21 = vpack.c.bf16 %v455_v19, %v453_v18  ;;  %v407_v22 = vpop.f32.mrb[20].mxu1  ;;  %v761_v19 = vpop.permute.xlu1 %760 }
 0x1e2   :  { %v408_v23 = vadd.f32 %v407_v22, %v1450_v12  ;;  %v409_v24 = vpop.f32.mrb[21].mxu1 }
 0x1e3   :  { %v410_v25 = vadd.f32 %v409_v24, %v1452_v13  ;;  %v411_v26 = vpop.f32.mrb[22].mxu1  ;;  %683 = vmatprep.mubr.bf16.mxu0 %v510_v21 }
 0x1e4   :  { %v412_v27 = vadd.f32 %v411_v26, %v1450_v12  ;;  %v413_v28 = vpop.f32.mrb[23].mxu1  ;;  %684 = vmatmul.mubr.bf16.gmra.mrb[32].mxu0 %v509_v20  ;;  %v456_v30 = vmax.f32 %v408_v23, 0.0 }
 0x1e5   :  { %v414_v29 = vadd.f32 %v413_v28, %v1452_v13  ;;  %v457_v32 = vmax.f32 %v410_v25, 0.0  ;;  %v766_v28 = vpop.permute.xlu1 %765 }
 0x1e6   :  { %v458_v31 = vmax.f32 %v412_v27, 0.0 }
 0x1e7   :  { %v459_v33 = vmax.f32 %v414_v29, 0.0 }
 0x1e8   :  { %v511_v34 = vpack.c.bf16 %v458_v31, %v456_v30 }
 0x1e9   :  { %v512_v35 = vpack.c.bf16 %v459_v33, %v457_v32  ;;  %v417_v36 = vpop.f32.mrb[24].mxu1 }
 0x1ea   :  { %v418_v37 = vadd.f32 %v417_v36, %v1450_v12  ;;  %v419_v38 = vpop.f32.mrb[25].mxu1 }
 0x1eb   :  { %v420_v39 = vadd.f32 %v419_v38, %v1452_v13  ;;  %v421_v40 = vpop.f32.mrb[26].mxu1  ;;  %691 = vmatprep.mubr.bf16.mxu0 %v512_v35 }
 0x1ec   :  { %v422_v41 = vadd.f32 %v421_v40, %v1450_v12  ;;  %v423_v42 = vpop.f32.mrb[27].mxu1  ;;  %692 = vmatmul.mubr.bf16.gmra.mrb[36].mxu0 %v511_v34  ;;  %v460_v44 = vmax.f32 %v418_v37, 0.0  ;;  %v776_v40 = vpop.permute.xlu1 %775 }
 0x1ed   :  { %v424_v43 = vadd.f32 %v423_v42, %v1452_v13  ;;  %v461_v47 = vmax.f32 %v420_v39, 0.0 }
 0x1ee   :  { %v462_v46 = vmax.f32 %v422_v41, 0.0 }
 0x1ef   :  { %v463_v48 = vmax.f32 %v424_v43, 0.0 }
 0x1f0   :  { %v513_v49 = vpack.c.bf16 %v462_v46, %v460_v44 }
 0x1f1   :  { %v514_v50 = vpack.c.bf16 %v463_v48, %v461_v47  ;;  %v427_v51 = vpop.f32.mrb[28].mxu1 }
 0x1f2   :  { %v428_v52 = vadd.f32 %v427_v51, %v1450_v12  ;;  %v429_v53 = vpop.f32.mrb[29].mxu1 }
 0x1f3   :  { %v430_v54 = vadd.f32 %v429_v53, %v1452_v13  ;;  %v431_v55 = vpop.f32.mrb[30].mxu1  ;;  %699 = vmatprep.mubr.bf16.mxu0 %v514_v50 }
 0x1f4   :  { %v432_v45 = vadd.f32 %v431_v55, %v1450_v12  ;;  %v433_v56 = vpop.f32.mrb[31].mxu1  ;;  %700 = vmatmul.mubr.bf16.gmra.mrb[40].mxu0 %v513_v49  ;;  %v464_v58 = vmax.f32 %v428_v52, 0.0  ;;  %v751_v12 = vpop.permute.xlu0 %750 }
 0x1f5   :  { %v434_v57 = vadd.f32 %v433_v56, %v1452_v13  ;;  %v465_v60 = vmax.f32 %v430_v54, 0.0 }
 0x1f6   :  { %v466_v59 = vmax.f32 %v432_v45, 0.0  ;;  %v786_v45 = vpop.permute.xlu1 %785 }
 0x1f7   :  { %v467_v61 = vmax.f32 %v434_v57, 0.0 }
 0x1f8   :  { %v515_v62 = vpack.c.bf16 %v466_v59, %v464_v58  ;;  %v756_v9 = vpop.permute.xlu0 %755 }
 0x1f9   :  { %v516_v63 = vpack.c.bf16 %v467_v61, %v465_v60 }
 0x1fb   :  { %707 = vmatprep.mubr.bf16.mxu0 %v516_v63 }
 0x1fc   :  { %708 = vmatmul.mubr.bf16.gmra.mrb[44].mxu0 %v515_v62  ;;  %v771_v43 = vpop.permute.xlu0 %770 }
 0x200   :  { %v781_v58 = vpop.permute.xlu0 %780 }
 0x297   :  { %v1074_v0 = vpop.f32.mrb[16].mxu0 }
 0x298   :  { %v1075_v2 = vpop.f32.mrb[17].mxu0 }
 0x299   :  { %v1076_v3 = vadd.f32 %v1075_v2, %v1074_v0  ;;  %v1077_v4 = vpop.f32.mrb[18].mxu0 }
 0x29a   :  { %v1078_v5 = vpop.f32.mrb[19].mxu0 }
 0x29b   :  { %v654_v13 = vadd.f32 %v1076_v3, %v1489_v1  ;;  %v1079_v6 = vadd.f32 %v1078_v5, %v1077_v4 }
 0x29d   :  { %v657_v7 = vadd.f32 %v1079_v6, %v1489_v1  ;;  %v716_v8 = vmax.f32 %v654_v13, 0.0  ;;  %v796_v13 = vpop.permute.xlu1 %795 }
 0x29f   :  { %v1080_v10 = vpop.f32.mrb[20].mxu0  ;;  %v717_v11 = vmax.f32 %v657_v7, 0.0  ;;  %v828_v15 = vmul.f32 %v751_v12, %v716_v8  ;;  %v791_v8 = vpop.permute.xlu0 %790 }
 0x2a0   :  { %v1081_v14 = vpop.f32.mrb[21].mxu0 }
 0x2a1   :  { %v829_v16 = vmul.f32 %v756_v9, %v717_v11  ;;  %v1082_v17 = vadd.f32 %v1081_v14, %v1080_v10  ;;  %v1083_v18 = vpop.f32.mrb[22].mxu0 }
 0x2a2   :  { %v1084_v20 = vpop.f32.mrb[23].mxu0 }
 0x2a3   :  { %v1005_v21 = vpack.c.bf16 %v829_v16, %v828_v15  ;;  %v662_v22 = vadd.f32 %v1082_v17, %v1489_v1  ;;  %v1085_v23 = vadd.f32 %v1084_v20, %v1083_v18 }
 0x2a5   :  { %1006 = vst [vmem:[%s1539_s8] sm:$0xff] %v1005_v21   ;;  %v718_v24 = vmax.f32 %v662_v22, 0.0  ;;  %v665_v25 = vadd.f32 %v1085_v23, %v1489_v1  ;;  %v806_v22 = vpop.permute.xlu1 %805 }
 0x2a7   :  { %v719_v26 = vmax.f32 %v665_v25, 0.0  ;;  %v1086_v27 = vpop.f32.mrb[24].mxu0  ;;  %v830_v30 = vmul.f32 %v761_v19, %v718_v24  ;;  %v801_v25 = vpop.permute.xlu0 %800 }
 0x2a8   :  { %v1087_v29 = vpop.f32.mrb[25].mxu0 }
 0x2a9   :  { %v831_v31 = vmul.f32 %v766_v28, %v719_v26  ;;  %v1088_v32 = vadd.f32 %v1087_v29, %v1086_v27  ;;  %v1089_v33 = vpop.f32.mrb[26].mxu0 }
 0x2aa   :  { %v1090_v34 = vpop.f32.mrb[27].mxu0 }
 0x2ab   :  { %v1010_v35 = vpack.c.bf16 %v831_v31, %v830_v30  ;;  %v670_v36 = vadd.f32 %v1088_v32, %v1489_v1  ;;  %v1091_v37 = vadd.f32 %v1090_v34, %v1089_v33 }
 0x2ad   :  { %1042 = vst [vmem:[%s1539_s8 + $0x8] sm:$0xff] %v1010_v35   ;;  %v720_v38 = vmax.f32 %v670_v36, 0.0  ;;  %v673_v39 = vadd.f32 %v1091_v37, %v1489_v1  ;;  %v816_v37 = vpop.permute.xlu1 %815 }
 0x2af   :  { %v721_v41 = vmax.f32 %v673_v39, 0.0  ;;  %v1092_v42 = vpop.f32.mrb[28].mxu0  ;;  %v832_v46 = vmul.f32 %v771_v43, %v720_v38 }
 0x2b0   :  { %v1093_v44 = vpop.f32.mrb[29].mxu0 }
 0x2b1   :  { %v833_v47 = vmul.f32 %v776_v40, %v721_v41  ;;  %v1094_v48 = vadd.f32 %v1093_v44, %v1092_v42  ;;  %v1095_v49 = vpop.f32.mrb[30].mxu0  ;;  %v811_v40 = vpop.permute.xlu0 %810 }
 0x2b2   :  { %v1096_v50 = vpop.f32.mrb[31].mxu0 }
 0x2b3   :  { %v1015_v51 = vpack.c.bf16 %v833_v47, %v832_v46  ;;  %v678_v52 = vadd.f32 %v1094_v48, %v1489_v1  ;;  %v1097_v53 = vadd.f32 %v1096_v50, %v1095_v49 }
 0x2b5   :  { %1043 = vst [vmem:[%s1539_s8 + $0x10] sm:$0xff] %v1015_v51   ;;  %v722_v54 = vmax.f32 %v678_v52, 0.0  ;;  %v681_v55 = vadd.f32 %v1097_v53, %v1489_v1 }
 0x2b7   :  { %v723_v56 = vmax.f32 %v681_v55, 0.0  ;;  %v1098_v57 = vpop.f32.mrb[32].mxu0  ;;  %v834_v60 = vmul.f32 %v781_v58, %v722_v54  ;;  %v826_v54 = vpop.permute.xlu1 %825 }
 0x2b8   :  { %v1099_v59 = vpop.f32.mrb[33].mxu0  ;;  %v821_v55 = vpop.permute.xlu0 %820 }
 0x2b9   :  { %v835_v61 = vmul.f32 %v786_v45, %v723_v56  ;;  %v1100_v62 = vadd.f32 %v1099_v59, %v1098_v57  ;;  %v1101_v63 = vpop.f32.mrb[34].mxu0 }
 0x2ba   :  { %v1102_v0 = vpop.f32.mrb[35].mxu0 }
 0x2bb   :  { %v1020_v2 = vpack.c.bf16 %v835_v61, %v834_v60  ;;  %v686_v12 = vadd.f32 %v1100_v62, %v1489_v1  ;;  %v1103_v3 = vadd.f32 %v1102_v0, %v1101_v63 }
 0x2bd   :  { %1044 = vst [vmem:[%s1539_s8 + $0x18] sm:$0xff] %v1020_v2   ;;  %v724_v4 = vmax.f32 %v686_v12, 0.0  ;;  %v689_v5 = vadd.f32 %v1103_v3, %v1489_v1 }
 0x2bf   :  { %v725_v6 = vmax.f32 %v689_v5, 0.0  ;;  %v1104_v7 = vpop.f32.mrb[36].mxu0  ;;  %v836_v10 = vmul.f32 %v791_v8, %v724_v4 }
 0x2c0   :  { %v1105_v9 = vpop.f32.mrb[37].mxu0 }
 0x2c1   :  { %v837_v11 = vmul.f32 %v796_v13, %v725_v6  ;;  %v1106_v14 = vadd.f32 %v1105_v9, %v1104_v7  ;;  %v1107_v15 = vpop.f32.mrb[38].mxu0 }
 0x2c2   :  { %v1108_v16 = vpop.f32.mrb[39].mxu0 }
 0x2c3   :  { %v1025_v17 = vpack.c.bf16 %v837_v11, %v836_v10  ;;  %v694_v18 = vadd.f32 %v1106_v14, %v1489_v1  ;;  %v1109_v19 = vadd.f32 %v1108_v16, %v1107_v15 }
 0x2c5   :  { %1045 = vst [vmem:[%s1539_s8 + $0x20] sm:$0xff] %v1025_v17   ;;  %v726_v20 = vmax.f32 %v694_v18, 0.0  ;;  %v697_v21 = vadd.f32 %v1109_v19, %v1489_v1 }
 0x2c7   :  { %v727_v23 = vmax.f32 %v697_v21, 0.0  ;;  %v1110_v24 = vpop.f32.mrb[40].mxu0  ;;  %v838_v27 = vmul.f32 %v801_v25, %v726_v20 }
 0x2c8   :  { %v1111_v26 = vpop.f32.mrb[41].mxu0 }
 0x2c9   :  { %v839_v28 = vmul.f32 %v806_v22, %v727_v23  ;;  %v1112_v29 = vadd.f32 %v1111_v26, %v1110_v24  ;;  %v1113_v30 = vpop.f32.mrb[42].mxu0 }
 0x2ca   :  { %v1114_v31 = vpop.f32.mrb[43].mxu0 }
 0x2cb   :  { %v1030_v32 = vpack.c.bf16 %v839_v28, %v838_v27  ;;  %v702_v33 = vadd.f32 %v1112_v29, %v1489_v1  ;;  %v1115_v34 = vadd.f32 %v1114_v31, %v1113_v30 }
 0x2cd   :  { %1046 = vst [vmem:[%s1539_s8 + $0x28] sm:$0xff] %v1030_v32   ;;  %v728_v35 = vmax.f32 %v702_v33, 0.0  ;;  %v705_v36 = vadd.f32 %v1115_v34, %v1489_v1 }
 0x2cf   :  { %v729_v38 = vmax.f32 %v705_v36, 0.0  ;;  %v1116_v39 = vpop.f32.mrb[44].mxu0  ;;  %v840_v42 = vmul.f32 %v811_v40, %v728_v35 }
 0x2d0   :  { %v1117_v41 = vpop.f32.mrb[45].mxu0 }
 0x2d1   :  { %v841_v43 = vmul.f32 %v816_v37, %v729_v38  ;;  %v1118_v44 = vadd.f32 %v1117_v41, %v1116_v39  ;;  %v1119_v46 = vpop.f32.mrb[46].mxu0 }
 0x2d2   :  { %v1120_v47 = vpop.f32.mrb[47].mxu0 }
 0x2d3   :  { %v1035_v48 = vpack.c.bf16 %v841_v43, %v840_v42  ;;  %v710_v49 = vadd.f32 %v1118_v44, %v1489_v1  ;;  %v1121_v50 = vadd.f32 %v1120_v47, %v1119_v46 }
 0x2d5   :  { %1047 = vst [vmem:[%s1539_s8 + $0x30] sm:$0xff] %v1035_v48   ;;  %v730_v51 = vmax.f32 %v710_v49, 0.0  ;;  %v713_v52 = vadd.f32 %v1121_v50, %v1489_v1 }
 0x2d7   :  { %v731_v53 = vmax.f32 %v713_v52, 0.0  ;;  %v842_v45 = vmul.f32 %v821_v55, %v730_v51 }
 0x2d9   :  { %v843_v56 = vmul.f32 %v826_v54, %v731_v53 }
 0x2db   :  { %v1040_v57 = vpack.c.bf16 %v843_v56, %v842_v45 }
 0x2dd   :  { %1048 = vst [vmem:[%s1539_s8 + $0x38] sm:$0xff] %v1040_v57  }

// kernel: mpnn_forward.10
= control target key start
LH: loop header
LB: loop body
LE: loop exit
PB: predicated region body
PF: predicated region fallthrough
CT: control target
= control target key end

     0   :  { %v2344_v0 = vmov 0.0   ;;  %vm2345_vm0 = vmmov 0   ;;  %vm311_vm1 = vcmask 130048   ;;  %vm364_vm2 = vcmask 1043456   ;;  %s2346_s30 = smov 96   ;;  %s2349_s16 = smov 112   ;;  %s2935_s5 = inlined_call_operand.vmem [shape: bf16[16,16], index: 5, kind: input, shape index: {}]   ;;  %s2936_s3 = inlined_call_operand.vmem [shape: f32[2,8,16], index: 3, kind: input, shape index: {}]   ;;  %s2937_s1 = inlined_call_operand.vmem [shape: bf16[2,1024,16], index: 1, kind: input, shape index: {}]   ;;  %s2938_s0 = inlined_call_operand.vmem [shape: bf16[2,8,1024], index: 0, kind: input, shape index: {}]   ;;  %s2939_s2 = inlined_call_operand.vmem [shape: bf16[2,8,8], index: 2, kind: input, shape index: {}]   ;;  %s2940_s7 = inlined_call_operand.vmem [shape: bf16[16,48], index: 7, kind: input, shape index: {}]   ;;  %s2941_s6 = inlined_call_operand.vmem [shape: bf16[16,48], index: 6, kind: input, shape index: {}]   ;;  %s2942_s9 = inlined_call_operand.vmem [shape: f32[1,48], index: 9, kind: input, shape index: {}]   ;;  %s2943_s8 = inlined_call_operand.vmem [shape: f32[1,48], index: 8, kind: input, shape index: {}]   ;;  %s2944_s4 = inlined_call_operand.vmem [shape: f32[2,8,1], index: 4, kind: input, shape index: {}]   ;;  %s2945_s10 = inlined_call_operand.vmem [shape: f32[2,8,16], index: 10, kind: output, shape index: {}]  }
   0x1   :  { %2144 = vmatprep.subr.bf16.mxu0 %v2344_v0  ;;  %v2183_v1 = vld [vmem:[%s2935_s5] sm:$0xff]   ;;  %2146 = vmatprep.mubr.msk.bf16.mxu0 %vm2345_vm0, %v2344_v0  ;;  %v37_v3 = vld [vmem:[%s2936_s3 + $0x8] sm:$0xff]  ;;  %vm360_vm3 = vcmask 64512   ;;  %v2192_v26 = vld [vmem:[%s2937_s1 + $0x50] sm:$0xff]   ;;  %s2350_s5 = smov 16  }
   0x2   :  { %v36_v2 = vld [vmem:[%s2936_s3] sm:$0xff]  ;;  %2150 = vmatprep.subr.bf16.mxu1 %v2344_v0  ;;  %2152 = vmatprep.mubr.msk.bf16.mxu1 %vm2345_vm0, %v2344_v0  ;;  %v2449_v17 = vld [vmem:[%s2938_s0 + $0x8] sm:$0xff]  ;;  %v2194_v28 = vld [vmem:[%s2937_s1 + $0xd0] sm:$0xff]  }
   0x3   :  { %2145 = vmatpush3.bf16.msra.mxu0 %v2183_v1  ;;  %v2421_v4 = vpack.c.bf16 %v37_v3, %v36_v2  ;;  %v2184_v5 = vld [vmem:[%s2937_s1 + $0x40] sm:$0xff]   ;;  %v2188_v20 = vld [vmem:[%s2937_s1 + $0x48] sm:$0xff]   ;;  %v1809_v23 = vcombine.high %v2449_v17, %v2449_v17  ;;  %v2193_v29 = vld [vmem:[%s2937_s1 + $0x10] sm:$0xff]   ;;  %v1808_v58 = vcombine.low %v2449_v17, %v2449_v17 }
   0x4   :  { %2156 = vmatprep.subr.bf16.mxu0 %v2344_v0  ;;  %v2434_v9 = vld [vmem:[%s2938_s0] sm:$0xff]  ;;  %v2190_v24 = vld [vmem:[%s2937_s1 + $0xc8] sm:$0xff]   ;;  %v2196_v30 = vld [vmem:[%s2937_s1 + $0x58] sm:$0xff]  }
   0x5   :  { %v356_v11 = vld [vmem:[%s2939_s2] sm:$0xf]  ;;  %v1807_v18 = vcombine.high %v2434_v9, %v2434_v9  ;;  %v357_v21 = vld [vmem:[%s2939_s2 + $0x4] sm:$0xf]  ;;  %v2189_v25 = vld [vmem:[%s2937_s1 + $0x8] sm:$0xff]   ;;  %v1806_v53 = vcombine.low %v2434_v9, %v2434_v9 }
   0x6   :  { %2147 = vmatmul.mubr.msk.bf16.vlgmr.msra.gmra.mrb[0].mxu0 %vm311_vm1, %v2421_v4  ;;  %v2185_v12 = vld [vmem:[%s2937_s1] sm:$0xff]   ;;  %v2191_v27 = vld [vmem:[%s2937_s1 + $0x88] sm:$0xff]   ;;  %v2195_v31 = vld [vmem:[%s2937_s1 + $0x90] sm:$0xff]  }
   0x7   :  { %2158 = vmatprep.mubr.msk.bf16.mxu0 %vm2345_vm0, %v2344_v0  ;;  %v2186_v16 = vld [vmem:[%s2937_s1 + $0xc0] sm:$0xff]   ;;  %v2198_v32 = vld [vmem:[%s2937_s1 + $0xd8] sm:$0xff]   ;;  %v2204_v38 = vld [vmem:[%s2937_s1 + $0x68] sm:$0xff]  }
   0x8   :  { %v2187_v22 = vld [vmem:[%s2937_s1 + $0x80] sm:$0xff]   ;;  %v2197_v33 = vld [vmem:[%s2937_s1 + $0x18] sm:$0xff]   ;;  %v2206_v40 = vld [vmem:[%s2937_s1 + $0xe8] sm:$0xff]  }
   0x9   :  { %v2200_v34 = vld [vmem:[%s2937_s1 + $0x60] sm:$0xff]   ;;  %v2199_v35 = vld [vmem:[%s2937_s1 + $0x98] sm:$0xff]   ;;  %v2205_v41 = vld [vmem:[%s2937_s1 + $0x28] sm:$0xff]  }
   0xa   :  { %v2202_v36 = vld [vmem:[%s2937_s1 + $0xe0] sm:$0xff]   ;;  %v2208_v42 = vld [vmem:[%s2937_s1 + $0x70] sm:$0xff]   ;;  %v2207_v43 = vld [vmem:[%s2937_s1 + $0xa8] sm:$0xff]  }
   0xb   :  { %v2201_v37 = vld [vmem:[%s2937_s1 + $0x20] sm:$0xff]   ;;  %v2210_v44 = vld [vmem:[%s2937_s1 + $0xf0] sm:$0xff]   ;;  %v2212_v46 = vld [vmem:[%s2937_s1 + $0x78] sm:$0xff]  }
   0xc   :  { %v2203_v39 = vld [vmem:[%s2937_s1 + $0xa0] sm:$0xff]   ;;  %v2209_v45 = vld [vmem:[%s2937_s1 + $0x30] sm:$0xff]   ;;  %v2214_v48 = vld [vmem:[%s2937_s1 + $0xf8] sm:$0xff]  }
   0xd   :  { %v2211_v47 = vld [vmem:[%s2937_s1 + $0xb0] sm:$0xff]   ;;  %v2213_v49 = vld [vmem:[%s2937_s1 + $0x38] sm:$0xff]   ;;  %v2218_v50 = vld [vmem:[%s2937_s1 + $0x140] sm:$0xff]  }
   0xe   :  { %v2551_v51 = vld [vmem:[%s2938_s0 + $0x10] sm:$0xff]  ;;  %v2217_v52 = vld [vmem:[%s2937_s1 + $0xb8] sm:$0xff]   ;;  %v2222_v54 = vld [vmem:[%s2937_s1 + $0x1c0] sm:$0xff]  }
   0xf   :  { %v2564_v55 = vld [vmem:[%s2938_s0 + $0x18] sm:$0xff]  ;;  %v2221_v56 = vld [vmem:[%s2937_s1 + $0x100] sm:$0xff]   ;;  %v1811_v57 = vcombine.high %v2551_v51, %v2551_v51  ;;  %v2224_v59 = vld [vmem:[%s2937_s1 + $0x148] sm:$0xff]  }
  0x10   :  { %v2223_v60 = vld [vmem:[%s2937_s1 + $0x180] sm:$0xff]   ;;  %v1813_v61 = vcombine.high %v2564_v55, %v2564_v55  ;;  %v2226_v62 = vld [vmem:[%s2937_s1 + $0x1c8] sm:$0xff]   ;;  %v2228_v1 = vld [vmem:[%s2937_s1 + $0x150] sm:$0xff]  }
  0x11   :  { %v2225_v63 = vld [vmem:[%s2937_s1 + $0x108] sm:$0xff]   ;;  %v2230_v3 = vld [vmem:[%s2937_s1 + $0x1d0] sm:$0xff]   ;;  %v2233_v9 = vld [vmem:[%s2937_s1 + $0x118] sm:$0xff]  }
  0x12   :  { %v2227_v2 = vld [vmem:[%s2937_s1 + $0x188] sm:$0xff]  }
  0x13   :  { %v2241_v17 = vld [vmem:[%s2937_s1 + $0x128] sm:$0xff]  }
  0xd9   :  { %v349_v6 = vpop.f32.mrb[0].mxu0 }
  0xda   :  { %v358_v7 = vpack.c.bf16 %v349_v6, %v349_v6  ;;  %v2148_v8 = vpop.f32.mrb[1].mxu0  ;;  %v2232_v6 = vld [vmem:[%s2937_s1 + $0x158] sm:$0xff]  }
  0xdb   :  { %v352_v10 = vpop.f32.mrb[2].mxu0  ;;  %v2234_v8 = vld [vmem:[%s2937_s1 + $0x1d8] sm:$0xff]  }
  0xdc   :  { %v359_v13 = vpack.c.bf16 %v352_v10, %v352_v10  ;;  %v2149_v14 = vpop.f32.mrb[3].mxu0  ;;  %v366_v15 = vsel %vm364_vm2, %v358_v7, 0  ;;  %v2231_v7 = vld [vmem:[%s2937_s1 + $0x190] sm:$0xff]   ;;  %v2236_v10 = vld [vmem:[%s2937_s1 + $0x160] sm:$0xff]  }
  0xdd   :  { %2151 = vmatpush3.bf16.msra.mxu1 %v366_v15  ;;  %v2240_v14 = vld [vmem:[%s2937_s1 + $0x168] sm:$0xff]   ;;  %v2239_v15 = vld [vmem:[%s2937_s1 + $0x1a0] sm:$0xff]  }
  0xde   :  { %v412_v19 = vsel %vm364_vm2, %v359_v13, 0  ;;  %1964 = vmatprep.subr.bf16.mxu1 %v2184_v5  ;;  %v2229_v5 = vld [vmem:[%s2937_s1 + $0x110] sm:$0xff]   ;;  %v2237_v13 = vld [vmem:[%s2937_s1 + $0x120] sm:$0xff]  }
  0xdf   :  { %2157 = vmatpush3.bf16.msra.mxu0 %v412_v19  ;;  %v2243_v19 = vld [vmem:[%s2937_s1 + $0x1a8] sm:$0xff]  }
  0xe0   :  { %2153 = vmatmul.mubr.msk.bf16.vlgmr.msra.gmra.mrb[0].mxu1 %vm360_vm3, %v356_v11  ;;  %1986 = vmatprep.subr.bf16.mxu0 %v2186_v16  ;;  %v2235_v11 = vld [vmem:[%s2937_s1 + $0x198] sm:$0xff]   ;;  %v2242_v16 = vld [vmem:[%s2937_s1 + $0x1e8] sm:$0xff]  }
  0xe1   :  { %1965 = vmatpush3.bf16.msra.mxu1 %v2185_v12  ;;  %898 = vmatprep.mubr.bf16.mxu1 %v1807_v18  ;;  %v2238_v12 = vld [vmem:[%s2937_s1 + $0x1e0] sm:$0xff]   ;;  %v2244_v18 = vld [vmem:[%s2937_s1 + $0x170] sm:$0xff]  }
  0xe2   :  { %2159 = vmatmul.mubr.msk.bf16.vlgmr.msra.gmra.mrb[4].mxu0 %vm360_vm3, %v357_v21  ;;  %1966 = vmatprep.subr.bf16.mxu1 %v2188_v20  ;;  %v2246_v20 = vld [vmem:[%s2937_s1 + $0x1f0] sm:$0xff]  }
  0xe3   :  { %1987 = vmatpush3.bf16.msra.mxu0 %v2187_v22  ;;  %938 = vmatprep.mubr.bf16.mxu0 %v1809_v23  ;;  %v2245_v21 = vld [vmem:[%s2937_s1 + $0x130] sm:$0xff]   ;;  %v2248_v22 = vld [vmem:[%s2937_s1 + $0x178] sm:$0xff]  }
  0xe4   :  { %1988 = vmatprep.subr.bf16.mxu0 %v2190_v24  ;;  %v2247_v23 = vld [vmem:[%s2937_s1 + $0x1b0] sm:$0xff]   ;;  %v2250_v24 = vld [vmem:[%s2937_s1 + $0x1f8] sm:$0xff]  }
  0xe5   :  { %1967 = vmatpush3.bf16.msra.mxu1 %v2189_v25  ;;  %v2249_v25 = vld [vmem:[%s2937_s1 + $0x138] sm:$0xff]  }
  0xe6   :  { %1968 = vmatprep.subr.bf16.mxu1 %v2192_v26  ;;  %v2254_v26 = vld [vmem:[%s2937_s1 + $0x240] sm:$0xff]  }
  0xe7   :  { %1989 = vmatpush3.bf16.msra.mxu0 %v2191_v27  ;;  %v2665_v27 = vld [vmem:[%s2938_s0 + $0x20] sm:$0xff] }
  0xe8   :  { %1990 = vmatprep.subr.bf16.mxu0 %v2194_v28  ;;  %v2253_v28 = vld [vmem:[%s2937_s1 + $0x1b8] sm:$0xff]  }
  0xe9   :  { %1969 = vmatpush3.bf16.msra.mxu1 %v2193_v29  ;;  %v1810_v29 = vcombine.low %v2551_v51, %v2551_v51  ;;  %v2273_v51 = vld [vmem:[%s2937_s1 + $0x220] sm:$0xff]  }
  0xea   :  { %1970 = vmatprep.subr.bf16.mxu1 %v2196_v30  ;;  %v2258_v30 = vld [vmem:[%s2937_s1 + $0x2c0] sm:$0xff]  }
  0xeb   :  { %1991 = vmatpush3.bf16.msra.mxu0 %v2195_v31  ;;  %v2678_v31 = vld [vmem:[%s2938_s0 + $0x28] sm:$0xff] }
  0xec   :  { %1992 = vmatprep.subr.bf16.mxu0 %v2198_v32  ;;  %v2257_v32 = vld [vmem:[%s2937_s1 + $0x200] sm:$0xff]  }
  0xed   :  { %1971 = vmatpush3.bf16.msra.mxu1 %v2197_v33  ;;  %v1879_v33 = vcombine.high %v2665_v27, %v2665_v27 }
  0xee   :  { %1972 = vmatprep.subr.bf16.mxu1 %v2200_v34  ;;  %v1812_v34 = vcombine.low %v2564_v55, %v2564_v55  ;;  %v2277_v55 = vld [vmem:[%s2937_s1 + $0x228] sm:$0xff]  }
  0xef   :  { %1993 = vmatpush3.bf16.msra.mxu0 %v2199_v35  ;;  %v2260_v35 = vld [vmem:[%s2937_s1 + $0x248] sm:$0xff]  }
  0xf0   :  { %1994 = vmatprep.subr.bf16.mxu0 %v2202_v36  ;;  %v2259_v36 = vld [vmem:[%s2937_s1 + $0x280] sm:$0xff]  }
  0xf1   :  { %1973 = vmatpush3.bf16.msra.mxu1 %v2201_v37  ;;  %v1881_v37 = vcombine.high %v2678_v31, %v2678_v31 }
  0xf2   :  { %1974 = vmatprep.subr.bf16.mxu1 %v2204_v38  ;;  %v2262_v38 = vld [vmem:[%s2937_s1 + $0x2c8] sm:$0xff]  }
  0xf3   :  { %1995 = vmatpush3.bf16.msra.mxu0 %v2203_v39  ;;  %v2261_v39 = vld [vmem:[%s2937_s1 + $0x208] sm:$0xff]  }
  0xf4   :  { %1996 = vmatprep.subr.bf16.mxu0 %v2206_v40  ;;  %v2264_v40 = vld [vmem:[%s2937_s1 + $0x250] sm:$0xff]  }
  0xf5   :  { %1975 = vmatpush3.bf16.msra.mxu1 %v2205_v41  ;;  %v2263_v41 = vld [vmem:[%s2937_s1 + $0x288] sm:$0xff]  }
  0xf6   :  { %1976 = vmatprep.subr.bf16.mxu1 %v2208_v42  ;;  %v2266_v42 = vld [vmem:[%s2937_s1 + $0x2d0] sm:$0xff]  }
  0xf7   :  { %1997 = vmatpush3.bf16.msra.mxu0 %v2207_v43  ;;  %v2265_v43 = vld [vmem:[%s2937_s1 + $0x210] sm:$0xff]  }
  0xf8   :  { %1998 = vmatprep.subr.bf16.mxu0 %v2210_v44  ;;  %v2268_v44 = vld [vmem:[%s2937_s1 + $0x258] sm:$0xff]  }
  0xf9   :  { %1977 = vmatpush3.bf16.msra.mxu1 %v2209_v45  ;;  %v2267_v45 = vld [vmem:[%s2937_s1 + $0x290] sm:$0xff]  }
  0xfa   :  { %1978 = vmatprep.subr.bf16.mxu1 %v2212_v46  ;;  %v2270_v46 = vld [vmem:[%s2937_s1 + $0x2d8] sm:$0xff]  }
  0xfb   :  { %1999 = vmatpush3.bf16.msra.mxu0 %v2211_v47  ;;  %v2269_v47 = vld [vmem:[%s2937_s1 + $0x218] sm:$0xff]  }
  0xfc   :  { %2000 = vmatprep.subr.bf16.mxu0 %v2214_v48  ;;  %v2272_v48 = vld [vmem:[%s2937_s1 + $0x260] sm:$0xff]  }
  0xfd   :  { %1979 = vmatpush3.bf16.msra.mxu1 %v2213_v49  ;;  %v2271_v49 = vld [vmem:[%s2937_s1 + $0x298] sm:$0xff]  }
  0xfe   :  { %2008 = vmatprep.subr.bf16.mxu1 %v2218_v50  ;;  %v2274_v50 = vld [vmem:[%s2937_s1 + $0x2e0] sm:$0xff]  }
  0xff   :  { %2001 = vmatpush3.bf16.msra.mxu0 %v2217_v52  ;;  %v2276_v52 = vld [vmem:[%s2937_s1 + $0x268] sm:$0xff]  }
 0x100   :  { %899 = vmatmul.mubr.bf16.vlgmr.msra.gmra.mrb[4].mxu1 %v1806_v53  ;;  %2030 = vmatprep.subr.bf16.mxu0 %v2222_v54  ;;  %v2275_v53 = vld [vmem:[%s2937_s1 + $0x2a0] sm:$0xff]   ;;  %v2278_v54 = vld [vmem:[%s2937_s1 + $0x2e8] sm:$0xff]  }
 0x101   :  { %2009 = vmatpush3.bf16.msra.mxu1 %v2221_v56  ;;  %978 = vmatprep.mubr.bf16.mxu1 %v1811_v57  ;;  %v2280_v56 = vld [vmem:[%s2937_s1 + $0x270] sm:$0xff]   ;;  %v2279_v57 = vld [vmem:[%s2937_s1 + $0x2a8] sm:$0xff]  }
 0x102   :  { %939 = vmatmul.mubr.bf16.vlgmr.msra.gmra.mrb[8].mxu0 %v1808_v58  ;;  %2010 = vmatprep.subr.bf16.mxu1 %v2224_v59  ;;  %v2282_v58 = vld [vmem:[%s2937_s1 + $0x2f0] sm:$0xff]  }
 0x103   :  { %2031 = vmatpush3.bf16.msra.mxu0 %v2223_v60  ;;  %1018 = vmatprep.mubr.bf16.mxu0 %v1813_v61  ;;  %v2281_v59 = vld [vmem:[%s2937_s1 + $0x230] sm:$0xff]   ;;  %v2284_v60 = vld [vmem:[%s2937_s1 + $0x278] sm:$0xff]  }
 0x104   :  { %2032 = vmatprep.subr.bf16.mxu0 %v2226_v62  ;;  %v2283_v61 = vld [vmem:[%s2937_s1 + $0x2b0] sm:$0xff]   ;;  %v2286_v62 = vld [vmem:[%s2937_s1 + $0x2f8] sm:$0xff]  }
 0x105   :  { %2011 = vmatpush3.bf16.msra.mxu1 %v2225_v63  ;;  %v2285_v63 = vld [vmem:[%s2937_s1 + $0x238] sm:$0xff]  }
 0x106   :  { %2012 = vmatprep.subr.bf16.mxu1 %v2228_v1  ;;  %v2290_v1 = vld [vmem:[%s2937_s1 + $0x340] sm:$0xff]  }
 0x107   :  { %2033 = vmatpush3.bf16.msra.mxu0 %v2227_v2  ;;  %v2779_v2 = vld [vmem:[%s2938_s0 + $0x30] sm:$0xff] }
 0x108   :  { %2034 = vmatprep.subr.bf16.mxu0 %v2230_v3  ;;  %v2289_v3 = vld [vmem:[%s2937_s1 + $0x2b8] sm:$0xff]  }
 0x109   :  { %2013 = vmatpush3.bf16.msra.mxu1 %v2229_v5  ;;  %v1878_v5 = vcombine.low %v2665_v27, %v2665_v27  ;;  %v2309_v27 = vld [vmem:[%s2937_s1 + $0x320] sm:$0xff]  }
 0x10a   :  { %2014 = vmatprep.subr.bf16.mxu1 %v2232_v6  ;;  %v2294_v6 = vld [vmem:[%s2937_s1 + $0x3c0] sm:$0xff]  }
 0x10b   :  { %2035 = vmatpush3.bf16.msra.mxu0 %v2231_v7  ;;  %v2792_v7 = vld [vmem:[%s2938_s0 + $0x38] sm:$0xff] }
 0x10c   :  { %2036 = vmatprep.subr.bf16.mxu0 %v2234_v8  ;;  %v2293_v8 = vld [vmem:[%s2937_s1 + $0x300] sm:$0xff]  }
 0x10d   :  { %2015 = vmatpush3.bf16.msra.mxu1 %v2233_v9  ;;  %v1883_v9 = vcombine.high %v2779_v2, %v2779_v2 }
 0x10e   :  { %2016 = vmatprep.subr.bf16.mxu1 %v2236_v10  ;;  %v1880_v10 = vcombine.low %v2678_v31, %v2678_v31  ;;  %v2313_v31 = vld [vmem:[%s2937_s1 + $0x328] sm:$0xff]  }
 0x10f   :  { %2037 = vmatpush3.bf16.msra.mxu0 %v2235_v11  ;;  %v2296_v11 = vld [vmem:[%s2937_s1 + $0x348] sm:$0xff]  }
 0x110   :  { %2038 = vmatprep.subr.bf16.mxu0 %v2238_v12  ;;  %v2295_v12 = vld [vmem:[%s2937_s1 + $0x380] sm:$0xff]  }
 0x111   :  { %2017 = vmatpush3.bf16.msra.mxu1 %v2237_v13  ;;  %v1885_v13 = vcombine.high %v2792_v7, %v2792_v7 }
 0x112   :  { %2018 = vmatprep.subr.bf16.mxu1 %v2240_v14  ;;  %v2298_v14 = vld [vmem:[%s2937_s1 + $0x3c8] sm:$0xff]  }
 0x113   :  { %2039 = vmatpush3.bf16.msra.mxu0 %v2239_v15  ;;  %v2297_v15 = vld [vmem:[%s2937_s1 + $0x308] sm:$0xff]  }
 0x114   :  { %2040 = vmatprep.subr.bf16.mxu0 %v2242_v16  ;;  %v2300_v16 = vld [vmem:[%s2937_s1 + $0x350] sm:$0xff]  }
 0x115   :  { %2019 = vmatpush3.bf16.msra.mxu1 %v2241_v17  ;;  %v2299_v17 = vld [vmem:[%s2937_s1 + $0x388] sm:$0xff]  }
 0x116   :  { %2020 = vmatprep.subr.bf16.mxu1 %v2244_v18  ;;  %v2302_v18 = vld [vmem:[%s2937_s1 + $0x3d0] sm:$0xff]  }
 0x117   :  { %2041 = vmatpush3.bf16.msra.mxu0 %v2243_v19  ;;  %v2301_v19 = vld [vmem:[%s2937_s1 + $0x310] sm:$0xff]  }
 0x118   :  { %2042 = vmatprep.subr.bf16.mxu0 %v2246_v20  ;;  %v2304_v20 = vld [vmem:[%s2937_s1 + $0x358] sm:$0xff]  }
 0x119   :  { %2021 = vmatpush3.bf16.msra.mxu1 %v2245_v21  ;;  %v2303_v21 = vld [vmem:[%s2937_s1 + $0x390] sm:$0xff]  }
 0x11a   :  { %2022 = vmatprep.subr.bf16.mxu1 %v2248_v22  ;;  %v2306_v22 = vld [vmem:[%s2937_s1 + $0x3d8] sm:$0xff]  }
 0x11b   :  { %2043 = vmatpush3.bf16.msra.mxu0 %v2247_v23  ;;  %v2305_v23 = vld [vmem:[%s2937_s1 + $0x318] sm:$0xff]  }
 0x11c   :  { %2044 = vmatprep.subr.bf16.mxu0 %v2250_v24  ;;  %v2308_v24 = vld [vmem:[%s2937_s1 + $0x360] sm:$0xff]  }
 0x11d   :  { %2023 = vmatpush3.bf16.msra.mxu1 %v2249_v25  ;;  %v2307_v25 = vld [vmem:[%s2937_s1 + $0x398] sm:$0xff]  }
 0x11e   :  { %2052 = vmatprep.subr.bf16.mxu1 %v2254_v26  ;;  %v2310_v26 = vld [vmem:[%s2937_s1 + $0x3e0] sm:$0xff]  }
 0x11f   :  { %2045 = vmatpush3.bf16.msra.mxu0 %v2253_v28  ;;  %v2312_v28 = vld [vmem:[%s2937_s1 + $0x368] sm:$0xff]  }
 0x120   :  { %979 = vmatmul.mubr.bf16.vlgmr.msra.gmra.mrb[8].mxu1 %v1810_v29  ;;  %2074 = vmatprep.subr.bf16.mxu0 %v2258_v30  ;;  %v2311_v29 = vld [vmem:[%s2937_s1 + $0x3a0] sm:$0xff]   ;;  %v2314_v30 = vld [vmem:[%s2937_s1 + $0x3e8] sm:$0xff]  }
 0x121   :  { %2053 = vmatpush3.bf16.msra.mxu1 %v2257_v32  ;;  %1470 = vmatprep.mubr.bf16.mxu1 %v1879_v33  ;;  %v2316_v32 = vld [vmem:[%s2937_s1 + $0x370] sm:$0xff]   ;;  %v2315_v33 = vld [vmem:[%s2937_s1 + $0x3a8] sm:$0xff]  }
 0x122   :  { %1019 = vmatmul.mubr.bf16.vlgmr.msra.gmra.mrb[12].mxu0 %v1812_v34  ;;  %2054 = vmatprep.subr.bf16.mxu1 %v2260_v35  ;;  %v2318_v34 = vld [vmem:[%s2937_s1 + $0x3f0] sm:$0xff]  }
 0x123   :  { %2075 = vmatpush3.bf16.msra.mxu0 %v2259_v36  ;;  %1510 = vmatprep.mubr.bf16.mxu0 %v1881_v37  ;;  %v2317_v35 = vld [vmem:[%s2937_s1 + $0x330] sm:$0xff]   ;;  %v2320_v36 = vld [vmem:[%s2937_s1 + $0x378] sm:$0xff]  }
 0x124   :  { %2076 = vmatprep.subr.bf16.mxu0 %v2262_v38  ;;  %v2319_v37 = vld [vmem:[%s2937_s1 + $0x3b0] sm:$0xff]   ;;  %v2322_v38 = vld [vmem:[%s2937_s1 + $0x3f8] sm:$0xff]  }
 0x125   :  { %2055 = vmatpush3.bf16.msra.mxu1 %v2261_v39  ;;  %v2321_v39 = vld [vmem:[%s2937_s1 + $0x338] sm:$0xff]  }
 0x126   :  { %2056 = vmatprep.subr.bf16.mxu1 %v2264_v40  ;;  %v2325_v40 = vld [vmem:[%s2937_s1 + $0x3b8] sm:$0xff]  }
 0x127   :  { %2077 = vmatpush3.bf16.msra.mxu0 %v2263_v41  ;;  %v1882_v41 = vcombine.low %v2779_v2, %v2779_v2 }
 0x128   :  { %2078 = vmatprep.subr.bf16.mxu0 %v2266_v42  ;;  %v1884_v42 = vcombine.low %v2792_v7, %v2792_v7 }
 0x129   :  { %2057 = vmatpush3.bf16.msra.mxu1 %v2265_v43  ;;  %v2328_v43 = vld [vmem:[%s2940_s7] sm:$0xff]  }
 0x12a   :  { %2058 = vmatprep.subr.bf16.mxu1 %v2268_v44 }
 0x12b   :  { %2079 = vmatpush3.bf16.msra.mxu0 %v2267_v45 }
 0x12c   :  { %2080 = vmatprep.subr.bf16.mxu0 %v2270_v46 }
 0x12d   :  { %2059 = vmatpush3.bf16.msra.mxu1 %v2269_v47 }
 0x12e   :  { %2060 = vmatprep.subr.bf16.mxu1 %v2272_v48 }
 0x12f   :  { %2081 = vmatpush3.bf16.msra.mxu0 %v2271_v49 }
 0x130   :  { %2082 = vmatprep.subr.bf16.mxu0 %v2274_v50 }
 0x131   :  { %2061 = vmatpush3.bf16.msra.mxu1 %v2273_v51 }
 0x132   :  { %2062 = vmatprep.subr.bf16.mxu1 %v2276_v52  ;;  %v2329_v52 = vld [vmem:[%s2941_s6] sm:$0xff]  }
 0x133   :  { %2083 = vmatpush3.bf16.msra.mxu0 %v2275_v53 }
 0x134   :  { %2084 = vmatprep.subr.bf16.mxu0 %v2278_v54 }
 0x135   :  { %2063 = vmatpush3.bf16.msra.mxu1 %v2277_v55 }
 0x136   :  { %2064 = vmatprep.subr.bf16.mxu1 %v2280_v56 }
 0x137   :  { %2085 = vmatpush3.bf16.msra.mxu0 %v2279_v57 }
 0x138   :  { %2086 = vmatprep.subr.bf16.mxu0 %v2282_v58 }
 0x139   :  { %2065 = vmatpush3.bf16.msra.mxu1 %v2281_v59 }
 0x13a   :  { %2066 = vmatprep.subr.bf16.mxu1 %v2284_v60 }
 0x13b   :  { %2087 = vmatpush3.bf16.msra.mxu0 %v2283_v61 }
 0x13c   :  { %2088 = vmatprep.subr.bf16.mxu0 %v2286_v62 }
 0x13d   :  { %2067 = vmatpush3.bf16.msra.mxu1 %v2285_v63 }
 0x13e   :  { %2096 = vmatprep.subr.bf16.mxu1 %v2290_v1 }
 0x13f   :  { %2089 = vmatpush3.bf16.msra.mxu0 %v2289_v3 }
 0x140   :  { %1471 = vmatmul.mubr.bf16.vlgmr.msra.gmra.mrb[12].mxu1 %v1878_v5  ;;  %2118 = vmatprep.subr.bf16.mxu0 %v2294_v6 }
 0x141   :  { %2097 = vmatpush3.bf16.msra.mxu1 %v2293_v8  ;;  %1550 = vmatprep.mubr.bf16.mxu1 %v1883_v9 }
 0x142   :  { %1511 = vmatmul.mubr.bf16.vlgmr.msra.gmra.mrb[16].mxu0 %v1880_v10  ;;  %2098 = vmatprep.subr.bf16.mxu1 %v2296_v11 }
 0x143   :  { %2119 = vmatpush3.bf16.msra.mxu0 %v2295_v12  ;;  %1590 = vmatprep.mubr.bf16.mxu0 %v1885_v13 }
 0x144   :  { %2120 = vmatprep.subr.bf16.mxu0 %v2298_v14 }
 0x145   :  { %2099 = vmatpush3.bf16.msra.mxu1 %v2297_v15 }
 0x146   :  { %2100 = vmatprep.subr.bf16.mxu1 %v2300_v16 }
 0x147   :  { %2121 = vmatpush3.bf16.msra.mxu0 %v2299_v17 }
 0x148   :  { %2122 = vmatprep.subr.bf16.mxu0 %v2302_v18 }
 0x149   :  { %2101 = vmatpush3.bf16.msra.mxu1 %v2301_v19 }
 0x14a   :  { %2102 = vmatprep.subr.bf16.mxu1 %v2304_v20 }
 0x14b   :  { %2123 = vmatpush3.bf16.msra.mxu0 %v2303_v21 }
 0x14c   :  { %2124 = vmatprep.subr.bf16.mxu0 %v2306_v22 }
 0x14d   :  { %2103 = vmatpush3.bf16.msra.mxu1 %v2305_v23 }
 0x14e   :  { %2104 = vmatprep.subr.bf16.mxu1 %v2308_v24 }
 0x14f   :  { %2125 = vmatpush3.bf16.msra.mxu0 %v2307_v25 }
 0x150   :  { %2126 = vmatprep.subr.bf16.mxu0 %v2310_v26 }
 0x151   :  { %2105 = vmatpush3.bf16.msra.mxu1 %v2309_v27 }
 0x152   :  { %2106 = vmatprep.subr.bf16.mxu1 %v2312_v28 }
 0x153   :  { %2127 = vmatpush3.bf16.msra.mxu0 %v2311_v29 }
 0x154   :  { %2128 = vmatprep.subr.bf16.mxu0 %v2314_v30 }
 0x155   :  { %2107 = vmatpush3.bf16.msra.mxu1 %v2313_v31 }
 0x156   :  { %2108 = vmatprep.subr.bf16.mxu1 %v2316_v32 }
 0x157   :  { %2129 = vmatpush3.bf16.msra.mxu0 %v2315_v33 }
 0x158   :  { %2130 = vmatprep.subr.bf16.mxu0 %v2318_v34 }
 0x159   :  { %2109 = vmatpush3.bf16.msra.mxu1 %v2317_v35 }
 0x15a   :  { %2110 = vmatprep.subr.bf16.mxu1 %v2320_v36 }
 0x15b   :  { %2131 = vmatpush3.bf16.msra.mxu0 %v2319_v37 }
 0x15c   :  { %2132 = vmatprep.subr.bf16.mxu0 %v2322_v38  ;;  %v1953_v38 = vld [vmem:[%s2942_s9] ss:$0 sm:$0xff] }
 0x15d   :  { %2111 = vmatpush3.bf16.msra.mxu1 %v2321_v39 }
 0x15e   :  { %2162 = vmatprep.subr.bf16.mxu1 %v2344_v0 }
 0x15f   :  { %2133 = vmatpush3.bf16.msra.mxu0 %v2325_v40 }
 0x160   :  { %1551 = vmatmul.mubr.bf16.vlgmr.msra.gmra.mrb[16].mxu1 %v1882_v41  ;;  %2168 = vmatprep.subr.bf16.mxu0 %v2344_v0 }
 0x161   :  { %2164 = vmatprep.mubr.msk.bf16.mxu1 %vm2345_vm0, %v2344_v0  ;;  %2163 = vmatpush3.bf16.msra.mxu1 %v2329_v52 }
 0x162   :  { %1591 = vmatmul.mubr.bf16.vlgmr.msra.gmra.mrb[20].mxu0 %v1884_v42 }
 0x163   :  { %2169 = vmatpush3.bf16.msra.mxu0 %v2328_v43  ;;  %2170 = vmatprep.mubr.msk.bf16.mxu0 %vm2345_vm0, %v2344_v0 }
 0x16a   :  { %2171 = vmatmul.mubr.msk.bf16.vlgmr.msra.gmra.mrb[24].mxu0 %vm311_vm1, %v2421_v4 }
 0x1b3   :  { %v402_v44 = vpop.f32.mrb[0].mxu1 }
 0x1b4   :  { %v2154_v45 = vpop.f32.mrb[1].mxu1 }
 0x1b5   :  { %v405_v46 = vpop.f32.mrb[2].mxu1  ;;  %v448_v47 = vpop.f32.mrb[4].mxu0  ;;  %v2347_v45 = vmov 0  }
 0x1b6   :  { %v2155_v48 = vpop.f32.mrb[3].mxu1  ;;  %v2160_v49 = vpop.f32.mrb[5].mxu0  ;;  %2182 = vset.pattern.permute.xlu1 %v2347_v45  ;;  %2181 = vset.pattern.permute.xlu0 %v2347_v45  ;;  %v1950_v46 = vld [vmem:[%s2943_s8] ss:$0 sm:$0xff]  ;;  %s2348_s8 = smov 32  }
 0x1b7   :  { %v451_v50 = vpop.f32.mrb[6].mxu0 }
 0x1b8   :  { %v2161_v51 = vpop.f32.mrb[7].mxu0 }
 0x1d3   :  { %v1980_v53 = vpop.f32.mrb[4].mxu1 }
 0x1d4   :  { %v1981_v54 = vpop.f32.mrb[5].mxu1 }
 0x1d5   :  { %v1982_v55 = vadd.f32 %v1981_v54, %v1980_v53  ;;  %v2002_v0 = vpop.f32.mrb[8].mxu0  ;;  %v1983_v56 = vpop.f32.mrb[6].mxu1 }
 0x1d6   :  { %v2003_v57 = vpop.f32.mrb[9].mxu0  ;;  %v1984_v4 = vpop.f32.mrb[7].mxu1 }
 0x1d7   :  { %v901_v58 = vadd.f32 %v1982_v55, %v402_v44  ;;  %v2004_v59 = vadd.f32 %v2003_v57, %v2002_v0  ;;  %v2005_v60 = vpop.f32.mrb[10].mxu0 }
 0x1d8   :  { %v2006_v61 = vpop.f32.mrb[11].mxu0 }
 0x1d9   :  { %v941_v62 = vadd.f32 %v2004_v59, %v901_v58  ;;  %v1774_v58 = vld [vmem:[%s2944_s4] sm:$0xff] }
 0x1f3   :  { %v2024_v63 = vpop.f32.mrb[8].mxu1 }
 0x1f4   :  { %v2025_v1 = vpop.f32.mrb[9].mxu1 }
 0x1f5   :  { %v2026_v2 = vadd.f32 %v2025_v1, %v2024_v63  ;;  %v2046_v3 = vpop.f32.mrb[12].mxu0  ;;  %v2027_v5 = vpop.f32.mrb[10].mxu1 }
 0x1f6   :  { %v2047_v6 = vpop.f32.mrb[13].mxu0  ;;  %v2028_v7 = vpop.f32.mrb[11].mxu1 }
 0x1f7   :  { %v981_v8 = vadd.f32 %v2026_v2, %v941_v62  ;;  %v2048_v9 = vadd.f32 %v2047_v6, %v2046_v3  ;;  %v2049_v10 = vpop.f32.mrb[14].mxu0  ;;  %v1775_v3 = vld [vmem:[%s2944_s4 + $0x8] sm:$0xff] }
 0x1f8   :  { %v2050_v11 = vpop.f32.mrb[15].mxu0 }
 0x1f9   :  { %v1021_v12 = vadd.f32 %v2048_v9, %v981_v8  ;;  %v2342_v11 = vld [vmem:[%s2936_s3] sm:$0xff] }
 0x213   :  { %v2068_v13 = vpop.f32.mrb[12].mxu1 }
 0x214   :  { %v2069_v14 = vpop.f32.mrb[13].mxu1 }
 0x215   :  { %v2070_v15 = vadd.f32 %v2069_v14, %v2068_v13  ;;  %v2090_v16 = vpop.f32.mrb[16].mxu0  ;;  %v2071_v17 = vpop.f32.mrb[14].mxu1 }
 0x216   :  { %v2091_v18 = vpop.f32.mrb[17].mxu0  ;;  %v2072_v19 = vpop.f32.mrb[15].mxu1 }
 0x217   :  { %v1473_v20 = vadd.f32 %v2070_v15, %v448_v47  ;;  %v2092_v21 = vadd.f32 %v2091_v18, %v2090_v16  ;;  %v2093_v22 = vpop.f32.mrb[18].mxu0 }
 0x218   :  { %v2094_v23 = vpop.f32.mrb[19].mxu0 }
 0x219   :  { %v1513_v24 = vadd.f32 %v2092_v21, %v1473_v20 }
 0x233   :  { %v2112_v25 = vpop.f32.mrb[16].mxu1 }
 0x234   :  { %v2113_v26 = vpop.f32.mrb[17].mxu1 }
 0x235   :  { %v2114_v27 = vadd.f32 %v2113_v26, %v2112_v25  ;;  %v2134_v28 = vpop.f32.mrb[20].mxu0  ;;  %v2115_v29 = vpop.f32.mrb[18].mxu1 }
 0x236   :  { %v2135_v30 = vpop.f32.mrb[21].mxu0  ;;  %v2116_v31 = vpop.f32.mrb[19].mxu1 }
 0x237   :  { %v1553_v32 = vadd.f32 %v2114_v27, %v1513_v24  ;;  %v2136_v33 = vadd.f32 %v2135_v30, %v2134_v28  ;;  %v2137_v34 = vpop.f32.mrb[22].mxu0 }
 0x238   :  { %v2138_v35 = vpop.f32.mrb[23].mxu0 }
 0x239   :  { %v1593_v36 = vadd.f32 %v2136_v33, %v1553_v32 }
 0x23b   :  { %v1598_v37 = vpack.c.bf16 %v1593_v36, %v1021_v12  ;;  %v2343_v12 = vld [vmem:[%s2936_s3 + $0x8] sm:$0xff] }
 0x23d   :  { %2165 = vmatmul.mubr.msk.bf16.vlgmr.msra.gmra.mrb[20].mxu1 %vm311_vm1, %v1598_v37  ;;  %v1707_v39 = vpop.f32.mrb[24].mxu0 }
 0x23e   :  { %v1708_v40 = vadd.f32 %v1953_v38, %v1707_v39  ;;  %v2172_v41 = vpop.f32.mrb[25].mxu0 }
 0x23f   :  { %v1710_v42 = vpop.f32.mrb[26].mxu0 }
 0x240   :  { %1730 = vrot.lane.b32.xlu0 %v1708_v40, %s2346_s30  ;;  %v1711_v43 = vadd.f32 %v1953_v38, %v1710_v42  ;;  %v2173_v44 = vpop.f32.mrb[27].mxu0 }
 0x244   :  { %1732 = vrot.lane.b32.xlu0 %v1711_v43, %s2346_s30 }
 0x248   :  { %1778 = vperm.xlu0 %2181, %v1774_v58  }
 0x2b2   :  { %v1731_v60 = vpop.permute.xlu0 %1730 }
 0x2b6   :  { %v1733_v1 = vpop.permute.xlu0 %1732 }
 0x2c7   :  { %v1779_v14 = vpop.permute.xlu0 %1778 }
 0x310   :  { %v1651_v47 = vpop.f32.mrb[20].mxu1 }
 0x311   :  { %v1652_v48 = vadd.f32 %v1950_v46, %v1651_v47  ;;  %v2166_v49 = vpop.f32.mrb[21].mxu1 }
 0x312   :  { %v1654_v50 = vpop.f32.mrb[22].mxu1 }
 0x313   :  { %v1714_v51 = vadd.f32 %v1708_v40, %v1652_v48  ;;  %v1655_v52 = vadd.f32 %v1950_v46, %v1654_v50  ;;  %v2167_v53 = vpop.f32.mrb[23].mxu1 }
 0x315   :  { %v1956_v54 = vmul.f32 -1.442695, %v1714_v51  ;;  %v1715_v55 = vadd.f32 %v1711_v43, %v1655_v52 }
 0x317   :  { %2330 = vpow2.f32 %v1956_v54  ;;  %v1957_v0 = vmul.f32 -1.442695, %v1715_v55 }
 0x319   :  { %2332 = vpow2.f32 %v1957_v0 }
 0x321   :  { %v2331_v56 = vpop.eup %2330 }
 0x322   :  { %v1722_v57 = vadd.f32 1.0, %v2331_v56 }
 0x323   :  { %v2333_v4 = vpop.eup %2332 }
 0x324   :  { %2334 = vrcp.f32 %v1722_v57  ;;  %v1723_v59 = vadd.f32 1.0, %v2333_v4 }
 0x326   :  { %2336 = vrcp.f32 %v1723_v59 }
 0x32e   :  { %v2335_v61 = vpop.eup %2334 }
 0x32f   :  { %v1736_v62 = vmul.f32 %v2335_v61, %v1731_v60  ;;  %v1750_v16 = vsub.f32 1.0, %v2335_v61 }
 0x330   :  { %v2337_v63 = vpop.eup %2336 }
 0x331   :  { %1740 = vrot.lane.b32.xlu1 %v1736_v62, %s2348_s8  ;;  %v1737_v2 = vmul.f32 %v2337_v63, %v1733_v1  ;;  %v1751_v21 = vsub.f32 1.0, %v2337_v63 }
 0x335   :  { %1742 = vrot.lane.b32.xlu1 %v1737_v2, %s2348_s8 }
 0x339   :  { %1783 = vperm.xlu1 %2182, %v1775_v3  }
 0x3a3   :  { %v1741_v5 = vpop.permute.xlu1 %1740 }
 0x3a4   :  { %v1746_v6 = vadd.f32 %v1741_v5, %v1652_v48 }
 0x3a6   :  { %2338 = vtanh.f32 %v1746_v6 }
 0x3a7   :  { %v1743_v7 = vpop.permute.xlu1 %1742 }
 0x3a8   :  { %v1747_v8 = vadd.f32 %v1743_v7, %v1655_v52 }
 0x3aa   :  { %2340 = vtanh.f32 %v1747_v8 }
 0x3b0   :  { %v2339_v9 = vpop.eup %2338 }
 0x3b1   :  { %1754 = vrot.lane.b32.xlu1 %v2339_v9, %s2349_s16 }
 0x3b4   :  { %v2341_v10 = vpop.eup %2340 }
 0x3b5   :  { %1764 = vrot.lane.b32.xlu1 %v2342_v11, %s2350_s5  ;;  %1756 = vrot.lane.b32.xlu0 %v2341_v10, %s2349_s16 }
 0x3b8   :  { %v1784_v13 = vpop.permute.xlu1 %1783 }
 0x3b9   :  { %1766 = vrot.lane.b32.xlu0 %v2343_v12, %s2350_s5 }
 0x423   :  { %v1755_v15 = vpop.permute.xlu1 %1754 }
 0x424   :  { %v1760_v19 = vmul.f32 %v1755_v15, %v1750_v16 }
 0x427   :  { %v1757_v17 = vpop.permute.xlu0 %1756  ;;  %v1765_v18 = vpop.permute.xlu1 %1764 }
 0x428   :  { %v1770_v20 = vmul.f32 %v2335_v61, %v1765_v18  ;;  %v1761_v24 = vmul.f32 %v1757_v17, %v1751_v21 }
 0x42a   :  { %v1772_v22 = vadd.f32 %v1770_v20, %v1760_v19 }
 0x42b   :  { %v1767_v23 = vpop.permute.xlu0 %1766 }
 0x42c   :  { %v1771_v25 = vmul.f32 %v2337_v63, %v1767_v23  ;;  %v1786_v26 = vmul.f32 %v1779_v14, %v1772_v22 }
 0x42e   :  { %v1773_v27 = vadd.f32 %v1771_v25, %v1761_v24  ;;  %1790 = vrot.lane.b32.xlu1 %v1786_v26, %s2349_s16 }
 0x430   :  { %v1787_v28 = vmul.f32 %v1784_v13, %v1773_v27 }
 0x432   :  { %1792 = vrot.lane.b32.xlu0 %v1787_v28, %s2349_s16 }
 0x4a0   :  { %v1791_v29 = vpop.permute.xlu1 %1790 }
 0x4a1   :  { %1796 = vst.msk [vmem:[%s2945_s10] sm:$0xff] %vm311_vm1, %v1791_v29 }
 0x4a4   :  { %v1793_v30 = vpop.permute.xlu0 %1792 }
 0x4a5   :  { %1797 = vst.msk [vmem:[%s2945_s10 + $0x8] sm:$0xff] %vm311_vm1, %v1793_v30 }

// kernel: mpnn_forward.15
= control target key start
LH: loop header
LB: loop body
LE: loop exit
PB: predicated region body
PF: predicated region fallthrough
CT: control target
= control target key end

     0   :  { %s6675_s6 = smov 1   ;;  %s6676_s10 = smov 2   ;;  %s7752_s0 = inlined_call_operand.smem [shape: u32[75], index: -1, kind: input, shape index: {}] }
   0x1   :  { %s6766_s5 = sld [smem:[%s7752_s0]]   ;;  %s6677_s14 = smov 3  }
   0x2   :  { %s6771_s9 = sld [smem:[%s7752_s0 + %s6675_s6]]   ;;  %s6678_s18 = smov 4  }
   0x3   :  { %s6776_s13 = sld [smem:[%s7752_s0 + %s6676_s10]]   ;;  %s6679_s22 = smov 5  }
   0x4   :  { %s6781_s17 = sld [smem:[%s7752_s0 + %s6677_s14]]   ;;  %s6680_s26 = smov 6  }
   0x5   :  { %s6786_s21 = sld [smem:[%s7752_s0 + %s6678_s18]]   ;;  %s6681_s30 = smov 7  }
   0x6   :  { %s6791_s25 = sld [smem:[%s7752_s0 + %s6679_s22]]   ;;  %s6682_s4 = smov 8  }
   0x7   :  { %s6796_s29 = sld [smem:[%s7752_s0 + %s6680_s26]]   ;;  %s6683_s10 = smov 9  }
   0x8   :  { %s6801_s3 = sld [smem:[%s7752_s0 + %s6681_s30]]   ;;  %s6684_s15 = smov 10  }
   0x9   :  { %7775 = sst [smem:[#allocation12_spill]] %s6776_s13  ;;  %s6685_s20 = smov 11  }
   0xa   :  { %s6806_s8 = sld [smem:[%s7752_s0 + %s6682_s4]]   ;;  %s6686_s26 = smov 12  }
   0xb   :  { %s6811_s14 = sld [smem:[%s7752_s0 + %s6683_s10]]   ;;  %s6687_s1 = smov 13  }
   0xc   :  { %s6816_s19 = sld [smem:[%s7752_s0 + %s6684_s15]]   ;;  %s6688_s7 = smov 14  }
   0xd   :  { %s5112_s24 = sld [smem:[%s7752_s0 + %s6685_s20]]   ;;  %s6689_s15 = smov 15  }
   0xe   :  { %s6824_s30 = sld [smem:[%s7752_s0 + %s6686_s26]]   ;;  %s6690_s22 = smov 16  }
   0xf   :  { %s6829_s6 = sld [smem:[%s7752_s0 + %s6687_s1]]   ;;  %s6691_s28 = smov 17  }
  0x10   :  { %s6834_s12 = sld [smem:[%s7752_s0 + %s6688_s7]]   ;;  %s6692_s7 = smov 18  }
  0x11   :  { %s6839_s20 = sld [smem:[%s7752_s0 + %s6689_s15]]   ;;  %s6693_s15 = smov 20  }
  0x12   :  { %s6844_s27 = sld [smem:[%s7752_s0 + %s6690_s22]]   ;;  %s6694_s23 = smov 21  }
  0x13   :  { %s6849_s4 = sld [smem:[%s7752_s0 + %s6691_s28]]   ;;  %v155_v0 = vstv %s5112_s24  ;;  %s6695_s24 = smov 22  }
  0x14   :  { %s6854_s16 = sld [smem:[%s7752_s0 + %s6692_s7]]   ;;  %156 = vst [vmem:[#allocation2] sm:$0x1] %v155_v0  ;;  %s6696_s7 = smov 23  }
  0x15   :  { %7776 = sst [smem:[#allocation13_spill]] %s6829_s6  ;;  %s6697_s13 = smov 24  }
  0x16   :  { %s6859_s22 = sld [smem:[%s7752_s0 + %s6693_s15]]   ;;  %s6747_s1 = smov 62  }
  0x17   :  { %7777 = sst [smem:[#allocation14_spill]] %s6839_s20  ;;  %s6698_s20 = smov 25  }
  0x18   :  { %s6864_s28 = sld [smem:[%s7752_s0 + %s6694_s23]]   ;;  %s6748_s6 = smov 70  }
  0x19   :  { %7778 = sst [smem:[#allocation15_spill]] %s6849_s4  ;;  %s6700_s4 = smov 27  }
  0x1a   :  { %7779 = sst [smem:[#allocation16_spill]] %s6854_s16 }
  0x1b   :  { %s6869_s10 = sld [smem:[%s7752_s0 + %s6695_s24]]   ;;  %s6699_s24 = smov 26  }
  0x1c   :  { %7780 = sst [smem:[#allocation17_spill]] %s6859_s22 }
  0x1d   :  { %s6874_s16 = sld [smem:[%s7752_s0 + %s6696_s7]]  }
  0x1e   :  { %7781 = sst [smem:[#allocation18_spill]] %s6864_s28 }
  0x1f   :  { %s6879_s22 = sld [smem:[%s7752_s0 + %s6697_s13]]   ;;  %s6701_s13 = smov 28  }
  0x20   :  { %s6884_s28 = sld [smem:[%s7752_s0 + %s6698_s20]]   ;;  %s6702_s20 = smov 29  }
  0x21   :  { %7782 = sst [smem:[#allocation19_spill]] %s6869_s10 }
  0x22   :  { %s6889_s10 = sld [smem:[%s7752_s0 + %s6699_s24]]   ;;  %s6703_s24 = smov 30  }
  0x23   :  { %7783 = sst [smem:[#allocation20_spill]] %s6874_s16 }
  0x24   :  { %s6894_s16 = sld [smem:[%s7752_s0 + %s6700_s4]]   ;;  %s6704_s4 = smov 31  }
  0x25   :  { %7784 = sst [smem:[#allocation21_spill]] %s6879_s22 }
  0x26   :  { %7785 = sst [smem:[#allocation22_spill]] %s6884_s28 }
  0x27   :  { %s6899_s22 = sld [smem:[%s7752_s0 + %s6701_s13]]   ;;  %s6705_s13 = smov 32  }
  0x28   :  { %7786 = sst [smem:[#allocation23_spill]] %s6889_s10 }
  0x29   :  { %s6904_s28 = sld [smem:[%s7752_s0 + %s6702_s20]]   ;;  %s6706_s20 = smov 33  }
  0x2a   :  { %7787 = sst [smem:[#allocation24_spill]] %s6894_s16 }
  0x2b   :  { %s6909_s10 = sld [smem:[%s7752_s0 + %s6703_s24]]   ;;  %s6707_s24 = smov 34  }
  0x2c   :  { %s6914_s16 = sld [smem:[%s7752_s0 + %s6704_s4]]   ;;  %s6708_s4 = smov 35  }
  0x2d   :  { %7788 = sst [smem:[#allocation25_spill]] %s6899_s22 }
  0x2e   :  { %s6919_s22 = sld [smem:[%s7752_s0 + %s6705_s13]]   ;;  %s6709_s13 = smov 36  }
  0x2f   :  { %7789 = sst [smem:[#allocation26_spill]] %s6904_s28 }
  0x30   :  { %s6924_s28 = sld [smem:[%s7752_s0 + %s6706_s20]]   ;;  %s6710_s20 = smov 37  }
  0x31   :  { %7790 = sst [smem:[#allocation27_spill]] %s6909_s10 }
  0x32   :  { %7791 = sst [smem:[#allocation28_spill]] %s6914_s16 }
  0x33   :  { %s6929_s10 = sld [smem:[%s7752_s0 + %s6707_s24]]   ;;  %s6711_s24 = smov 38  }
  0x34   :  { %7792 = sst [smem:[#allocation29_spill]] %s6919_s22 }
  0x35   :  { %s6934_s16 = sld [smem:[%s7752_s0 + %s6708_s4]]   ;;  %s6712_s4 = smov 39  }
  0x36   :  { %7793 = sst [smem:[#allocation30_spill]] %s6924_s28 }
  0x37   :  { %s6939_s22 = sld [smem:[%s7752_s0 + %s6709_s13]]   ;;  %s6713_s13 = smov 40  }
  0x38   :  { %s6944_s28 = sld [smem:[%s7752_s0 + %s6710_s20]]   ;;  %s6714_s20 = smov 41  }
  0x39   :  { %7794 = sst [smem:[#allocation31_spill]] %s6929_s10 }
  0x3a   :  { %s6949_s10 = sld [smem:[%s7752_s0 + %s6711_s24]]   ;;  %s6715_s24 = smov 42  }
  0x3b   :  { %7795 = sst [smem:[#allocation32_spill]] %s6934_s16 }
  0x3c   :  { %s6954_s16 = sld [smem:[%s7752_s0 + %s6712_s4]]   ;;  %s6716_s4 = smov 43  }
  0x3d   :  { %7796 = sst [smem:[#allocation33_spill]] %s6939_s22 }
  0x3e   :  { %7797 = sst [smem:[#allocation34_spill]] %s6944_s28 }
  0x3f   :  { %s6959_s22 = sld [smem:[%s7752_s0 + %s6713_s13]]   ;;  %s6717_s13 = smov 44  }
  0x40   :  { %7798 = sst [smem:[#allocation35_spill]] %s6949_s10 }
  0x41   :  { %s6964_s28 = sld [smem:[%s7752_s0 + %s6714_s20]]   ;;  %s6718_s20 = smov 45  }
  0x42   :  { %7799 = sst [smem:[#allocation36_spill]] %s6954_s16 }
  0x43   :  { %s6969_s10 = sld [smem:[%s7752_s0 + %s6715_s24]]   ;;  %s6719_s24 = smov 46  }
  0x44   :  { %s6974_s16 = sld [smem:[%s7752_s0 + %s6716_s4]]   ;;  %s6720_s4 = smov 47  }
  0x45   :  { %7800 = sst [smem:[#allocation37_spill]] %s6959_s22 }
  0x46   :  { %s6979_s22 = sld [smem:[%s7752_s0 + %s6717_s13]]   ;;  %s6721_s13 = smov 48  }
  0x47   :  { %7801 = sst [smem:[#allocation38_spill]] %s6964_s28 }
  0x48   :  { %s6984_s28 = sld [smem:[%s7752_s0 + %s6718_s20]]   ;;  %s6722_s20 = smov 49  }
  0x49   :  { %7802 = sst [smem:[#allocation39_spill]] %s6969_s10 }
  0x4a   :  { %7803 = sst [smem:[#allocation40_spill]] %s6974_s16 }
  0x4b   :  { %s6989_s10 = sld [smem:[%s7752_s0 + %s6719_s24]]   ;;  %s6723_s24 = smov 50  }
  0x4c   :  { %7804 = sst [smem:[#allocation41_spill]] %s6979_s22 }
  0x4d   :  { %s6994_s16 = sld [smem:[%s7752_s0 + %s6720_s4]]   ;;  %s6724_s4 = smov 51  }
  0x4e   :  { %7805 = sst [smem:[#allocation42_spill]] %s6984_s28 }
  0x4f   :  { %s6999_s22 = sld [smem:[%s7752_s0 + %s6721_s13]]   ;;  %s6725_s13 = smov 52  }
  0x50   :  { %s7004_s28 = sld [smem:[%s7752_s0 + %s6722_s20]]   ;;  %s6726_s20 = smov 53  }
  0x51   :  { %7806 = sst [smem:[#allocation43_spill]] %s6989_s10 }
  0x52   :  { %s7009_s10 = sld [smem:[%s7752_s0 + %s6723_s24]]   ;;  %s6727_s24 = smov 54  }
  0x53   :  { %7807 = sst [smem:[#allocation44_spill]] %s6994_s16 }
  0x54   :  { %s7014_s16 = sld [smem:[%s7752_s0 + %s6724_s4]]   ;;  %s6728_s4 = smov 55  }
  0x55   :  { %7808 = sst [smem:[#allocation45_spill]] %s6999_s22 }
  0x56   :  { %7809 = sst [smem:[#allocation46_spill]] %s7004_s28 }
  0x57   :  { %s7019_s22 = sld [smem:[%s7752_s0 + %s6725_s13]]   ;;  %s6729_s13 = smov 56  }
  0x58   :  { %7810 = sst [smem:[#allocation47_spill]] %s7009_s10 }
  0x59   :  { %s7024_s28 = sld [smem:[%s7752_s0 + %s6726_s20]]   ;;  %s6730_s20 = smov 57  }
  0x5a   :  { %7811 = sst [smem:[#allocation48_spill]] %s7014_s16 }
  0x5b   :  { %s7029_s10 = sld [smem:[%s7752_s0 + %s6727_s24]]   ;;  %s6731_s24 = smov 58  }
  0x5c   :  { %s7034_s16 = sld [smem:[%s7752_s0 + %s6728_s4]]   ;;  %s6732_s4 = smov 59  }
  0x5d   :  { %7812 = sst [smem:[#allocation49_spill]] %s7019_s22 }
  0x5e   :  { %s7039_s22 = sld [smem:[%s7752_s0 + %s6729_s13]]   ;;  %s6733_s13 = smov 60  }
  0x5f   :  { %7813 = sst [smem:[#allocation50_spill]] %s7024_s28 }
  0x60   :  { %s7044_s28 = sld [smem:[%s7752_s0 + %s6730_s20]]   ;;  %s6734_s20 = smov 61  }
  0x61   :  { %7814 = sst [smem:[#allocation51_spill]] %s7029_s10 }
  0x62   :  { %7815 = sst [smem:[#allocation52_spill]] %s7034_s16 }
  0x63   :  { %s7049_s10 = sld [smem:[%s7752_s0 + %s6731_s24]]   ;;  %s6735_s24 = smov 63  }
  0x64   :  { %7816 = sst [smem:[#allocation53_spill]] %s7039_s22 }
  0x65   :  { %s7054_s16 = sld [smem:[%s7752_s0 + %s6732_s4]]   ;;  %s6736_s4 = smov 64  }
  0x66   :  { %7817 = sst [smem:[#allocation54_spill]] %s7044_s28 }
  0x67   :  { %s7059_s22 = sld [smem:[%s7752_s0 + %s6733_s13]]   ;;  %s6737_s13 = smov 65  }
  0x68   :  { %s7064_s28 = sld [smem:[%s7752_s0 + %s6734_s20]]   ;;  %s6738_s20 = smov 66  }
  0x69   :  { %7818 = sst [smem:[#allocation55_spill]] %s7049_s10 }
  0x6a   :  { %s7069_s10 = sld [smem:[%s7752_s0 + %s6735_s24]]   ;;  %s6739_s24 = smov 67  }
  0x6b   :  { %7819 = sst [smem:[#allocation56_spill]] %s7054_s16 }
  0x6c   :  { %s7074_s16 = sld [smem:[%s7752_s0 + %s6736_s4]]   ;;  %s6740_s4 = smov 68  }
  0x6d   :  { %7820 = sst [smem:[#allocation57_spill]] %s7059_s22 }
  0x6e   :  { %7821 = sst [smem:[#allocation58_spill]] %s7064_s28 }
  0x6f   :  { %s7079_s22 = sld [smem:[%s7752_s0 + %s6737_s13]]   ;;  %s6741_s13 = smov 69  }
  0x70   :  { %7822 = sst [smem:[#allocation59_spill]] %s7069_s10 }
  0x71   :  { %s7084_s28 = sld [smem:[%s7752_s0 + %s6738_s20]]   ;;  %s6742_s20 = smov 71  }
  0x72   :  { %7823 = sst [smem:[#allocation60_spill]] %s7074_s16 }
  0x73   :  { %s7089_s10 = sld [smem:[%s7752_s0 + %s6739_s24]]   ;;  %s6743_s24 = smov 72  }
  0x74   :  { %s7094_s16 = sld [smem:[%s7752_s0 + %s6740_s4]]   ;;  %s6744_s4 = smov 73  }
  0x75   :  { %7824 = sst [smem:[#allocation61_spill]] %s7079_s22 }
  0x76   :  { %s7099_s22 = sld [smem:[%s7752_s0 + %s6741_s13]]   ;;  %s6745_s13 = smov 74  }
  0x77   :  { %7825 = sst [smem:[#allocation62_spill]] %s7084_s28 }
  0x78   :  { %s7104_s28 = sld [smem:[%s7752_s0 + %s6742_s20]]   ;;  %s6746_s20 = smov 19  }
  0x79   :  { %7826 = sst [smem:[#allocation63_spill]] %s7089_s10 }
  0x7a   :  { %7827 = sst [smem:[#allocation64_spill]] %s7094_s16 }
  0x7b   :  { %s7109_s10 = sld [smem:[%s7752_s0 + %s6743_s24]]  }
  0x7c   :  { %7828 = sst [smem:[#allocation65_spill]] %s7099_s22 }
  0x7d   :  { %s7114_s16 = sld [smem:[%s7752_s0 + %s6744_s4]]  }
  0x7e   :  { %7829 = sst [smem:[#allocation66_spill]] %s7104_s28 }
  0x7f   :  { %s7119_s22 = sld [smem:[%s7752_s0 + %s6745_s13]]  }
  0x80   :  { %s5120_s28 = sld [smem:[%s7752_s0 + %s6746_s20]]  }
  0x81   :  { %7830 = sst [smem:[#allocation67_spill]] %s7109_s10 }
  0x82   :  { %s5163_s10 = sld [smem:[%s7752_s0 + %s6747_s1]]  }
  0x83   :  { %s5171_s11 = sld [smem:[%s7752_s0 + %s6748_s6]]  }
  0x86   :  { %v157_v1 = vstv %s5120_s28 }
  0x87   :  { %158 = vst [vmem:[#allocation3] sm:$0x1] %v157_v1 }
  0x88   :  { %v159_v2 = vstv %s5163_s10 }
  0x89   :  { %160 = vst [vmem:[#allocation4] sm:$0x1] %v159_v2  ;;  %v161_v3 = vstv %s5171_s11 }
  0x8a   :  { %162 = vst [vmem:[#allocation5] sm:$0x1] %v161_v3 }
  0x8b   :  { %163 = vsyncpa [#allocation7], 0  ;;  %v6197_v4 = vld [vmem:[%s6786_s21] sm:$0xff]   ;;  %v6749_v5 = vmov 0.0   ;;  %vm6750_vm0 = vmmov 0   ;;  %v312_v8 = vld [vmem:[%s6771_s9 + $0x8] sm:$0xff] }
  0x8c   :  { %5841 = vmatprep.subr.bf16.mxu0 %v6749_v5  ;;  %5847 = vmatprep.subr.bf16.mxu1 %v6749_v5  ;;  %v6198_v6 = vld [vmem:[%s6781_s17] sm:$0xff]   ;;  %vm338_vm1 = vcmask 130048   ;;  %v309_v11 = vld [vmem:[%s6766_s5 + $0x8] sm:$0xff]  ;;  %v6204_v15 = vld [vmem:[%s6796_s29 + $0x14] ss:$8 sps:$4 sm:$0xff]   ;;  %v6751_v29 = vmov 0  }
  0x8d   :  { %5842 = vmatpush3.bf16.msra.mxu0 %v6197_v4  ;;  %5843 = vmatprep.mubr.msk.bf16.mxu0 %vm6750_vm0, %v6749_v5  ;;  %v311_v7 = vld [vmem:[%s6771_s9] sm:$0xff]  ;;  %v6202_v16 = vld [vmem:[%s6796_s29 + $0x10] ss:$8 sps:$4 sm:$0xff]   ;;  %v6210_v19 = vld [vmem:[%s6796_s29 + $0x34] ss:$8 sps:$4 sm:$0xff]  }
  0x8e   :  { %v308_v9 = vld [vmem:[%s6766_s5] sm:$0xff]  ;;  %5848 = vmatpush3.bf16.msra.mxu1 %v6198_v6  ;;  %5849 = vmatprep.mubr.msk.bf16.mxu1 %vm6750_vm0, %v6749_v5  ;;  %v7141_v10 = vpack.c.bf16 %v312_v8, %v311_v7  ;;  %v6208_v20 = vld [vmem:[%s6796_s29 + $0x30] ss:$8 sps:$4 sm:$0xff]   ;;  %v6216_v23 = vld [vmem:[%s6796_s29 + $0x54] ss:$8 sps:$4 sm:$0xff]  }
  0x8f   :  { %v7144_v12 = vpack.c.bf16 %v309_v11, %v308_v9  ;;  %v6199_v13 = vld [vmem:[%s6796_s29] ss:$8 sps:$4 sm:$0xff]   ;;  %v6201_v14 = vld [vmem:[%s6796_s29 + $0x4] ss:$8 sps:$4 sm:$0xff]   ;;  %v6214_v24 = vld [vmem:[%s6796_s29 + $0x50] ss:$8 sps:$4 sm:$0xff]   ;;  %6196 = vset.pattern.permute.xlu0 %v6751_v29 }
  0x90   :  { %5844 = vmatmul.mubr.msk.bf16.vlgmr.msra.gmra.mrb[0].mxu0 %vm338_vm1, %v7141_v10  ;;  %553 = vmatprep.subr.bf16.mxu0 %v6201_v14  ;;  %v6207_v17 = vld [vmem:[%s6796_s29 + $0x24] ss:$8 sps:$4 sm:$0xff]   ;;  %v6205_v18 = vld [vmem:[%s6796_s29 + $0x20] ss:$8 sps:$4 sm:$0xff]   ;;  %v6222_v27 = vld [vmem:[%s6796_s29 + $0x74] ss:$8 sps:$4 sm:$0xff]  }
  0x91   :  { %5850 = vmatmul.mubr.msk.bf16.vlgmr.msra.gmra.mrb[0].mxu1 %vm338_vm1, %v7144_v12  ;;  %554 = vmatpush1.bf16.msra.mxu0 %v6199_v13  ;;  %v6213_v21 = vld [vmem:[%s6796_s29 + $0x44] ss:$8 sps:$4 sm:$0xff]   ;;  %v6211_v22 = vld [vmem:[%s6796_s29 + $0x40] ss:$8 sps:$4 sm:$0xff]   ;;  %v6220_v28 = vld [vmem:[%s6796_s29 + $0x70] ss:$8 sps:$4 sm:$0xff]  }
  0x92   :  { %555 = vmatprep.subr.bf16.mxu0 %v6204_v15  ;;  %v6219_v25 = vld [vmem:[%s6796_s29 + $0x64] ss:$8 sps:$4 sm:$0xff]   ;;  %v6217_v26 = vld [vmem:[%s6796_s29 + $0x60] ss:$8 sps:$4 sm:$0xff]   ;;  %585 = vmatprep.mubr.bf16.mxu0 %v6751_v29  ;;  %v6227_v34 = vld [vmem:[%s6806_s8 + $0x50] sm:$0xff]  }
  0x93   :  { %v6223_v30 = vld [vmem:[%s6806_s8 + $0x40] sm:$0xff]   ;;  %v6225_v32 = vld [vmem:[%s6806_s8 + $0x48] sm:$0xff]   ;;  %v6228_v35 = vld [vmem:[%s6806_s8 + $0x10] sm:$0xff]  }
  0x94   :  { %v6224_v31 = vld [vmem:[%s6806_s8] sm:$0xff]   ;;  %5561 = vmatprep.subr.bf16.mxu1 %v6223_v30  ;;  %v6226_v33 = vld [vmem:[%s6806_s8 + $0x8] sm:$0xff]   ;;  %v6229_v36 = vld [vmem:[%s6806_s8 + $0x58] sm:$0xff]  }
  0x95   :  { %556 = vmatpush1.bf16.msra.mxu0 %v6202_v16  ;;  %5562 = vmatpush3.bf16.msra.mxu1 %v6224_v31  ;;  %v6230_v37 = vld [vmem:[%s6806_s8 + $0x18] sm:$0xff]   ;;  %v6231_v38 = vld [vmem:[%s6806_s8 + $0x60] sm:$0xff]   ;;  %v6233_v40 = vld [vmem:[%s6806_s8 + $0x68] sm:$0xff]  }
  0x96   :  { %557 = vmatprep.subr.bf16.mxu0 %v6207_v17  ;;  %5563 = vmatprep.subr.bf16.mxu1 %v6225_v32  ;;  %v6232_v39 = vld [vmem:[%s6806_s8 + $0x20] sm:$0xff]  }
  0x99   :  { %558 = vmatpush1.bf16.msra.mxu0 %v6205_v18  ;;  %5564 = vmatpush3.bf16.msra.mxu1 %v6226_v33 }
  0x9a   :  { %559 = vmatprep.subr.bf16.mxu0 %v6210_v19  ;;  %5565 = vmatprep.subr.bf16.mxu1 %v6227_v34 }
  0x9d   :  { %560 = vmatpush1.bf16.msra.mxu0 %v6208_v20  ;;  %5566 = vmatpush3.bf16.msra.mxu1 %v6228_v35 }
  0x9e   :  { %561 = vmatprep.subr.bf16.mxu0 %v6213_v21  ;;  %5567 = vmatprep.subr.bf16.mxu1 %v6229_v36 }
  0xa1   :  { %562 = vmatpush1.bf16.msra.mxu0 %v6211_v22  ;;  %5568 = vmatpush3.bf16.msra.mxu1 %v6230_v37 }
  0xa2   :  { %563 = vmatprep.subr.bf16.mxu0 %v6216_v23  ;;  %5569 = vmatprep.subr.bf16.mxu1 %v6231_v38 }
  0xa5   :  { %564 = vmatpush1.bf16.msra.mxu0 %v6214_v24  ;;  %5570 = vmatpush3.bf16.msra.mxu1 %v6232_v39 }
  0xa6   :  { %565 = vmatprep.subr.bf16.mxu0 %v6219_v25  ;;  %5571 = vmatprep.subr.bf16.mxu1 %v6233_v40 }
  0xa9   :  { %566 = vmatpush1.bf16.msra.mxu0 %v6217_v26 }
  0xaa   :  { %567 = vmatprep.subr.bf16.mxu0 %v6222_v27 }
  0xad   :  { %568 = vmatpush1.bf16.msra.mxu0 %v6220_v28 }
  0xae   :  { %5853 = vmatprep.subr.bf16.mxu0 %v6749_v5 }
  0xaf   :  { %164 = vsyncpa [#allocation9], 0  ;;  %v5181_v43 = vld [vmem:[%s6791_s25] ss:$0 sm:$0xff]  ;;  %v6234_v57 = vld [vmem:[%s6806_s8 + $0x28] sm:$0xff]   ;;  %v316_v3 = vlaneseq  ;;  %s7831_s0 = sld [smem:[#allocation13_spill]] }
  0xb0   :  { %5572 = vmatpush3.bf16.msra.mxu1 %v6234_v57  ;;  %v6235_v58 = vld [vmem:[%s6806_s8 + $0x70] sm:$0xff]   ;;  %v6237_v60 = vld [vmem:[%s6806_s8 + $0x78] sm:$0xff]   ;;  %v6240_v62 = vld [vmem:[%s6816_s19] sm:$0xff]   ;;  %s7832_s5 = sld [smem:[#allocation16_spill]]  ;;  %s7833_s9 = sld [smem:[#allocation14_spill]]  ;;  %vm1514_vm5 = vcmask 0  }
  0xb1   :  { %v6236_v59 = vld [vmem:[%s6806_s8 + $0x30] sm:$0xff]   ;;  %5573 = vmatprep.subr.bf16.mxu1 %v6235_v58  ;;  %v6238_v61 = vld [vmem:[%s6806_s8 + $0x38] sm:$0xff]   ;;  %v6241_v63 = vld [vmem:[%s6816_s19 + $0x8] sm:$0xff]   ;;  %v7200_v4 = vshrl.u32 %v316_v3, 7  ;;  %s7834_s17 = sld [smem:[#allocation12_spill]]  ;;  %s7835_s21 = sld [smem:[#allocation15_spill]] }
  0xb2   :  { %v6245_v0 = vld [vmem:[%s6816_s19 + $0x10] sm:$0xff]   ;;  %v6249_v1 = vld [vmem:[%s6816_s19 + $0x18] sm:$0xff]   ;;  %v6253_v2 = vld [vmem:[%s6816_s19 + $0x20] sm:$0xff]   ;;  %s7836_s25 = sld [smem:[#allocation17_spill]]  ;;  %s7837_s29 = sld [smem:[#allocation18_spill]]  ;;  %vm2703_vm6 = vcmask 49152  }
  0xb3   :  { %v7203_v6 = vsub.s32 0, %v7200_v4  ;;  %v461_v7 = vld [vmem:[%s6801_s3] sm:$0x3]  ;;  %v7207_v8 = vsub.s32 1, %v7200_v4  ;;  %v6244_v28 = vld [vmem:[%s6834_s12 + $0x4] ss:$8 sps:$4 sm:$0xff]  }
  0xb4   :  { %5574 = vmatpush3.bf16.msra.mxu1 %v6236_v59  ;;  %v6239_v27 = vld [vmem:[%s6824_s30] sm:$0xff]   ;;  %v6248_v31 = vld [vmem:[%s6834_s12 + $0x14] ss:$8 sps:$4 sm:$0xff]   ;;  %v6246_v32 = vld [vmem:[%s6834_s12 + $0x10] ss:$8 sps:$4 sm:$0xff]   ;;  %s7838_s3 = sld [smem:[#allocation20_spill]] }
  0xb5   :  { %5575 = vmatprep.subr.bf16.mxu1 %v6237_v60  ;;  %v466_v9 = vrot.slane %v461_v7, %v7203_v6  ;;  %v470_v11 = vrot.slane %v461_v7, %v7207_v8  ;;  %v6242_v30 = vld [vmem:[%s6834_s12] ss:$8 sps:$4 sm:$0xff]   ;;  %v6252_v33 = vld [vmem:[%s6834_s12 + $0x24] ss:$8 sps:$4 sm:$0xff]   ;;  %v6256_v35 = vld [vmem:[%s6834_s12 + $0x34] ss:$8 sps:$4 sm:$0xff]  }
  0xb6   :  { %v6250_v34 = vld [vmem:[%s6834_s12 + $0x20] ss:$8 sps:$4 sm:$0xff]   ;;  %v6254_v36 = vld [vmem:[%s6834_s12 + $0x30] ss:$8 sps:$4 sm:$0xff]   ;;  %v6260_v38 = vld [vmem:[%s6834_s12 + $0x44] ss:$8 sps:$4 sm:$0xff]  }
  0xb7   :  { %v6257_v37 = vld [vmem:[%s6816_s19 + $0x28] sm:$0xff]   ;;  %v6261_v40 = vld [vmem:[%s6816_s19 + $0x30] sm:$0xff]   ;;  %v5224_v58 = vld [vmem:[%s7831_s0] ss:$0 sm:$0xff]  ;;  %s7839_s8 = sld [smem:[#allocation22_spill]]  ;;  %s7842_s30 = sld [smem:[#allocation24_spill]] }
  0xb8   :  { %5576 = vmatpush3.bf16.msra.mxu1 %v6238_v61  ;;  %v6258_v39 = vld [vmem:[%s6834_s12 + $0x40] ss:$8 sps:$4 sm:$0xff]   ;;  %s7843_s6 = sld [smem:[#allocation21_spill]]  ;;  %s7846_s28 = sld [smem:[#allocation30_spill]] }
  0xb9   :  { %5873 = vmatprep.subr.bf16.mxu1 %v6749_v5  ;;  %v6274_v7 = vld [vmem:[%s6844_s27 + $0x48] sm:$0xff]   ;;  %s7847_s10 = sld [smem:[#allocation23_spill]]  ;;  %s7848_s13 = sld [smem:[#allocation27_spill]] }
  0xba   :  { %s7849_s15 = sld [smem:[#allocation32_spill]]  ;;  %s7850_s18 = sld [smem:[#allocation29_spill]] }
  0xbb   :  { %s7851_s20 = sld [smem:[#allocation31_spill]]  ;;  %s7852_s23 = sld [smem:[#allocation37_spill]] }
  0xbc   :  { %s7853_s26 = sld [smem:[#allocation25_spill]]  ;;  %s7855_s24 = sld [smem:[#allocation35_spill]] }
  0xbd   :  { %s7854_s1 = sld [smem:[#allocation33_spill]]  ;;  %s7856_s2 = sld [smem:[#allocation34_spill]] }
  0xbe   :  { %s7857_s7 = sld [smem:[#allocation39_spill]]  ;;  %s7858_s4 = sld [smem:[#allocation36_spill]] }
  0xbf   :  { %s7859_s11 = sld [smem:[#allocation41_spill]]  ;;  %s7860_s0 = sld [smem:[#allocation38_spill]] }
 0x163   :  { %v376_v41 = vpop.f32.mrb[0].mxu0 }
 0x164   :  { %v426_v42 = vpop.f32.mrb[0].mxu1  ;;  %v5845_v44 = vpop.f32.mrb[1].mxu0 }
 0x165   :  { %v427_v45 = vadd.f32 %v426_v42, %v376_v41  ;;  %v5851_v46 = vpop.f32.mrb[1].mxu1  ;;  %v379_v47 = vpop.f32.mrb[2].mxu0  ;;  %v6264_v41 = vld [vmem:[%s6834_s12 + $0x54] ss:$8 sps:$4 sm:$0xff]   ;;  %v6262_v42 = vld [vmem:[%s6834_s12 + $0x50] ss:$8 sps:$4 sm:$0xff]  }
 0x166   :  { %v429_v48 = vpop.f32.mrb[2].mxu1  ;;  %v5846_v49 = vpop.f32.mrb[3].mxu0  ;;  %v6268_v44 = vld [vmem:[%s6834_s12 + $0x64] ss:$8 sps:$4 sm:$0xff]   ;;  %v6271_v46 = vld [vmem:[%s6834_s12 + $0x74] ss:$8 sps:$4 sm:$0xff]  }
 0x167   :  { %v440_v50 = vadd.f32 %v5181_v43, %v427_v45  ;;  %v430_v51 = vadd.f32 %v429_v48, %v379_v47  ;;  %v5852_v52 = vpop.f32.mrb[3].mxu1  ;;  %v6266_v45 = vld [vmem:[%s6834_s12 + $0x60] ss:$8 sps:$4 sm:$0xff]   ;;  %v6269_v47 = vld [vmem:[%s6834_s12 + $0x70] ss:$8 sps:$4 sm:$0xff]   ;;  %s7844_s12 = sld [smem:[#allocation26_spill]] }
 0x168   :  { %v6272_v48 = vld [vmem:[%s6844_s27 + $0x40] sm:$0xff]  }
 0x169   :  { %v441_v53 = vadd.f32 %v5181_v43, %v430_v51  ;;  %v442_v54 = vmax.f32 %v440_v50, 0.0  ;;  %v6265_v43 = vld [vmem:[%s6816_s19 + $0x38] sm:$0xff]   ;;  %v5198_v50 = vld [vmem:[%s6811_s14] ss:$0 sm:$0xff]  ;;  %s7840_s14 = sld [smem:[#allocation19_spill]]  ;;  %s7841_s19 = sld [smem:[#allocation66_spill]] }
 0x16b   :  { %v443_v55 = vmax.f32 %v441_v53, 0.0 }
 0x16d   :  { %v444_v56 = vpack.c.bf16 %v443_v55, %v442_v54 }
 0x16f   :  { %586 = vmatmul.mubr.bf16.vlgmr.msra.gmra.mrb[4].mxu0 %v444_v56 }
 0x170   :  { %5869 = vmatprep.mubr.msk.bf16.mxu0 %vm6750_vm0, %v6749_v5  ;;  %5854 = vmatpush3.bf16.msra.mxu0 %v6240_v62 }
 0x171   :  { %5855 = vmatprep.subr.bf16.mxu0 %v6749_v5 }
 0x174   :  { %5856 = vmatpush3.bf16.msra.mxu0 %v6241_v63 }
 0x175   :  { %5857 = vmatprep.subr.bf16.mxu0 %v6749_v5 }
 0x178   :  { %5858 = vmatpush3.bf16.msra.mxu0 %v6245_v0  ;;  %v6273_v0 = vld [vmem:[%s6844_s27] sm:$0xff]  }
 0x179   :  { %5859 = vmatprep.subr.bf16.mxu0 %v6749_v5 }
 0x17c   :  { %5860 = vmatpush3.bf16.msra.mxu0 %v6249_v1 }
 0x17d   :  { %5861 = vmatprep.subr.bf16.mxu0 %v6749_v5 }
 0x180   :  { %5862 = vmatpush3.bf16.msra.mxu0 %v6253_v2 }
 0x181   :  { %5863 = vmatprep.subr.bf16.mxu0 %v6749_v5 }
 0x184   :  { %5864 = vmatpush3.bf16.msra.mxu0 %v6257_v37 }
 0x185   :  { %5865 = vmatprep.subr.bf16.mxu0 %v6749_v5 }
 0x188   :  { %5866 = vmatpush3.bf16.msra.mxu0 %v6261_v40 }
 0x189   :  { %5867 = vmatprep.subr.bf16.mxu0 %v6749_v5 }
 0x18c   :  { %5868 = vmatpush3.bf16.msra.mxu0 %v6265_v43 }
 0x18d   :  { %5594 = vmatprep.subr.bf16.mxu0 %v6272_v48 }
 0x242   :  { %v587_v13 = vpop.f32.mrb[4].mxu0 }
 0x243   :  { %v588_v14 = vadd.f32 %v587_v13, %v466_v9  ;;  %v589_v15 = vpop.f32.mrb[5].mxu0 }
 0x244   :  { %v590_v16 = vadd.f32 %v589_v15, %v470_v11  ;;  %v591_v17 = vpop.f32.mrb[6].mxu0  ;;  %v6275_v15 = vld [vmem:[%s6844_s27 + $0x8] sm:$0xff]  }
 0x245   :  { %v592_v18 = vadd.f32 %v591_v17, %v466_v9  ;;  %v593_v19 = vpop.f32.mrb[7].mxu0  ;;  %v596_v21 = vmax.f32 %v588_v14, 0.0 }
 0x246   :  { %v594_v20 = vadd.f32 %v593_v19, %v470_v11  ;;  %v597_v23 = vmax.f32 %v590_v16, 0.0  ;;  %v6276_v16 = vld [vmem:[%s6844_s27 + $0x50] sm:$0xff]   ;;  %v6278_v19 = vld [vmem:[%s6844_s27 + $0x58] sm:$0xff]  }
 0x247   :  { %v598_v22 = vmax.f32 %v592_v18, 0.0  ;;  %v6277_v18 = vld [vmem:[%s6844_s27 + $0x10] sm:$0xff]  }
 0x248   :  { %v599_v24 = vmax.f32 %v594_v20, 0.0  ;;  %v6279_v20 = vld [vmem:[%s6844_s27 + $0x18] sm:$0xff]  }
 0x249   :  { %v600_v25 = vpack.c.bf16 %v598_v22, %v596_v21  ;;  %v6280_v21 = vld [vmem:[%s6844_s27 + $0x60] sm:$0xff]  }
 0x24a   :  { %v601_v26 = vpack.c.bf16 %v599_v24, %v597_v23  ;;  %v6281_v22 = vld [vmem:[%s6844_s27 + $0x20] sm:$0xff]   ;;  %v6282_v23 = vld [vmem:[%s6844_s27 + $0x68] sm:$0xff]  }
 0x24b   :  { %v6283_v24 = vld [vmem:[%s6844_s27 + $0x28] sm:$0xff]  }
 0x24c   :  { %769 = vmatprep.mubr.bf16.mxu1 %v601_v26  ;;  %v6285_v26 = vld [vmem:[%s6844_s27 + $0x30] sm:$0xff]  }
 0x24d   :  { %770 = vmatmul.mubr.bf16.vlgmr.msra.gmra.mrb[4].mxu1 %v600_v25  ;;  %v6284_v25 = vld [vmem:[%s6844_s27 + $0x70] sm:$0xff]  }
 0x24e   :  { %5874 = vmatpush3.bf16.msra.mxu1 %v6239_v27  ;;  %5875 = vmatprep.mubr.msk.bf16.mxu1 %vm6750_vm0, %v6749_v5  ;;  %v6286_v27 = vld [vmem:[%s6844_s27 + $0x78] sm:$0xff]  }
 0x24f   :  { %1060 = vmatprep.subr.bf16.mxu1 %v6244_v28  ;;  %v6287_v28 = vld [vmem:[%s6844_s27 + $0x38] sm:$0xff]   ;;  %s7845_s27 = sld [smem:[#allocation28_spill]] }
 0x255   :  { %5876 = vmatmul.mubr.msk.bf16.vlgmr.msra.gmra.mrb[8].mxu1 %vm338_vm1, %v7141_v10 }
 0x256   :  { %1061 = vmatpush1.bf16.msra.mxu1 %v6242_v30  ;;  %1092 = vmatprep.mubr.bf16.mxu1 %v6751_v29  ;;  %v6288_v30 = vld [vmem:[%s7832_s5] sm:$0xff]  }
 0x257   :  { %1062 = vmatprep.subr.bf16.mxu1 %v6248_v31  ;;  %v6289_v31 = vld [vmem:[%s7832_s5 + $0x8] sm:$0xff]  }
 0x25a   :  { %1063 = vmatpush1.bf16.msra.mxu1 %v6246_v32  ;;  %v6290_v32 = vld [vmem:[%s7832_s5 + $0x10] sm:$0xff]  }
 0x25b   :  { %1064 = vmatprep.subr.bf16.mxu1 %v6252_v33  ;;  %v6291_v33 = vld [vmem:[%s7832_s5 + $0x18] sm:$0xff]  }
 0x25e   :  { %1065 = vmatpush1.bf16.msra.mxu1 %v6250_v34  ;;  %v6292_v34 = vld [vmem:[%s7832_s5 + $0x20] sm:$0xff]  }
 0x25f   :  { %1066 = vmatprep.subr.bf16.mxu1 %v6256_v35  ;;  %v968_v35 = vld [vmem:[%s7833_s9] sm:$0x3]  ;;  %s7862_s9 = sld [smem:[#allocation45_spill]] }
 0x262   :  { %1067 = vmatpush1.bf16.msra.mxu1 %v6254_v36 }
 0x263   :  { %1068 = vmatprep.subr.bf16.mxu1 %v6260_v38 }
 0x266   :  { %1069 = vmatpush1.bf16.msra.mxu1 %v6258_v39  ;;  %v973_v39 = vrot.slane %v968_v35, %v7203_v6 }
 0x267   :  { %1070 = vmatprep.subr.bf16.mxu1 %v6264_v41  ;;  %v977_v41 = vrot.slane %v968_v35, %v7207_v8 }
 0x26a   :  { %1071 = vmatpush1.bf16.msra.mxu1 %v6262_v42 }
 0x26b   :  { %1072 = vmatprep.subr.bf16.mxu1 %v6268_v44 }
 0x26e   :  { %1073 = vmatpush1.bf16.msra.mxu1 %v6266_v45 }
 0x26f   :  { %1074 = vmatprep.subr.bf16.mxu1 %v6271_v46 }
 0x272   :  { %1075 = vmatpush1.bf16.msra.mxu1 %v6269_v47 }
 0x273   :  { %5879 = vmatprep.subr.bf16.mxu1 %v6749_v5 }
 0x320   :  { %v5577_v49 = vpop.f32.mrb[4].mxu1 }
 0x321   :  { %v5578_v51 = vpop.f32.mrb[5].mxu1 }
 0x322   :  { %v5579_v52 = vadd.f32 %v5578_v51, %v5577_v49  ;;  %v5580_v53 = vpop.f32.mrb[6].mxu1 }
 0x323   :  { %v5581_v54 = vpop.f32.mrb[7].mxu1 }
 0x324   :  { %v772_v55 = vadd.f32 %v5579_v52, %v5198_v50  ;;  %v5582_v56 = vadd.f32 %v5581_v54, %v5580_v53 }
 0x326   :  { %v775_v57 = vadd.f32 %v5582_v56, %v5198_v50  ;;  %v778_v59 = vmax.f32 %v772_v55, 0.0  ;;  %v6293_v56 = vld [vmem:[%s7832_s5 + $0x28] sm:$0xff]  }
 0x328   :  { %v779_v60 = vmax.f32 %v775_v57, 0.0  ;;  %v942_v61 = vpop.f32.mrb[8].mxu1  ;;  %v6294_v57 = vld [vmem:[%s7832_s5 + $0x30] sm:$0xff]  }
 0x329   :  { %v943_v62 = vadd.f32 %v5224_v58, %v942_v61  ;;  %v5877_v63 = vpop.f32.mrb[9].mxu1  ;;  %v5243_v61 = vld [vmem:[%s7835_s21] ss:$0 sm:$0xff]  ;;  %s7863_s21 = sld [smem:[#allocation47_spill]] }
 0x32a   :  { %v780_v1 = vpack.c.bf16 %v779_v60, %v778_v59  ;;  %v945_v2 = vpop.f32.mrb[10].mxu1  ;;  %v314_v59 = vld [vmem:[%s7834_s17] sm:$0xff] }
 0x32b   :  { %v946_v9 = vadd.f32 %v5224_v58, %v945_v2  ;;  %v5878_v11 = vpop.f32.mrb[11].mxu1  ;;  %v949_v13 = vmax.f32 %v943_v62, 0.0  ;;  %v6295_v58 = vld [vmem:[%s7832_s5 + $0x38] sm:$0xff]   ;;  %2598 = vperm.xlu0 %6196, %v314_v59   ;;  %s7861_s5 = sld [smem:[#allocation43_spill]] }
 0x32c   :  { %5870 = vmatmul.mubr.bf16.vlgmr.msra.gmra.mrb[8].mxu0 %v780_v1 }
 0x32d   :  { %v950_v14 = vmax.f32 %v946_v9, 0.0  ;;  %5595 = vmatpush3.bf16.msra.mxu0 %v6273_v0 }
 0x32e   :  { %5596 = vmatprep.subr.bf16.mxu0 %v6274_v7 }
 0x32f   :  { %v951_v17 = vpack.c.bf16 %v950_v14, %v949_v13 }
 0x331   :  { %1093 = vmatmul.mubr.bf16.vlgmr.msra.gmra.mrb[12].mxu1 %v951_v17  ;;  %5597 = vmatpush3.bf16.msra.mxu0 %v6275_v15  ;;  %v315_v15 = vld [vmem:[%s7834_s17 + $0x8] sm:$0xff]  ;;  %v6296_v17 = vld [vmem:[%s7836_s25] sm:$0xff]   ;;  %s7864_s25 = sld [smem:[#allocation40_spill]] }
 0x332   :  { %5598 = vmatprep.subr.bf16.mxu0 %v6276_v16  ;;  %5895 = vmatprep.mubr.msk.bf16.mxu1 %vm6750_vm0, %v6749_v5  ;;  %v6752_v16 = vmov 0.0|0.0  }
 0x333   :  { %5880 = vmatpush3.bf16.msra.mxu1 %v6288_v30  ;;  %2603 = vperm.xlu0 %6196, %v315_v15  }
 0x334   :  { %5881 = vmatprep.subr.bf16.mxu1 %v6749_v5 }
 0x335   :  { %5599 = vmatpush3.bf16.msra.mxu0 %v6277_v18  ;;  %v5215_v18 = vld [vmem:[#allocation2] ss:$0 sm:$0xff] }
 0x336   :  { %5600 = vmatprep.subr.bf16.mxu0 %v6278_v19 }
 0x337   :  { %5882 = vmatpush3.bf16.msra.mxu1 %v6289_v31 }
 0x338   :  { %5883 = vmatprep.subr.bf16.mxu1 %v6749_v5 }
 0x339   :  { %5601 = vmatpush3.bf16.msra.mxu0 %v6279_v20 }
 0x33a   :  { %5602 = vmatprep.subr.bf16.mxu0 %v6280_v21 }
 0x33b   :  { %5884 = vmatpush3.bf16.msra.mxu1 %v6290_v32 }
 0x33c   :  { %5885 = vmatprep.subr.bf16.mxu1 %v6749_v5 }
 0x33d   :  { %5603 = vmatpush3.bf16.msra.mxu0 %v6281_v22 }
 0x33e   :  { %5604 = vmatprep.subr.bf16.mxu0 %v6282_v23 }
 0x33f   :  { %5886 = vmatpush3.bf16.msra.mxu1 %v6291_v33  ;;  %v319_v33 = vand.u32 127, %v316_v3 }
 0x340   :  { %5887 = vmatprep.subr.bf16.mxu1 %v6749_v5 }
 0x341   :  { %5605 = vmatpush3.bf16.msra.mxu0 %v6283_v24 }
 0x342   :  { %5606 = vmatprep.subr.bf16.mxu0 %v6284_v25 }
 0x343   :  { %5888 = vmatpush3.bf16.msra.mxu1 %v6292_v34  ;;  %v320_v34 = vmul.u32 8, %v7200_v4 }
 0x344   :  { %5889 = vmatprep.subr.bf16.mxu1 %v6749_v5 }
 0x345   :  { %5607 = vmatpush3.bf16.msra.mxu0 %v6285_v26  ;;  %vm321_vm2 = vcmp.ge.s32.totalorder %v319_v33, %v320_v34 }
 0x346   :  { %5608 = vmatprep.subr.bf16.mxu0 %v6286_v27  ;;  %v322_v27 = vadd.s32 1, %v7200_v4 }
 0x347   :  { %5890 = vmatpush3.bf16.msra.mxu1 %v6293_v56  ;;  %v6310_v56 = vld [vmem:[%s7838_s3 + $0x40] ss:$8 sps:$4 sm:$0xff]  }
 0x348   :  { %5891 = vmatprep.subr.bf16.mxu1 %v6749_v5  ;;  %v323_v35 = vmul.u32 8, %v322_v27 }
 0x349   :  { %5609 = vmatpush3.bf16.msra.mxu0 %v6287_v28  ;;  %v5260_v28 = vld [vmem:[#allocation3] ss:$0 sm:$0xff] }
 0x34a   :  { %6101 = vmatprep.subr.bf16.mxu0 %v6752_v16  ;;  %vm324_vm3 = vcmp.lt.s32.totalorder %v319_v33, %v323_v35  ;;  %v5276_v33 = vld [vmem:[%s7840_s14] ss:$0 sm:$0xff]  ;;  %s7868_s14 = sld [smem:[#allocation48_spill]] }
 0x34b   :  { %5892 = vmatpush3.bf16.msra.mxu1 %v6294_v57  ;;  %vm325_vm4 = vmand %vm321_vm2, %vm324_vm3 }
 0x34c   :  { %5893 = vmatprep.subr.bf16.mxu1 %v6749_v5 }
 0x34f   :  { %5894 = vmatpush3.bf16.msra.mxu1 %v6295_v58  ;;  %v6315_v58 = vld [vmem:[%s7838_s3 + $0x54] ss:$8 sps:$4 sm:$0xff]  }
 0x350   :  { %5912 = vmatprep.subr.bf16.mxu1 %v6749_v5 }
 0x3ff   :  { %v886_v36 = vpop.f32.mrb[8].mxu0 }
 0x400   :  { %v5871_v37 = vpop.f32.mrb[9].mxu0  ;;  %v887_v19 = vadd.f32 %v5215_v18, %v886_v36 }
 0x401   :  { %v889_v38 = vpop.f32.mrb[10].mxu0 }
 0x402   :  { %v5872_v40 = vpop.f32.mrb[11].mxu0  ;;  %v890_v20 = vadd.f32 %v5215_v18, %v889_v38  ;;  %v5269_v21 = vmul.f32 -1.442695, %v887_v19  ;;  %v6329_v18 = vld [vmem:[%s7839_s8 + $0x18] sm:$0xff]   ;;  %v6330_v19 = vld [vmem:[%s7839_s8 + $0x60] sm:$0xff]  }
 0x404   :  { %v1094_v42 = vpop.f32.mrb[12].mxu1  ;;  %v5270_v22 = vmul.f32 -1.442695, %v890_v20  ;;  %6593 = vpow2.f32 %v5269_v21  ;;  %v6331_v20 = vld [vmem:[%s7839_s8 + $0x20] sm:$0xff]   ;;  %v6332_v21 = vld [vmem:[%s7839_s8 + $0x68] sm:$0xff]  }
 0x405   :  { %v1095_v43 = vadd.f32 %v1094_v42, %v973_v39  ;;  %v1096_v44 = vpop.f32.mrb[13].mxu1 }
 0x406   :  { %v1097_v45 = vadd.f32 %v1096_v44, %v977_v41  ;;  %v1098_v46 = vpop.f32.mrb[14].mxu1  ;;  %6595 = vpow2.f32 %v5270_v22  ;;  %v6753_v22 = vmov 1966171168  }
 0x407   :  { %v1099_v47 = vadd.f32 %v1098_v46, %v973_v39  ;;  %v1100_v48 = vpop.f32.mrb[15].mxu1  ;;  %v1103_v50 = vmax.f32 %v1095_v43, 0.0  ;;  %v6297_v46 = vld [vmem:[%s7837_s29] sm:$0xff]   ;;  %s7865_s29 = sld [smem:[#allocation44_spill]] }
 0x408   :  { %v1101_v49 = vadd.f32 %v1100_v48, %v977_v41  ;;  %v1104_v52 = vmax.f32 %v1097_v45, 0.0  ;;  %v7293_v45 = vsel %vm325_vm4, 1.0, %v6749_v5  ;;  %v6298_v48 = vld [vmem:[%s7838_s3] ss:$8 sps:$4 sm:$0xff]  }
 0x409   :  { %v1105_v51 = vmax.f32 %v1099_v47, 0.0  ;;  %v6300_v47 = vld [vmem:[%s7838_s3 + $0x4] ss:$8 sps:$4 sm:$0xff]  }
 0x40a   :  { %v1106_v53 = vmax.f32 %v1101_v49, 0.0  ;;  %v6303_v49 = vld [vmem:[%s7838_s3 + $0x14] ss:$8 sps:$4 sm:$0xff]  }
 0x40b   :  { %v1107_v54 = vpack.c.bf16 %v1105_v51, %v1103_v50  ;;  %v6301_v50 = vld [vmem:[%s7838_s3 + $0x10] ss:$8 sps:$4 sm:$0xff]   ;;  %v6306_v51 = vld [vmem:[%s7838_s3 + $0x24] ss:$8 sps:$4 sm:$0xff]  }
 0x40c   :  { %v1108_v55 = vpack.c.bf16 %v1106_v53, %v1104_v52  ;;  %v6304_v52 = vld [vmem:[%s7838_s3 + $0x20] ss:$8 sps:$4 sm:$0xff]   ;;  %v6309_v53 = vld [vmem:[%s7838_s3 + $0x34] ss:$8 sps:$4 sm:$0xff]  }
 0x40e   :  { %1276 = vmatprep.mubr.bf16.mxu0 %v1108_v55  ;;  %v6594_v23 = vpop.eup %6593  ;;  %v6312_v55 = vld [vmem:[%s7838_s3 + $0x44] ss:$8 sps:$4 sm:$0xff]  }
 0x40f   :  { %1277 = vmatmul.mubr.bf16.vlgmr.msra.gmra.mrb[12].mxu0 %v1107_v54  ;;  %v1406_v25 = vadd.f32 1.0, %v6594_v23  ;;  %v6307_v54 = vld [vmem:[%s7838_s3 + $0x30] ss:$8 sps:$4 sm:$0xff]   ;;  %v1491_v23 = vunpack.c.l.s4 %v6753_v22  ;;  %v6355_v22 = vld [vmem:[%s7845_s27 + $0x34] ss:$8 sps:$4 sm:$0xff]  }
 0x410   :  { %5903 = vmatprep.mubr.msk.f32.mxu0 %vm6750_vm0, %v6749_v5  ;;  %v6596_v24 = vpop.eup %6595 }
 0x411   :  { %v1407_v26 = vadd.f32 1.0, %v6596_v24  ;;  %6597 = vrcp.f32 %v1406_v25  ;;  %v1492_v24 = vunpack.c.0.s8 %v1491_v23  ;;  %v6353_v23 = vld [vmem:[%s7845_s27 + $0x30] ss:$8 sps:$4 sm:$0xff]  }
 0x413   :  { %6599 = vrcp.f32 %v1407_v26  ;;  %v7333_v25 = vsub.s32 %v1492_v24, %v7200_v4  ;;  %v6356_v24 = vld [vmem:[%s7842_s30 + $0x28] sm:$0xff]  }
 0x41b   :  { %v6598_v36 = vpop.eup %6597 }
 0x41d   :  { %v6600_v41 = vpop.eup %6599 }
 0x4e2   :  { %v5610_v60 = vpop.f32.mrb[12].mxu0 }
 0x4e3   :  { %v5611_v62 = vpop.f32.mrb[13].mxu0 }
 0x4e4   :  { %v5612_v63 = vadd.f32 %v5611_v62, %v5610_v60  ;;  %v5613_v0 = vpop.f32.mrb[14].mxu0  ;;  %v6313_v60 = vld [vmem:[%s7838_s3 + $0x50] ss:$8 sps:$4 sm:$0xff]  }
 0x4e5   :  { %v5614_v1 = vpop.f32.mrb[15].mxu0 }
 0x4e6   :  { %v1279_v2 = vadd.f32 %v5612_v63, %v5243_v61  ;;  %v5615_v7 = vadd.f32 %v5614_v1, %v5613_v0  ;;  %v6318_v63 = vld [vmem:[%s7838_s3 + $0x64] ss:$8 sps:$4 sm:$0xff]   ;;  %v6316_v0 = vld [vmem:[%s7838_s3 + $0x60] ss:$8 sps:$4 sm:$0xff]   ;;  %v6321_v1 = vld [vmem:[%s7838_s3 + $0x74] ss:$8 sps:$4 sm:$0xff]  }
 0x4e8   :  { %v1282_v9 = vadd.f32 %v5615_v7, %v5243_v61  ;;  %v1285_v11 = vmax.f32 %v1279_v2, 0.0  ;;  %v6319_v2 = vld [vmem:[%s7838_s3 + $0x70] ss:$8 sps:$4 sm:$0xff]   ;;  %v6322_v7 = vld [vmem:[%s7839_s8 + $0x40] sm:$0xff]   ;;  %s7866_s3 = sld [smem:[#allocation49_spill]] }
 0x4ea   :  { %v1286_v13 = vmax.f32 %v1282_v9, 0.0  ;;  %v6323_v9 = vld [vmem:[%s7839_s8] sm:$0xff]  }
 0x4ec   :  { %v1287_v14 = vpack.c.bf16 %v1286_v13, %v1285_v11  ;;  %v6324_v11 = vld [vmem:[%s7839_s8 + $0x48] sm:$0xff]  }
 0x4ed   :  { %v6325_v13 = vld [vmem:[%s7839_s8 + $0x8] sm:$0xff]  }
 0x4ee   :  { %5896 = vmatmul.mubr.bf16.vlgmr.msra.gmra.mrb[16].mxu1 %v1287_v14  ;;  %v6326_v14 = vld [vmem:[%s7839_s8 + $0x50] sm:$0xff]  }
 0x4ef   :  { %5914 = vmatprep.mubr.msk.bf16.mxu1 %vm6750_vm0, %v6749_v5  ;;  %5913 = vmatpush3.bf16.msra.mxu1 %v6296_v17  ;;  %v6328_v17 = vld [vmem:[%s7839_s8 + $0x58] sm:$0xff]  }
 0x4f0   :  { %5632 = vmatprep.subr.bf16.mxu1 %v6322_v7 }
 0x4f6   :  { %5915 = vmatmul.mubr.msk.bf16.vlgmr.msra.gmra.mrb[20].mxu1 %vm338_vm1, %v7144_v12 }
 0x4f7   :  { %5633 = vmatpush3.bf16.msra.mxu1 %v6323_v9 }
 0x4f8   :  { %5634 = vmatprep.subr.bf16.mxu1 %v6324_v11 }
 0x4fb   :  { %5635 = vmatpush3.bf16.msra.mxu1 %v6325_v13 }
 0x4fc   :  { %5636 = vmatprep.subr.bf16.mxu1 %v6326_v14  ;;  %v6338_v14 = vld [vmem:[%s7844_s12] sm:$0xff]   ;;  %s7872_s12 = sld [smem:[#allocation52_spill]] }
 0x5c1   :  { %v1393_v30 = vpop.f32.mrb[16].mxu1 }
 0x5c2   :  { %v1394_v31 = vadd.f32 %v5260_v28, %v1393_v30  ;;  %v5897_v32 = vpop.f32.mrb[17].mxu1 }
 0x5c3   :  { %v1396_v37 = vpop.f32.mrb[18].mxu1 }
 0x5c4   :  { %v1412_v38 = vmul.f32 %v6598_v36, %v1394_v31  ;;  %v1397_v39 = vadd.f32 %v5260_v28, %v1396_v37  ;;  %v5898_v40 = vpop.f32.mrb[19].mxu1 }
 0x5c6   :  { %v1413_v42 = vmul.f32 %v6600_v41, %v1397_v39  ;;  %v1414_v43 = vmul.f32 %v1412_v38, %v314_v59 }
 0x5c8   :  { %v1415_v44 = vmul.f32 %v1413_v42, %v315_v15  ;;  %v6327_v15 = vld [vmem:[%s7839_s8 + $0x10] sm:$0xff]  }
 0x5c9   :  { %v1608_v57 = vpop.f32.mrb[20].mxu1  ;;  %5637 = vmatpush3.bf16.msra.mxu1 %v6327_v15  ;;  %v6343_v15 = vld [vmem:[%s7845_s27 + $0x4] ss:$8 sps:$4 sm:$0xff]  }
 0x5ca   :  { %v6102_v3 = vpack.c.bf16 %v1415_v44, %v1414_v43  ;;  %v5916_v59 = vpop.f32.mrb[21].mxu1  ;;  %5638 = vmatprep.subr.bf16.mxu1 %v6328_v17  ;;  %v6333_v44 = vld [vmem:[%s7839_s8 + $0x28] sm:$0xff]  }
 0x5cb   :  { %v1611_v61 = vpop.f32.mrb[22].mxu1  ;;  %v6341_v17 = vld [vmem:[%s7845_s27] ss:$8 sps:$4 sm:$0xff]  }
 0x5cc   :  { %6103 = vmatpush3.bf16.msra.mxu0 %v6102_v3  ;;  %v5917_v62 = vpop.f32.mrb[23].mxu1  ;;  %v6334_v3 = vld [vmem:[%s7839_s8 + $0x70] sm:$0xff]  }
 0x5cd   :  { %5906 = vmatprep.subr.bf16.mxu0 %v6749_v5  ;;  %5639 = vmatpush3.bf16.msra.mxu1 %v6329_v18  ;;  %v6347_v18 = vld [vmem:[%s7845_s27 + $0x14] ss:$8 sps:$4 sm:$0xff]  }
 0x5ce   :  { %5640 = vmatprep.subr.bf16.mxu1 %v6330_v19  ;;  %v6345_v19 = vld [vmem:[%s7845_s27 + $0x10] ss:$8 sps:$4 sm:$0xff]  }
 0x5cf   :  { %5904 = vmatmul.mubr.msk.f32.vlgmr.msra.gmra.mrb[16].mxu0 %vm338_vm1, %v7293_v45 }
 0x5d0   :  { %5907 = vmatpush3.bf16.msra.mxu0 %v6297_v46  ;;  %5908 = vmatprep.mubr.msk.bf16.mxu0 %vm6750_vm0, %v6749_v5  ;;  %v6335_v46 = vld [vmem:[%s7839_s8 + $0x30] sm:$0xff]  }
 0x5d1   :  { %1735 = vmatprep.subr.bf16.mxu0 %v6300_v47  ;;  %5641 = vmatpush3.bf16.msra.mxu1 %v6331_v20  ;;  %v6336_v47 = vld [vmem:[%s7839_s8 + $0x78] sm:$0xff]   ;;  %v6351_v20 = vld [vmem:[%s7845_s27 + $0x24] ss:$8 sps:$4 sm:$0xff]  }
 0x5d2   :  { %5642 = vmatprep.subr.bf16.mxu1 %v6332_v21  ;;  %v6349_v21 = vld [vmem:[%s7845_s27 + $0x20] ss:$8 sps:$4 sm:$0xff]  }
 0x5d3   :  { %5909 = vmatmul.mubr.msk.bf16.vlgmr.msra.gmra.mrb[20].mxu0 %vm338_vm1, %v7141_v10 }
 0x5d4   :  { %1736 = vmatpush1.bf16.msra.mxu0 %v6298_v48  ;;  %1767 = vmatprep.mubr.bf16.mxu0 %v6751_v29  ;;  %v6337_v48 = vld [vmem:[%s7839_s8 + $0x38] sm:$0xff]   ;;  %s7867_s8 = sld [smem:[#allocation46_spill]] }
 0x5d5   :  { %1737 = vmatprep.subr.bf16.mxu0 %v6303_v49  ;;  %5643 = vmatpush3.bf16.msra.mxu1 %v6333_v44  ;;  %v6339_v49 = vld [vmem:[%s7842_s30] sm:$0xff]  }
 0x5d6   :  { %5644 = vmatprep.subr.bf16.mxu1 %v6334_v3 }
 0x5d8   :  { %1738 = vmatpush1.bf16.msra.mxu0 %v6301_v50  ;;  %v6340_v50 = vld [vmem:[%s7842_s30 + $0x8] sm:$0xff]  }
 0x5d9   :  { %1739 = vmatprep.subr.bf16.mxu0 %v6306_v51  ;;  %5645 = vmatpush3.bf16.msra.mxu1 %v6335_v46  ;;  %v6344_v51 = vld [vmem:[%s7842_s30 + $0x10] sm:$0xff]   ;;  %v5319_v46 = vld [vmem:[%s7848_s13] ss:$0 sm:$0xff]  ;;  %s7876_s13 = sld [smem:[#allocation58_spill]] }
 0x5da   :  { %5646 = vmatprep.subr.bf16.mxu1 %v6336_v47 }
 0x5dc   :  { %1740 = vmatpush1.bf16.msra.mxu0 %v6304_v52  ;;  %v6348_v52 = vld [vmem:[%s7842_s30 + $0x18] sm:$0xff]  }
 0x5dd   :  { %1741 = vmatprep.subr.bf16.mxu0 %v6309_v53  ;;  %5647 = vmatpush3.bf16.msra.mxu1 %v6337_v48  ;;  %v6352_v53 = vld [vmem:[%s7842_s30 + $0x20] sm:$0xff]  }
 0x5de   :  { %5938 = vmatprep.subr.bf16.mxu1 %v6749_v5 }
 0x5e0   :  { %1742 = vmatpush1.bf16.msra.mxu0 %v6307_v54  ;;  %v1643_v54 = vld [vmem:[%s7843_s6] sm:$0x3]  ;;  %s7871_s6 = sld [smem:[#allocation50_spill]] }
 0x5e1   :  { %1743 = vmatprep.subr.bf16.mxu0 %v6312_v55  ;;  %v1648_v55 = vrot.slane %v1643_v54, %v7203_v6 }
 0x5e4   :  { %1744 = vmatpush1.bf16.msra.mxu0 %v6310_v56  ;;  %v1652_v56 = vrot.slane %v1643_v54, %v7207_v8 }
 0x5e5   :  { %1745 = vmatprep.subr.bf16.mxu0 %v6315_v58 }
 0x5e8   :  { %1746 = vmatpush1.bf16.msra.mxu0 %v6313_v60 }
 0x5e9   :  { %1747 = vmatprep.subr.bf16.mxu0 %v6318_v63 }
 0x5ec   :  { %1748 = vmatpush1.bf16.msra.mxu0 %v6316_v0 }
 0x5ed   :  { %1749 = vmatprep.subr.bf16.mxu0 %v6321_v1 }
 0x5f0   :  { %1750 = vmatpush1.bf16.msra.mxu0 %v6319_v2 }
 0x5f1   :  { %5918 = vmatprep.subr.bf16.mxu0 %v6749_v5 }
 0x6a2   :  { %v1485_v26 = vpop.f32.mrb[16].mxu0 }
 0x6a3   :  { %v1496_v27 = vrot.slane %v1485_v26, %v7333_v25  ;;  %v5905_v28 = vpop.f32.mrb[17].mxu0  ;;  %v6359_v26 = vld [vmem:[%s7845_s27 + $0x44] ss:$8 sps:$4 sm:$0xff]  }
 0x6a4   :  { %v6360_v28 = vld [vmem:[%s7842_s30 + $0x30] sm:$0xff]  }
 0x6a5   :  { %v1497_v30 = vcombine.high %v1496_v27, %v1496_v27  ;;  %v1504_v31 = vrot.slane %v1496_v27, %v7333_v25  ;;  %v6357_v27 = vld [vmem:[%s7845_s27 + $0x40] ss:$8 sps:$4 sm:$0xff]  }
 0x6a6   :  { %v1561_v32 = vpop.f32.mrb[20].mxu0 }
 0x6a7   :  { %v1511_v34 = vrot.slane %v1497_v30, %v7333_v25  ;;  %1515 = vst.msk [vmem:[%s7841_s19] sm:$0x1] %vm1514_vm5, %v1504_v31  ;;  %v1609_v35 = vadd.f32 %v1608_v57, %v1561_v32  ;;  %v5910_v4 = vpop.f32.mrb[21].mxu0  ;;  %v6363_v30 = vld [vmem:[%s7845_s27 + $0x54] ss:$8 sps:$4 sm:$0xff]  }
 0x6a8   :  { %v1564_v36 = vpop.f32.mrb[22].mxu0  ;;  %v6361_v31 = vld [vmem:[%s7845_s27 + $0x50] ss:$8 sps:$4 sm:$0xff]  }
 0x6a9   :  { %1516 = vst.msk [vmem:[%s7841_s19 + $0x1] sm:$0x1] %vm1514_vm5, %v1511_v34  ;;  %v1622_v37 = vadd.f32 %v5276_v33, %v1609_v35  ;;  %v1612_v38 = vadd.f32 %v1611_v61, %v1564_v36  ;;  %v5911_v39 = vpop.f32.mrb[23].mxu0  ;;  %v6364_v32 = vld [vmem:[%s7842_s30 + $0x38] sm:$0xff]   ;;  %v6365_v34 = vld [vmem:[%s7845_s27 + $0x60] ss:$8 sps:$4 sm:$0xff]  }
 0x6aa   :  { %v6370_v35 = vld [vmem:[%s7845_s27 + $0x74] ss:$8 sps:$4 sm:$0xff]   ;;  %v6368_v4 = vld [vmem:[%s7845_s27 + $0x70] ss:$8 sps:$4 sm:$0xff]   ;;  %v6371_v36 = vld [vmem:[%s7846_s28 + $0x40] sm:$0xff]   ;;  %s7869_s19 = sld [smem:[#allocation54_spill]] }
 0x6ab   :  { %v1623_v40 = vadd.f32 %v5276_v33, %v1612_v38  ;;  %v1624_v41 = vmax.f32 %v1622_v37, 0.0  ;;  %v6367_v33 = vld [vmem:[%s7845_s27 + $0x64] ss:$8 sps:$4 sm:$0xff]   ;;  %v5293_v38 = vld [vmem:[%s7847_s10] ss:$0 sm:$0xff]  ;;  %s7870_s30 = sld [smem:[#allocation42_spill]] }
 0x6ac   :  { %s7873_s27 = sld [smem:[#allocation51_spill]]  ;;  %s7875_s10 = sld [smem:[#allocation53_spill]] }
 0x6ad   :  { %v1625_v42 = vmax.f32 %v1623_v40, 0.0 }
 0x6af   :  { %v1626_v43 = vpack.c.bf16 %v1625_v42, %v1624_v41 }
 0x6b1   :  { %1768 = vmatmul.mubr.bf16.vlgmr.msra.gmra.mrb[24].mxu0 %v1626_v43 }
 0x6b2   :  { %5934 = vmatprep.mubr.msk.bf16.mxu0 %vm6750_vm0, %v6749_v5  ;;  %5919 = vmatpush3.bf16.msra.mxu0 %v6339_v49 }
 0x6b3   :  { %5920 = vmatprep.subr.bf16.mxu0 %v6749_v5 }
 0x6b6   :  { %5921 = vmatpush3.bf16.msra.mxu0 %v6340_v50 }
 0x6b7   :  { %5922 = vmatprep.subr.bf16.mxu0 %v6749_v5 }
 0x6ba   :  { %5923 = vmatpush3.bf16.msra.mxu0 %v6344_v51 }
 0x6bb   :  { %5924 = vmatprep.subr.bf16.mxu0 %v6749_v5 }
 0x6be   :  { %5925 = vmatpush3.bf16.msra.mxu0 %v6348_v52  ;;  %v6372_v52 = vld [vmem:[%s7846_s28] sm:$0xff]  }
 0x6bf   :  { %5926 = vmatprep.subr.bf16.mxu0 %v6749_v5 }
 0x6c2   :  { %5927 = vmatpush3.bf16.msra.mxu0 %v6352_v53 }
 0x6c3   :  { %5928 = vmatprep.subr.bf16.mxu0 %v6749_v5 }
 0x6c6   :  { %5929 = vmatpush3.bf16.msra.mxu0 %v6356_v24 }
 0x6c7   :  { %5930 = vmatprep.subr.bf16.mxu0 %v6749_v5 }
 0x6ca   :  { %5931 = vmatpush3.bf16.msra.mxu0 %v6360_v28 }
 0x6cb   :  { %5932 = vmatprep.subr.bf16.mxu0 %v6749_v5 }
 0x6ce   :  { %5933 = vmatpush3.bf16.msra.mxu0 %v6364_v32 }
 0x6cf   :  { %5665 = vmatprep.subr.bf16.mxu0 %v6371_v36 }
 0x784   :  { %v1769_v57 = vpop.f32.mrb[24].mxu0 }
 0x785   :  { %v1770_v58 = vadd.f32 %v1769_v57, %v1648_v55  ;;  %v1771_v59 = vpop.f32.mrb[25].mxu0 }
 0x786   :  { %v1772_v60 = vadd.f32 %v1771_v59, %v1652_v56  ;;  %v1773_v61 = vpop.f32.mrb[26].mxu0 }
 0x787   :  { %v1774_v62 = vadd.f32 %v1773_v61, %v1648_v55  ;;  %v1775_v63 = vpop.f32.mrb[27].mxu0  ;;  %v1778_v1 = vmax.f32 %v1770_v58, 0.0  ;;  %v6373_v55 = vld [vmem:[%s7846_s28 + $0x48] sm:$0xff]   ;;  %v6375_v61 = vld [vmem:[%s7846_s28 + $0x50] sm:$0xff]  }
 0x788   :  { %v1776_v0 = vadd.f32 %v1775_v63, %v1652_v56  ;;  %v1779_v7 = vmax.f32 %v1772_v60, 0.0  ;;  %v6374_v60 = vld [vmem:[%s7846_s28 + $0x8] sm:$0xff]   ;;  %v6376_v63 = vld [vmem:[%s7846_s28 + $0x10] sm:$0xff]  }
 0x789   :  { %v1780_v2 = vmax.f32 %v1774_v62, 0.0 }
 0x78a   :  { %v1781_v9 = vmax.f32 %v1776_v0, 0.0  ;;  %v6377_v0 = vld [vmem:[%s7846_s28 + $0x58] sm:$0xff]  }
 0x78b   :  { %v1782_v11 = vpack.c.bf16 %v1780_v2, %v1778_v1  ;;  %v6378_v1 = vld [vmem:[%s7846_s28 + $0x18] sm:$0xff]   ;;  %v6379_v2 = vld [vmem:[%s7846_s28 + $0x60] sm:$0xff]  }
 0x78c   :  { %v1783_v13 = vpack.c.bf16 %v1781_v9, %v1779_v7  ;;  %v6380_v7 = vld [vmem:[%s7846_s28 + $0x20] sm:$0xff]   ;;  %v6381_v9 = vld [vmem:[%s7846_s28 + $0x68] sm:$0xff]  }
 0x78e   :  { %1951 = vmatprep.mubr.bf16.mxu1 %v1783_v13  ;;  %v6383_v13 = vld [vmem:[%s7846_s28 + $0x70] sm:$0xff]  }
 0x78f   :  { %1952 = vmatmul.mubr.bf16.vlgmr.msra.gmra.mrb[24].mxu1 %v1782_v11  ;;  %v6382_v11 = vld [vmem:[%s7846_s28 + $0x28] sm:$0xff]  }
 0x790   :  { %5939 = vmatpush3.bf16.msra.mxu1 %v6338_v14  ;;  %5940 = vmatprep.mubr.msk.bf16.mxu1 %vm6750_vm0, %v6749_v5  ;;  %v6384_v14 = vld [vmem:[%s7846_s28 + $0x30] sm:$0xff]  }
 0x791   :  { %2242 = vmatprep.subr.bf16.mxu1 %v6343_v15  ;;  %v6385_v15 = vld [vmem:[%s7846_s28 + $0x78] sm:$0xff]  }
 0x797   :  { %5941 = vmatmul.mubr.msk.bf16.vlgmr.msra.gmra.mrb[28].mxu1 %vm338_vm1, %v7141_v10 }
 0x798   :  { %2243 = vmatpush1.bf16.msra.mxu1 %v6341_v17  ;;  %2274 = vmatprep.mubr.bf16.mxu1 %v6751_v29  ;;  %v6386_v17 = vld [vmem:[%s7846_s28 + $0x38] sm:$0xff]   ;;  %s7874_s28 = sld [smem:[#allocation56_spill]] }
 0x799   :  { %2244 = vmatprep.subr.bf16.mxu1 %v6347_v18  ;;  %v6387_v18 = vld [vmem:[%s7849_s15] sm:$0xff]  }
 0x79c   :  { %2245 = vmatpush1.bf16.msra.mxu1 %v6345_v19  ;;  %v6388_v19 = vld [vmem:[%s7849_s15 + $0x8] sm:$0xff]  }
 0x79d   :  { %2246 = vmatprep.subr.bf16.mxu1 %v6351_v20  ;;  %v6389_v20 = vld [vmem:[%s7849_s15 + $0x10] sm:$0xff]  }
 0x7a0   :  { %2247 = vmatpush1.bf16.msra.mxu1 %v6349_v21  ;;  %v6390_v21 = vld [vmem:[%s7849_s15 + $0x18] sm:$0xff]  }
 0x7a1   :  { %2248 = vmatprep.subr.bf16.mxu1 %v6355_v22  ;;  %v6391_v22 = vld [vmem:[%s7849_s15 + $0x20] sm:$0xff]  }
 0x7a4   :  { %2249 = vmatpush1.bf16.msra.mxu1 %v6353_v23  ;;  %v2150_v23 = vld [vmem:[%s7850_s18] sm:$0x3]  ;;  %s7878_s18 = sld [smem:[#allocation59_spill]] }
 0x7a5   :  { %2250 = vmatprep.subr.bf16.mxu1 %v6359_v26  ;;  %v2155_v28 = vrot.slane %v2150_v23, %v7203_v6 }
 0x7a8   :  { %2251 = vmatpush1.bf16.msra.mxu1 %v6357_v27 }
 0x7a9   :  { %2252 = vmatprep.subr.bf16.mxu1 %v6363_v30 }
 0x7ac   :  { %2253 = vmatpush1.bf16.msra.mxu1 %v6361_v31  ;;  %v2159_v31 = vrot.slane %v2150_v23, %v7207_v8 }
 0x7ad   :  { %2254 = vmatprep.subr.bf16.mxu1 %v6367_v33 }
 0x7b0   :  { %2255 = vmatpush1.bf16.msra.mxu1 %v6365_v34 }
 0x7b1   :  { %2256 = vmatprep.subr.bf16.mxu1 %v6370_v35 }
 0x7b4   :  { %2257 = vmatpush1.bf16.msra.mxu1 %v6368_v4 }
 0x7b5   :  { %5944 = vmatprep.subr.bf16.mxu1 %v6749_v5 }
 0x862   :  { %v5648_v37 = vpop.f32.mrb[24].mxu1 }
 0x863   :  { %v5649_v39 = vpop.f32.mrb[25].mxu1 }
 0x864   :  { %v5650_v40 = vadd.f32 %v5649_v39, %v5648_v37  ;;  %v5651_v41 = vpop.f32.mrb[26].mxu1 }
 0x865   :  { %v5652_v42 = vpop.f32.mrb[27].mxu1 }
 0x866   :  { %v1954_v43 = vadd.f32 %v5650_v40, %v5293_v38  ;;  %v5653_v44 = vadd.f32 %v5652_v42, %v5651_v41 }
 0x868   :  { %v1957_v3 = vadd.f32 %v5653_v44, %v5293_v38  ;;  %v1960_v47 = vmax.f32 %v1954_v43, 0.0 }
 0x86a   :  { %v1961_v48 = vmax.f32 %v1957_v3, 0.0  ;;  %v2124_v49 = vpop.f32.mrb[28].mxu1  ;;  %v6392_v3 = vld [vmem:[%s7849_s15 + $0x28] sm:$0xff]  }
 0x86b   :  { %v2125_v50 = vadd.f32 %v5319_v46, %v2124_v49  ;;  %v5942_v51 = vpop.f32.mrb[29].mxu1  ;;  %v5338_v49 = vld [vmem:[%s7851_s20] ss:$0 sm:$0xff]  ;;  %s7879_s20 = sld [smem:[#allocation61_spill]] }
 0x86c   :  { %v1962_v53 = vpack.c.bf16 %v1961_v48, %v1960_v47  ;;  %v2127_v54 = vpop.f32.mrb[30].mxu1  ;;  %v6394_v47 = vld [vmem:[%s7849_s15 + $0x38] sm:$0xff]  }
 0x86d   :  { %v2128_v56 = vadd.f32 %v5319_v46, %v2127_v54  ;;  %v5943_v57 = vpop.f32.mrb[31].mxu1  ;;  %v2131_v58 = vmax.f32 %v2125_v50, 0.0  ;;  %v6393_v46 = vld [vmem:[%s7849_s15 + $0x30] sm:$0xff]   ;;  %s7877_s15 = sld [smem:[#allocation55_spill]] }
 0x86e   :  { %5935 = vmatmul.mubr.bf16.vlgmr.msra.gmra.mrb[28].mxu0 %v1962_v53 }
 0x86f   :  { %v2132_v59 = vmax.f32 %v2128_v56, 0.0  ;;  %5666 = vmatpush3.bf16.msra.mxu0 %v6372_v52 }
 0x870   :  { %5667 = vmatprep.subr.bf16.mxu0 %v6373_v55 }
 0x871   :  { %v2133_v62 = vpack.c.bf16 %v2132_v59, %v2131_v58 }
 0x873   :  { %2275 = vmatmul.mubr.bf16.vlgmr.msra.gmra.mrb[32].mxu1 %v2133_v62  ;;  %5668 = vmatpush3.bf16.msra.mxu0 %v6374_v60  ;;  %v6397_v60 = vld [vmem:[%s7852_s23] ss:$8 sps:$4 sm:$0xff]   ;;  %v6402_v62 = vld [vmem:[%s7852_s23 + $0x14] ss:$8 sps:$4 sm:$0xff]  }
 0x874   :  { %5669 = vmatprep.subr.bf16.mxu0 %v6375_v61  ;;  %5960 = vmatprep.mubr.msk.bf16.mxu1 %vm6750_vm0, %v6749_v5  ;;  %v6399_v61 = vld [vmem:[%s7852_s23 + $0x4] ss:$8 sps:$4 sm:$0xff]  }
 0x875   :  { %5945 = vmatpush3.bf16.msra.mxu1 %v6387_v18 }
 0x876   :  { %5946 = vmatprep.subr.bf16.mxu1 %v6749_v5 }
 0x877   :  { %5670 = vmatpush3.bf16.msra.mxu0 %v6376_v63  ;;  %v6400_v63 = vld [vmem:[%s7852_s23 + $0x10] ss:$8 sps:$4 sm:$0xff]  }
 0x878   :  { %5671 = vmatprep.subr.bf16.mxu0 %v6377_v0  ;;  %v6405_v0 = vld [vmem:[%s7852_s23 + $0x24] ss:$8 sps:$4 sm:$0xff]  }
 0x879   :  { %5947 = vmatpush3.bf16.msra.mxu1 %v6388_v19  ;;  %v5355_v19 = vld [vmem:[%s7854_s1] ss:$0 sm:$0xff]  ;;  %s7882_s1 = sld [smem:[#allocation60_spill]] }
 0x87a   :  { %5948 = vmatprep.subr.bf16.mxu1 %v6749_v5 }
 0x87b   :  { %5672 = vmatpush3.bf16.msra.mxu0 %v6378_v1  ;;  %v6403_v1 = vld [vmem:[%s7852_s23 + $0x20] ss:$8 sps:$4 sm:$0xff]  }
 0x87c   :  { %5673 = vmatprep.subr.bf16.mxu0 %v6379_v2  ;;  %v5310_v2 = vld [vmem:[%s7853_s26] ss:$0 sm:$0xff]  ;;  %s7881_s26 = sld [smem:[#allocation57_spill]] }
 0x87d   :  { %5949 = vmatpush3.bf16.msra.mxu1 %v6389_v20  ;;  %v7443_v20 = vpop.permute.xlu0 %2598 }
 0x87e   :  { %5950 = vmatprep.subr.bf16.mxu1 %v6749_v5 }
 0x87f   :  { %5674 = vmatpush3.bf16.msra.mxu0 %v6380_v7 }
 0x880   :  { %5675 = vmatprep.subr.bf16.mxu0 %v6381_v9 }
 0x881   :  { %5951 = vmatpush3.bf16.msra.mxu1 %v6390_v21 }
 0x882   :  { %5952 = vmatprep.subr.bf16.mxu1 %v6749_v5 }
 0x883   :  { %5676 = vmatpush3.bf16.msra.mxu0 %v6382_v11 }
 0x884   :  { %5677 = vmatprep.subr.bf16.mxu0 %v6383_v13 }
 0x885   :  { %5953 = vmatpush3.bf16.msra.mxu1 %v6391_v22 }
 0x886   :  { %5954 = vmatprep.subr.bf16.mxu1 %v6749_v5 }
 0x887   :  { %5678 = vmatpush3.bf16.msra.mxu0 %v6384_v14 }
 0x888   :  { %5679 = vmatprep.subr.bf16.mxu0 %v6385_v15 }
 0x889   :  { %5955 = vmatpush3.bf16.msra.mxu1 %v6392_v3  ;;  %v6415_v3 = vld [vmem:[%s7852_s23 + $0x60] ss:$8 sps:$4 sm:$0xff]  }
 0x88a   :  { %5956 = vmatprep.subr.bf16.mxu1 %v6749_v5 }
 0x88b   :  { %5680 = vmatpush3.bf16.msra.mxu0 %v6386_v17 }
 0x88c   :  { %6104 = vmatprep.subr.bf16.mxu0 %v6752_v16 }
 0x88d   :  { %5957 = vmatpush3.bf16.msra.mxu1 %v6393_v46  ;;  %v6420_v46 = vld [vmem:[%s7852_s23 + $0x74] ss:$8 sps:$4 sm:$0xff]  }
 0x88e   :  { %5958 = vmatprep.subr.bf16.mxu1 %v6749_v5 }
 0x891   :  { %5959 = vmatpush3.bf16.msra.mxu1 %v6394_v47  ;;  %v6418_v47 = vld [vmem:[%s7852_s23 + $0x70] ss:$8 sps:$4 sm:$0xff]  }
 0x892   :  { %2924 = vmatprep.subr.bf16.mxu1 %v6399_v61 }
 0x941   :  { %v2068_v24 = vpop.f32.mrb[28].mxu0 }
 0x942   :  { %v5936_v26 = vpop.f32.mrb[29].mxu0  ;;  %v2069_v7 = vadd.f32 %v5310_v2, %v2068_v24 }
 0x943   :  { %v2071_v27 = vpop.f32.mrb[30].mxu0 }
 0x944   :  { %v5937_v30 = vpop.f32.mrb[31].mxu0  ;;  %v2072_v9 = vadd.f32 %v5310_v2, %v2071_v27  ;;  %v5364_v11 = vmul.f32 -1.442695, %v2069_v7 }
 0x946   :  { %v2276_v32 = vpop.f32.mrb[32].mxu1  ;;  %v5365_v13 = vmul.f32 -1.442695, %v2072_v9  ;;  %6601 = vpow2.f32 %v5364_v11 }
 0x947   :  { %v2277_v33 = vadd.f32 %v2276_v32, %v2155_v28  ;;  %v2278_v34 = vpop.f32.mrb[33].mxu1 }
 0x948   :  { %v2279_v35 = vadd.f32 %v2278_v34, %v2159_v31  ;;  %v2280_v4 = vpop.f32.mrb[34].mxu1  ;;  %6603 = vpow2.f32 %v5365_v13  ;;  %v5371_v13 = vld [vmem:[%s7858_s4] ss:$0 sm:$0xff]  ;;  %s6754_s4 = smov [#allocation6]  }
 0x949   :  { %v2281_v36 = vadd.f32 %v2280_v4, %v2155_v28  ;;  %v2282_v37 = vpop.f32.mrb[35].mxu1  ;;  %v2285_v39 = vmax.f32 %v2277_v33, 0.0  ;;  %v7445_v33 = vpop.permute.xlu0 %2603 }
 0x94a   :  { %v2283_v38 = vadd.f32 %v2282_v37, %v2159_v31  ;;  %v2286_v41 = vmax.f32 %v2279_v35, 0.0  ;;  %v6396_v37 = vld [vmem:[%s7856_s2] sm:$0xff]   ;;  %s7884_s2 = sld [smem:[#allocation62_spill]] }
 0x94b   :  { %v2287_v40 = vmax.f32 %v2281_v36, 0.0  ;;  %v6395_v36 = vld [vmem:[%s7855_s24] sm:$0xff]   ;;  %s7883_s24 = sld [smem:[#allocation65_spill]] }
 0x94c   :  { %v2288_v42 = vmax.f32 %v2283_v38, 0.0  ;;  %v6408_v38 = vld [vmem:[%s7852_s23 + $0x34] ss:$8 sps:$4 sm:$0xff]  }
 0x94d   :  { %v2289_v43 = vpack.c.bf16 %v2287_v40, %v2285_v39  ;;  %v6406_v39 = vld [vmem:[%s7852_s23 + $0x30] ss:$8 sps:$4 sm:$0xff]   ;;  %v6411_v40 = vld [vmem:[%s7852_s23 + $0x44] ss:$8 sps:$4 sm:$0xff]  }
 0x94e   :  { %v2290_v44 = vpack.c.bf16 %v2288_v42, %v2286_v41  ;;  %v6409_v41 = vld [vmem:[%s7852_s23 + $0x40] ss:$8 sps:$4 sm:$0xff]   ;;  %v6414_v42 = vld [vmem:[%s7852_s23 + $0x54] ss:$8 sps:$4 sm:$0xff]  }
 0x950   :  { %2458 = vmatprep.mubr.bf16.mxu0 %v2290_v44  ;;  %v6602_v14 = vpop.eup %6601  ;;  %v6417_v44 = vld [vmem:[%s7852_s23 + $0x64] ss:$8 sps:$4 sm:$0xff]  }
 0x951   :  { %2459 = vmatmul.mubr.bf16.vlgmr.msra.gmra.mrb[32].mxu0 %v2289_v43  ;;  %v2588_v17 = vadd.f32 1.0, %v6602_v14  ;;  %v6412_v43 = vld [vmem:[%s7852_s23 + $0x50] ss:$8 sps:$4 sm:$0xff]   ;;  %s7880_s23 = sld [smem:[#allocation63_spill]] }
 0x952   :  { %5968 = vmatprep.mubr.msk.f32.mxu0 %vm6750_vm0, %v6749_v5  ;;  %v6604_v15 = vpop.eup %6603 }
 0x953   :  { %v2589_v18 = vadd.f32 1.0, %v6604_v15  ;;  %6605 = vrcp.f32 %v2588_v17 }
 0x955   :  { %6607 = vrcp.f32 %v2589_v18 }
 0x95d   :  { %v6606_v26 = vpop.eup %6605 }
 0x95f   :  { %v6608_v31 = vpop.eup %6607 }
 0xa24   :  { %v5681_v48 = vpop.f32.mrb[32].mxu0 }
 0xa25   :  { %v5682_v50 = vpop.f32.mrb[33].mxu0 }
 0xa26   :  { %v5683_v51 = vadd.f32 %v5682_v50, %v5681_v48  ;;  %v5684_v52 = vpop.f32.mrb[34].mxu0  ;;  %v6421_v48 = vld [vmem:[%s7857_s7 + $0x40] sm:$0xff]   ;;  %v6423_v50 = vld [vmem:[%s7857_s7 + $0x48] sm:$0xff]  }
 0xa27   :  { %v5685_v53 = vpop.f32.mrb[35].mxu0 }
 0xa28   :  { %v2461_v54 = vadd.f32 %v5683_v51, %v5338_v49  ;;  %v5686_v55 = vadd.f32 %v5685_v53, %v5684_v52  ;;  %v6424_v51 = vld [vmem:[%s7857_s7 + $0x8] sm:$0xff]   ;;  %v6425_v52 = vld [vmem:[%s7857_s7 + $0x50] sm:$0xff]  }
 0xa29   :  { %v6426_v53 = vld [vmem:[%s7857_s7 + $0x10] sm:$0xff]  }
 0xa2a   :  { %v2464_v56 = vadd.f32 %v5686_v55, %v5338_v49  ;;  %v2467_v57 = vmax.f32 %v2461_v54, 0.0  ;;  %v6422_v49 = vld [vmem:[%s7857_s7] sm:$0xff]   ;;  %v6427_v54 = vld [vmem:[%s7857_s7 + $0x58] sm:$0xff]  }
 0xa2b   :  { %v6428_v55 = vld [vmem:[%s7857_s7 + $0x18] sm:$0xff]  }
 0xa2c   :  { %v2468_v58 = vmax.f32 %v2464_v56, 0.0  ;;  %v6429_v56 = vld [vmem:[%s7857_s7 + $0x60] sm:$0xff]  }
 0xa2e   :  { %v2469_v59 = vpack.c.bf16 %v2468_v58, %v2467_v57  ;;  %v6430_v57 = vld [vmem:[%s7857_s7 + $0x20] sm:$0xff]   ;;  %v6431_v58 = vld [vmem:[%s7857_s7 + $0x68] sm:$0xff]  }
 0xa30   :  { %5961 = vmatmul.mubr.bf16.vlgmr.msra.gmra.mrb[36].mxu1 %v2469_v59 }
 0xa31   :  { %2956 = vmatprep.mubr.bf16.mxu1 %v6751_v29  ;;  %2925 = vmatpush1.bf16.msra.mxu1 %v6397_v60 }
 0xa32   :  { %2926 = vmatprep.subr.bf16.mxu1 %v6402_v62 }
 0xa35   :  { %2927 = vmatpush1.bf16.msra.mxu1 %v6400_v63 }
 0xa36   :  { %2928 = vmatprep.subr.bf16.mxu1 %v6405_v0 }
 0xa39   :  { %2929 = vmatpush1.bf16.msra.mxu1 %v6403_v1 }
 0xa3a   :  { %2930 = vmatprep.subr.bf16.mxu1 %v6408_v38  ;;  %v2832_v38 = vld [vmem:[%s7860_s0] sm:$0x3]  ;;  %s6755_s0 = smov [#allocation8]  }
 0xa3d   :  { %2931 = vmatpush1.bf16.msra.mxu1 %v6406_v39  ;;  %v2837_v39 = vrot.slane %v2832_v38, %v7203_v6 }
 0xa3e   :  { %2932 = vmatprep.subr.bf16.mxu1 %v6411_v40  ;;  %v2841_v40 = vrot.slane %v2832_v38, %v7207_v8  ;;  %v6471_v38 = vld [vmem:[%s7863_s21] sm:$0xff]  }
 0xa41   :  { %2933 = vmatpush1.bf16.msra.mxu1 %v6409_v41 }
 0xa42   :  { %2934 = vmatprep.subr.bf16.mxu1 %v6414_v42 }
 0xa45   :  { %2935 = vmatpush1.bf16.msra.mxu1 %v6412_v43 }
 0xa46   :  { %2936 = vmatprep.subr.bf16.mxu1 %v6417_v44 }
 0xa49   :  { %2937 = vmatpush1.bf16.msra.mxu1 %v6415_v3 }
 0xa4a   :  { %2938 = vmatprep.subr.bf16.mxu1 %v6420_v46 }
 0xa4d   :  { %2939 = vmatpush1.bf16.msra.mxu1 %v6418_v47 }
 0xa4e   :  { %5983 = vmatprep.subr.bf16.mxu1 %v6749_v5 }
 0xb03   :  { %v2575_v21 = vpop.f32.mrb[36].mxu1 }
 0xb04   :  { %v2576_v22 = vadd.f32 %v5355_v19, %v2575_v21  ;;  %v5962_v23 = vpop.f32.mrb[37].mxu1 }
 0xb05   :  { %v2578_v24 = vpop.f32.mrb[38].mxu1 }
 0xb06   :  { %v2594_v27 = vmul.f32 %v6606_v26, %v2576_v22  ;;  %v2579_v28 = vadd.f32 %v5355_v19, %v2578_v24  ;;  %v5963_v30 = vpop.f32.mrb[39].mxu1 }
 0xb07   :  { %v6434_v30 = vld [vmem:[%s7857_s7 + $0x30] sm:$0xff]  }
 0xb08   :  { %v2595_v32 = vmul.f32 %v6608_v31, %v2579_v28  ;;  %v2606_v34 = vmul.f32 %v7443_v20, %v2594_v27  ;;  %v6432_v27 = vld [vmem:[%s7857_s7 + $0x28] sm:$0xff]   ;;  %v6433_v28 = vld [vmem:[%s7857_s7 + $0x70] sm:$0xff]   ;;  %v6435_v31 = vld [vmem:[%s7857_s7 + $0x78] sm:$0xff]  }
 0xb0a   :  { %v2607_v35 = vmul.f32 %v7445_v33, %v2595_v32  ;;  %v6436_v32 = vld [vmem:[%s7857_s7 + $0x38] sm:$0xff]   ;;  %s7885_s7 = sld [smem:[#allocation64_spill]] }
 0xb0c   :  { %v6105_v4 = vpack.c.bf16 %v2607_v35, %v2606_v34  ;;  %v6438_v34 = vld [vmem:[%s7859_s11] sm:$0xff]   ;;  %v6439_v35 = vld [vmem:[%s7859_s11 + $0x8] sm:$0xff]  }
 0xb0e   :  { %6106 = vmatpush3.bf16.msra.mxu0 %v6105_v4  ;;  %v6443_v4 = vld [vmem:[%s7859_s11 + $0x10] sm:$0xff]  }
 0xb0f   :  { %5971 = vmatprep.subr.bf16.mxu0 %v6749_v5 }
 0xb11   :  { %5969 = vmatmul.mubr.msk.f32.vlgmr.msra.gmra.mrb[18].mxu0 %vm338_vm1, %v7293_v45 }
 0xb12   :  { %5972 = vmatpush3.bf16.msra.mxu0 %v6395_v36  ;;  %5973 = vmatprep.mubr.msk.bf16.mxu0 %vm6750_vm0, %v6749_v5  ;;  %v6447_v36 = vld [vmem:[%s7859_s11 + $0x18] sm:$0xff]  }
 0xb13   :  { %5977 = vmatprep.subr.bf16.mxu0 %v6749_v5 }
 0xb15   :  { %5974 = vmatmul.mubr.msk.bf16.vlgmr.msra.gmra.mrb[36].mxu0 %vm338_vm1, %v7141_v10 }
 0xb16   :  { %5978 = vmatpush3.bf16.msra.mxu0 %v6396_v37  ;;  %5979 = vmatprep.mubr.msk.bf16.mxu0 %vm6750_vm0, %v6749_v5  ;;  %v6451_v37 = vld [vmem:[%s7859_s11 + $0x20] sm:$0xff]  }
 0xb17   :  { %5703 = vmatprep.subr.bf16.mxu0 %v6421_v48 }
 0xb1d   :  { %5980 = vmatmul.mubr.msk.bf16.vlgmr.msra.gmra.mrb[40].mxu0 %vm338_vm1, %v7144_v12 }
 0xb1e   :  { %5704 = vmatpush3.bf16.msra.mxu0 %v6422_v49 }
 0xb1f   :  { %5705 = vmatprep.subr.bf16.mxu0 %v6423_v50 }
 0xb22   :  { %5706 = vmatpush3.bf16.msra.mxu0 %v6424_v51 }
 0xb23   :  { %5707 = vmatprep.subr.bf16.mxu0 %v6425_v52 }
 0xb26   :  { %5708 = vmatpush3.bf16.msra.mxu0 %v6426_v53 }
 0xb27   :  { %5709 = vmatprep.subr.bf16.mxu0 %v6427_v54 }
 0xb2a   :  { %5710 = vmatpush3.bf16.msra.mxu0 %v6428_v55  ;;  %v6437_v55 = vld [vmem:[%s7861_s5] sm:$0xff]   ;;  %s5081_s5 = sshll.u32 %s6755_s0, 4  ;;  %s7730_s5 = int_to_ptr.vmem [resolvable:$true] %s5081_s5 }
 0xb2b   :  { %5711 = vmatprep.subr.bf16.mxu0 %v6429_v56  ;;  %v6442_v56 = vld [vmem:[%s7862_s9 + $0x4] ss:$8 sps:$4 sm:$0xff]  }
 0xb2e   :  { %5712 = vmatpush3.bf16.msra.mxu0 %v6430_v57  ;;  %v6440_v57 = vld [vmem:[%s7862_s9] ss:$8 sps:$4 sm:$0xff]  }
 0xb2f   :  { %5713 = vmatprep.subr.bf16.mxu0 %v6431_v58  ;;  %v6446_v58 = vld [vmem:[%s7862_s9 + $0x14] ss:$8 sps:$4 sm:$0xff]  }
 0xb32   :  { %5714 = vmatpush3.bf16.msra.mxu0 %v6432_v27 }
 0xb33   :  { %5715 = vmatprep.subr.bf16.mxu0 %v6433_v28 }
 0xb36   :  { %5716 = vmatpush3.bf16.msra.mxu0 %v6434_v30 }
 0xb37   :  { %5717 = vmatprep.subr.bf16.mxu0 %v6435_v31 }
 0xb3a   :  { %5718 = vmatpush3.bf16.msra.mxu0 %v6436_v32  ;;  %v5414_v32 = vld [vmem:[%s7865_s29] ss:$0 sm:$0xff] }
 0xb3b   :  { %6003 = vmatprep.subr.bf16.mxu0 %v6749_v5 }
 0xbe4   :  { %v2674_v59 = vpop.f32.mrb[18].mxu0 }
 0xbe5   :  { %v2685_v60 = vrot.slane %v2674_v59, %v7333_v25  ;;  %v5970_v61 = vpop.f32.mrb[19].mxu0  ;;  %v6444_v59 = vld [vmem:[%s7862_s9 + $0x10] ss:$8 sps:$4 sm:$0xff]  }
 0xbe6   :  { %v6448_v61 = vld [vmem:[%s7862_s9 + $0x20] ss:$8 sps:$4 sm:$0xff]  }
 0xbe7   :  { %v2686_v62 = vcombine.high %v2685_v60, %v2685_v60  ;;  %v2693_v63 = vrot.slane %v2685_v60, %v7333_v25  ;;  %v6450_v60 = vld [vmem:[%s7862_s9 + $0x24] ss:$8 sps:$4 sm:$0xff]  }
 0xbe8   :  { %v2750_v0 = vpop.f32.mrb[36].mxu0 }
 0xbe9   :  { %v2700_v1 = vrot.slane %v2686_v62, %v7333_v25  ;;  %2704 = vst.msk [vmem:[#allocation6] sm:$0x1] %vm2703_vm6, %v2693_v63  ;;  %v5975_v2 = vpop.f32.mrb[37].mxu0  ;;  %v6454_v62 = vld [vmem:[%s7862_s9 + $0x34] ss:$8 sps:$4 sm:$0xff]  }
 0xbea   :  { %v2753_v7 = vpop.f32.mrb[38].mxu0  ;;  %v6452_v63 = vld [vmem:[%s7862_s9 + $0x30] ss:$8 sps:$4 sm:$0xff]   ;;  %v6456_v2 = vld [vmem:[%s7862_s9 + $0x40] ss:$8 sps:$4 sm:$0xff]  }
 0xbeb   :  { %2705 = vst.msk [vmem:[#allocation6 + $0x1] sm:$0x1] %vm2703_vm6, %v2700_v1  ;;  %v5976_v9 = vpop.f32.mrb[39].mxu0  ;;  %v6458_v1 = vld [vmem:[%s7862_s9 + $0x44] ss:$8 sps:$4 sm:$0xff]  }
 0xbec   :  { %v6462_v9 = vld [vmem:[%s7862_s9 + $0x54] ss:$8 sps:$4 sm:$0xff]  }
 0xbf0   :  { %v2797_v11 = vpop.f32.mrb[40].mxu0 }
 0xbf1   :  { %v2798_v14 = vadd.f32 %v2797_v11, %v2750_v0  ;;  %v5981_v15 = vpop.f32.mrb[41].mxu0  ;;  %v6455_v0 = vld [vmem:[%s7859_s11 + $0x28] sm:$0xff]   ;;  %v6460_v11 = vld [vmem:[%s7862_s9 + $0x50] ss:$8 sps:$4 sm:$0xff]  }
 0xbf2   :  { %v2800_v17 = vpop.f32.mrb[42].mxu0  ;;  %v6464_v15 = vld [vmem:[%s7862_s9 + $0x60] ss:$8 sps:$4 sm:$0xff]  }
 0xbf3   :  { %v2811_v18 = vadd.f32 %v5371_v13, %v2798_v14  ;;  %v2801_v19 = vadd.f32 %v2800_v17, %v2753_v7  ;;  %v5982_v21 = vpop.f32.mrb[43].mxu0  ;;  %v6459_v7 = vld [vmem:[%s7859_s11 + $0x30] sm:$0xff]   ;;  %v6466_v14 = vld [vmem:[%s7862_s9 + $0x64] ss:$8 sps:$4 sm:$0xff]  }
 0xbf4   :  { %v6469_v17 = vld [vmem:[%s7862_s9 + $0x74] ss:$8 sps:$4 sm:$0xff]  }
 0xbf5   :  { %v2812_v22 = vadd.f32 %v5371_v13, %v2801_v19  ;;  %v2813_v23 = vmax.f32 %v2811_v18, 0.0  ;;  %v6463_v13 = vld [vmem:[%s7859_s11 + $0x38] sm:$0xff]   ;;  %v6470_v19 = vld [vmem:[%s7863_s21 + $0x40] sm:$0xff]   ;;  %s5069_s11 = sshll.u32 %s6754_s4, 4  ;;  %s5070_s11 = int_to_ptr.vmem [resolvable:$true] %s5069_s11 }
 0xbf6   :  { %v6467_v18 = vld [vmem:[%s7862_s9 + $0x70] ss:$8 sps:$4 sm:$0xff]   ;;  %s6627_s9 = scalar_lea.vmem %s5070_s11, 32  ;;  %p6632_p1 = scmp.lt.s32.totalorder %s5070_s11, %s5070_s11 }
 0xbf7   :  { %v2814_v26 = vmax.f32 %v2812_v22, 0.0  ;;  %v5388_v22 = vld [vmem:[%s7864_s25] ss:$0 sm:$0xff]  ;;  %p6628_p0 = scmp.ne.s32.totalorder %s5070_s11, %s6627_s9  ;;  %p6633_p2 = scmp.lt.s32.totalorder %s6627_s9, %s6627_s9 }
 0xbf9   :  { %v2815_v24 = vpack.c.bf16 %v2814_v26, %v2813_v23  ;;  %p6634_p3 = por %p6633_p2, %p6632_p1 }
 0xbfb   :  { %2957 = vmatmul.mubr.bf16.vlgmr.msra.gmra.mrb[40].mxu1 %v2815_v24  ;;  %p6635_p4 = pnand %p6634_p3, %p6628_p0 }
 0xbfc   :  { %5999 = vmatprep.mubr.msk.bf16.mxu1 %vm6750_vm0, %v6749_v5  ;;  %5984 = vmatpush3.bf16.msra.mxu1 %v6438_v34 }
 0xbfd   :  { %5985 = vmatprep.subr.bf16.mxu1 %v6749_v5 }
 0xc00   :  { %5986 = vmatpush3.bf16.msra.mxu1 %v6439_v35 }
 0xc01   :  { %5987 = vmatprep.subr.bf16.mxu1 %v6749_v5 }
 0xc04   :  { %5988 = vmatpush3.bf16.msra.mxu1 %v6443_v4 }
 0xc05   :  { %5989 = vmatprep.subr.bf16.mxu1 %v6749_v5 }
 0xc08   :  { %5990 = vmatpush3.bf16.msra.mxu1 %v6447_v36 }
 0xc09   :  { %5991 = vmatprep.subr.bf16.mxu1 %v6749_v5 }
 0xc0c   :  { %5992 = vmatpush3.bf16.msra.mxu1 %v6451_v37 }
 0xc0d   :  { %5993 = vmatprep.subr.bf16.mxu1 %v6749_v5 }
 0xc10   :  { %5994 = vmatpush3.bf16.msra.mxu1 %v6455_v0  ;;  %v6490_v0 = vld [vmem:[%s7866_s3 + $0x20] sm:$0xff]  }
 0xc11   :  { %5995 = vmatprep.subr.bf16.mxu1 %v6749_v5 }
 0xc14   :  { %5996 = vmatpush3.bf16.msra.mxu1 %v6459_v7 }
 0xc15   :  { %5997 = vmatprep.subr.bf16.mxu1 %v6749_v5 }
 0xc18   :  { %5998 = vmatpush3.bf16.msra.mxu1 %v6463_v13 }
 0xc19   :  { %5736 = vmatprep.subr.bf16.mxu1 %v6470_v19 }
 0xcce   :  { %v2958_v41 = vpop.f32.mrb[40].mxu1 }
 0xccf   :  { %v2959_v42 = vadd.f32 %v2958_v41, %v2837_v39  ;;  %v2960_v43 = vpop.f32.mrb[41].mxu1  ;;  %v6472_v41 = vld [vmem:[%s7863_s21 + $0x48] sm:$0xff]  }
 0xcd0   :  { %v2961_v44 = vadd.f32 %v2960_v43, %v2841_v40  ;;  %v2962_v3 = vpop.f32.mrb[42].mxu1 }
 0xcd1   :  { %v2963_v46 = vadd.f32 %v2962_v3, %v2837_v39  ;;  %v2964_v47 = vpop.f32.mrb[43].mxu1  ;;  %v2967_v49 = vmax.f32 %v2959_v42, 0.0 }
 0xcd2   :  { %v2965_v48 = vadd.f32 %v2964_v47, %v2841_v40  ;;  %v2968_v51 = vmax.f32 %v2961_v44, 0.0  ;;  %v6474_v47 = vld [vmem:[%s7863_s21 + $0x50] sm:$0xff]  }
 0xcd3   :  { %v2969_v50 = vmax.f32 %v2963_v46, 0.0  ;;  %v6473_v46 = vld [vmem:[%s7863_s21 + $0x8] sm:$0xff]  }
 0xcd4   :  { %v2970_v52 = vmax.f32 %v2965_v48, 0.0 }
 0xcd5   :  { %v2971_v53 = vpack.c.bf16 %v2969_v50, %v2967_v49  ;;  %v6475_v49 = vld [vmem:[%s7863_s21 + $0x10] sm:$0xff]   ;;  %v6476_v50 = vld [vmem:[%s7863_s21 + $0x58] sm:$0xff]  }
 0xcd6   :  { %v2972_v54 = vpack.c.bf16 %v2970_v52, %v2968_v51  ;;  %v6477_v51 = vld [vmem:[%s7863_s21 + $0x18] sm:$0xff]   ;;  %v6478_v52 = vld [vmem:[%s7863_s21 + $0x60] sm:$0xff]  }
 0xcd8   :  { %3140 = vmatprep.mubr.bf16.mxu0 %v2972_v54  ;;  %v6480_v54 = vld [vmem:[%s7863_s21 + $0x68] sm:$0xff]  }
 0xcd9   :  { %3141 = vmatmul.mubr.bf16.vlgmr.msra.gmra.mrb[44].mxu0 %v2971_v53  ;;  %v6479_v53 = vld [vmem:[%s7863_s21 + $0x20] sm:$0xff]  }
 0xcda   :  { %6004 = vmatpush3.bf16.msra.mxu0 %v6437_v55  ;;  %6005 = vmatprep.mubr.msk.bf16.mxu0 %vm6750_vm0, %v6749_v5  ;;  %v6481_v55 = vld [vmem:[%s7863_s21 + $0x28] sm:$0xff]  }
 0xcdb   :  { %3431 = vmatprep.subr.bf16.mxu0 %v6442_v56  ;;  %v6482_v56 = vld [vmem:[%s7863_s21 + $0x70] sm:$0xff]  }
 0xce1   :  { %6006 = vmatmul.mubr.msk.bf16.vlgmr.msra.gmra.mrb[48].mxu0 %vm338_vm1, %v7141_v10 }
 0xce2   :  { %3432 = vmatpush1.bf16.msra.mxu0 %v6440_v57  ;;  %3463 = vmatprep.mubr.bf16.mxu0 %v6751_v29  ;;  %v6483_v57 = vld [vmem:[%s7863_s21 + $0x30] sm:$0xff]  }
 0xce3   :  { %3433 = vmatprep.subr.bf16.mxu0 %v6446_v58  ;;  %v6484_v58 = vld [vmem:[%s7863_s21 + $0x78] sm:$0xff]  }
 0xce6   :  { %3434 = vmatpush1.bf16.msra.mxu0 %v6444_v59  ;;  %v6485_v59 = vld [vmem:[%s7863_s21 + $0x38] sm:$0xff]  }
 0xce7   :  { %3435 = vmatprep.subr.bf16.mxu0 %v6450_v60  ;;  %v6486_v60 = vld [vmem:[%s7866_s3] sm:$0xff]  }
 0xcea   :  { %3436 = vmatpush1.bf16.msra.mxu0 %v6448_v61  ;;  %v6487_v61 = vld [vmem:[%s7866_s3 + $0x8] sm:$0xff]  }
 0xceb   :  { %3437 = vmatprep.subr.bf16.mxu0 %v6454_v62  ;;  %v6488_v62 = vld [vmem:[%s7866_s3 + $0x10] sm:$0xff]  }
 0xcee   :  { %3438 = vmatpush1.bf16.msra.mxu0 %v6452_v63  ;;  %v6489_v63 = vld [vmem:[%s7866_s3 + $0x18] sm:$0xff]  }
 0xcef   :  { %3439 = vmatprep.subr.bf16.mxu0 %v6458_v1  ;;  %v3339_v1 = vld [vmem:[%s7867_s8] sm:$0x3] }
 0xcf2   :  { %3440 = vmatpush1.bf16.msra.mxu0 %v6456_v2 }
 0xcf3   :  { %3441 = vmatprep.subr.bf16.mxu0 %v6462_v9 }
 0xcf6   :  { %3442 = vmatpush1.bf16.msra.mxu0 %v6460_v11  ;;  %v3344_v11 = vrot.slane %v3339_v1, %v7203_v6 }
 0xcf7   :  { %3443 = vmatprep.subr.bf16.mxu0 %v6466_v14  ;;  %v3348_v14 = vrot.slane %v3339_v1, %v7207_v8 }
 0xcfa   :  { %3444 = vmatpush1.bf16.msra.mxu0 %v6464_v15 }
 0xcfb   :  { %3445 = vmatprep.subr.bf16.mxu0 %v6469_v17 }
 0xcfe   :  { %3446 = vmatpush1.bf16.msra.mxu0 %v6467_v18 }
 0xcff   :  { %6009 = vmatprep.subr.bf16.mxu0 %v6749_v5 }
 0xdac   :  { %v5719_v21 = vpop.f32.mrb[44].mxu0 }
 0xdad   :  { %v5720_v23 = vpop.f32.mrb[45].mxu0 }
 0xdae   :  { %v5721_v26 = vadd.f32 %v5720_v23, %v5719_v21  ;;  %v5722_v24 = vpop.f32.mrb[46].mxu0 }
 0xdaf   :  { %v5723_v27 = vpop.f32.mrb[47].mxu0 }
 0xdb0   :  { %v3143_v28 = vadd.f32 %v5721_v26, %v5388_v22  ;;  %v5724_v30 = vadd.f32 %v5723_v27, %v5722_v24 }
 0xdb2   :  { %v3146_v31 = vadd.f32 %v5724_v30, %v5388_v22  ;;  %v3149_v34 = vmax.f32 %v3143_v28, 0.0 }
 0xdb4   :  { %v3150_v35 = vmax.f32 %v3146_v31, 0.0  ;;  %v3313_v4 = vpop.f32.mrb[48].mxu0 }
 0xdb5   :  { %v3314_v36 = vadd.f32 %v5414_v32, %v3313_v4  ;;  %v6007_v37 = vpop.f32.mrb[49].mxu0  ;;  %v6493_v4 = vld [vmem:[%s7866_s3 + $0x38] sm:$0xff]  }
 0xdb6   :  { %v3151_v39 = vpack.c.bf16 %v3150_v35, %v3149_v34  ;;  %v3316_v40 = vpop.f32.mrb[50].mxu0  ;;  %v6491_v34 = vld [vmem:[%s7866_s3 + $0x28] sm:$0xff]   ;;  %v6492_v35 = vld [vmem:[%s7866_s3 + $0x30] sm:$0xff]   ;;  %v5433_v37 = vld [vmem:[%s7868_s14] ss:$0 sm:$0xff] }
 0xdb7   :  { %v3317_v42 = vadd.f32 %v5414_v32, %v3316_v40  ;;  %v6008_v43 = vpop.f32.mrb[51].mxu0  ;;  %v3320_v44 = vmax.f32 %v3314_v36, 0.0 }
 0xdb8   :  { %6000 = vmatmul.mubr.bf16.vlgmr.msra.gmra.mrb[44].mxu1 %v3151_v39 }
 0xdb9   :  { %v3321_v3 = vmax.f32 %v3317_v42, 0.0  ;;  %5737 = vmatpush3.bf16.msra.mxu1 %v6471_v38 }
 0xdba   :  { %5738 = vmatprep.subr.bf16.mxu1 %v6472_v41 }
 0xdbb   :  { %v3322_v48 = vpack.c.bf16 %v3321_v3, %v3320_v44 }
 0xdbd   :  { %3464 = vmatmul.mubr.bf16.vlgmr.msra.gmra.mrb[52].mxu0 %v3322_v48  ;;  %5739 = vmatpush3.bf16.msra.mxu1 %v6473_v46  ;;  %v6496_v48 = vld [vmem:[%s7869_s19] ss:$8 sps:$4 sm:$0xff]  }
 0xdbe   :  { %5740 = vmatprep.subr.bf16.mxu1 %v6474_v47  ;;  %6025 = vmatprep.mubr.msk.bf16.mxu0 %vm6750_vm0, %v6749_v5 }
 0xdbf   :  { %6010 = vmatpush3.bf16.msra.mxu0 %v6486_v60 }
 0xdc0   :  { %6011 = vmatprep.subr.bf16.mxu0 %v6749_v5 }
 0xdc1   :  { %5741 = vmatpush3.bf16.msra.mxu1 %v6475_v49  ;;  %v6498_v49 = vld [vmem:[%s7869_s19 + $0x4] ss:$8 sps:$4 sm:$0xff]  }
 0xdc2   :  { %5742 = vmatprep.subr.bf16.mxu1 %v6476_v50  ;;  %v6501_v50 = vld [vmem:[%s7869_s19 + $0x14] ss:$8 sps:$4 sm:$0xff]  }
 0xdc3   :  { %6012 = vmatpush3.bf16.msra.mxu0 %v6487_v61 }
 0xdc4   :  { %6013 = vmatprep.subr.bf16.mxu0 %v6749_v5 }
 0xdc5   :  { %5743 = vmatpush3.bf16.msra.mxu1 %v6477_v51  ;;  %v6499_v51 = vld [vmem:[%s7869_s19 + $0x10] ss:$8 sps:$4 sm:$0xff]  }
 0xdc6   :  { %5744 = vmatprep.subr.bf16.mxu1 %v6478_v52  ;;  %v6504_v52 = vld [vmem:[%s7869_s19 + $0x24] ss:$8 sps:$4 sm:$0xff]  }
 0xdc7   :  { %6014 = vmatpush3.bf16.msra.mxu0 %v6488_v62 }
 0xdc8   :  { %6015 = vmatprep.subr.bf16.mxu0 %v6749_v5 }
 0xdc9   :  { %5745 = vmatpush3.bf16.msra.mxu1 %v6479_v53  ;;  %v6502_v53 = vld [vmem:[%s7869_s19 + $0x20] ss:$8 sps:$4 sm:$0xff]  }
 0xdca   :  { %5746 = vmatprep.subr.bf16.mxu1 %v6480_v54  ;;  %v5405_v54 = vld [vmem:[%s7870_s30] ss:$0 sm:$0xff] }
 0xdcb   :  { %6016 = vmatpush3.bf16.msra.mxu0 %v6489_v63  ;;  %v5450_v63 = vld [vmem:[%s7871_s6] ss:$0 sm:$0xff] }
 0xdcc   :  { %6017 = vmatprep.subr.bf16.mxu0 %v6749_v5 }
 0xdcd   :  { %5747 = vmatpush3.bf16.msra.mxu1 %v6481_v55 }
 0xdce   :  { %5748 = vmatprep.subr.bf16.mxu1 %v6482_v56 }
 0xdcf   :  { %6018 = vmatpush3.bf16.msra.mxu0 %v6490_v0 }
 0xdd0   :  { %6019 = vmatprep.subr.bf16.mxu0 %v6749_v5 }
 0xdd1   :  { %5749 = vmatpush3.bf16.msra.mxu1 %v6483_v57 }
 0xdd2   :  { %5750 = vmatprep.subr.bf16.mxu1 %v6484_v58 }
 0xdd3   :  { %6020 = vmatpush3.bf16.msra.mxu0 %v6491_v34  ;;  %v6520_v34 = vld [vmem:[%s7874_s28 + $0x40] sm:$0xff]  }
 0xdd4   :  { %6021 = vmatprep.subr.bf16.mxu0 %v6749_v5 }
 0xdd5   :  { %5751 = vmatpush3.bf16.msra.mxu1 %v6485_v59 }
 0xdd6   :  { %6107 = vmatprep.subr.bf16.mxu1 %v6752_v16 }
 0xdd7   :  { %6022 = vmatpush3.bf16.msra.mxu0 %v6492_v35  ;;  %v6521_v35 = vld [vmem:[%s7874_s28] sm:$0xff]  }
 0xdd8   :  { %6023 = vmatprep.subr.bf16.mxu0 %v6749_v5 }
 0xddb   :  { %6024 = vmatpush3.bf16.msra.mxu0 %v6493_v4  ;;  %v6522_v4 = vld [vmem:[%s7874_s28 + $0x48] sm:$0xff]  }
 0xddc   :  { %4102 = vmatprep.subr.bf16.mxu0 %v6498_v49 }
 0xe8b   :  { %v3257_v2 = vpop.f32.mrb[44].mxu1 }
 0xe8c   :  { %v6001_v7 = vpop.f32.mrb[45].mxu1  ;;  %v3258_v55 = vadd.f32 %v5405_v54, %v3257_v2 }
 0xe8d   :  { %v3260_v9 = vpop.f32.mrb[46].mxu1 }
 0xe8e   :  { %v6002_v13 = vpop.f32.mrb[47].mxu1  ;;  %v3261_v56 = vadd.f32 %v5405_v54, %v3260_v9  ;;  %v5459_v57 = vmul.f32 -1.442695, %v3258_v55  ;;  %v5466_v55 = vld [vmem:[%s7875_s10] ss:$0 sm:$0xff] }
 0xe90   :  { %v3465_v15 = vpop.f32.mrb[52].mxu0  ;;  %v5460_v58 = vmul.f32 -1.442695, %v3261_v56  ;;  %6609 = vpow2.f32 %v5459_v57 }
 0xe91   :  { %v3466_v17 = vadd.f32 %v3465_v15, %v3344_v11  ;;  %v3467_v18 = vpop.f32.mrb[53].mxu0 }
 0xe92   :  { %v3468_v19 = vadd.f32 %v3467_v18, %v3348_v14  ;;  %v3469_v21 = vpop.f32.mrb[54].mxu0  ;;  %6611 = vpow2.f32 %v5460_v58 }
 0xe93   :  { %v3470_v22 = vadd.f32 %v3469_v21, %v3344_v11  ;;  %v3471_v23 = vpop.f32.mrb[55].mxu0  ;;  %v3474_v24 = vmax.f32 %v3466_v17, 0.0 }
 0xe94   :  { %v3472_v26 = vadd.f32 %v3471_v23, %v3348_v14  ;;  %v3475_v28 = vmax.f32 %v3468_v19, 0.0  ;;  %v6505_v23 = vld [vmem:[%s7869_s19 + $0x30] ss:$8 sps:$4 sm:$0xff]  }
 0xe95   :  { %v3476_v27 = vmax.f32 %v3470_v22, 0.0  ;;  %v6494_v22 = vld [vmem:[%s7872_s12] sm:$0xff]  }
 0xe96   :  { %v3477_v30 = vmax.f32 %v3472_v26, 0.0  ;;  %v6510_v26 = vld [vmem:[%s7869_s19 + $0x44] ss:$8 sps:$4 sm:$0xff]  }
 0xe97   :  { %v3478_v31 = vpack.c.bf16 %v3476_v27, %v3474_v24  ;;  %v6508_v24 = vld [vmem:[%s7869_s19 + $0x40] ss:$8 sps:$4 sm:$0xff]   ;;  %v6513_v27 = vld [vmem:[%s7869_s19 + $0x54] ss:$8 sps:$4 sm:$0xff]  }
 0xe98   :  { %v3479_v32 = vpack.c.bf16 %v3477_v30, %v3475_v28  ;;  %v6511_v28 = vld [vmem:[%s7869_s19 + $0x50] ss:$8 sps:$4 sm:$0xff]   ;;  %v6516_v30 = vld [vmem:[%s7869_s19 + $0x64] ss:$8 sps:$4 sm:$0xff]  }
 0xe9a   :  { %3647 = vmatprep.mubr.bf16.mxu1 %v3479_v32  ;;  %v6610_v59 = vpop.eup %6609  ;;  %v6517_v32 = vld [vmem:[%s7869_s19 + $0x70] ss:$8 sps:$4 sm:$0xff]  }
 0xe9b   :  { %3648 = vmatmul.mubr.bf16.vlgmr.msra.gmra.mrb[48].mxu1 %v3478_v31  ;;  %v3777_v61 = vadd.f32 1.0, %v6610_v59  ;;  %v6519_v31 = vld [vmem:[%s7869_s19 + $0x74] ss:$8 sps:$4 sm:$0xff]  }
 0xe9c   :  { %6033 = vmatprep.mubr.msk.f32.mxu1 %vm6750_vm0, %v6749_v5  ;;  %v6612_v60 = vpop.eup %6611 }
 0xe9d   :  { %v3778_v62 = vadd.f32 1.0, %v6612_v60  ;;  %6613 = vrcp.f32 %v3777_v61 }
 0xe9f   :  { %6615 = vrcp.f32 %v3778_v62 }
 0xea7   :  { %v6614_v11 = vpop.eup %6613 }
 0xea9   :  { %v6616_v15 = vpop.eup %6615 }
 0xf6e   :  { %v5752_v36 = vpop.f32.mrb[48].mxu1 }
 0xf6f   :  { %v5753_v38 = vpop.f32.mrb[49].mxu1 }
 0xf70   :  { %v5754_v39 = vadd.f32 %v5753_v38, %v5752_v36  ;;  %v5755_v40 = vpop.f32.mrb[50].mxu1  ;;  %v6523_v36 = vld [vmem:[%s7874_s28 + $0x8] sm:$0xff]   ;;  %v6525_v38 = vld [vmem:[%s7874_s28 + $0x10] sm:$0xff]  }
 0xf71   :  { %v5756_v41 = vpop.f32.mrb[51].mxu1 }
 0xf72   :  { %v3650_v42 = vadd.f32 %v5754_v39, %v5433_v37  ;;  %v5757_v43 = vadd.f32 %v5756_v41, %v5755_v40  ;;  %v6526_v39 = vld [vmem:[%s7874_s28 + $0x58] sm:$0xff]   ;;  %v6528_v41 = vld [vmem:[%s7874_s28 + $0x60] sm:$0xff]  }
 0xf73   :  { %v6527_v40 = vld [vmem:[%s7874_s28 + $0x18] sm:$0xff]  }
 0xf74   :  { %v3653_v44 = vadd.f32 %v5757_v43, %v5433_v37  ;;  %v3656_v3 = vmax.f32 %v3650_v42, 0.0  ;;  %v6524_v37 = vld [vmem:[%s7874_s28 + $0x50] sm:$0xff]   ;;  %v6529_v42 = vld [vmem:[%s7874_s28 + $0x20] sm:$0xff]   ;;  %v6530_v43 = vld [vmem:[%s7874_s28 + $0x68] sm:$0xff]  }
 0xf76   :  { %v3657_v46 = vmax.f32 %v3653_v44, 0.0 }
 0xf78   :  { %v3658_v47 = vpack.c.bf16 %v3657_v46, %v3656_v3 }
 0xf7a   :  { %6026 = vmatmul.mubr.bf16.vlgmr.msra.gmra.mrb[56].mxu0 %v3658_v47 }
 0xf7b   :  { %4134 = vmatprep.mubr.bf16.mxu0 %v6751_v29  ;;  %4103 = vmatpush1.bf16.msra.mxu0 %v6496_v48 }
 0xf7c   :  { %4104 = vmatprep.subr.bf16.mxu0 %v6501_v50 }
 0xf7f   :  { %4105 = vmatpush1.bf16.msra.mxu0 %v6499_v51 }
 0xf80   :  { %4106 = vmatprep.subr.bf16.mxu0 %v6504_v52 }
 0xf83   :  { %4107 = vmatpush1.bf16.msra.mxu0 %v6502_v53 }
0x104d   :  { %v3764_v0 = vpop.f32.mrb[56].mxu0 }
0x104e   :  { %v3765_v1 = vadd.f32 %v5450_v63, %v3764_v0  ;;  %v6027_v7 = vpop.f32.mrb[57].mxu0 }
0x104f   :  { %v3767_v13 = vpop.f32.mrb[58].mxu0  ;;  %v6531_v7 = vld [vmem:[%s7874_s28 + $0x28] sm:$0xff]  }
0x1050   :  { %v3783_v2 = vmul.f32 %v6614_v11, %v3765_v1  ;;  %v3768_v9 = vadd.f32 %v5450_v63, %v3767_v13  ;;  %v6028_v14 = vpop.f32.mrb[59].mxu0  ;;  %v6532_v11 = vld [vmem:[%s7874_s28 + $0x70] sm:$0xff]  }
0x1051   :  { %v6533_v13 = vld [vmem:[%s7874_s28 + $0x30] sm:$0xff]   ;;  %v6537_v14 = vld [vmem:[%s7876_s13] sm:$0xff]  }
0x1052   :  { %v3784_v17 = vmul.f32 %v6616_v15, %v3768_v9  ;;  %v3785_v18 = vmul.f32 %v3783_v2, %v7443_v20  ;;  %v6495_v20 = vld [vmem:[%s7873_s27] sm:$0xff]   ;;  %v6534_v2 = vld [vmem:[%s7874_s28 + $0x78] sm:$0xff]   ;;  %v6538_v15 = vld [vmem:[%s7876_s13 + $0x8] sm:$0xff]  }
0x1053   :  { %v6535_v9 = vld [vmem:[%s7874_s28 + $0x38] sm:$0xff]  }
0x1054   :  { %v3786_v19 = vmul.f32 %v3784_v17, %v7445_v33  ;;  %v6507_v33 = vld [vmem:[%s7869_s19 + $0x34] ss:$8 sps:$4 sm:$0xff]  }
0x1055   :  { %4108 = vmatprep.subr.bf16.mxu0 %v6507_v33  ;;  %v6542_v17 = vld [vmem:[%s7876_s13 + $0x10] sm:$0xff]  }
0x1056   :  { %v6108_v21 = vpack.c.bf16 %v3786_v19, %v3785_v18  ;;  %4109 = vmatpush1.bf16.msra.mxu0 %v6505_v23  ;;  %v6546_v18 = vld [vmem:[%s7876_s13 + $0x18] sm:$0xff]   ;;  %v6550_v19 = vld [vmem:[%s7876_s13 + $0x20] sm:$0xff]  }
0x1057   :  { %4110 = vmatprep.subr.bf16.mxu0 %v6510_v26 }
0x1058   :  { %6109 = vmatpush3.bf16.msra.mxu1 %v6108_v21  ;;  %v4010_v21 = vld [vmem:[%s7877_s15] sm:$0x3] }
0x1059   :  { %6036 = vmatprep.subr.bf16.mxu1 %v6749_v5 }
0x105a   :  { %4111 = vmatpush1.bf16.msra.mxu0 %v6508_v24 }
0x105b   :  { %6034 = vmatmul.mubr.msk.f32.vlgmr.msra.gmra.mrb[52].mxu1 %vm338_vm1, %v7293_v45  ;;  %4112 = vmatprep.subr.bf16.mxu0 %v6513_v27 }
0x105c   :  { %6037 = vmatpush3.bf16.msra.mxu1 %v6494_v22  ;;  %6038 = vmatprep.mubr.msk.bf16.mxu1 %vm6750_vm0, %v6749_v5  ;;  %v4015_v22 = vrot.slane %v4010_v21, %v7203_v6 }
0x105d   :  { %6042 = vmatprep.subr.bf16.mxu1 %v6749_v5 }
0x105e   :  { %4113 = vmatpush1.bf16.msra.mxu0 %v6511_v28 }
0x105f   :  { %6039 = vmatmul.mubr.msk.bf16.vlgmr.msra.gmra.mrb[56].mxu1 %vm338_vm1, %v7141_v10  ;;  %4114 = vmatprep.subr.bf16.mxu0 %v6516_v30 }
0x1060   :  { %6043 = vmatpush3.bf16.msra.mxu1 %v6495_v20  ;;  %6044 = vmatprep.mubr.msk.bf16.mxu1 %vm6750_vm0, %v6749_v5  ;;  %v4019_v20 = vrot.slane %v4010_v21, %v7207_v8 }
0x1061   :  { %5774 = vmatprep.subr.bf16.mxu1 %v6520_v34 }
0x1067   :  { %6045 = vmatmul.mubr.msk.bf16.vlgmr.msra.gmra.mrb[60].mxu1 %vm338_vm1, %v7144_v12  ;;  %v6514_v12 = vld [vmem:[%s7869_s19 + $0x60] ss:$8 sps:$4 sm:$0xff]  }
0x1068   :  { %4115 = vmatpush1.bf16.msra.mxu0 %v6514_v12  ;;  %5775 = vmatpush3.bf16.msra.mxu1 %v6521_v35 }
0x1069   :  { %4116 = vmatprep.subr.bf16.mxu0 %v6519_v31  ;;  %5776 = vmatprep.subr.bf16.mxu1 %v6522_v4 }
0x106c   :  { %4117 = vmatpush1.bf16.msra.mxu0 %v6517_v32  ;;  %5777 = vmatpush3.bf16.msra.mxu1 %v6523_v36 }
0x106d   :  { %6048 = vmatprep.subr.bf16.mxu0 %v6749_v5  ;;  %5778 = vmatprep.subr.bf16.mxu1 %v6524_v37  ;;  %v6536_v37 = vld [vmem:[%s7878_s18] sm:$0xff]  }
0x1070   :  { %5779 = vmatpush3.bf16.msra.mxu1 %v6525_v38  ;;  %v6541_v38 = vld [vmem:[%s7879_s20 + $0x4] ss:$8 sps:$4 sm:$0xff]  }
0x1071   :  { %5780 = vmatprep.subr.bf16.mxu1 %v6526_v39  ;;  %v6539_v39 = vld [vmem:[%s7879_s20] ss:$8 sps:$4 sm:$0xff]  }
0x1074   :  { %5781 = vmatpush3.bf16.msra.mxu1 %v6527_v40  ;;  %v6545_v40 = vld [vmem:[%s7879_s20 + $0x14] ss:$8 sps:$4 sm:$0xff]  }
0x1075   :  { %5782 = vmatprep.subr.bf16.mxu1 %v6528_v41  ;;  %v6543_v41 = vld [vmem:[%s7879_s20 + $0x10] ss:$8 sps:$4 sm:$0xff]  }
0x1078   :  { %5783 = vmatpush3.bf16.msra.mxu1 %v6529_v42  ;;  %v6549_v42 = vld [vmem:[%s7879_s20 + $0x24] ss:$8 sps:$4 sm:$0xff]  }
0x1079   :  { %5784 = vmatprep.subr.bf16.mxu1 %v6530_v43  ;;  %v6547_v43 = vld [vmem:[%s7879_s20 + $0x20] ss:$8 sps:$4 sm:$0xff]  }
0x107c   :  { %5785 = vmatpush3.bf16.msra.mxu1 %v6531_v7 }
0x107d   :  { %5786 = vmatprep.subr.bf16.mxu1 %v6532_v11 }
0x1080   :  { %5787 = vmatpush3.bf16.msra.mxu1 %v6533_v13 }
0x1081   :  { %5788 = vmatprep.subr.bf16.mxu1 %v6534_v2 }
0x1084   :  { %5789 = vmatpush3.bf16.msra.mxu1 %v6535_v9 }
0x1085   :  { %6068 = vmatprep.subr.bf16.mxu1 %v6749_v5 }
0x112e   :  { %v3853_v44 = vpop.f32.mrb[52].mxu1 }
0x112f   :  { %v3864_v3 = vrot.slane %v3853_v44, %v7333_v25  ;;  %v6035_v46 = vpop.f32.mrb[53].mxu1  ;;  %v6553_v44 = vld [vmem:[%s7879_s20 + $0x34] ss:$8 sps:$4 sm:$0xff]  }
0x1130   :  { %v6557_v46 = vld [vmem:[%s7879_s20 + $0x44] ss:$8 sps:$4 sm:$0xff]  }
0x1131   :  { %v3865_v47 = vcombine.high %v3864_v3, %v3864_v3  ;;  %v3872_v48 = vrot.slane %v3864_v3, %v7333_v25  ;;  %v6551_v3 = vld [vmem:[%s7879_s20 + $0x30] ss:$8 sps:$4 sm:$0xff]  }
0x1132   :  { %v3928_v49 = vpop.f32.mrb[56].mxu1 }
0x1133   :  { %v3879_v50 = vrot.slane %v3865_v47, %v7333_v25  ;;  %3882 = vst.msk [vmem:[#allocation8] sm:$0x1] %vm2703_vm6, %v3872_v48  ;;  %v6040_v51 = vpop.f32.mrb[57].mxu1  ;;  %v6555_v47 = vld [vmem:[%s7879_s20 + $0x40] ss:$8 sps:$4 sm:$0xff]  }
0x1134   :  { %v3931_v52 = vpop.f32.mrb[58].mxu1  ;;  %v6561_v48 = vld [vmem:[%s7879_s20 + $0x54] ss:$8 sps:$4 sm:$0xff]   ;;  %v6565_v51 = vld [vmem:[%s7879_s20 + $0x64] ss:$8 sps:$4 sm:$0xff]  }
0x1135   :  { %3883 = vst.msk [vmem:[#allocation8 + $0x1] sm:$0x1] %vm2703_vm6, %v3879_v50  ;;  %v6041_v53 = vpop.f32.mrb[59].mxu1  ;;  %v6562_v50 = vld [vmem:[%s7876_s13 + $0x38] sm:$0xff]  }
0x1136   :  { %v6568_v53 = vld [vmem:[%s7879_s20 + $0x74] ss:$8 sps:$4 sm:$0xff]  }
0x113a   :  { %v3975_v54 = vpop.f32.mrb[60].mxu1 }
0x113b   :  { %v3976_v56 = vadd.f32 %v3975_v54, %v3928_v49  ;;  %v6046_v57 = vpop.f32.mrb[61].mxu1  ;;  %v6559_v49 = vld [vmem:[%s7879_s20 + $0x50] ss:$8 sps:$4 sm:$0xff]  }
0x113c   :  { %v3978_v58 = vpop.f32.mrb[62].mxu1  ;;  %v6566_v54 = vld [vmem:[%s7879_s20 + $0x70] ss:$8 sps:$4 sm:$0xff]   ;;  %v5483_v57 = vld [vmem:[%s7881_s26] ss:$0 sm:$0xff] }
0x113d   :  { %v3989_v59 = vadd.f32 %v5466_v55, %v3976_v56  ;;  %v3979_v60 = vadd.f32 %v3978_v58, %v3931_v52  ;;  %v6047_v61 = vpop.f32.mrb[63].mxu1  ;;  %v6563_v52 = vld [vmem:[%s7879_s20 + $0x60] ss:$8 sps:$4 sm:$0xff]  }
0x113f   :  { %v3990_v62 = vadd.f32 %v5466_v55, %v3979_v60  ;;  %v3991_v63 = vmax.f32 %v3989_v59, 0.0  ;;  %v6569_v55 = vld [vmem:[%s7880_s23 + $0x40] sm:$0xff]  }
0x1141   :  { %v3992_v0 = vmax.f32 %v3990_v62, 0.0 }
0x1143   :  { %v3993_v1 = vpack.c.bf16 %v3992_v0, %v3991_v63 }
0x1145   :  { %4135 = vmatmul.mubr.bf16.vlgmr.msra.gmra.mrb[60].mxu0 %v3993_v1  ;;  %v5509_v1 = vld [vmem:[%s7882_s1] ss:$0 sm:$0xff] }
0x1146   :  { %6064 = vmatprep.mubr.msk.bf16.mxu0 %vm6750_vm0, %v6749_v5  ;;  %6049 = vmatpush3.bf16.msra.mxu0 %v6537_v14  ;;  %v6570_v14 = vld [vmem:[%s7880_s23] sm:$0xff]  }
0x1147   :  { %6050 = vmatprep.subr.bf16.mxu0 %v6749_v5 }
0x114a   :  { %6051 = vmatpush3.bf16.msra.mxu0 %v6538_v15 }
0x114b   :  { %6052 = vmatprep.subr.bf16.mxu0 %v6749_v5 }
0x114e   :  { %6053 = vmatpush3.bf16.msra.mxu0 %v6542_v17 }
0x114f   :  { %6054 = vmatprep.subr.bf16.mxu0 %v6749_v5 }
0x1152   :  { %6055 = vmatpush3.bf16.msra.mxu0 %v6546_v18  ;;  %v6571_v18 = vld [vmem:[%s7880_s23 + $0x48] sm:$0xff]  }
0x1153   :  { %6056 = vmatprep.subr.bf16.mxu0 %v6749_v5 }
0x1156   :  { %6057 = vmatpush3.bf16.msra.mxu0 %v6550_v19 }
0x1157   :  { %6058 = vmatprep.subr.bf16.mxu0 %v6749_v5 }
0x1218   :  { %v4136_v33 = vpop.f32.mrb[60].mxu0 }
0x1219   :  { %v4137_v23 = vadd.f32 %v4136_v33, %v4015_v22  ;;  %v4138_v26 = vpop.f32.mrb[61].mxu0  ;;  %v6572_v33 = vld [vmem:[%s7880_s23 + $0x8] sm:$0xff]  }
0x121a   :  { %v4139_v24 = vadd.f32 %v4138_v26, %v4019_v20  ;;  %v4140_v27 = vpop.f32.mrb[62].mxu0 }
0x121b   :  { %v4141_v28 = vadd.f32 %v4140_v27, %v4015_v22  ;;  %v4142_v30 = vpop.f32.mrb[63].mxu0  ;;  %v4145_v31 = vmax.f32 %v4137_v23, 0.0  ;;  %v6573_v23 = vld [vmem:[%s7880_s23 + $0x50] sm:$0xff]   ;;  %v6575_v27 = vld [vmem:[%s7880_s23 + $0x58] sm:$0xff]  }
0x121c   :  { %v4143_v12 = vadd.f32 %v4142_v30, %v4019_v20  ;;  %v4146_v34 = vmax.f32 %v4139_v24, 0.0  ;;  %v6574_v24 = vld [vmem:[%s7880_s23 + $0x10] sm:$0xff]   ;;  %v6577_v30 = vld [vmem:[%s7880_s23 + $0x60] sm:$0xff]  }
0x121d   :  { %v4147_v32 = vmax.f32 %v4141_v28, 0.0  ;;  %v6576_v28 = vld [vmem:[%s7880_s23 + $0x18] sm:$0xff]  }
0x121e   :  { %v4148_v35 = vmax.f32 %v4143_v12, 0.0  ;;  %v6578_v12 = vld [vmem:[%s7880_s23 + $0x20] sm:$0xff]  }
0x121f   :  { %v4149_v4 = vpack.c.bf16 %v4147_v32, %v4145_v31  ;;  %v6579_v31 = vld [vmem:[%s7880_s23 + $0x68] sm:$0xff]  }
0x1220   :  { %v4150_v36 = vpack.c.bf16 %v4148_v35, %v4146_v34  ;;  %v6580_v32 = vld [vmem:[%s7880_s23 + $0x28] sm:$0xff]   ;;  %v6581_v34 = vld [vmem:[%s7880_s23 + $0x70] sm:$0xff]  }
0x1221   :  { %v6582_v35 = vld [vmem:[%s7880_s23 + $0x30] sm:$0xff]  }
0x1222   :  { %4318 = vmatprep.mubr.bf16.mxu1 %v4150_v36  ;;  %v6584_v36 = vld [vmem:[%s7880_s23 + $0x38] sm:$0xff]  }
0x1223   :  { %4319 = vmatmul.mubr.bf16.vlgmr.msra.gmra.mrb[64].mxu1 %v4149_v4  ;;  %v6583_v4 = vld [vmem:[%s7880_s23 + $0x78] sm:$0xff]  }
0x1224   :  { %6069 = vmatpush3.bf16.msra.mxu1 %v6536_v37  ;;  %6070 = vmatprep.mubr.msk.bf16.mxu1 %vm6750_vm0, %v6749_v5  ;;  %v6585_v37 = vld [vmem:[%s7883_s24] sm:$0xff]  }
0x1225   :  { %4609 = vmatprep.subr.bf16.mxu1 %v6541_v38  ;;  %v6586_v38 = vld [vmem:[%s7883_s24 + $0x8] sm:$0xff]  }
0x122b   :  { %6071 = vmatmul.mubr.msk.bf16.vlgmr.msra.gmra.mrb[68].mxu1 %vm338_vm1, %v7141_v10  ;;  %v6554_v10 = vld [vmem:[%s7876_s13 + $0x28] sm:$0xff]  }
0x122c   :  { %4610 = vmatpush1.bf16.msra.mxu1 %v6539_v39  ;;  %4641 = vmatprep.mubr.bf16.mxu1 %v6751_v29  ;;  %v6558_v29 = vld [vmem:[%s7876_s13 + $0x30] sm:$0xff]  }
0x122d   :  { %4611 = vmatprep.subr.bf16.mxu1 %v6545_v40  ;;  %6059 = vmatpush3.bf16.msra.mxu0 %v6554_v10  ;;  %v6587_v39 = vld [vmem:[%s7883_s24 + $0x10] sm:$0xff]   ;;  %v6588_v40 = vld [vmem:[%s7883_s24 + $0x18] sm:$0xff]  }
0x122e   :  { %6060 = vmatprep.subr.bf16.mxu0 %v6749_v5 }
0x1230   :  { %4612 = vmatpush1.bf16.msra.mxu1 %v6543_v41  ;;  %v6589_v41 = vld [vmem:[%s7883_s24 + $0x20] sm:$0xff]  }
0x1231   :  { %4613 = vmatprep.subr.bf16.mxu1 %v6549_v42  ;;  %6061 = vmatpush3.bf16.msra.mxu0 %v6558_v29 }
0x1232   :  { %6062 = vmatprep.subr.bf16.mxu0 %v6749_v5 }
0x1234   :  { %4614 = vmatpush1.bf16.msra.mxu1 %v6547_v43 }
0x1235   :  { %4615 = vmatprep.subr.bf16.mxu1 %v6553_v44  ;;  %6063 = vmatpush3.bf16.msra.mxu0 %v6562_v50 }
0x1236   :  { %5807 = vmatprep.subr.bf16.mxu0 %v6569_v55 }
0x1238   :  { %4616 = vmatpush1.bf16.msra.mxu1 %v6551_v3 }
0x1239   :  { %4617 = vmatprep.subr.bf16.mxu1 %v6557_v46 }
0x123c   :  { %4618 = vmatpush1.bf16.msra.mxu1 %v6555_v47 }
0x123d   :  { %4619 = vmatprep.subr.bf16.mxu1 %v6561_v48 }
0x1240   :  { %4620 = vmatpush1.bf16.msra.mxu1 %v6559_v49 }
0x1241   :  { %4621 = vmatprep.subr.bf16.mxu1 %v6565_v51 }
0x1244   :  { %4622 = vmatpush1.bf16.msra.mxu1 %v6563_v52 }
0x1245   :  { %4623 = vmatprep.subr.bf16.mxu1 %v6568_v53 }
0x1248   :  { %4624 = vmatpush1.bf16.msra.mxu1 %v6566_v54 }
0x1249   :  { %6074 = vmatprep.subr.bf16.mxu1 %v6749_v5 }
0x12f6   :  { %v5790_v56 = vpop.f32.mrb[64].mxu1 }
0x12f7   :  { %v5791_v58 = vpop.f32.mrb[65].mxu1 }
0x12f8   :  { %v5792_v59 = vadd.f32 %v5791_v58, %v5790_v56  ;;  %v5793_v60 = vpop.f32.mrb[66].mxu1 }
0x12f9   :  { %v5794_v61 = vpop.f32.mrb[67].mxu1 }
0x12fa   :  { %v4321_v62 = vadd.f32 %v5792_v59, %v5483_v57  ;;  %v5795_v63 = vadd.f32 %v5794_v61, %v5793_v60  ;;  %v6591_v59 = vld [vmem:[%s7883_s24 + $0x30] sm:$0xff]   ;;  %v6592_v60 = vld [vmem:[%s7883_s24 + $0x38] sm:$0xff]  }
0x12fc   :  { %v4324_v0 = vadd.f32 %v5795_v63, %v5483_v57  ;;  %v4327_v7 = vmax.f32 %v4321_v62, 0.0  ;;  %v5528_v62 = vld [vmem:[%s7885_s7] ss:$0 sm:$0xff] }
0x12fe   :  { %v4328_v11 = vmax.f32 %v4324_v0, 0.0  ;;  %v4491_v13 = vpop.f32.mrb[68].mxu1 }
0x12ff   :  { %v4492_v2 = vadd.f32 %v5509_v1, %v4491_v13  ;;  %v6072_v9 = vpop.f32.mrb[69].mxu1 }
0x1300   :  { %v4329_v15 = vpack.c.bf16 %v4328_v11, %v4327_v7  ;;  %v4494_v17 = vpop.f32.mrb[70].mxu1 }
0x1301   :  { %v4495_v19 = vadd.f32 %v5509_v1, %v4494_v17  ;;  %v6073_v21 = vpop.f32.mrb[71].mxu1  ;;  %v4498_v22 = vmax.f32 %v4492_v2, 0.0  ;;  %v5500_v17 = vld [vmem:[#allocation4] ss:$0 sm:$0xff] }
0x1302   :  { %6065 = vmatmul.mubr.bf16.vlgmr.msra.gmra.mrb[64].mxu0 %v4329_v15 }
0x1303   :  { %v4499_v20 = vmax.f32 %v4495_v19, 0.0  ;;  %5808 = vmatpush3.bf16.msra.mxu0 %v6570_v14 }
0x1304   :  { %5809 = vmatprep.subr.bf16.mxu0 %v6571_v18 }
0x1305   :  { %v4500_v26 = vpack.c.bf16 %v4499_v20, %v4498_v22 }
0x1307   :  { %4642 = vmatmul.mubr.bf16.vlgmr.msra.gmra.mrb[72].mxu1 %v4500_v26  ;;  %5810 = vmatpush3.bf16.msra.mxu0 %v6572_v33  ;;  %v5545_v26 = vld [vmem:[#allocation5] ss:$0 sm:$0xff] }
0x1308   :  { %5811 = vmatprep.subr.bf16.mxu0 %v6573_v23  ;;  %6090 = vmatprep.mubr.msk.bf16.mxu1 %vm6750_vm0, %v6749_v5 }
0x1309   :  { %6075 = vmatpush3.bf16.msra.mxu1 %v6585_v37 }
0x130a   :  { %6076 = vmatprep.subr.bf16.mxu1 %v6749_v5 }
0x130b   :  { %5812 = vmatpush3.bf16.msra.mxu0 %v6574_v24 }
0x130c   :  { %5813 = vmatprep.subr.bf16.mxu0 %v6575_v27 }
0x130d   :  { %6077 = vmatpush3.bf16.msra.mxu1 %v6586_v38  ;;  %v6626_v38 = vld [vmem:[%s7834_s17 + $0x8] sm:$0xff] }
0x130e   :  { %6078 = vmatprep.subr.bf16.mxu1 %v6749_v5 }
0x130f   :  { %5814 = vmatpush3.bf16.msra.mxu0 %v6576_v28 }
0x1310   :  { %5815 = vmatprep.subr.bf16.mxu0 %v6577_v30 }
0x1311   :  { %6079 = vmatpush3.bf16.msra.mxu1 %v6587_v39 }
0x1312   :  { %6080 = vmatprep.subr.bf16.mxu1 %v6749_v5 }
0x1313   :  { %5816 = vmatpush3.bf16.msra.mxu0 %v6578_v12 }
0x1314   :  { %5817 = vmatprep.subr.bf16.mxu0 %v6579_v31 }
0x1315   :  { %6081 = vmatpush3.bf16.msra.mxu1 %v6588_v40 }
0x1316   :  { %6082 = vmatprep.subr.bf16.mxu1 %v6749_v5 }
0x1317   :  { %5818 = vmatpush3.bf16.msra.mxu0 %v6580_v32 }
0x1318   :  { %5819 = vmatprep.subr.bf16.mxu0 %v6581_v34 }
0x1319   :  { %6083 = vmatpush3.bf16.msra.mxu1 %v6589_v41 }
0x131a   :  { %6084 = vmatprep.subr.bf16.mxu1 %v6749_v5 }
0x131b   :  { %5820 = vmatpush3.bf16.msra.mxu0 %v6582_v35 }
0x131c   :  { %5821 = vmatprep.subr.bf16.mxu0 %v6583_v4 }
0x131f   :  { %5822 = vmatpush3.bf16.msra.mxu0 %v6584_v36  ;;  %v6625_v36 = vld [vmem:[%s7834_s17] sm:$0xff] }
0x1320   :  { %6110 = vmatprep.subr.bf16.mxu0 %v6752_v16  ;;  %v4517_v16 = vld [vmem:[%s7884_s2] sm:$0x3] }
0x1321   :  { %v4522_v3 = vrot.slane %v4517_v16, %v7203_v6  ;;  %v4526_v46 = vrot.slane %v4517_v16, %v7207_v8  ;;  %v6590_v8 = vld [vmem:[%s7883_s24 + $0x28] sm:$0xff]  }
0x1322   :  { %6085 = vmatpush3.bf16.msra.mxu1 %v6590_v8 }
0x1323   :  { %6086 = vmatprep.subr.bf16.mxu1 %v6749_v5 }
0x1326   :  { %6087 = vmatpush3.bf16.msra.mxu1 %v6591_v59 }
0x1327   :  { %6088 = vmatprep.subr.bf16.mxu1 %v6749_v5 }
0x132a   :  { %6089 = vmatpush3.bf16.msra.mxu1 %v6592_v60 }
0x13d5   :  { %v4435_v42 = vpop.f32.mrb[64].mxu0 }
0x13d6   :  { %v6066_v43 = vpop.f32.mrb[65].mxu0  ;;  %v4436_v18 = vadd.f32 %v5500_v17, %v4435_v42 }
0x13d7   :  { %v4438_v44 = vpop.f32.mrb[66].mxu0 }
0x13d8   :  { %v6067_v10 = vpop.f32.mrb[67].mxu0  ;;  %v4439_v19 = vadd.f32 %v5500_v17, %v4438_v44  ;;  %v5554_v21 = vmul.f32 -1.442695, %v4436_v18 }
0x13da   :  { %v4643_v47 = vpop.f32.mrb[72].mxu1  ;;  %6617 = vpow2.f32 %v5554_v21 }
0x13db   :  { %v4644_v29 = vadd.f32 %v4643_v47, %v4522_v3  ;;  %v4645_v48 = vpop.f32.mrb[73].mxu1 }
0x13dc   :  { %v4646_v49 = vadd.f32 %v4645_v48, %v4526_v46  ;;  %v4647_v50 = vpop.f32.mrb[74].mxu1 }
0x13dd   :  { %v4648_v51 = vadd.f32 %v4647_v50, %v4522_v3  ;;  %v4649_v52 = vpop.f32.mrb[75].mxu1  ;;  %v4652_v54 = vmax.f32 %v4644_v29, 0.0 }
0x13de   :  { %v4650_v53 = vadd.f32 %v4649_v52, %v4526_v46  ;;  %v4653_v56 = vmax.f32 %v4646_v49, 0.0 }
0x13df   :  { %v4654_v55 = vmax.f32 %v4648_v51, 0.0 }
0x13e0   :  { %v4655_v57 = vmax.f32 %v4650_v53, 0.0 }
0x13e1   :  { %v4656_v6 = vpack.c.bf16 %v4654_v55, %v4652_v54 }
0x13e2   :  { %v4657_v58 = vpack.c.bf16 %v4655_v57, %v4653_v56 }
0x13e4   :  { %4825 = vmatprep.mubr.bf16.mxu0 %v4657_v58  ;;  %v6618_v22 = vpop.eup %6617 }
0x13e5   :  { %4826 = vmatmul.mubr.bf16.vlgmr.msra.gmra.mrb[68].mxu0 %v4656_v6  ;;  %v4955_v33 = vadd.f32 1.0, %v6618_v22 }
0x13e6   :  { %6098 = vmatprep.mubr.msk.f32.mxu0 %vm6750_vm0, %v6749_v5  ;;  %v5555_v5 = vmul.f32 -1.442695, %v4439_v19 }
0x13e8   :  { %6619 = vpow2.f32 %v5555_v5 }
0x13e9   :  { %6621 = vrcp.f32 %v4955_v33 }
0x13f2   :  { %v6620_v20 = vpop.eup %6619 }
0x13f3   :  { %v4956_v23 = vadd.f32 1.0, %v6620_v20  ;;  %v6622_v30 = vpop.eup %6621 }
0x13f5   :  { %6623 = vrcp.f32 %v4956_v23 }
0x13ff   :  { %v6624_v35 = vpop.eup %6623 }
0x14b8   :  { %v5823_v61 = vpop.f32.mrb[68].mxu0 }
0x14b9   :  { %v5824_v63 = vpop.f32.mrb[69].mxu0 }
0x14ba   :  { %v5825_v0 = vadd.f32 %v5824_v63, %v5823_v61  ;;  %v5826_v1 = vpop.f32.mrb[70].mxu0 }
0x14bb   :  { %v5827_v7 = vpop.f32.mrb[71].mxu0 }
0x14bc   :  { %v4828_v11 = vadd.f32 %v5825_v0, %v5528_v62  ;;  %v5828_v13 = vadd.f32 %v5827_v7, %v5826_v1 }
0x14be   :  { %v4831_v2 = vadd.f32 %v5828_v13, %v5528_v62  ;;  %v4834_v9 = vmax.f32 %v4828_v11, 0.0 }
0x14c0   :  { %v4835_v14 = vmax.f32 %v4831_v2, 0.0 }
0x14c2   :  { %v4836_v15 = vpack.c.bf16 %v4835_v14, %v4834_v9 }
0x14c4   :  { %6091 = vmatmul.mubr.bf16.vlgmr.msra.gmra.mrb[76].mxu1 %v4836_v15 }
0x1597   :  { %v4942_v24 = vpop.f32.mrb[76].mxu1 }
0x1598   :  { %v4943_v27 = vadd.f32 %v5545_v26, %v4942_v24  ;;  %v6092_v28 = vpop.f32.mrb[77].mxu1 }
0x1599   :  { %v4945_v12 = vpop.f32.mrb[78].mxu1 }
0x159a   :  { %v4961_v31 = vmul.f32 %v6622_v30, %v4943_v27  ;;  %v4946_v32 = vadd.f32 %v5545_v26, %v4945_v12  ;;  %v6093_v34 = vpop.f32.mrb[79].mxu1 }
0x159c   :  { %v4962_v4 = vmul.f32 %v6624_v35, %v4946_v32  ;;  %v4963_v37 = vmul.f32 %v6625_v36, %v4961_v31 }
0x159e   :  { %v4964_v39 = vmul.f32 %v6626_v38, %v4962_v4 }
0x15a0   :  { %v6111_v40 = vpack.c.bf16 %v4964_v39, %v4963_v37 }
0x15a2   :  { %6112 = vmatpush3.bf16.msra.mxu0 %v6111_v40 }
0x15a5   :  { %6099 = vmatmul.mubr.msk.f32.vlgmr.msra.gmra.mrb[72].mxu0 %vm338_vm1, %v7293_v45 }
0x15a6   :  { %6638 = shalt.err (!%p6635_p4)
}
0x15a7   :  { %s7886_s17 = sld [smem:[#allocation67_spill]] }
0x15ad   :  { %s6639_s21 = scalar_lea.hbm %s7886_s17, 32 }
0x15ae   :  { %p6640_p5 = scmp.ne.s32.totalorder %s7886_s17, %s6639_s21  ;;  %p6643_p6 = scmp.lt.u32.totalorder %s6639_s21, %s7886_s17 }
0x15b0   :  { %p6645_p7 = pnand %p6643_p6, %p6640_p5 }
0x15b2   :  { %6648 = shalt.err (!%p6645_p7)
}
0x15b3   :  { %s6756_s25 = smov 16   ;;  %s6757_s29 = smov 1  }
0x15b4   :  { %5075 = dma.vmem_to_hbm [thread:$0]  %s5070_s11, 32, %s7886_s17, [#allocation7], %s6756_s25, %s6756_s25, %s6757_s29  }
0x15b5   :  { %s6649_s3 = scalar_lea.vmem %s7730_s5, 32  ;;  %p6654_p9 = scmp.lt.s32.totalorder %s7730_s5, %s7730_s5 }
0x15b6   :  { %p6650_p8 = scmp.ne.s32.totalorder %s7730_s5, %s6649_s3  ;;  %p6655_p10 = scmp.lt.s32.totalorder %s6649_s3, %s6649_s3 }
0x15b8   :  { %p6656_p11 = por %p6655_p10, %p6654_p9 }
0x15ba   :  { %p6657_p12 = pnand %p6656_p11, %p6650_p8 }
0x15bc   :  { %6660 = shalt.err (!%p6657_p12)
}
0x15bd   :  { %s6661_s8 = scalar_lea.hbm %s7114_s16, 32 }
0x15be   :  { %p6662_p13 = scmp.ne.s32.totalorder %s7114_s16, %s6661_s8  ;;  %p6665_p0 = scmp.lt.u32.totalorder %s6661_s8, %s7114_s16 }
0x15c0   :  { %p6667_p1 = pnand %p6665_p0, %p6662_p13 }
0x15c2   :  { %6670 = shalt.err (!%p6667_p1)
}
0x15c3   :  { %5087 = dma.vmem_to_hbm [thread:$0]  %s7730_s5, 32, %s7114_s16, [#allocation9], %s6756_s25, %s6756_s25, %s6757_s29  }
0x1678   :  { %v5031_v45 = vpop.f32.mrb[72].mxu0 }
0x1679   :  { %v5042_v41 = vrot.slane %v5031_v45, %v7333_v25  ;;  %v6100_v16 = vpop.f32.mrb[73].mxu0 }
0x167b   :  { %v5043_v42 = vcombine.high %v5042_v41, %v5042_v41  ;;  %v5050_v43 = vrot.slane %v5042_v41, %v7333_v25 }
0x167d   :  { %v5057_v44 = vrot.slane %v5043_v42, %v7333_v25  ;;  %5060 = vst.msk [vmem:[%s7119_s22] sm:$0x1] %vm1514_vm5, %v5050_v43 }
0x167f   :  { %5061 = vst.msk [vmem:[%s7119_s22 + $0x1] sm:$0x1] %vm1514_vm5, %v5057_v44 }
0x1680   :  { %6671 = dma.done.wait [#allocation7], 32  }
0x1681   :  { %6672 = vsyncadd [#allocation7], 4294967264 }
0x1682   :  { %6673 = dma.done.wait [#allocation9], 32  }
0x1683   :  { %6674 = vsyncadd [#allocation9], 4294967264 }
0x1684   :  { %5100 = vsyncpa [#allocation7], 1 }
0x1685   :  { %5101 = vsyncpa [#allocation9], 1 }

</bundles_post_ra>
